<compile_context>
chip_gen: v7x
topology: tpu7x:2x2x1
jax: 0.10.0
libtpu: 0.0.40
codegen_flags: <defaults>
</compile_context>

<pallas_src>
import functools

import jax
import jax.numpy as jnp
from jax.experimental import pallas as pl
from jax.experimental.pallas import tpu as pltpu

HIDDEN = 1024
NEG_SLOPE = 0.01  # default negative_slope of nn.LeakyReLU()


def _leaky_relu(y):
    return jnp.where(y > 0, y, NEG_SLOPE * y)


def _round_up(n, m):
    return ((n + m - 1) // m) * m


def res_block_kernel(x_ref, w1_ref, b1_ref, w2_ref, b2_ref, o_ref):
    # x_ref:     (tm, 1024) f32    current batch tile
    # w1/w2_ref: (1024, 1024) bf16 full weight matrices (in x out), resident across the grid
    # b1/b2_ref: (1, 1024) f32     biases
    inp = x_ref[...]                      # f32, kept for the residual add
    x_bf = inp.astype(jnp.bfloat16)       # bf16 only at the MXU input

    h1 = jnp.dot(x_bf, w1_ref[...], preferred_element_type=jnp.float32)
    h1 = _leaky_relu(h1 + b1_ref[...])    # f32 elementwise (v5e VPU has no bf16 path)

    h2 = jnp.dot(h1.astype(jnp.bfloat16), w2_ref[...],
                 preferred_element_type=jnp.float32)
    h2 = _leaky_relu(h2 + b2_ref[...])

    o_ref[...] = (h2 + inp).astype(o_ref.dtype)


def prepare_params(w1, b1, w2, b2):
    """One-time init-path conversion of PyTorch Linear params.

    w1/w2: (out, in) f32 -> pre-transposed (in, out) bf16 (halves weight HBM/VMEM traffic and
    keeps the per-call hot path free of convert ops). b1/b2: (out,) -> (1, out) f32, lane-dense.
    """
    return (jnp.asarray(w1).T.astype(jnp.bfloat16),
            jnp.asarray(b1).reshape(1, -1).astype(jnp.float32),
            jnp.asarray(w2).T.astype(jnp.bfloat16),
            jnp.asarray(b2).reshape(1, -1).astype(jnp.float32))


def _default_tiling():
    """Returns (tm, min_tiles) for the local chip generation."""
    try:
        kind = jax.devices()[0].device_kind.lower()
    except Exception:  # pragma: no cover - fall back to generic defaults
        kind = ""
    if "v5 lite" in kind or "v5e" in kind:
        return 256, 1   # v5e: already MXU-bound at tm=256; larger tiles just add VMEM pressure
    # Chips with 2 TensorCores (v7x, megacore v4/v5p): keep >= 2 batch tiles so the
    # "parallel" grid axis can shard across both cores.
    two_core = any(tag in kind for tag in ("v7", "v5p", "v4"))
    return 512, (2 if two_core else 1)


@functools.partial(jax.jit,
                   static_argnames=("tm", "min_tiles", "single_buffer_weights"))
def _res_block_call(x, w1_bf, b1, w2_bf, b2, *, tm, min_tiles, single_buffer_weights):
    B, D = x.shape
    assert D == HIDDEN, f"res_block expects feature dim {HIDDEN}, got {D}"

    # Balanced batch tiles; no jnp.pad / out[:B] copies.  Pallas masks the partial last
    # tile and garbage rows there are harmless because the op is row-independent.
    n_tiles = max(pl.cdiv(B, tm), min_tiles if B >= 8 * min_tiles else 1)
    tm_eff = _round_up(pl.cdiv(B, n_tiles), 8)
    grid = (pl.cdiv(B, tm_eff),)

    # Resident (constant index_map) blocks: single-buffer them to save ~4 MiB of VMEM.
    resident = {"pipeline_mode": pl.Buffered(1)} if single_buffer_weights else {}

    return pl.pallas_call(
        res_block_kernel,
        out_shape=jax.ShapeDtypeStruct((B, D), x.dtype),
        grid_spec=pltpu.PrefetchScalarGridSpec(
            num_scalar_prefetch=0,
            grid=grid,
            in_specs=[
                pl.BlockSpec((tm_eff, D), lambda i: (i, 0)),          # x tile
                pl.BlockSpec((D, D), lambda i: (0, 0), **resident),   # W1 (in,out) bf16
                pl.BlockSpec((1, D), lambda i: (0, 0), **resident),   # b1
                pl.BlockSpec((D, D), lambda i: (0, 0), **resident),   # W2 (in,out) bf16
                pl.BlockSpec((1, D), lambda i: (0, 0), **resident),   # b2
            ],
            out_specs=pl.BlockSpec((tm_eff, D), lambda i: (i, 0)),
        ),
        compiler_params=pltpu.CompilerParams(
            dimension_semantics=("parallel",),
            vmem_limit_bytes=32 << 20,   # working set <= ~16 MiB even at tm=512
        ),
    )(x, w1_bf, b1, w2_bf, b2)


# Cached capability flag: whether this JAX build accepts pl.Buffered on the outer pallas_call.
_RESIDENT_SINGLE_BUFFER_OK = True


def res_block_forward(x, params, *, tm=None, min_tiles=None):
    """x: (B, 1024) f32. params: output of prepare_params()."""
    global _RESIDENT_SINGLE_BUFFER_OK
    w1_bf, b1, w2_bf, b2 = params
    if tm is None or min_tiles is None:
        d_tm, d_mt = _default_tiling()
        tm = d_tm if tm is None else tm
        min_tiles = d_mt if min_tiles is None else min_tiles

    if _RESIDENT_SINGLE_BUFFER_OK:
        try:
            return _res_block_call(x, w1_bf, b1, w2_bf, b2, tm=tm, min_tiles=min_tiles,
                                   single_buffer_weights=True)
        except Exception:
            # Older/newer JAX builds may reject pipeline_mode on pallas_call BlockSpecs;
            # fall back to default double-buffering (correctness identical, ~4 MiB more VMEM).
            _RESIDENT_SINGLE_BUFFER_OK = False
    return _res_block_call(x, w1_bf, b1, w2_bf, b2, tm=tm, min_tiles=min_tiles,
                           single_buffer_weights=False)


def reference_forward_f32(x, w1, b1, w2, b2):
    h = _leaky_relu(x @ w1.T + b1.reshape(1, -1))
    h = _leaky_relu(h @ w2.T + b2.reshape(1, -1))
    return h + x


def reference_forward_bf16(x, w1, b1, w2, b2):
    # Emulates the kernel's numerics: bf16 MXU operands, f32 accumulation / elementwise.
    h = jnp.dot(x.astype(jnp.bfloat16), w1.T.astype(jnp.bfloat16),
                preferred_element_type=jnp.float32)
    h = _leaky_relu(h + b1.reshape(1, -1))
    h = jnp.dot(h.astype(jnp.bfloat16), w2.T.astype(jnp.bfloat16),
                preferred_element_type=jnp.float32)
    h = _leaky_relu(h + b2.reshape(1, -1))
    return h + x


if __name__ == "__main__":
    key = jax.random.PRNGKey(0)
    k_x1, k_x2, k_w1, k_b1, k_w2, k_b2 = jax.random.split(key, 6)

    # PyTorch Linear layout: W (out, in), b (out,).
    scale = 1.0 / jnp.sqrt(HIDDEN)
    w1 = jax.random.uniform(k_w1, (HIDDEN, HIDDEN), jnp.float32, -scale, scale)
    b1 = jax.random.uniform(k_b1, (HIDDEN,), jnp.float32, -scale, scale)
    w2 = jax.random.uniform(k_w2, (HIDDEN, HIDDEN), jnp.float32, -scale, scale)
    b2 = jax.random.uniform(k_b2, (HIDDEN,), jnp.float32, -scale, scale)

    params = prepare_params(w1, b1, w2, b2)   # one-time bf16 conversion (init path, not per call)

    # Small batch that is NOT a multiple of 8: exercises the masked partial tile (no padding ops).
    x_a = jax.random.normal(k_x1, (4, HIDDEN), dtype=jnp.float32)
    out_a = jax.block_until_ready(res_block_forward(x_a, params))
    assert out_a.shape == (4, HIDDEN)
    assert jnp.allclose(out_a, reference_forward_bf16(x_a, w1, b1, w2, b2),
                        atol=1e-3, rtol=1e-3)
    assert jnp.allclose(out_a, reference_forward_f32(x_a, w1, b1, w2, b2),
                        atol=2e-2, rtol=2e-2)

    # Slightly larger batch: exercises multi-tile grids (>= 2 balanced tiles on 2-core chips).
    x_b = jax.random.normal(k_x2, (24, HIDDEN), dtype=jnp.float32)
    out_b = jax.block_until_ready(res_block_forward(x_b, params))
    assert out_b.shape == (24, HIDDEN)
    assert jnp.allclose(out_b, reference_forward_bf16(x_b, w1, b1, w2, b2),
                        atol=1e-3, rtol=1e-3)
    assert jnp.allclose(out_b, reference_forward_f32(x_b, w1, b1, w2, b2),
                        atol=2e-2, rtol=2e-2)

    print("KERNEL_OK")
</pallas_src>

<mosaic_0001>
module attributes {stable_mosaic.version = 11 : i64} {
  func.func @res_block_kernel(%arg0: i32, %arg1: memref<8x1024xf32, #tpu.memory_space<vmem>>, %arg2: memref<1024x1024xbf16, #tpu.memory_space<vmem>>, %arg3: memref<1x1024xf32, #tpu.memory_space<vmem>>, %arg4: memref<1024x1024xbf16, #tpu.memory_space<vmem>>, %arg5: memref<1x1024xf32, #tpu.memory_space<vmem>>, %arg6: memref<8x1024xf32, #tpu.memory_space<vmem>>) attributes {dimension_semantics = [#tpu.dimension_semantics<parallel>], iteration_bounds = array<i64: 1>, scalar_prefetch = 0 : i64, scratch_operands = 0 : i64, tpu.core_type = #tpu.core_type<tc>, window_params = [{transform_indices = @transform_0, window_bounds = array<i64: 8, 1024>}, {pipeline_mode = #tpu.pipeline_mode<synchronous>, transform_indices = @transform_1, window_bounds = array<i64: 1024, 1024>}, {pipeline_mode = #tpu.pipeline_mode<synchronous>, transform_indices = @transform_2, window_bounds = array<i64: 1, 1024>}, {pipeline_mode = #tpu.pipeline_mode<synchronous>, transform_indices = @transform_3, window_bounds = array<i64: 1024, 1024>}, {pipeline_mode = #tpu.pipeline_mode<synchronous>, transform_indices = @transform_4, window_bounds = array<i64: 1, 1024>}, {transform_indices = @transform_5, window_bounds = array<i64: 8, 1024>}]} {
    %c0 = arith.constant 0 : index
    %c0_0 = arith.constant 0 : index
    %0 = vector.load %arg1[%c0, %c0_0] : memref<8x1024xf32, #tpu.memory_space<vmem>>, vector<8x1024xf32>
    %1 = arith.truncf %0 : vector<8x1024xf32> to vector<8x1024xbf16>
    %c0_1 = arith.constant 0 : index
    %c0_2 = arith.constant 0 : index
    %2 = vector.load %arg2[%c0_1, %c0_2] : memref<1024x1024xbf16, #tpu.memory_space<vmem>>, vector<1024x1024xbf16>
    %cst = arith.constant dense<0.000000e+00> : vector<8x1024xf32>
    %3 = tpu.matmul %1, %2, %cst {dimension_numbers = #tpu.dot_dimension_numbers<[1], [0], [0], [1], [0, 0, 1, 1], [], []>} : vector<8x1024xbf16>, vector<1024x1024xbf16>, vector<8x1024xf32> -> vector<8x1024xf32>
    %c0_3 = arith.constant 0 : index
    %c0_4 = arith.constant 0 : index
    %4 = vector.load %arg3[%c0_3, %c0_4] : memref<1x1024xf32, #tpu.memory_space<vmem>>, vector<1x1024xf32>
    %5 = vector.broadcast %4 : vector<1x1024xf32> to vector<8x1024xf32>
    %6 = arith.addf %3, %5 : vector<8x1024xf32>
    %cst_5 = arith.constant 0.000000e+00 : f32
    %7 = vector.broadcast %cst_5 : f32 to vector<8x1024xf32>
    %8 = arith.cmpf ogt, %6, %7 : vector<8x1024xf32>
    %cst_6 = arith.constant 0.00999999977 : f32
    %9 = vector.broadcast %cst_6 : f32 to vector<8x1024xf32>
    %10 = arith.mulf %9, %6 : vector<8x1024xf32>
    %11 = arith.select %8, %6, %10 : vector<8x1024xi1>, vector<8x1024xf32>
    %12 = arith.truncf %11 : vector<8x1024xf32> to vector<8x1024xbf16>
    %c0_7 = arith.constant 0 : index
    %c0_8 = arith.constant 0 : index
    %13 = vector.load %arg4[%c0_7, %c0_8] : memref<1024x1024xbf16, #tpu.memory_space<vmem>>, vector<1024x1024xbf16>
    %cst_9 = arith.constant dense<0.000000e+00> : vector<8x1024xf32>
    %14 = tpu.matmul %12, %13, %cst_9 {dimension_numbers = #tpu.dot_dimension_numbers<[1], [0], [0], [1], [0, 0, 1, 1], [], []>} : vector<8x1024xbf16>, vector<1024x1024xbf16>, vector<8x1024xf32> -> vector<8x1024xf32>
    %c0_10 = arith.constant 0 : index
    %c0_11 = arith.constant 0 : index
    %15 = vector.load %arg5[%c0_10, %c0_11] : memref<1x1024xf32, #tpu.memory_space<vmem>>, vector<1x1024xf32>
    %16 = vector.broadcast %15 : vector<1x1024xf32> to vector<8x1024xf32>
    %17 = arith.addf %14, %16 : vector<8x1024xf32>
    %cst_12 = arith.constant 0.000000e+00 : f32
    %18 = vector.broadcast %cst_12 : f32 to vector<8x1024xf32>
    %19 = arith.cmpf ogt, %17, %18 : vector<8x1024xf32>
    %cst_13 = arith.constant 0.00999999977 : f32
    %20 = vector.broadcast %cst_13 : f32 to vector<8x1024xf32>
    %21 = arith.mulf %20, %17 : vector<8x1024xf32>
    %22 = arith.select %19, %17, %21 : vector<8x1024xi1>, vector<8x1024xf32>
    %23 = arith.addf %22, %0 : vector<8x1024xf32>
    %c0_14 = arith.constant 0 : index
    %c0_15 = arith.constant 0 : index
    %24 = vector.load %arg6[%c0_14, %c0_15] : memref<8x1024xf32, #tpu.memory_space<vmem>>, vector<8x1024xf32>
    tpu.vector_store %arg6[%c0_14, %c0_15], %23 {strides = array<i32>} : memref<8x1024xf32, #tpu.memory_space<vmem>>, vector<8x1024xf32>,
    return
  }
  func.func @transform_0(%arg0: i32) -> (i32, i32) {
    %c0_i32 = arith.constant 0 : i32
    %c0_i32_0 = arith.constant 0 : i32
    return %arg0, %c0_i32 : i32, i32
  }
  func.func @transform_1(%arg0: i32) -> (i32, i32) {
    %c0_i32 = arith.constant 0 : i32
    %c0_i32_0 = arith.constant 0 : i32
    %c0_i32_1 = arith.constant 0 : i32
    return %c0_i32, %c0_i32_0 : i32, i32
  }
  func.func @transform_2(%arg0: i32) -> (i32, i32) {
    %c0_i32 = arith.constant 0 : i32
    %c0_i32_0 = arith.constant 0 : i32
    %c0_i32_1 = arith.constant 0 : i32
    return %c0_i32, %c0_i32_0 : i32, i32
  }
  func.func @transform_3(%arg0: i32) -> (i32, i32) {
    %c0_i32 = arith.constant 0 : i32
    %c0_i32_0 = arith.constant 0 : i32
    %c0_i32_1 = arith.constant 0 : i32
    return %c0_i32, %c0_i32_0 : i32, i32
  }
  func.func @transform_4(%arg0: i32) -> (i32, i32) {
    %c0_i32 = arith.constant 0 : i32
    %c0_i32_0 = arith.constant 0 : i32
    %c0_i32_1 = arith.constant 0 : i32
    return %c0_i32, %c0_i32_0 : i32, i32
  }
  func.func @transform_5(%arg0: i32) -> (i32, i32) {
    %c0_i32 = arith.constant 0 : i32
    %c0_i32_0 = arith.constant 0 : i32
    return %arg0, %c0_i32 : i32, i32
  }
}

module attributes {stable_mosaic.version = 11 : i64} {
  func.func @res_block_kernel(%arg0: i32, %arg1: memref<8x1024xf32, #tpu.memory_space<vmem>>, %arg2: memref<1024x1024xbf16, #tpu.memory_space<vmem>>, %arg3: memref<1x1024xf32, #tpu.memory_space<vmem>>, %arg4: memref<1024x1024xbf16, #tpu.memory_space<vmem>>, %arg5: memref<1x1024xf32, #tpu.memory_space<vmem>>, %arg6: memref<8x1024xf32, #tpu.memory_space<vmem>>) attributes {dimension_semantics = [#tpu.dimension_semantics<parallel>], iteration_bounds = array<i64: 1>, scalar_prefetch = 0 : i64, scratch_operands = 0 : i64, tpu.core_type = #tpu.core_type<tc>, window_params = [{transform_indices = @transform_0, window_bounds = array<i64: 8, 1024>}, {pipeline_mode = #tpu.pipeline_mode<synchronous>, transform_indices = @transform_1, window_bounds = array<i64: 1024, 1024>}, {pipeline_mode = #tpu.pipeline_mode<synchronous>, transform_indices = @transform_2, window_bounds = array<i64: 1, 1024>}, {pipeline_mode = #tpu.pipeline_mode<synchronous>, transform_indices = @transform_3, window_bounds = array<i64: 1024, 1024>}, {pipeline_mode = #tpu.pipeline_mode<synchronous>, transform_indices = @transform_4, window_bounds = array<i64: 1, 1024>}, {transform_indices = @transform_5, window_bounds = array<i64: 8, 1024>}]} {
    %c0 = arith.constant 0 : index
    %c0_0 = arith.constant 0 : index
    %0 = vector.load %arg1[%c0, %c0_0] : memref<8x1024xf32, #tpu.memory_space<vmem>>, vector<8x1024xf32>
    %1 = arith.truncf %0 : vector<8x1024xf32> to vector<8x1024xbf16>
    %c0_1 = arith.constant 0 : index
    %c0_2 = arith.constant 0 : index
    %2 = vector.load %arg2[%c0_1, %c0_2] : memref<1024x1024xbf16, #tpu.memory_space<vmem>>, vector<1024x1024xbf16>
    %cst = arith.constant dense<0.000000e+00> : vector<8x1024xf32>
    %3 = tpu.matmul %1, %2, %cst {dimension_numbers = #tpu.dot_dimension_numbers<[1], [0], [0], [1], [0, 0, 1, 1], [], []>} : vector<8x1024xbf16>, vector<1024x1024xbf16>, vector<8x1024xf32> -> vector<8x1024xf32>
    %c0_3 = arith.constant 0 : index
    %c0_4 = arith.constant 0 : index
    %4 = vector.load %arg3[%c0_3, %c0_4] : memref<1x1024xf32, #tpu.memory_space<vmem>>, vector<1x1024xf32>
    %5 = vector.broadcast %4 : vector<1x1024xf32> to vector<8x1024xf32>
    %6 = arith.addf %3, %5 : vector<8x1024xf32>
    %cst_5 = arith.constant 0.000000e+00 : f32
    %7 = vector.broadcast %cst_5 : f32 to vector<8x1024xf32>
    %8 = arith.cmpf ogt, %6, %7 : vector<8x1024xf32>
    %cst_6 = arith.constant 0.00999999977 : f32
    %9 = vector.broadcast %cst_6 : f32 to vector<8x1024xf32>
    %10 = arith.mulf %9, %6 : vector<8x1024xf32>
    %11 = arith.select %8, %6, %10 : vector<8x1024xi1>, vector<8x1024xf32>
    %12 = arith.truncf %11 : vector<8x1024xf32> to vector<8x1024xbf16>
    %c0_7 = arith.constant 0 : index
    %c0_8 = arith.constant 0 : index
    %13 = vector.load %arg4[%c0_7, %c0_8] : memref<1024x1024xbf16, #tpu.memory_space<vmem>>, vector<1024x1024xbf16>
    %cst_9 = arith.constant dense<0.000000e+00> : vector<8x1024xf32>
    %14 = tpu.matmul %12, %13, %cst_9 {dimension_numbers = #tpu.dot_dimension_numbers<[1], [0], [0], [1], [0, 0, 1, 1], [], []>} : vector<8x1024xbf16>, vector<1024x1024xbf16>, vector<8x1024xf32> -> vector<8x1024xf32>
    %c0_10 = arith.constant 0 : index
    %c0_11 = arith.constant 0 : index
    %15 = vector.load %arg5[%c0_10, %c0_11] : memref<1x1024xf32, #tpu.memory_space<vmem>>, vector<1x1024xf32>
    %16 = vector.broadcast %15 : vector<1x1024xf32> to vector<8x1024xf32>
    %17 = arith.addf %14, %16 : vector<8x1024xf32>
    %cst_12 = arith.constant 0.000000e+00 : f32
    %18 = vector.broadcast %cst_12 : f32 to vector<8x1024xf32>
    %19 = arith.cmpf ogt, %17, %18 : vector<8x1024xf32>
    %cst_13 = arith.constant 0.00999999977 : f32
    %20 = vector.broadcast %cst_13 : f32 to vector<8x1024xf32>
    %21 = arith.mulf %20, %17 : vector<8x1024xf32>
    %22 = arith.select %19, %17, %21 : vector<8x1024xi1>, vector<8x1024xf32>
    %23 = arith.addf %22, %0 : vector<8x1024xf32>
    %c0_14 = arith.constant 0 : index
    %c0_15 = arith.constant 0 : index
    %24 = vector.load %arg6[%c0_14, %c0_15] : memref<8x1024xf32, #tpu.memory_space<vmem>>, vector<8x1024xf32>
    tpu.vector_store %arg6[%c0_14, %c0_15], %23 {strides = array<i32>} : memref<8x1024xf32, #tpu.memory_space<vmem>>, vector<8x1024xf32>,
    return
  }
  func.func @transform_0(%arg0: i32) -> (i32, i32) {
    %c0_i32 = arith.constant 0 : i32
    %c0_i32_0 = arith.constant 0 : i32
    return %arg0, %c0_i32 : i32, i32
  }
  func.func @transform_1(%arg0: i32) -> (i32, i32) {
    %c0_i32 = arith.constant 0 : i32
    %c0_i32_0 = arith.constant 0 : i32
    %c0_i32_1 = arith.constant 0 : i32
    return %c0_i32, %c0_i32_0 : i32, i32
  }
  func.func @transform_2(%arg0: i32) -> (i32, i32) {
    %c0_i32 = arith.constant 0 : i32
    %c0_i32_0 = arith.constant 0 : i32
    %c0_i32_1 = arith.constant 0 : i32
    return %c0_i32, %c0_i32_0 : i32, i32
  }
  func.func @transform_3(%arg0: i32) -> (i32, i32) {
    %c0_i32 = arith.constant 0 : i32
    %c0_i32_0 = arith.constant 0 : i32
    %c0_i32_1 = arith.constant 0 : i32
    return %c0_i32, %c0_i32_0 : i32, i32
  }
  func.func @transform_4(%arg0: i32) -> (i32, i32) {
    %c0_i32 = arith.constant 0 : i32
    %c0_i32_0 = arith.constant 0 : i32
    %c0_i32_1 = arith.constant 0 : i32
    return %c0_i32, %c0_i32_0 : i32, i32
  }
  func.func @transform_5(%arg0: i32) -> (i32, i32) {
    %c0_i32 = arith.constant 0 : i32
    %c0_i32_0 = arith.constant 0 : i32
    return %arg0, %c0_i32 : i32, i32
  }
}

</mosaic_0001>

<bundles_post_ra>
// kernel: _res_block_call.1
= control target key start
LH: loop header
LB: loop body
LE: loop exit
PB: predicated region body
PF: predicated region fallthrough
CT: control target
= control target key end

     0   :  { %10 = vsyncpa [#allocation3], 0  ;;  %s9453_s0 = inlined_call_operand.hbm [shape: f32[4,1024], index: 0, kind: input, shape index: {}]   ;;  %s9454_s1 = inlined_call_operand.hbm [shape: bf16[1024,1024], index: 1, kind: input, shape index: {}]   ;;  %s9455_s2 = inlined_call_operand.hbm [shape: f32[1,1024], index: 2, kind: input, shape index: {}]   ;;  %s9456_s3 = inlined_call_operand.hbm [shape: bf16[1024,1024], index: 3, kind: input, shape index: {}]   ;;  %s9457_s4 = inlined_call_operand.hbm [shape: f32[1,1024], index: 4, kind: input, shape index: {}]   ;;  %s9458_s5 = inlined_call_operand.hbm [shape: f32[4,1024], index: 5, kind: output, shape index: {}]  }
   0x1   :  { %11 = vsyncpa [#allocation6], 0 }
   0x2   :  { %12 = vsyncpa [#allocation9], 0 }
   0x3   :  { %13 = vsyncpa [#allocation4], 0 }
   0x4   :  { %18 = vsyncadd [#allocation3], 512  ;;  %s9065_s18 = smov [#allocation5]   ;;  %s9066_s20 = smov [#allocation8]  }
   0x5   :  { %s31_s19 = sshll.u32 %s9065_s18, 4  ;;  %s53_s21 = sshll.u32 %s9066_s20, 4  ;;  %s32_s19 = int_to_ptr.vmem [resolvable:$true] %s31_s19  ;;  %s9103_s21 = int_to_ptr.vmem [resolvable:$true] %s53_s21 }
   0x6   :  { %s8925_s24 = scalar_lea.hbm %s9454_s1, 65536 }
   0x7   :  { %p8926_p0 = scmp.ne.s32.totalorder %s9454_s1, %s8925_s24  ;;  %p8929_p1 = scmp.lt.u32.totalorder %s8925_s24, %s9454_s1 }
   0x9   :  { %p8931_p2 = pnand %p8929_p1, %p8926_p0 }
   0xb   :  { %8934 = shalt.err (!%p8931_p2)
}
   0xc   :  { %s8935_s29 = scalar_lea.vmem %s32_s19, 65536  ;;  %p8940_p4 = scmp.lt.s32.totalorder %s32_s19, %s32_s19 }
   0xd   :  { %p8936_p3 = scmp.ne.s32.totalorder %s32_s19, %s8935_s29  ;;  %p8941_p5 = scmp.lt.s32.totalorder %s8935_s29, %s8935_s29 }
   0xf   :  { %p8942_p6 = por %p8941_p5, %p8940_p4 }
  0x11   :  { %p8943_p7 = pnand %p8942_p6, %p8936_p3 }
  0x13   :  { %8946 = shalt.err (!%p8943_p7)
}
  0x14   :  { %s9067_s30 = smov 512   ;;  %s9068_s6 = smov 32  }
  0x15   :  { %37 = dma.hbm_to_vmem [thread:$0]  %s9454_s1, 65536, %s32_s19, [#allocation6], %s9067_s30, %s9067_s30, %s9068_s6  }
  0x16   :  { %s8947_s11 = scalar_lea.hbm %s9456_s3, 65536 }
  0x17   :  { %p8948_p8 = scmp.ne.s32.totalorder %s9456_s3, %s8947_s11  ;;  %p8951_p9 = scmp.lt.u32.totalorder %s8947_s11, %s9456_s3 }
  0x19   :  { %p8953_p10 = pnand %p8951_p9, %p8948_p8 }
  0x1b   :  { %8956 = shalt.err (!%p8953_p10)
}
  0x1c   :  { %s8957_s16 = scalar_lea.vmem %s9103_s21, 65536  ;;  %p8962_p12 = scmp.lt.s32.totalorder %s9103_s21, %s9103_s21 }
  0x1d   :  { %p8958_p11 = scmp.ne.s32.totalorder %s9103_s21, %s8957_s16  ;;  %p8963_p13 = scmp.lt.s32.totalorder %s8957_s16, %s8957_s16 }
  0x1f   :  { %p8964_p0 = por %p8963_p13, %p8962_p12 }
  0x21   :  { %p8965_p1 = pnand %p8964_p0, %p8958_p11 }
  0x23   :  { %8968 = shalt.err (!%p8965_p1)
}
  0x24   :  { %59 = dma.hbm_to_vmem [thread:$0]  %s9456_s3, 65536, %s9103_s21, [#allocation9], %s9067_s30, %s9067_s30, %s9068_s6  }
  0x25   :  { %s9069_s18 = smov [#allocation2]   ;;  %s9070_s20 = smov [#allocation7]  }
  0x26   :  { %s19_s19 = sshll.u32 %s9069_s18, 4  ;;  %s44_s22 = sshll.u32 %s9070_s20, 4  ;;  %s20_s19 = int_to_ptr.vmem [resolvable:$true] %s19_s19  ;;  %s45_s22 = int_to_ptr.vmem [resolvable:$true] %s44_s22 }
  0x27   :  { %s8969_s25 = scalar_lea.hbm %s9453_s0, 512 }
  0x28   :  { %p8970_p2 = scmp.ne.s32.totalorder %s9453_s0, %s8969_s25  ;;  %p8973_p3 = scmp.lt.u32.totalorder %s8969_s25, %s9453_s0 }
  0x2a   :  { %p8975_p4 = pnand %p8973_p3, %p8970_p2 }
  0x2c   :  { %8978 = shalt.err (!%p8975_p4)
}
  0x2d   :  { %s8979_s3 = scalar_lea.vmem %s20_s19, 512  ;;  %s8983_s21 = scalar_lea.vmem %s20_s19, 1024 }
  0x2e   :  { %p8980_p5 = scmp.ne.s32.totalorder %s20_s19, %s8979_s3  ;;  %p8984_p6 = scmp.lt.s32.totalorder %s20_s19, %s20_s19 }
  0x2f   :  { %p8985_p7 = scmp.lt.s32.totalorder %s8983_s21, %s8979_s3 }
  0x31   :  { %p8986_p8 = por %p8985_p7, %p8984_p6 }
  0x33   :  { %p8987_p9 = pnand %p8986_p8, %p8980_p5 }
  0x35   :  { %8990 = shalt.err (!%p8987_p9)
}
  0x36   :  { %25 = dma.hbm_to_vmem [thread:$0]  %s9453_s0, 512, %s20_s19, [#allocation3], %s9067_s30, %s9067_s30, %s9068_s6  }
  0x37   :  { %s8991_s11 = scalar_lea.hbm %s9455_s2, 128 }
  0x38   :  { %p8992_p10 = scmp.ne.s32.totalorder %s9455_s2, %s8991_s11  ;;  %p8995_p11 = scmp.lt.u32.totalorder %s8991_s11, %s9455_s2 }
  0x3a   :  { %p8997_p12 = pnand %p8995_p11, %p8992_p10 }
  0x3c   :  { %9000 = shalt.err (!%p8997_p12)
}
  0x3d   :  { %s9001_s16 = scalar_lea.vmem %s45_s22, 128  ;;  %p9006_p0 = scmp.lt.s32.totalorder %s45_s22, %s45_s22 }
  0x3e   :  { %p9002_p13 = scmp.ne.s32.totalorder %s45_s22, %s9001_s16  ;;  %p9007_p1 = scmp.lt.s32.totalorder %s9001_s16, %s9001_s16 }
  0x40   :  { %p9008_p2 = por %p9007_p1, %p9006_p0 }
  0x42   :  { %p9009_p3 = pnand %p9008_p2, %p9002_p13 }
  0x44   :  { %9012 = shalt.err (!%p9009_p3)
}
  0x45   :  { %47 = dma.hbm_to_vmem [thread:$0]  %s9455_s2, 128, %s45_s22, [#allocation6]  }
  0x46   :  { %s9071_s17 = smov [#allocation10]   ;;  %s9013_s23 = scalar_lea.hbm %s9457_s4, 128 }
  0x47   :  { %s66_s18 = sshll.u32 %s9071_s17, 4  ;;  %p9014_p4 = scmp.ne.s32.totalorder %s9457_s4, %s9013_s23  ;;  %s67_s18 = int_to_ptr.vmem [resolvable:$true] %s66_s18 }
  0x48   :  { %p9017_p5 = scmp.lt.u32.totalorder %s9013_s23, %s9457_s4 }
  0x4a   :  { %p9019_p6 = pnand %p9017_p5, %p9014_p4 }
  0x4c   :  { %9022 = shalt.err (!%p9019_p6)
}
  0x4d   :  { %s9023_s28 = scalar_lea.vmem %s67_s18, 128  ;;  %p9028_p8 = scmp.lt.s32.totalorder %s67_s18, %s67_s18 }
  0x4e   :  { %p9024_p7 = scmp.ne.s32.totalorder %s67_s18, %s9023_s28  ;;  %p9029_p9 = scmp.lt.s32.totalorder %s9023_s28, %s9023_s28 }
  0x50   :  { %p9030_p10 = por %p9029_p9, %p9028_p8 }
  0x52   :  { %p9031_p11 = pnand %p9030_p10, %p9024_p7 }
  0x54   :  { %9034 = shalt.err (!%p9031_p11)
}
  0x55   :  { %69 = dma.hbm_to_vmem [thread:$0]  %s9457_s4, 128, %s67_s18, [#allocation9]  }
  0x56   :  { %9057 = dma.done.wait [#allocation3], 1024  }
  0x57   :  { %9058 = vsyncadd [#allocation3], 4294966272 }
  0x58   :  { %9059 = dma.done.wait [#allocation6], 65664  }
  0x59   :  { %9060 = vsyncadd [#allocation6], 4294901632 }
  0x5a   :  { %9061 = dma.done.wait [#allocation9], 65664  }
  0x5b   :  { %9062 = vsyncadd [#allocation9], 4294901632  ;;  %v125_v0 = vld [vmem:[#allocation5] sm:$0xff]  ;;  %v126_v2 = vld [vmem:[#allocation5 + $0x8] sm:$0xff] }
  0x5c   :  { %v129_v1 = vld [vmem:[#allocation5 + $0x20] sm:$0xff]  ;;  %v130_v4 = vld [vmem:[#allocation5 + $0x28] sm:$0xff] }
  0x5d   :  { %v7781_v3 = vcombine.high %v125_v0, %v129_v1  ;;  %v7780_v5 = vcombine.low %v125_v0, %v129_v1  ;;  %v133_v6 = vld [vmem:[#allocation5 + $0x40] sm:$0xff]  ;;  %v7783_v8 = vcombine.high %v126_v2, %v130_v4  ;;  %v7782_v9 = vcombine.low %v126_v2, %v130_v4  ;;  %v134_v11 = vld [vmem:[#allocation5 + $0x48] sm:$0xff] }
  0x5e   :  { %v137_v7 = vld [vmem:[#allocation5 + $0x60] sm:$0xff]  ;;  %v138_v12 = vld [vmem:[#allocation5 + $0x68] sm:$0xff] }
  0x5f   :  { %v7789_v10 = vcombine.high %v133_v6, %v137_v7  ;;  %v141_v13 = vld [vmem:[#allocation5 + $0x80] sm:$0xff]  ;;  %3239 = vmatprep.subr.bf16.mxu0 %v7781_v3  ;;  %v7791_v14 = vcombine.high %v134_v11, %v138_v12  ;;  %v142_v16 = vld [vmem:[#allocation5 + $0x88] sm:$0xff]  ;;  %3403 = vmatprep.subr.bf16.mxu1 %v7783_v8  ;;  %v7788_v18 = vcombine.low %v133_v6, %v137_v7 }
  0x60   :  { %v145_v15 = vld [vmem:[#allocation5 + $0xa0] sm:$0xff]  ;;  %v146_v17 = vld [vmem:[#allocation5 + $0xa8] sm:$0xff]  ;;  %3240 = vmatpush1.bf16.msra.mxu0 %v7780_v5  ;;  %3404 = vmatpush1.bf16.msra.mxu1 %v7782_v9  ;;  %v7790_v19 = vcombine.low %v134_v11, %v138_v12 }
  0x61   :  { %3241 = vmatprep.subr.bf16.mxu0 %v7789_v10  ;;  %v7797_v20 = vcombine.high %v141_v13, %v145_v15  ;;  %3405 = vmatprep.subr.bf16.mxu1 %v7791_v14  ;;  %v7799_v21 = vcombine.high %v142_v16, %v146_v17  ;;  %v149_v22 = vld [vmem:[#allocation5 + $0xc0] sm:$0xff]  ;;  %v150_v24 = vld [vmem:[#allocation5 + $0xc8] sm:$0xff]  ;;  %v7796_v26 = vcombine.low %v141_v13, %v145_v15 }
  0x62   :  { %v153_v23 = vld [vmem:[#allocation5 + $0xe0] sm:$0xff]  ;;  %v154_v25 = vld [vmem:[#allocation5 + $0xe8] sm:$0xff]  ;;  %v7798_v27 = vcombine.low %v142_v16, %v146_v17 }
  0x63   :  { %v7805_v28 = vcombine.high %v149_v22, %v153_v23  ;;  %v7807_v29 = vcombine.high %v150_v24, %v154_v25  ;;  %v157_v30 = vld [vmem:[#allocation5 + $0x100] sm:$0xff]  ;;  %v158_v32 = vld [vmem:[#allocation5 + $0x108] sm:$0xff]  ;;  %v7804_v34 = vcombine.low %v149_v22, %v153_v23  ;;  %v7806_v35 = vcombine.low %v150_v24, %v154_v25 }
  0x64   :  { %3242 = vmatpush1.bf16.msra.mxu0 %v7788_v18  ;;  %3406 = vmatpush1.bf16.msra.mxu1 %v7790_v19  ;;  %v161_v31 = vld [vmem:[#allocation5 + $0x120] sm:$0xff]  ;;  %v162_v33 = vld [vmem:[#allocation5 + $0x128] sm:$0xff] }
  0x65   :  { %3243 = vmatprep.subr.bf16.mxu0 %v7797_v20  ;;  %3407 = vmatprep.subr.bf16.mxu1 %v7799_v21  ;;  %v7813_v36 = vcombine.high %v157_v30, %v161_v31  ;;  %v7815_v37 = vcombine.high %v158_v32, %v162_v33  ;;  %v165_v38 = vld [vmem:[#allocation5 + $0x140] sm:$0xff]  ;;  %v166_v40 = vld [vmem:[#allocation5 + $0x148] sm:$0xff]  ;;  %v7812_v42 = vcombine.low %v157_v30, %v161_v31 }
  0x66   :  { %v169_v39 = vld [vmem:[#allocation5 + $0x160] sm:$0xff]  ;;  %v170_v41 = vld [vmem:[#allocation5 + $0x168] sm:$0xff]  ;;  %v7814_v43 = vcombine.low %v158_v32, %v162_v33 }
  0x67   :  { %v7821_v44 = vcombine.high %v165_v38, %v169_v39  ;;  %v7823_v45 = vcombine.high %v166_v40, %v170_v41  ;;  %v173_v46 = vld [vmem:[#allocation5 + $0x180] sm:$0xff]  ;;  %v174_v48 = vld [vmem:[#allocation5 + $0x188] sm:$0xff]  ;;  %v7820_v50 = vcombine.low %v165_v38, %v169_v39  ;;  %v7822_v51 = vcombine.low %v166_v40, %v170_v41 }
  0x68   :  { %3244 = vmatpush1.bf16.msra.mxu0 %v7796_v26  ;;  %3408 = vmatpush1.bf16.msra.mxu1 %v7798_v27  ;;  %v177_v47 = vld [vmem:[#allocation5 + $0x1a0] sm:$0xff]  ;;  %v178_v49 = vld [vmem:[#allocation5 + $0x1a8] sm:$0xff] }
  0x69   :  { %3245 = vmatprep.subr.bf16.mxu0 %v7805_v28  ;;  %3409 = vmatprep.subr.bf16.mxu1 %v7807_v29  ;;  %v7829_v52 = vcombine.high %v173_v46, %v177_v47  ;;  %v9179_v53 = vld [vmem:[#allocation2] sm:$0xff]  ;;  %v7831_v55 = vcombine.high %v174_v48, %v178_v49  ;;  %v182_v59 = vld [vmem:[#allocation5 + $0x1c8] sm:$0xff]  ;;  %v7828_v61 = vcombine.low %v173_v46, %v177_v47 }
  0x6a   :  { %v9181_v54 = vld [vmem:[#allocation2 + $0x20] sm:$0xff]  ;;  %v186_v60 = vld [vmem:[#allocation5 + $0x1e8] sm:$0xff]  ;;  %v7830_v63 = vcombine.low %v174_v48, %v178_v49 }
  0x6b   :  { %v181_v56 = vld [vmem:[#allocation5 + $0x1c0] sm:$0xff]  ;;  %v9185_v58 = vcombine.high %v9179_v53, %v9181_v54  ;;  %v7839_v1 = vcombine.high %v182_v59, %v186_v60  ;;  %v190_v4 = vld [vmem:[#allocation5 + $0x208] sm:$0xff]  ;;  %v7838_v7 = vcombine.low %v182_v59, %v186_v60 }
  0x6c   :  { %3246 = vmatpush1.bf16.msra.mxu0 %v7804_v34  ;;  %3410 = vmatpush1.bf16.msra.mxu1 %v7806_v35  ;;  %v185_v57 = vld [vmem:[#allocation5 + $0x1e0] sm:$0xff]  ;;  %v194_v5 = vld [vmem:[#allocation5 + $0x228] sm:$0xff] }
  0x6d   :  { %3247 = vmatprep.subr.bf16.mxu0 %v7813_v36  ;;  %3411 = vmatprep.subr.bf16.mxu1 %v7815_v37  ;;  %v9189_v62 = vpack.c.bf16 %v9185_v58, %v9185_v58  ;;  %v7837_v0 = vcombine.high %v181_v56, %v185_v57  ;;  %v189_v2 = vld [vmem:[#allocation5 + $0x200] sm:$0xff]  ;;  %v7836_v6 = vcombine.low %v181_v56, %v185_v57  ;;  %v198_v12 = vld [vmem:[#allocation5 + $0x248] sm:$0xff] }
  0x6e   :  { %v193_v3 = vld [vmem:[#allocation5 + $0x220] sm:$0xff]  ;;  %v7847_v9 = vcombine.high %v190_v4, %v194_v5  ;;  %v202_v13 = vld [vmem:[#allocation5 + $0x268] sm:$0xff]  ;;  %v7846_v15 = vcombine.low %v190_v4, %v194_v5 }
  0x6f   :  { %3271 = vmatprep.mubr.bf16.mxu0 %v9189_v62  ;;  %3435 = vmatprep.mubr.bf16.mxu1 %v9189_v62  ;;  %v7845_v8 = vcombine.high %v189_v2, %v193_v3  ;;  %v197_v10 = vld [vmem:[#allocation5 + $0x240] sm:$0xff]  ;;  %v7844_v14 = vcombine.low %v189_v2, %v193_v3  ;;  %v7855_v17 = vcombine.high %v198_v12, %v202_v13  ;;  %v206_v20 = vld [vmem:[#allocation5 + $0x288] sm:$0xff] }
  0x70   :  { %3248 = vmatpush1.bf16.msra.mxu0 %v7812_v42  ;;  %3412 = vmatpush1.bf16.msra.mxu1 %v7814_v43  ;;  %v201_v11 = vld [vmem:[#allocation5 + $0x260] sm:$0xff]  ;;  %v210_v21 = vld [vmem:[#allocation5 + $0x2a8] sm:$0xff]  ;;  %v7854_v23 = vcombine.low %v198_v12, %v202_v13 }
  0x71   :  { %3249 = vmatprep.subr.bf16.mxu0 %v7821_v44  ;;  %3413 = vmatprep.subr.bf16.mxu1 %v7823_v45  ;;  %v7853_v16 = vcombine.high %v197_v10, %v201_v11  ;;  %v205_v18 = vld [vmem:[#allocation5 + $0x280] sm:$0xff]  ;;  %v7852_v22 = vcombine.low %v197_v10, %v201_v11  ;;  %v7863_v25 = vcombine.high %v206_v20, %v210_v21  ;;  %v214_v28 = vld [vmem:[#allocation5 + $0x2c8] sm:$0xff] }
  0x72   :  { %v209_v19 = vld [vmem:[#allocation5 + $0x2a0] sm:$0xff]  ;;  %v218_v29 = vld [vmem:[#allocation5 + $0x2e8] sm:$0xff]  ;;  %v7862_v31 = vcombine.low %v206_v20, %v210_v21  ;;  %v9195_v10 = vcombine.low %v9179_v53, %v9181_v54 }
  0x73   :  { %v7861_v24 = vcombine.high %v205_v18, %v209_v19  ;;  %v213_v26 = vld [vmem:[#allocation5 + $0x2c0] sm:$0xff]  ;;  %v7860_v30 = vcombine.low %v205_v18, %v209_v19  ;;  %v7871_v33 = vcombine.high %v214_v28, %v218_v29  ;;  %v222_v36 = vld [vmem:[#allocation5 + $0x308] sm:$0xff]  ;;  %v7870_v39 = vcombine.low %v214_v28, %v218_v29 }
  0x74   :  { %3250 = vmatpush1.bf16.msra.mxu0 %v7820_v50  ;;  %3414 = vmatpush1.bf16.msra.mxu1 %v7822_v51  ;;  %v217_v27 = vld [vmem:[#allocation5 + $0x2e0] sm:$0xff]  ;;  %v226_v37 = vld [vmem:[#allocation5 + $0x328] sm:$0xff]  ;;  %v9207_v53 = vpack.c.bf16 %v9195_v10, %v9195_v10 }
  0x75   :  { %3251 = vmatprep.subr.bf16.mxu0 %v7829_v52  ;;  %3415 = vmatprep.subr.bf16.mxu1 %v7831_v55  ;;  %v7869_v32 = vcombine.high %v213_v26, %v217_v27  ;;  %v221_v34 = vld [vmem:[#allocation5 + $0x300] sm:$0xff]  ;;  %v7868_v38 = vcombine.low %v213_v26, %v217_v27  ;;  %v7879_v41 = vcombine.high %v222_v36, %v226_v37  ;;  %v230_v44 = vld [vmem:[#allocation5 + $0x348] sm:$0xff] }
  0x76   :  { %v225_v35 = vld [vmem:[#allocation5 + $0x320] sm:$0xff]  ;;  %v234_v45 = vld [vmem:[#allocation5 + $0x368] sm:$0xff]  ;;  %v7878_v47 = vcombine.low %v222_v36, %v226_v37 }
  0x77   :  { %v7877_v40 = vcombine.high %v221_v34, %v225_v35  ;;  %v229_v42 = vld [vmem:[#allocation5 + $0x340] sm:$0xff]  ;;  %v7876_v46 = vcombine.low %v221_v34, %v225_v35  ;;  %v7887_v49 = vcombine.high %v230_v44, %v234_v45  ;;  %v238_v52 = vld [vmem:[#allocation5 + $0x388] sm:$0xff]  ;;  %v7886_v57 = vcombine.low %v230_v44, %v234_v45 }
  0x78   :  { %3252 = vmatpush1.bf16.msra.mxu0 %v7828_v61  ;;  %3416 = vmatpush1.bf16.msra.mxu1 %v7830_v63  ;;  %v233_v43 = vld [vmem:[#allocation5 + $0x360] sm:$0xff]  ;;  %v242_v55 = vld [vmem:[#allocation5 + $0x3a8] sm:$0xff] }
  0x79   :  { %3253 = vmatprep.subr.bf16.mxu0 %v7837_v0  ;;  %3417 = vmatprep.subr.bf16.mxu1 %v7839_v1  ;;  %v7885_v48 = vcombine.high %v229_v42, %v233_v43  ;;  %v237_v50 = vld [vmem:[#allocation5 + $0x380] sm:$0xff]  ;;  %v7884_v56 = vcombine.low %v229_v42, %v233_v43  ;;  %v7895_v60 = vcombine.high %v238_v52, %v242_v55  ;;  %v246_v0 = vld [vmem:[#allocation5 + $0x3c8] sm:$0xff] }
  0x7a   :  { %v241_v51 = vld [vmem:[#allocation5 + $0x3a0] sm:$0xff]  ;;  %v250_v1 = vld [vmem:[#allocation5 + $0x3e8] sm:$0xff]  ;;  %v7894_v3 = vcombine.low %v238_v52, %v242_v55 }
  0x7b   :  { %v7893_v59 = vcombine.high %v237_v50, %v241_v51  ;;  %v245_v61 = vld [vmem:[#allocation5 + $0x3c0] sm:$0xff]  ;;  %v7892_v2 = vcombine.low %v237_v50, %v241_v51  ;;  %v7903_v5 = vcombine.high %v246_v0, %v250_v1  ;;  %v9197_v11 = vld [vmem:[#allocation2 + $0x8] sm:$0xff] }
  0x7c   :  { %3254 = vmatpush1.bf16.msra.mxu0 %v7836_v6  ;;  %3418 = vmatpush1.bf16.msra.mxu1 %v7838_v7  ;;  %v249_v63 = vld [vmem:[#allocation5 + $0x3e0] sm:$0xff]  ;;  %v9199_v12 = vld [vmem:[#allocation2 + $0x28] sm:$0xff] }
  0x7d   :  { %3255 = vmatprep.subr.bf16.mxu0 %v7845_v8  ;;  %3419 = vmatprep.subr.bf16.mxu1 %v7847_v9  ;;  %v7901_v4 = vcombine.high %v245_v61, %v249_v63  ;;  %v253_v6 = vld [vmem:[#allocation5 + $0x400] sm:$0xff]  ;;  %v254_v8 = vld [vmem:[#allocation5 + $0x408] sm:$0xff]  ;;  %v7900_v13 = vcombine.low %v245_v61, %v249_v63  ;;  %v9203_v19 = vcombine.high %v9197_v11, %v9199_v12 }
  0x7e   :  { %v257_v7 = vld [vmem:[#allocation5 + $0x420] sm:$0xff]  ;;  %v258_v9 = vld [vmem:[#allocation5 + $0x428] sm:$0xff] }
  0x7f   :  { %v265_v18 = vld [vmem:[#allocation5 + $0x460] sm:$0xff]  ;;  %v262_v54 = vld [vmem:[#allocation5 + $0x448] sm:$0xff]  ;;  %v7908_v21 = vcombine.low %v253_v6, %v257_v7  ;;  %v9211_v27 = vpack.c.bf16 %v9203_v19, %v9203_v19 }
  0x80   :  { %3256 = vmatpush1.bf16.msra.mxu0 %v7844_v14  ;;  %3420 = vmatpush1.bf16.msra.mxu1 %v7846_v15  ;;  %v7902_v14 = vcombine.low %v246_v0, %v250_v1  ;;  %v7909_v15 = vcombine.high %v253_v6, %v257_v7  ;;  %v266_v20 = vld [vmem:[#allocation5 + $0x468] sm:$0xff]  ;;  %v273_v26 = vld [vmem:[#allocation5 + $0x4a0] sm:$0xff] }
  0x81   :  { %3257 = vmatprep.subr.bf16.mxu0 %v7853_v16  ;;  %3421 = vmatprep.subr.bf16.mxu1 %v7855_v17  ;;  %v7911_v16 = vcombine.high %v254_v8, %v258_v9  ;;  %v261_v17 = vld [vmem:[#allocation5 + $0x440] sm:$0xff]  ;;  %v270_v28 = vld [vmem:[#allocation5 + $0x488] sm:$0xff] }
  0x82   :  { %v274_v29 = vld [vmem:[#allocation5 + $0x4a8] sm:$0xff]  ;;  %v277_v34 = vld [vmem:[#allocation5 + $0x4c0] sm:$0xff] }
  0x83   :  { %v281_v35 = vld [vmem:[#allocation5 + $0x4e0] sm:$0xff]  ;;  %v278_v36 = vld [vmem:[#allocation5 + $0x4c8] sm:$0xff] }
  0x84   :  { %3258 = vmatpush1.bf16.msra.mxu0 %v7852_v22  ;;  %3422 = vmatpush1.bf16.msra.mxu1 %v7854_v23  ;;  %v7910_v22 = vcombine.low %v254_v8, %v258_v9  ;;  %v7917_v23 = vcombine.high %v261_v17, %v265_v18  ;;  %v282_v37 = vld [vmem:[#allocation5 + $0x4e8] sm:$0xff]  ;;  %v285_v42 = vld [vmem:[#allocation5 + $0x500] sm:$0xff] }
  0x85   :  { %3259 = vmatprep.subr.bf16.mxu0 %v7861_v24  ;;  %3423 = vmatprep.subr.bf16.mxu1 %v7863_v25  ;;  %v7919_v24 = vcombine.high %v262_v54, %v266_v20  ;;  %v269_v25 = vld [vmem:[#allocation5 + $0x480] sm:$0xff]  ;;  %v286_v44 = vld [vmem:[#allocation5 + $0x508] sm:$0xff] }
  0x86   :  { %v289_v43 = vld [vmem:[#allocation5 + $0x520] sm:$0xff]  ;;  %v290_v45 = vld [vmem:[#allocation5 + $0x528] sm:$0xff] }
  0x87   :  { %v293_v50 = vld [vmem:[#allocation5 + $0x540] sm:$0xff]  ;;  %v294_v52 = vld [vmem:[#allocation5 + $0x548] sm:$0xff] }
  0x88   :  { %3260 = vmatpush1.bf16.msra.mxu0 %v7860_v30  ;;  %3424 = vmatpush1.bf16.msra.mxu1 %v7862_v31  ;;  %v7916_v30 = vcombine.low %v261_v17, %v265_v18  ;;  %v7918_v31 = vcombine.low %v262_v54, %v266_v20  ;;  %v297_v51 = vld [vmem:[#allocation5 + $0x560] sm:$0xff]  ;;  %v298_v55 = vld [vmem:[#allocation5 + $0x568] sm:$0xff] }
  0x89   :  { %3261 = vmatprep.subr.bf16.mxu0 %v7869_v32  ;;  %3425 = vmatprep.subr.bf16.mxu1 %v7871_v33  ;;  %v7925_v32 = vcombine.high %v269_v25, %v273_v26  ;;  %v7927_v33 = vcombine.high %v270_v28, %v274_v29  ;;  %v301_v61 = vld [vmem:[#allocation5 + $0x580] sm:$0xff]  ;;  %v302_v0 = vld [vmem:[#allocation5 + $0x588] sm:$0xff] }
  0x8a   :  { %v305_v63 = vld [vmem:[#allocation5 + $0x5a0] sm:$0xff]  ;;  %v306_v1 = vld [vmem:[#allocation5 + $0x5a8] sm:$0xff] }
  0x8b   :  { %v309_v6 = vld [vmem:[#allocation5 + $0x5c0] sm:$0xff]  ;;  %v310_v8 = vld [vmem:[#allocation5 + $0x5c8] sm:$0xff] }
  0x8c   :  { %3262 = vmatpush1.bf16.msra.mxu0 %v7868_v38  ;;  %3426 = vmatpush1.bf16.msra.mxu1 %v7870_v39  ;;  %v7924_v38 = vcombine.low %v269_v25, %v273_v26  ;;  %v7926_v39 = vcombine.low %v270_v28, %v274_v29  ;;  %v313_v7 = vld [vmem:[#allocation5 + $0x5e0] sm:$0xff]  ;;  %v314_v9 = vld [vmem:[#allocation5 + $0x5e8] sm:$0xff] }
  0x8d   :  { %3263 = vmatprep.subr.bf16.mxu0 %v7877_v40  ;;  %3427 = vmatprep.subr.bf16.mxu1 %v7879_v41  ;;  %v7933_v40 = vcombine.high %v277_v34, %v281_v35  ;;  %v7935_v41 = vcombine.high %v278_v36, %v282_v37  ;;  %v317_v17 = vld [vmem:[#allocation5 + $0x600] sm:$0xff]  ;;  %v318_v54 = vld [vmem:[#allocation5 + $0x608] sm:$0xff] }
  0x8e   :  { %v321_v18 = vld [vmem:[#allocation5 + $0x620] sm:$0xff]  ;;  %v322_v20 = vld [vmem:[#allocation5 + $0x628] sm:$0xff] }
  0x8f   :  { %v325_v25 = vld [vmem:[#allocation5 + $0x640] sm:$0xff]  ;;  %v326_v28 = vld [vmem:[#allocation5 + $0x648] sm:$0xff] }
  0x90   :  { %3264 = vmatpush1.bf16.msra.mxu0 %v7876_v46  ;;  %3428 = vmatpush1.bf16.msra.mxu1 %v7878_v47  ;;  %v7932_v46 = vcombine.low %v277_v34, %v281_v35  ;;  %v7934_v47 = vcombine.low %v278_v36, %v282_v37  ;;  %v329_v26 = vld [vmem:[#allocation5 + $0x660] sm:$0xff]  ;;  %v330_v29 = vld [vmem:[#allocation5 + $0x668] sm:$0xff] }
  0x91   :  { %3265 = vmatprep.subr.bf16.mxu0 %v7885_v48  ;;  %3429 = vmatprep.subr.bf16.mxu1 %v7887_v49  ;;  %v7941_v48 = vcombine.high %v285_v42, %v289_v43  ;;  %v7943_v49 = vcombine.high %v286_v44, %v290_v45  ;;  %v333_v34 = vld [vmem:[#allocation5 + $0x680] sm:$0xff]  ;;  %v334_v36 = vld [vmem:[#allocation5 + $0x688] sm:$0xff] }
  0x92   :  { %v337_v35 = vld [vmem:[#allocation5 + $0x6a0] sm:$0xff]  ;;  %v338_v37 = vld [vmem:[#allocation5 + $0x6a8] sm:$0xff] }
  0x94   :  { %3266 = vmatpush1.bf16.msra.mxu0 %v7884_v56  ;;  %3430 = vmatpush1.bf16.msra.mxu1 %v7886_v57  ;;  %v7940_v56 = vcombine.low %v285_v42, %v289_v43  ;;  %v7942_v57 = vcombine.low %v286_v44, %v290_v45  ;;  %v341_v42 = vld [vmem:[#allocation5 + $0x6c0] sm:$0xff]  ;;  %v342_v44 = vld [vmem:[#allocation5 + $0x6c8] sm:$0xff] }
  0x95   :  { %3267 = vmatprep.subr.bf16.mxu0 %v7893_v59  ;;  %3431 = vmatprep.subr.bf16.mxu1 %v7895_v60  ;;  %v7949_v59 = vcombine.high %v293_v50, %v297_v51  ;;  %v7951_v60 = vcombine.high %v294_v52, %v298_v55  ;;  %v345_v43 = vld [vmem:[#allocation5 + $0x6e0] sm:$0xff]  ;;  %v346_v45 = vld [vmem:[#allocation5 + $0x6e8] sm:$0xff] }
  0x98   :  { %3268 = vmatpush1.bf16.msra.mxu0 %v7892_v2  ;;  %3432 = vmatpush1.bf16.msra.mxu1 %v7894_v3  ;;  %v7948_v2 = vcombine.low %v293_v50, %v297_v51  ;;  %v7950_v3 = vcombine.low %v294_v52, %v298_v55  ;;  %v349_v50 = vld [vmem:[#allocation5 + $0x700] sm:$0xff]  ;;  %v350_v52 = vld [vmem:[#allocation5 + $0x708] sm:$0xff] }
  0x99   :  { %3269 = vmatprep.subr.bf16.mxu0 %v7901_v4  ;;  %3433 = vmatprep.subr.bf16.mxu1 %v7903_v5  ;;  %v7957_v4 = vcombine.high %v301_v61, %v305_v63  ;;  %v7959_v5 = vcombine.high %v302_v0, %v306_v1  ;;  %v353_v51 = vld [vmem:[#allocation5 + $0x720] sm:$0xff]  ;;  %v354_v55 = vld [vmem:[#allocation5 + $0x728] sm:$0xff] }
  0x9c   :  { %3270 = vmatpush1.bf16.msra.mxu0 %v7900_v13  ;;  %3434 = vmatpush1.bf16.msra.mxu1 %v7902_v14  ;;  %v7956_v13 = vcombine.low %v301_v61, %v305_v63  ;;  %v7958_v14 = vcombine.low %v302_v0, %v306_v1  ;;  %v357_v61 = vld [vmem:[#allocation5 + $0x740] sm:$0xff]  ;;  %v358_v0 = vld [vmem:[#allocation5 + $0x748] sm:$0xff] }
  0x9d   :  { %3280 = vmatprep.subr.bf16.mxu0 %v7909_v15  ;;  %3444 = vmatprep.subr.bf16.mxu1 %v7911_v16  ;;  %v7965_v15 = vcombine.high %v309_v6, %v313_v7  ;;  %v7967_v16 = vcombine.high %v310_v8, %v314_v9  ;;  %v361_v63 = vld [vmem:[#allocation5 + $0x760] sm:$0xff]  ;;  %v362_v1 = vld [vmem:[#allocation5 + $0x768] sm:$0xff] }
  0x9f   :  { %3272 = vmatmul.mubr.bf16.vlgmr.msra.gmra.mrb[0].mxu0 %v9207_v53  ;;  %3436 = vmatmul.mubr.bf16.vlgmr.msra.gmra.mrb[0].mxu1 %v9207_v53 }
  0xa0   :  { %3281 = vmatpush1.bf16.msra.mxu0 %v7908_v21  ;;  %3445 = vmatpush1.bf16.msra.mxu1 %v7910_v22  ;;  %v7964_v21 = vcombine.low %v309_v6, %v313_v7  ;;  %v7966_v22 = vcombine.low %v310_v8, %v314_v9  ;;  %v365_v6 = vld [vmem:[#allocation5 + $0x780] sm:$0xff]  ;;  %v366_v8 = vld [vmem:[#allocation5 + $0x788] sm:$0xff] }
  0xa1   :  { %3282 = vmatprep.subr.bf16.mxu0 %v7917_v23  ;;  %3446 = vmatprep.subr.bf16.mxu1 %v7919_v24  ;;  %v7973_v23 = vcombine.high %v317_v17, %v321_v18  ;;  %v7975_v24 = vcombine.high %v318_v54, %v322_v20  ;;  %v369_v7 = vld [vmem:[#allocation5 + $0x7a0] sm:$0xff]  ;;  %v370_v9 = vld [vmem:[#allocation5 + $0x7a8] sm:$0xff] }
  0xa2   :  { %3312 = vmatprep.mubr.bf16.mxu0 %v9211_v27  ;;  %3476 = vmatprep.mubr.bf16.mxu1 %v9211_v27 }
  0xa4   :  { %3283 = vmatpush1.bf16.msra.mxu0 %v7916_v30  ;;  %3447 = vmatpush1.bf16.msra.mxu1 %v7918_v31  ;;  %v7972_v30 = vcombine.low %v317_v17, %v321_v18  ;;  %v7974_v31 = vcombine.low %v318_v54, %v322_v20  ;;  %v373_v17 = vld [vmem:[#allocation5 + $0x7c0] sm:$0xff]  ;;  %v374_v54 = vld [vmem:[#allocation5 + $0x7c8] sm:$0xff] }
  0xa5   :  { %3284 = vmatprep.subr.bf16.mxu0 %v7925_v32  ;;  %3448 = vmatprep.subr.bf16.mxu1 %v7927_v33  ;;  %v7981_v32 = vcombine.high %v325_v25, %v329_v26  ;;  %v7983_v33 = vcombine.high %v326_v28, %v330_v29  ;;  %v377_v18 = vld [vmem:[#allocation5 + $0x7e0] sm:$0xff]  ;;  %v378_v20 = vld [vmem:[#allocation5 + $0x7e8] sm:$0xff] }
  0xa8   :  { %3285 = vmatpush1.bf16.msra.mxu0 %v7924_v38  ;;  %3449 = vmatpush1.bf16.msra.mxu1 %v7926_v39  ;;  %v7980_v38 = vcombine.low %v325_v25, %v329_v26  ;;  %v7982_v39 = vcombine.low %v326_v28, %v330_v29  ;;  %v381_v25 = vld [vmem:[#allocation5 + $0x800] sm:$0xff]  ;;  %v382_v28 = vld [vmem:[#allocation5 + $0x808] sm:$0xff] }
  0xa9   :  { %3286 = vmatprep.subr.bf16.mxu0 %v7933_v40  ;;  %3450 = vmatprep.subr.bf16.mxu1 %v7935_v41  ;;  %v7989_v40 = vcombine.high %v333_v34, %v337_v35  ;;  %v7991_v41 = vcombine.high %v334_v36, %v338_v37  ;;  %v385_v26 = vld [vmem:[#allocation5 + $0x820] sm:$0xff]  ;;  %v386_v29 = vld [vmem:[#allocation5 + $0x828] sm:$0xff] }
  0xac   :  { %3287 = vmatpush1.bf16.msra.mxu0 %v7932_v46  ;;  %3451 = vmatpush1.bf16.msra.mxu1 %v7934_v47  ;;  %v7988_v46 = vcombine.low %v333_v34, %v337_v35  ;;  %v7990_v47 = vcombine.low %v334_v36, %v338_v37  ;;  %v8030_v34 = vcombine.low %v374_v54, %v378_v20  ;;  %v389_v37 = vld [vmem:[#allocation5 + $0x840] sm:$0xff] }
  0xad   :  { %3288 = vmatprep.subr.bf16.mxu0 %v7941_v48  ;;  %3452 = vmatprep.subr.bf16.mxu1 %v7943_v49  ;;  %v7997_v48 = vcombine.high %v341_v42, %v345_v43  ;;  %v7999_v49 = vcombine.high %v342_v44, %v346_v45  ;;  %v8037_v35 = vcombine.high %v381_v25, %v385_v26 }
  0xae   :  { %v8039_v36 = vcombine.high %v382_v28, %v386_v29 }
  0xb0   :  { %3289 = vmatpush1.bf16.msra.mxu0 %v7940_v56  ;;  %3453 = vmatpush1.bf16.msra.mxu1 %v7942_v57  ;;  %v7996_v56 = vcombine.low %v341_v42, %v345_v43  ;;  %v7998_v57 = vcombine.low %v342_v44, %v346_v45  ;;  %v8038_v42 = vcombine.low %v382_v28, %v386_v29  ;;  %v397_v45 = vld [vmem:[#allocation5 + $0x880] sm:$0xff] }
  0xb1   :  { %3290 = vmatprep.subr.bf16.mxu0 %v7949_v59  ;;  %3454 = vmatprep.subr.bf16.mxu1 %v7951_v60  ;;  %v8005_v59 = vcombine.high %v349_v50, %v353_v51  ;;  %v8007_v60 = vcombine.high %v350_v52, %v354_v55 }
  0xb4   :  { %3291 = vmatpush1.bf16.msra.mxu0 %v7948_v2  ;;  %3455 = vmatpush1.bf16.msra.mxu1 %v7950_v3  ;;  %v8004_v2 = vcombine.low %v349_v50, %v353_v51  ;;  %v8006_v3 = vcombine.low %v350_v52, %v354_v55 }
  0xb5   :  { %3292 = vmatprep.subr.bf16.mxu0 %v7957_v4  ;;  %3456 = vmatprep.subr.bf16.mxu1 %v7959_v5  ;;  %v8013_v4 = vcombine.high %v357_v61, %v361_v63  ;;  %v8015_v5 = vcombine.high %v358_v0, %v362_v1 }
  0xb8   :  { %3293 = vmatpush1.bf16.msra.mxu0 %v7956_v13  ;;  %3457 = vmatpush1.bf16.msra.mxu1 %v7958_v14  ;;  %v8012_v13 = vcombine.low %v357_v61, %v361_v63  ;;  %v8014_v14 = vcombine.low %v358_v0, %v362_v1 }
  0xb9   :  { %3294 = vmatprep.subr.bf16.mxu0 %v7965_v15  ;;  %3458 = vmatprep.subr.bf16.mxu1 %v7967_v16  ;;  %v8021_v15 = vcombine.high %v365_v6, %v369_v7  ;;  %v8023_v16 = vcombine.high %v366_v8, %v370_v9 }
  0xbc   :  { %3295 = vmatpush1.bf16.msra.mxu0 %v7964_v21  ;;  %3459 = vmatpush1.bf16.msra.mxu1 %v7966_v22  ;;  %v8020_v21 = vcombine.low %v365_v6, %v369_v7  ;;  %v8022_v22 = vcombine.low %v366_v8, %v370_v9 }
  0xbd   :  { %3296 = vmatprep.subr.bf16.mxu0 %v7973_v23  ;;  %3460 = vmatprep.subr.bf16.mxu1 %v7975_v24  ;;  %v8029_v23 = vcombine.high %v373_v17, %v377_v18  ;;  %v8031_v24 = vcombine.high %v374_v54, %v378_v20 }
  0xc0   :  { %3297 = vmatpush1.bf16.msra.mxu0 %v7972_v30  ;;  %3461 = vmatpush1.bf16.msra.mxu1 %v7974_v31  ;;  %v9219_v30 = vcombine.low %v9197_v11, %v9199_v12  ;;  %v9221_v31 = vld [vmem:[#allocation2 + $0x10] sm:$0xff]  ;;  %v390_v12 = vld [vmem:[#allocation5 + $0x848] sm:$0xff] }
  0xc1   :  { %3298 = vmatprep.subr.bf16.mxu0 %v7981_v32  ;;  %3462 = vmatprep.subr.bf16.mxu1 %v7983_v33  ;;  %v9223_v32 = vld [vmem:[#allocation2 + $0x30] sm:$0xff]  ;;  %v8028_v33 = vcombine.low %v373_v17, %v377_v18 }
  0xc2   :  { %v9231_v11 = vpack.c.bf16 %v9219_v30, %v9219_v30 }
  0xc4   :  { %3299 = vmatpush1.bf16.msra.mxu0 %v7980_v38  ;;  %3463 = vmatpush1.bf16.msra.mxu1 %v7982_v39  ;;  %v393_v38 = vld [vmem:[#allocation5 + $0x860] sm:$0xff]  ;;  %v9227_v39 = vcombine.high %v9221_v31, %v9223_v32 }
  0xc5   :  { %3300 = vmatprep.subr.bf16.mxu0 %v7989_v40  ;;  %3464 = vmatprep.subr.bf16.mxu1 %v7991_v41  ;;  %v394_v40 = vld [vmem:[#allocation5 + $0x868] sm:$0xff]  ;;  %v8036_v41 = vcombine.low %v381_v25, %v385_v26  ;;  %v8045_v43 = vcombine.high %v389_v37, %v393_v38  ;;  %v8044_v50 = vcombine.low %v389_v37, %v393_v38 }
  0xc6   :  { %v8047_v44 = vcombine.high %v390_v12, %v394_v40  ;;  %v8046_v51 = vcombine.low %v390_v12, %v394_v40 }
  0xc8   :  { %3301 = vmatpush1.bf16.msra.mxu0 %v7988_v46  ;;  %3465 = vmatpush1.bf16.msra.mxu1 %v7990_v47  ;;  %v401_v46 = vld [vmem:[#allocation5 + $0x8a0] sm:$0xff]  ;;  %v9235_v47 = vpack.c.bf16 %v9227_v39, %v9227_v39 }
  0xc9   :  { %3302 = vmatprep.subr.bf16.mxu0 %v7997_v48  ;;  %3466 = vmatprep.subr.bf16.mxu1 %v7999_v49  ;;  %v398_v48 = vld [vmem:[#allocation5 + $0x888] sm:$0xff]  ;;  %v8053_v52 = vcombine.high %v397_v45, %v401_v46  ;;  %v8052_v61 = vcombine.low %v397_v45, %v401_v46 }
  0xca   :  { %v402_v49 = vld [vmem:[#allocation5 + $0x8a8] sm:$0xff] }
  0xcb   :  { %v8055_v55 = vcombine.high %v398_v48, %v402_v49  ;;  %v8054_v63 = vcombine.low %v398_v48, %v402_v49 }
  0xcc   :  { %3303 = vmatpush1.bf16.msra.mxu0 %v7996_v56  ;;  %3467 = vmatpush1.bf16.msra.mxu1 %v7998_v57  ;;  %v405_v56 = vld [vmem:[#allocation5 + $0x8c0] sm:$0xff] }
  0xcd   :  { %3304 = vmatprep.subr.bf16.mxu0 %v8005_v59  ;;  %3468 = vmatprep.subr.bf16.mxu1 %v8007_v60  ;;  %v409_v57 = vld [vmem:[#allocation5 + $0x8e0] sm:$0xff]  ;;  %v406_v59 = vld [vmem:[#allocation5 + $0x8c8] sm:$0xff] }
  0xce   :  { %v410_v60 = vld [vmem:[#allocation5 + $0x8e8] sm:$0xff]  ;;  %v8061_v0 = vcombine.high %v405_v56, %v409_v57  ;;  %v8060_v6 = vcombine.low %v405_v56, %v409_v57 }
  0xcf   :  { %v8063_v1 = vcombine.high %v406_v59, %v410_v60  ;;  %v8062_v7 = vcombine.low %v406_v59, %v410_v60 }
  0xd0   :  { %3305 = vmatpush1.bf16.msra.mxu0 %v8004_v2  ;;  %3469 = vmatpush1.bf16.msra.mxu1 %v8006_v3  ;;  %v413_v2 = vld [vmem:[#allocation5 + $0x900] sm:$0xff] }
  0xd1   :  { %3306 = vmatprep.subr.bf16.mxu0 %v8013_v4  ;;  %3470 = vmatprep.subr.bf16.mxu1 %v8015_v5  ;;  %v417_v3 = vld [vmem:[#allocation5 + $0x920] sm:$0xff]  ;;  %v414_v4 = vld [vmem:[#allocation5 + $0x908] sm:$0xff] }
  0xd2   :  { %v418_v5 = vld [vmem:[#allocation5 + $0x928] sm:$0xff]  ;;  %v8069_v8 = vcombine.high %v413_v2, %v417_v3  ;;  %v8068_v17 = vcombine.low %v413_v2, %v417_v3 }
  0xd3   :  { %v8071_v9 = vcombine.high %v414_v4, %v418_v5  ;;  %v8070_v18 = vcombine.low %v414_v4, %v418_v5 }
  0xd4   :  { %3307 = vmatpush1.bf16.msra.mxu0 %v8012_v13  ;;  %3471 = vmatpush1.bf16.msra.mxu1 %v8014_v14  ;;  %v421_v13 = vld [vmem:[#allocation5 + $0x940] sm:$0xff] }
  0xd5   :  { %3308 = vmatprep.subr.bf16.mxu0 %v8021_v15  ;;  %3472 = vmatprep.subr.bf16.mxu1 %v8023_v16  ;;  %v425_v14 = vld [vmem:[#allocation5 + $0x960] sm:$0xff]  ;;  %v422_v15 = vld [vmem:[#allocation5 + $0x948] sm:$0xff] }
  0xd6   :  { %v426_v16 = vld [vmem:[#allocation5 + $0x968] sm:$0xff]  ;;  %v8077_v54 = vcombine.high %v421_v13, %v425_v14  ;;  %v8076_v25 = vcombine.low %v421_v13, %v425_v14 }
  0xd7   :  { %v8079_v20 = vcombine.high %v422_v15, %v426_v16  ;;  %v8078_v26 = vcombine.low %v422_v15, %v426_v16 }
  0xd8   :  { %3309 = vmatpush1.bf16.msra.mxu0 %v8020_v21  ;;  %3473 = vmatpush1.bf16.msra.mxu1 %v8022_v22  ;;  %v429_v21 = vld [vmem:[#allocation5 + $0x980] sm:$0xff] }
  0xd9   :  { %3310 = vmatprep.subr.bf16.mxu0 %v8029_v23  ;;  %3474 = vmatprep.subr.bf16.mxu1 %v8031_v24  ;;  %v433_v22 = vld [vmem:[#allocation5 + $0x9a0] sm:$0xff]  ;;  %v430_v23 = vld [vmem:[#allocation5 + $0x988] sm:$0xff] }
  0xda   :  { %v434_v24 = vld [vmem:[#allocation5 + $0x9a8] sm:$0xff]  ;;  %v8085_v28 = vcombine.high %v429_v21, %v433_v22  ;;  %v8084_v37 = vcombine.low %v429_v21, %v433_v22 }
  0xdb   :  { %v8087_v29 = vcombine.high %v430_v23, %v434_v24  ;;  %v8086_v38 = vcombine.low %v430_v23, %v434_v24 }
  0xdc   :  { %3311 = vmatpush1.bf16.msra.mxu0 %v8028_v33  ;;  %3475 = vmatpush1.bf16.msra.mxu1 %v8030_v34  ;;  %v437_v33 = vld [vmem:[#allocation5 + $0x9c0] sm:$0xff] }
  0xdd   :  { %3321 = vmatprep.subr.bf16.mxu0 %v8037_v35  ;;  %3485 = vmatprep.subr.bf16.mxu1 %v8039_v36  ;;  %v441_v34 = vld [vmem:[#allocation5 + $0x9e0] sm:$0xff]  ;;  %v438_v35 = vld [vmem:[#allocation5 + $0x9c8] sm:$0xff] }
  0xde   :  { %v442_v36 = vld [vmem:[#allocation5 + $0x9e8] sm:$0xff]  ;;  %v8093_v12 = vcombine.high %v437_v33, %v441_v34  ;;  %v8092_v45 = vcombine.low %v437_v33, %v441_v34 }
  0xdf   :  { %3313 = vmatmul.mubr.bf16.vlgmr.msra.gmra.mrb[0].mxu0 %v9231_v11  ;;  %3477 = vmatmul.mubr.bf16.vlgmr.msra.gmra.mrb[0].mxu1 %v9231_v11  ;;  %v8095_v40 = vcombine.high %v438_v35, %v442_v36  ;;  %v8094_v46 = vcombine.low %v438_v35, %v442_v36 }
  0xe0   :  { %3322 = vmatpush1.bf16.msra.mxu0 %v8036_v41  ;;  %3486 = vmatpush1.bf16.msra.mxu1 %v8038_v42  ;;  %v445_v41 = vld [vmem:[#allocation5 + $0xa00] sm:$0xff] }
  0xe1   :  { %3323 = vmatprep.subr.bf16.mxu0 %v8045_v43  ;;  %3487 = vmatprep.subr.bf16.mxu1 %v8047_v44  ;;  %v449_v42 = vld [vmem:[#allocation5 + $0xa20] sm:$0xff]  ;;  %v446_v43 = vld [vmem:[#allocation5 + $0xa08] sm:$0xff] }
  0xe2   :  { %3353 = vmatprep.mubr.bf16.mxu0 %v9235_v47  ;;  %3517 = vmatprep.mubr.bf16.mxu1 %v9235_v47  ;;  %v450_v44 = vld [vmem:[#allocation5 + $0xa28] sm:$0xff]  ;;  %v8101_v48 = vcombine.high %v445_v41, %v449_v42  ;;  %v8100_v56 = vcombine.low %v445_v41, %v449_v42 }
  0xe3   :  { %v8103_v49 = vcombine.high %v446_v43, %v450_v44  ;;  %v8102_v57 = vcombine.low %v446_v43, %v450_v44 }
  0xe4   :  { %3324 = vmatpush1.bf16.msra.mxu0 %v8044_v50  ;;  %3488 = vmatpush1.bf16.msra.mxu1 %v8046_v51  ;;  %v453_v50 = vld [vmem:[#allocation5 + $0xa40] sm:$0xff] }
  0xe5   :  { %3325 = vmatprep.subr.bf16.mxu0 %v8053_v52  ;;  %3489 = vmatprep.subr.bf16.mxu1 %v8055_v55  ;;  %v457_v51 = vld [vmem:[#allocation5 + $0xa60] sm:$0xff]  ;;  %v454_v52 = vld [vmem:[#allocation5 + $0xa48] sm:$0xff] }
  0xe6   :  { %v458_v55 = vld [vmem:[#allocation5 + $0xa68] sm:$0xff]  ;;  %v8109_v59 = vcombine.high %v453_v50, %v457_v51  ;;  %v8108_v2 = vcombine.low %v453_v50, %v457_v51 }
  0xe7   :  { %v8111_v60 = vcombine.high %v454_v52, %v458_v55  ;;  %v8110_v3 = vcombine.low %v454_v52, %v458_v55 }
  0xe8   :  { %3326 = vmatpush1.bf16.msra.mxu0 %v8052_v61  ;;  %3490 = vmatpush1.bf16.msra.mxu1 %v8054_v63  ;;  %v461_v61 = vld [vmem:[#allocation5 + $0xa80] sm:$0xff] }
  0xe9   :  { %3327 = vmatprep.subr.bf16.mxu0 %v8061_v0  ;;  %3491 = vmatprep.subr.bf16.mxu1 %v8063_v1  ;;  %v465_v63 = vld [vmem:[#allocation5 + $0xaa0] sm:$0xff]  ;;  %v462_v0 = vld [vmem:[#allocation5 + $0xa88] sm:$0xff] }
  0xea   :  { %v466_v1 = vld [vmem:[#allocation5 + $0xaa8] sm:$0xff]  ;;  %v8117_v4 = vcombine.high %v461_v61, %v465_v63  ;;  %v8116_v13 = vcombine.low %v461_v61, %v465_v63  ;;  %v9243_v61 = vcombine.low %v9221_v31, %v9223_v32  ;;  %v9245_v63 = vld [vmem:[#allocation2 + $0x18] sm:$0xff] }
  0xeb   :  { %v8119_v5 = vcombine.high %v462_v0, %v466_v1  ;;  %v8118_v14 = vcombine.low %v462_v0, %v466_v1  ;;  %v9247_v0 = vld [vmem:[#allocation2 + $0x38] sm:$0xff]  ;;  %v518_v32 = vld [vmem:[#allocation5 + $0xc48] sm:$0xff] }
  0xec   :  { %3328 = vmatpush1.bf16.msra.mxu0 %v8060_v6  ;;  %3492 = vmatpush1.bf16.msra.mxu1 %v8062_v7  ;;  %v469_v6 = vld [vmem:[#allocation5 + $0xac0] sm:$0xff]  ;;  %v9255_v31 = vpack.c.bf16 %v9243_v61, %v9243_v61 }
  0xed   :  { %3329 = vmatprep.subr.bf16.mxu0 %v8069_v8  ;;  %3493 = vmatprep.subr.bf16.mxu1 %v8071_v9  ;;  %v473_v7 = vld [vmem:[#allocation5 + $0xae0] sm:$0xff]  ;;  %v470_v8 = vld [vmem:[#allocation5 + $0xac8] sm:$0xff] }
  0xee   :  { %v474_v9 = vld [vmem:[#allocation5 + $0xae8] sm:$0xff]  ;;  %v8125_v15 = vcombine.high %v469_v6, %v473_v7  ;;  %v8124_v21 = vcombine.low %v469_v6, %v473_v7  ;;  %v521_v6 = vld [vmem:[#allocation5 + $0xc60] sm:$0xff]  ;;  %v9251_v7 = vcombine.high %v9245_v63, %v9247_v0 }
  0xef   :  { %v8127_v16 = vcombine.high %v470_v8, %v474_v9  ;;  %v8126_v22 = vcombine.low %v470_v8, %v474_v9  ;;  %v522_v8 = vld [vmem:[#allocation5 + $0xc68] sm:$0xff] }
  0xf0   :  { %3330 = vmatpush1.bf16.msra.mxu0 %v8068_v17  ;;  %3494 = vmatpush1.bf16.msra.mxu1 %v8070_v18  ;;  %v477_v17 = vld [vmem:[#allocation5 + $0xb00] sm:$0xff] }
  0xf1   :  { %3331 = vmatprep.subr.bf16.mxu0 %v8077_v54  ;;  %3495 = vmatprep.subr.bf16.mxu1 %v8079_v20  ;;  %v481_v18 = vld [vmem:[#allocation5 + $0xb20] sm:$0xff]  ;;  %v478_v54 = vld [vmem:[#allocation5 + $0xb08] sm:$0xff] }
  0xf2   :  { %v482_v20 = vld [vmem:[#allocation5 + $0xb28] sm:$0xff]  ;;  %v8133_v23 = vcombine.high %v477_v17, %v481_v18  ;;  %v8132_v33 = vcombine.low %v477_v17, %v481_v18  ;;  %v529_v17 = vld [vmem:[#allocation5 + $0xca0] sm:$0xff]  ;;  %v9259_v18 = vpack.c.bf16 %v9251_v7, %v9251_v7 }
  0xf3   :  { %v8135_v24 = vcombine.high %v478_v54, %v482_v20  ;;  %v8134_v34 = vcombine.low %v478_v54, %v482_v20  ;;  %v526_v54 = vld [vmem:[#allocation5 + $0xc88] sm:$0xff] }
  0xf4   :  { %3332 = vmatpush1.bf16.msra.mxu0 %v8076_v25  ;;  %3496 = vmatpush1.bf16.msra.mxu1 %v8078_v26  ;;  %v485_v25 = vld [vmem:[#allocation5 + $0xb40] sm:$0xff]  ;;  %v530_v20 = vld [vmem:[#allocation5 + $0xca8] sm:$0xff] }
  0xf5   :  { %3333 = vmatprep.subr.bf16.mxu0 %v8085_v28  ;;  %3497 = vmatprep.subr.bf16.mxu1 %v8087_v29  ;;  %v489_v26 = vld [vmem:[#allocation5 + $0xb60] sm:$0xff]  ;;  %v486_v28 = vld [vmem:[#allocation5 + $0xb48] sm:$0xff] }
  0xf6   :  { %v490_v29 = vld [vmem:[#allocation5 + $0xb68] sm:$0xff]  ;;  %v8141_v35 = vcombine.high %v485_v25, %v489_v26  ;;  %v8140_v41 = vcombine.low %v485_v25, %v489_v26  ;;  %v533_v25 = vld [vmem:[#allocation5 + $0xcc0] sm:$0xff] }
  0xf7   :  { %v8143_v36 = vcombine.high %v486_v28, %v490_v29  ;;  %v8142_v42 = vcombine.low %v486_v28, %v490_v29  ;;  %v537_v26 = vld [vmem:[#allocation5 + $0xce0] sm:$0xff]  ;;  %v534_v28 = vld [vmem:[#allocation5 + $0xcc8] sm:$0xff] }
  0xf8   :  { %3334 = vmatpush1.bf16.msra.mxu0 %v8084_v37  ;;  %3498 = vmatpush1.bf16.msra.mxu1 %v8086_v38  ;;  %v493_v37 = vld [vmem:[#allocation5 + $0xb80] sm:$0xff]  ;;  %v538_v29 = vld [vmem:[#allocation5 + $0xce8] sm:$0xff] }
  0xf9   :  { %3335 = vmatprep.subr.bf16.mxu0 %v8093_v12  ;;  %3499 = vmatprep.subr.bf16.mxu1 %v8095_v40  ;;  %v497_v38 = vld [vmem:[#allocation5 + $0xba0] sm:$0xff]  ;;  %v494_v12 = vld [vmem:[#allocation5 + $0xb88] sm:$0xff] }
  0xfa   :  { %v498_v40 = vld [vmem:[#allocation5 + $0xba8] sm:$0xff]  ;;  %v8149_v43 = vcombine.high %v493_v37, %v497_v38  ;;  %v8148_v50 = vcombine.low %v493_v37, %v497_v38  ;;  %v541_v37 = vld [vmem:[#allocation5 + $0xd00] sm:$0xff] }
  0xfb   :  { %v8151_v44 = vcombine.high %v494_v12, %v498_v40  ;;  %v8150_v51 = vcombine.low %v494_v12, %v498_v40  ;;  %v545_v38 = vld [vmem:[#allocation5 + $0xd20] sm:$0xff]  ;;  %v542_v12 = vld [vmem:[#allocation5 + $0xd08] sm:$0xff] }
  0xfc   :  { %3336 = vmatpush1.bf16.msra.mxu0 %v8092_v45  ;;  %3500 = vmatpush1.bf16.msra.mxu1 %v8094_v46  ;;  %v501_v45 = vld [vmem:[#allocation5 + $0xbc0] sm:$0xff]  ;;  %v546_v40 = vld [vmem:[#allocation5 + $0xd28] sm:$0xff] }
  0xfd   :  { %3337 = vmatprep.subr.bf16.mxu0 %v8101_v48  ;;  %3501 = vmatprep.subr.bf16.mxu1 %v8103_v49  ;;  %v505_v46 = vld [vmem:[#allocation5 + $0xbe0] sm:$0xff]  ;;  %v502_v48 = vld [vmem:[#allocation5 + $0xbc8] sm:$0xff] }
  0xfe   :  { %v506_v49 = vld [vmem:[#allocation5 + $0xbe8] sm:$0xff]  ;;  %v8157_v52 = vcombine.high %v501_v45, %v505_v46  ;;  %v8156_v1 = vcombine.low %v501_v45, %v505_v46  ;;  %v549_v45 = vld [vmem:[#allocation5 + $0xd40] sm:$0xff] }
  0xff   :  { %v8159_v55 = vcombine.high %v502_v48, %v506_v49  ;;  %v553_v46 = vld [vmem:[#allocation5 + $0xd60] sm:$0xff] }
 0x100   :  { %3338 = vmatpush1.bf16.msra.mxu0 %v8100_v56  ;;  %3502 = vmatpush1.bf16.msra.mxu1 %v8102_v57  ;;  %v509_v56 = vld [vmem:[#allocation5 + $0xc00] sm:$0xff] }
 0x101   :  { %3339 = vmatprep.subr.bf16.mxu0 %v8109_v59  ;;  %3503 = vmatprep.subr.bf16.mxu1 %v8111_v60  ;;  %v513_v57 = vld [vmem:[#allocation5 + $0xc20] sm:$0xff]  ;;  %v510_v59 = vld [vmem:[#allocation5 + $0xc08] sm:$0xff] }
 0x102   :  { %v514_v60 = vld [vmem:[#allocation5 + $0xc28] sm:$0xff]  ;;  %v8164_v9 = vcombine.low %v509_v56, %v513_v57 }
 0x104   :  { %3340 = vmatpush1.bf16.msra.mxu0 %v8108_v2  ;;  %3504 = vmatpush1.bf16.msra.mxu1 %v8110_v3  ;;  %v8158_v2 = vcombine.low %v502_v48, %v506_v49  ;;  %v8165_v3 = vcombine.high %v509_v56, %v513_v57  ;;  %v550_v48 = vld [vmem:[#allocation5 + $0xd48] sm:$0xff]  ;;  %v557_v56 = vld [vmem:[#allocation5 + $0xd80] sm:$0xff] }
 0x105   :  { %3341 = vmatprep.subr.bf16.mxu0 %v8117_v4  ;;  %3505 = vmatprep.subr.bf16.mxu1 %v8119_v5  ;;  %v8167_v4 = vcombine.high %v510_v59, %v514_v60  ;;  %v517_v5 = vld [vmem:[#allocation5 + $0xc40] sm:$0xff]  ;;  %v554_v49 = vld [vmem:[#allocation5 + $0xd68] sm:$0xff] }
 0x106   :  { %v561_v57 = vld [vmem:[#allocation5 + $0xda0] sm:$0xff] }
 0x108   :  { %3342 = vmatpush1.bf16.msra.mxu0 %v8116_v13  ;;  %3506 = vmatpush1.bf16.msra.mxu1 %v8118_v14  ;;  %v8166_v13 = vcombine.low %v510_v59, %v514_v60  ;;  %v8173_v14 = vcombine.high %v517_v5, %v521_v6  ;;  %v558_v59 = vld [vmem:[#allocation5 + $0xd88] sm:$0xff] }
 0x109   :  { %3343 = vmatprep.subr.bf16.mxu0 %v8125_v15  ;;  %3507 = vmatprep.subr.bf16.mxu1 %v8127_v16  ;;  %v8175_v15 = vcombine.high %v518_v32, %v522_v8  ;;  %v525_v16 = vld [vmem:[#allocation5 + $0xc80] sm:$0xff]  ;;  %v562_v60 = vld [vmem:[#allocation5 + $0xda8] sm:$0xff] }
 0x10c   :  { %3344 = vmatpush1.bf16.msra.mxu0 %v8124_v21  ;;  %3508 = vmatpush1.bf16.msra.mxu1 %v8126_v22  ;;  %v8172_v21 = vcombine.low %v517_v5, %v521_v6  ;;  %v8174_v22 = vcombine.low %v518_v32, %v522_v8  ;;  %v565_v5 = vld [vmem:[#allocation5 + $0xdc0] sm:$0xff]  ;;  %v566_v32 = vld [vmem:[#allocation5 + $0xdc8] sm:$0xff] }
 0x10d   :  { %3345 = vmatprep.subr.bf16.mxu0 %v8133_v23  ;;  %3509 = vmatprep.subr.bf16.mxu1 %v8135_v24  ;;  %v8181_v23 = vcombine.high %v525_v16, %v529_v17  ;;  %v8183_v24 = vcombine.high %v526_v54, %v530_v20  ;;  %v569_v6 = vld [vmem:[#allocation5 + $0xde0] sm:$0xff]  ;;  %v570_v8 = vld [vmem:[#allocation5 + $0xde8] sm:$0xff] }
 0x110   :  { %3346 = vmatpush1.bf16.msra.mxu0 %v8132_v33  ;;  %3510 = vmatpush1.bf16.msra.mxu1 %v8134_v34  ;;  %v8180_v33 = vcombine.low %v525_v16, %v529_v17  ;;  %v8182_v34 = vcombine.low %v526_v54, %v530_v20  ;;  %v573_v16 = vld [vmem:[#allocation5 + $0xe00] sm:$0xff]  ;;  %v574_v54 = vld [vmem:[#allocation5 + $0xe08] sm:$0xff] }
 0x111   :  { %3347 = vmatprep.subr.bf16.mxu0 %v8141_v35  ;;  %3511 = vmatprep.subr.bf16.mxu1 %v8143_v36  ;;  %v8189_v35 = vcombine.high %v533_v25, %v537_v26  ;;  %v8191_v36 = vcombine.high %v534_v28, %v538_v29  ;;  %v577_v17 = vld [vmem:[#allocation5 + $0xe20] sm:$0xff]  ;;  %v578_v20 = vld [vmem:[#allocation5 + $0xe28] sm:$0xff] }
 0x114   :  { %3348 = vmatpush1.bf16.msra.mxu0 %v8140_v41  ;;  %3512 = vmatpush1.bf16.msra.mxu1 %v8142_v42  ;;  %v8188_v41 = vcombine.low %v533_v25, %v537_v26  ;;  %v8190_v42 = vcombine.low %v534_v28, %v538_v29  ;;  %v581_v25 = vld [vmem:[#allocation5 + $0xe40] sm:$0xff]  ;;  %v582_v28 = vld [vmem:[#allocation5 + $0xe48] sm:$0xff] }
 0x115   :  { %3349 = vmatprep.subr.bf16.mxu0 %v8149_v43  ;;  %3513 = vmatprep.subr.bf16.mxu1 %v8151_v44  ;;  %v8197_v43 = vcombine.high %v541_v37, %v545_v38  ;;  %v8199_v44 = vcombine.high %v542_v12, %v546_v40  ;;  %v585_v26 = vld [vmem:[#allocation5 + $0xe60] sm:$0xff]  ;;  %v586_v29 = vld [vmem:[#allocation5 + $0xe68] sm:$0xff] }
 0x118   :  { %3350 = vmatpush1.bf16.msra.mxu0 %v8148_v50  ;;  %3514 = vmatpush1.bf16.msra.mxu1 %v8150_v51  ;;  %v8196_v50 = vcombine.low %v541_v37, %v545_v38  ;;  %v8198_v51 = vcombine.low %v542_v12, %v546_v40  ;;  %v589_v37 = vld [vmem:[#allocation5 + $0xe80] sm:$0xff]  ;;  %v590_v12 = vld [vmem:[#allocation5 + $0xe88] sm:$0xff] }
 0x119   :  { %3351 = vmatprep.subr.bf16.mxu0 %v8157_v52  ;;  %3515 = vmatprep.subr.bf16.mxu1 %v8159_v55  ;;  %v8205_v52 = vcombine.high %v549_v45, %v553_v46  ;;  %v8207_v55 = vcombine.high %v550_v48, %v554_v49  ;;  %v593_v38 = vld [vmem:[#allocation5 + $0xea0] sm:$0xff]  ;;  %v594_v40 = vld [vmem:[#allocation5 + $0xea8] sm:$0xff] }
 0x11c   :  { %3352 = vmatpush1.bf16.msra.mxu0 %v8156_v1  ;;  %3516 = vmatpush1.bf16.msra.mxu1 %v8158_v2  ;;  %v8204_v1 = vcombine.low %v549_v45, %v553_v46  ;;  %v8206_v2 = vcombine.low %v550_v48, %v554_v49  ;;  %v597_v45 = vld [vmem:[#allocation5 + $0xec0] sm:$0xff]  ;;  %v598_v48 = vld [vmem:[#allocation5 + $0xec8] sm:$0xff] }
 0x11d   :  { %3362 = vmatprep.subr.bf16.mxu0 %v8165_v3  ;;  %3526 = vmatprep.subr.bf16.mxu1 %v8167_v4  ;;  %v8213_v3 = vcombine.high %v557_v56, %v561_v57  ;;  %v8215_v4 = vcombine.high %v558_v59, %v562_v60  ;;  %v601_v46 = vld [vmem:[#allocation5 + $0xee0] sm:$0xff]  ;;  %v602_v49 = vld [vmem:[#allocation5 + $0xee8] sm:$0xff] }
 0x11f   :  { %3354 = vmatmul.mubr.bf16.vlgmr.msra.gmra.mrb[0].mxu0 %v9255_v31  ;;  %3518 = vmatmul.mubr.bf16.vlgmr.msra.gmra.mrb[0].mxu1 %v9255_v31 }
 0x120   :  { %3363 = vmatpush1.bf16.msra.mxu0 %v8164_v9  ;;  %3527 = vmatpush1.bf16.msra.mxu1 %v8166_v13  ;;  %v8212_v9 = vcombine.low %v557_v56, %v561_v57  ;;  %v8214_v13 = vcombine.low %v558_v59, %v562_v60  ;;  %v605_v56 = vld [vmem:[#allocation5 + $0xf00] sm:$0xff]  ;;  %v606_v59 = vld [vmem:[#allocation5 + $0xf08] sm:$0xff] }
 0x121   :  { %3364 = vmatprep.subr.bf16.mxu0 %v8173_v14  ;;  %3528 = vmatprep.subr.bf16.mxu1 %v8175_v15  ;;  %v8221_v14 = vcombine.high %v565_v5, %v569_v6  ;;  %v8223_v15 = vcombine.high %v566_v32, %v570_v8  ;;  %v609_v57 = vld [vmem:[#allocation5 + $0xf20] sm:$0xff]  ;;  %v610_v60 = vld [vmem:[#allocation5 + $0xf28] sm:$0xff] }
 0x122   :  { %3394 = vmatprep.mubr.bf16.mxu0 %v9259_v18  ;;  %3558 = vmatprep.mubr.bf16.mxu1 %v9259_v18 }
 0x124   :  { %3365 = vmatpush1.bf16.msra.mxu0 %v8172_v21  ;;  %3529 = vmatpush1.bf16.msra.mxu1 %v8174_v22  ;;  %v8220_v21 = vcombine.low %v565_v5, %v569_v6  ;;  %v8222_v22 = vcombine.low %v566_v32, %v570_v8  ;;  %v613_v5 = vld [vmem:[#allocation5 + $0xf40] sm:$0xff]  ;;  %v614_v32 = vld [vmem:[#allocation5 + $0xf48] sm:$0xff] }
 0x125   :  { %3366 = vmatprep.subr.bf16.mxu0 %v8181_v23  ;;  %3530 = vmatprep.subr.bf16.mxu1 %v8183_v24  ;;  %v8229_v23 = vcombine.high %v573_v16, %v577_v17  ;;  %v8231_v24 = vcombine.high %v574_v54, %v578_v20  ;;  %v617_v6 = vld [vmem:[#allocation5 + $0xf60] sm:$0xff]  ;;  %v618_v8 = vld [vmem:[#allocation5 + $0xf68] sm:$0xff] }
 0x128   :  { %3367 = vmatpush1.bf16.msra.mxu0 %v8180_v33  ;;  %3531 = vmatpush1.bf16.msra.mxu1 %v8182_v34  ;;  %v8228_v33 = vcombine.low %v573_v16, %v577_v17  ;;  %v8230_v34 = vcombine.low %v574_v54, %v578_v20  ;;  %v621_v16 = vld [vmem:[#allocation5 + $0xf80] sm:$0xff]  ;;  %v622_v54 = vld [vmem:[#allocation5 + $0xf88] sm:$0xff] }
 0x129   :  { %3368 = vmatprep.subr.bf16.mxu0 %v8189_v35  ;;  %3532 = vmatprep.subr.bf16.mxu1 %v8191_v36  ;;  %v8237_v35 = vcombine.high %v581_v25, %v585_v26  ;;  %v8239_v36 = vcombine.high %v582_v28, %v586_v29  ;;  %v625_v17 = vld [vmem:[#allocation5 + $0xfa0] sm:$0xff]  ;;  %v626_v20 = vld [vmem:[#allocation5 + $0xfa8] sm:$0xff] }
 0x12c   :  { %3369 = vmatpush1.bf16.msra.mxu0 %v8188_v41  ;;  %3533 = vmatpush1.bf16.msra.mxu1 %v8190_v42  ;;  %v8236_v41 = vcombine.low %v581_v25, %v585_v26  ;;  %v8238_v42 = vcombine.low %v582_v28, %v586_v29  ;;  %v629_v25 = vld [vmem:[#allocation5 + $0xfc0] sm:$0xff]  ;;  %v630_v28 = vld [vmem:[#allocation5 + $0xfc8] sm:$0xff] }
 0x12d   :  { %3370 = vmatprep.subr.bf16.mxu0 %v8197_v43  ;;  %3534 = vmatprep.subr.bf16.mxu1 %v8199_v44  ;;  %v8245_v43 = vcombine.high %v589_v37, %v593_v38  ;;  %v8247_v44 = vcombine.high %v590_v12, %v594_v40  ;;  %v633_v26 = vld [vmem:[#allocation5 + $0xfe0] sm:$0xff]  ;;  %v634_v29 = vld [vmem:[#allocation5 + $0xfe8] sm:$0xff] }
 0x130   :  { %3371 = vmatpush1.bf16.msra.mxu0 %v8196_v50  ;;  %3535 = vmatpush1.bf16.msra.mxu1 %v8198_v51  ;;  %v8244_v50 = vcombine.low %v589_v37, %v593_v38  ;;  %v8246_v51 = vcombine.low %v590_v12, %v594_v40  ;;  %v127_v37 = vld [vmem:[#allocation5 + $0x10] sm:$0xff]  ;;  %v9267_v12 = vcombine.low %v9245_v63, %v9247_v0  ;;  %v128_v40 = vld [vmem:[#allocation5 + $0x18] sm:$0xff] }
 0x131   :  { %3372 = vmatprep.subr.bf16.mxu0 %v8205_v52  ;;  %3536 = vmatprep.subr.bf16.mxu1 %v8207_v55  ;;  %v8253_v52 = vcombine.high %v597_v45, %v601_v46  ;;  %v8255_v55 = vcombine.high %v598_v48, %v602_v49  ;;  %v131_v38 = vld [vmem:[#allocation5 + $0x30] sm:$0xff] }
 0x132   :  { %v7784_v63 = vcombine.low %v127_v37, %v131_v38 }
 0x134   :  { %3373 = vmatpush1.bf16.msra.mxu0 %v8204_v1  ;;  %3537 = vmatpush1.bf16.msra.mxu1 %v8206_v2  ;;  %v8252_v1 = vcombine.low %v597_v45, %v601_v46  ;;  %v8254_v2 = vcombine.low %v598_v48, %v602_v49  ;;  %v135_v46 = vld [vmem:[#allocation5 + $0x50] sm:$0xff]  ;;  %v9271_v49 = vpack.c.bf16 %v9267_v12, %v9267_v12 }
 0x135   :  { %3374 = vmatprep.subr.bf16.mxu0 %v8213_v3  ;;  %3538 = vmatprep.subr.bf16.mxu1 %v8215_v4  ;;  %v8261_v3 = vcombine.high %v605_v56, %v609_v57  ;;  %v8263_v4 = vcombine.high %v606_v59, %v610_v60  ;;  %v139_v48 = vld [vmem:[#allocation5 + $0x70] sm:$0xff] }
 0x138   :  { %3375 = vmatpush1.bf16.msra.mxu0 %v8212_v9  ;;  %3539 = vmatpush1.bf16.msra.mxu1 %v8214_v13  ;;  %v8260_v9 = vcombine.low %v605_v56, %v609_v57  ;;  %v8262_v13 = vcombine.low %v606_v59, %v610_v60  ;;  %v143_v56 = vld [vmem:[#allocation5 + $0x90] sm:$0xff]  ;;  %v144_v59 = vld [vmem:[#allocation5 + $0x98] sm:$0xff] }
 0x139   :  { %3376 = vmatprep.subr.bf16.mxu0 %v8221_v14  ;;  %3540 = vmatprep.subr.bf16.mxu1 %v8223_v15  ;;  %v8269_v14 = vcombine.high %v613_v5, %v617_v6  ;;  %v8271_v15 = vcombine.high %v614_v32, %v618_v8  ;;  %v147_v57 = vld [vmem:[#allocation5 + $0xb0] sm:$0xff]  ;;  %v148_v60 = vld [vmem:[#allocation5 + $0xb8] sm:$0xff] }
 0x13c   :  { %3377 = vmatpush1.bf16.msra.mxu0 %v8220_v21  ;;  %3541 = vmatpush1.bf16.msra.mxu1 %v8222_v22  ;;  %v8268_v21 = vcombine.low %v613_v5, %v617_v6  ;;  %v8270_v22 = vcombine.low %v614_v32, %v618_v8  ;;  %v151_v5 = vld [vmem:[#allocation5 + $0xd0] sm:$0xff]  ;;  %v152_v32 = vld [vmem:[#allocation5 + $0xd8] sm:$0xff] }
 0x13d   :  { %3378 = vmatprep.subr.bf16.mxu0 %v8229_v23  ;;  %3542 = vmatprep.subr.bf16.mxu1 %v8231_v24  ;;  %v8277_v23 = vcombine.high %v621_v16, %v625_v17  ;;  %v8279_v24 = vcombine.high %v622_v54, %v626_v20  ;;  %v155_v6 = vld [vmem:[#allocation5 + $0xf0] sm:$0xff]  ;;  %v156_v8 = vld [vmem:[#allocation5 + $0xf8] sm:$0xff] }
 0x140   :  { %3379 = vmatpush1.bf16.msra.mxu0 %v8228_v33  ;;  %3543 = vmatpush1.bf16.msra.mxu1 %v8230_v34  ;;  %v8276_v33 = vcombine.low %v621_v16, %v625_v17  ;;  %v8278_v34 = vcombine.low %v622_v54, %v626_v20  ;;  %v159_v16 = vld [vmem:[#allocation5 + $0x110] sm:$0xff]  ;;  %v160_v54 = vld [vmem:[#allocation5 + $0x118] sm:$0xff] }
 0x141   :  { %3380 = vmatprep.subr.bf16.mxu0 %v8237_v35  ;;  %3544 = vmatprep.subr.bf16.mxu1 %v8239_v36  ;;  %v8285_v35 = vcombine.high %v629_v25, %v633_v26  ;;  %v8287_v36 = vcombine.high %v630_v28, %v634_v29  ;;  %v163_v17 = vld [vmem:[#allocation5 + $0x130] sm:$0xff]  ;;  %v164_v20 = vld [vmem:[#allocation5 + $0x138] sm:$0xff] }
 0x144   :  { %3381 = vmatpush1.bf16.msra.mxu0 %v8236_v41  ;;  %3545 = vmatpush1.bf16.msra.mxu1 %v8238_v42  ;;  %v132_v41 = vld [vmem:[#allocation5 + $0x38] sm:$0xff]  ;;  %v8284_v42 = vcombine.low %v629_v25, %v633_v26  ;;  %v171_v25 = vld [vmem:[#allocation5 + $0x170] sm:$0xff] }
 0x145   :  { %3382 = vmatprep.subr.bf16.mxu0 %v8245_v43  ;;  %3546 = vmatprep.subr.bf16.mxu1 %v8247_v44  ;;  %v8286_v43 = vcombine.low %v630_v28, %v634_v29  ;;  %v7785_v44 = vcombine.high %v127_v37, %v131_v38  ;;  %v7787_v45 = vcombine.high %v128_v40, %v132_v41  ;;  %v168_v26 = vld [vmem:[#allocation5 + $0x158] sm:$0xff]  ;;  %v179_v37 = vld [vmem:[#allocation5 + $0x1b0] sm:$0xff] }
 0x146   :  { %v7786_v0 = vcombine.low %v128_v40, %v132_v41  ;;  %v172_v28 = vld [vmem:[#allocation5 + $0x178] sm:$0xff]  ;;  %v7816_v29 = vcombine.low %v159_v16, %v163_v17 }
 0x147   :  { %v176_v38 = vld [vmem:[#allocation5 + $0x198] sm:$0xff] }
 0x148   :  { %3383 = vmatpush1.bf16.msra.mxu0 %v8244_v50  ;;  %3547 = vmatpush1.bf16.msra.mxu1 %v8246_v51  ;;  %v136_v50 = vld [vmem:[#allocation5 + $0x58] sm:$0xff] }
 0x149   :  { %3384 = vmatprep.subr.bf16.mxu0 %v8253_v52  ;;  %3548 = vmatprep.subr.bf16.mxu1 %v8255_v55  ;;  %v140_v51 = vld [vmem:[#allocation5 + $0x78] sm:$0xff]  ;;  %v7793_v52 = vcombine.high %v135_v46, %v139_v48 }
 0x14a   :  { %v7795_v55 = vcombine.high %v136_v50, %v140_v51  ;;  %v180_v40 = vld [vmem:[#allocation5 + $0x1b8] sm:$0xff] }
 0x14c   :  { %3385 = vmatpush1.bf16.msra.mxu0 %v8252_v1  ;;  %3549 = vmatpush1.bf16.msra.mxu1 %v8254_v2  ;;  %v7792_v1 = vcombine.low %v135_v46, %v139_v48  ;;  %v7794_v2 = vcombine.low %v136_v50, %v140_v51  ;;  %v187_v46 = vld [vmem:[#allocation5 + $0x1f0] sm:$0xff]  ;;  %v184_v48 = vld [vmem:[#allocation5 + $0x1d8] sm:$0xff] }
 0x14d   :  { %3386 = vmatprep.subr.bf16.mxu0 %v8261_v3  ;;  %3550 = vmatprep.subr.bf16.mxu1 %v8263_v4  ;;  %v7801_v3 = vcombine.high %v143_v56, %v147_v57  ;;  %v7803_v4 = vcombine.high %v144_v59, %v148_v60  ;;  %v188_v50 = vld [vmem:[#allocation5 + $0x1f8] sm:$0xff] }
 0x150   :  { %3387 = vmatpush1.bf16.msra.mxu0 %v8260_v9  ;;  %3551 = vmatpush1.bf16.msra.mxu1 %v8262_v13  ;;  %v7800_v9 = vcombine.low %v143_v56, %v147_v57  ;;  %v7802_v13 = vcombine.low %v144_v59, %v148_v60  ;;  %v195_v56 = vld [vmem:[#allocation5 + $0x230] sm:$0xff]  ;;  %v192_v57 = vld [vmem:[#allocation5 + $0x218] sm:$0xff] }
 0x151   :  { %3388 = vmatprep.subr.bf16.mxu0 %v8269_v14  ;;  %3552 = vmatprep.subr.bf16.mxu1 %v8271_v15  ;;  %v7809_v14 = vcombine.high %v151_v5, %v155_v6  ;;  %v7811_v15 = vcombine.high %v152_v32, %v156_v8  ;;  %v196_v59 = vld [vmem:[#allocation5 + $0x238] sm:$0xff] }
 0x154   :  { %3389 = vmatpush1.bf16.msra.mxu0 %v8268_v21  ;;  %3553 = vmatpush1.bf16.msra.mxu1 %v8270_v22  ;;  %v7808_v21 = vcombine.low %v151_v5, %v155_v6  ;;  %v7810_v22 = vcombine.low %v152_v32, %v156_v8  ;;  %v203_v5 = vld [vmem:[#allocation5 + $0x270] sm:$0xff]  ;;  %v200_v6 = vld [vmem:[#allocation5 + $0x258] sm:$0xff] }
 0x155   :  { %3390 = vmatprep.subr.bf16.mxu0 %v8277_v23  ;;  %3554 = vmatprep.subr.bf16.mxu1 %v8279_v24  ;;  %v7817_v23 = vcombine.high %v159_v16, %v163_v17  ;;  %v167_v24 = vld [vmem:[#allocation5 + $0x150] sm:$0xff]  ;;  %v204_v32 = vld [vmem:[#allocation5 + $0x278] sm:$0xff] }
 0x156   :  { %v7824_v41 = vcombine.low %v167_v24, %v171_v25  ;;  %v211_v16 = vld [vmem:[#allocation5 + $0x2b0] sm:$0xff]  ;;  %v208_v17 = vld [vmem:[#allocation5 + $0x298] sm:$0xff] }
 0x158   :  { %3391 = vmatpush1.bf16.msra.mxu0 %v8276_v33  ;;  %3555 = vmatpush1.bf16.msra.mxu1 %v8278_v34  ;;  %v7818_v33 = vcombine.low %v160_v54, %v164_v20  ;;  %v7825_v34 = vcombine.high %v167_v24, %v171_v25  ;;  %v219_v24 = vld [vmem:[#allocation5 + $0x2f0] sm:$0xff]  ;;  %v216_v25 = vld [vmem:[#allocation5 + $0x2d8] sm:$0xff] }
 0x159   :  { %3392 = vmatprep.subr.bf16.mxu0 %v8285_v35  ;;  %3556 = vmatprep.subr.bf16.mxu1 %v8287_v36  ;;  %v7827_v35 = vcombine.high %v168_v26, %v172_v28  ;;  %v175_v36 = vld [vmem:[#allocation5 + $0x190] sm:$0xff] }
 0x15a   :  { %v7832_v51 = vcombine.low %v175_v36, %v179_v37 }
 0x15c   :  { %3393 = vmatpush1.bf16.msra.mxu0 %v8284_v42  ;;  %3557 = vmatpush1.bf16.msra.mxu1 %v8286_v43  ;;  %v7826_v42 = vcombine.low %v168_v26, %v172_v28  ;;  %v7833_v43 = vcombine.high %v175_v36, %v179_v37  ;;  %v220_v26 = vld [vmem:[#allocation5 + $0x2f8] sm:$0xff]  ;;  %v227_v36 = vld [vmem:[#allocation5 + $0x330] sm:$0xff] }
 0x15d   :  { %3567 = vmatprep.subr.bf16.mxu0 %v7785_v44  ;;  %3731 = vmatprep.subr.bf16.mxu1 %v7787_v45  ;;  %v7835_v44 = vcombine.high %v176_v38, %v180_v40  ;;  %v183_v45 = vld [vmem:[#allocation5 + $0x1d0] sm:$0xff]  ;;  %v224_v37 = vld [vmem:[#allocation5 + $0x318] sm:$0xff] }
 0x15e   :  { %v7840_v60 = vcombine.low %v183_v45, %v187_v46 }
 0x15f   :  { %3395 = vmatmul.mubr.bf16.vlgmr.msra.gmra.mrb[0].mxu0 %v9271_v49  ;;  %3559 = vmatmul.mubr.bf16.vlgmr.msra.gmra.mrb[0].mxu1 %v9271_v49 }
 0x160   :  { %3568 = vmatpush1.bf16.msra.mxu0 %v7784_v63  ;;  %3732 = vmatpush1.bf16.msra.mxu1 %v7786_v0  ;;  %v7834_v63 = vcombine.low %v176_v38, %v180_v40  ;;  %v7841_v0 = vcombine.high %v183_v45, %v187_v46  ;;  %v228_v38 = vld [vmem:[#allocation5 + $0x338] sm:$0xff]  ;;  %v235_v45 = vld [vmem:[#allocation5 + $0x370] sm:$0xff] }
 0x161   :  { %3569 = vmatprep.subr.bf16.mxu0 %v7793_v52  ;;  %3733 = vmatprep.subr.bf16.mxu1 %v7795_v55  ;;  %v7843_v52 = vcombine.high %v184_v48, %v188_v50  ;;  %v191_v55 = vld [vmem:[#allocation5 + $0x210] sm:$0xff]  ;;  %v232_v46 = vld [vmem:[#allocation5 + $0x358] sm:$0xff] }
 0x162   :  { %3599 = vmatprep.mubr.bf16.mxu0 %v9189_v62  ;;  %3763 = vmatprep.mubr.bf16.mxu1 %v9189_v62  ;;  %v7819_v62 = vcombine.high %v160_v54, %v164_v20  ;;  %v7848_v8 = vcombine.low %v191_v55, %v195_v56  ;;  %v212_v54 = vld [vmem:[#allocation5 + $0x2b8] sm:$0xff] }
 0x164   :  { %3570 = vmatpush1.bf16.msra.mxu0 %v7792_v1  ;;  %3734 = vmatpush1.bf16.msra.mxu1 %v7794_v2  ;;  %v7842_v1 = vcombine.low %v184_v48, %v188_v50  ;;  %v7849_v2 = vcombine.high %v191_v55, %v195_v56  ;;  %v236_v48 = vld [vmem:[#allocation5 + $0x378] sm:$0xff]  ;;  %v243_v55 = vld [vmem:[#allocation5 + $0x3b0] sm:$0xff] }
 0x165   :  { %3571 = vmatprep.subr.bf16.mxu0 %v7801_v3  ;;  %3735 = vmatprep.subr.bf16.mxu1 %v7803_v4  ;;  %v7851_v3 = vcombine.high %v192_v57, %v196_v59  ;;  %v199_v4 = vld [vmem:[#allocation5 + $0x250] sm:$0xff]  ;;  %v240_v56 = vld [vmem:[#allocation5 + $0x398] sm:$0xff] }
 0x166   :  { %v7856_v20 = vcombine.low %v199_v4, %v203_v5 }
 0x168   :  { %3572 = vmatpush1.bf16.msra.mxu0 %v7800_v9  ;;  %3736 = vmatpush1.bf16.msra.mxu1 %v7802_v13  ;;  %v7850_v9 = vcombine.low %v192_v57, %v196_v59  ;;  %v7857_v13 = vcombine.high %v199_v4, %v203_v5  ;;  %v244_v57 = vld [vmem:[#allocation5 + $0x3b8] sm:$0xff]  ;;  %v251_v4 = vld [vmem:[#allocation5 + $0x3f0] sm:$0xff] }
 0x169   :  { %3573 = vmatprep.subr.bf16.mxu0 %v7809_v14  ;;  %3737 = vmatprep.subr.bf16.mxu1 %v7811_v15  ;;  %v7859_v14 = vcombine.high %v200_v6, %v204_v32  ;;  %v207_v15 = vld [vmem:[#allocation5 + $0x290] sm:$0xff]  ;;  %v248_v5 = vld [vmem:[#allocation5 + $0x3d8] sm:$0xff] }
 0x16a   :  { %v7864_v28 = vcombine.low %v207_v15, %v211_v16 }
 0x16c   :  { %3574 = vmatpush1.bf16.msra.mxu0 %v7808_v21  ;;  %3738 = vmatpush1.bf16.msra.mxu1 %v7810_v22  ;;  %v7858_v21 = vcombine.low %v200_v6, %v204_v32  ;;  %v7865_v22 = vcombine.high %v207_v15, %v211_v16  ;;  %v252_v6 = vld [vmem:[#allocation5 + $0x3f8] sm:$0xff]  ;;  %v259_v15 = vld [vmem:[#allocation5 + $0x430] sm:$0xff] }
 0x16d   :  { %3575 = vmatprep.subr.bf16.mxu0 %v7817_v23  ;;  %3739 = vmatprep.subr.bf16.mxu1 %v7819_v62  ;;  %v7867_v23 = vcombine.high %v208_v17, %v212_v54  ;;  %v215_v62 = vld [vmem:[#allocation5 + $0x2d0] sm:$0xff]  ;;  %v256_v16 = vld [vmem:[#allocation5 + $0x418] sm:$0xff] }
 0x16e   :  { %v7872_v40 = vcombine.low %v215_v62, %v219_v24 }
 0x170   :  { %3576 = vmatpush1.bf16.msra.mxu0 %v7816_v29  ;;  %3740 = vmatpush1.bf16.msra.mxu1 %v7818_v33  ;;  %v7866_v29 = vcombine.low %v208_v17, %v212_v54  ;;  %v7873_v33 = vcombine.high %v215_v62, %v219_v24  ;;  %v260_v17 = vld [vmem:[#allocation5 + $0x438] sm:$0xff]  ;;  %v267_v62 = vld [vmem:[#allocation5 + $0x470] sm:$0xff] }
 0x171   :  { %3577 = vmatprep.subr.bf16.mxu0 %v7825_v34  ;;  %3741 = vmatprep.subr.bf16.mxu1 %v7827_v35  ;;  %v7875_v34 = vcombine.high %v216_v25, %v220_v26  ;;  %v223_v35 = vld [vmem:[#allocation5 + $0x310] sm:$0xff]  ;;  %v264_v24 = vld [vmem:[#allocation5 + $0x458] sm:$0xff] }
 0x172   :  { %v7880_v50 = vcombine.low %v223_v35, %v227_v36 }
 0x174   :  { %3578 = vmatpush1.bf16.msra.mxu0 %v7824_v41  ;;  %3742 = vmatpush1.bf16.msra.mxu1 %v7826_v42  ;;  %v7874_v41 = vcombine.low %v216_v25, %v220_v26  ;;  %v7881_v42 = vcombine.high %v223_v35, %v227_v36  ;;  %v268_v25 = vld [vmem:[#allocation5 + $0x478] sm:$0xff]  ;;  %v275_v35 = vld [vmem:[#allocation5 + $0x4b0] sm:$0xff] }
 0x175   :  { %3579 = vmatprep.subr.bf16.mxu0 %v7833_v43  ;;  %3743 = vmatprep.subr.bf16.mxu1 %v7835_v44  ;;  %v7883_v43 = vcombine.high %v224_v37, %v228_v38  ;;  %v231_v44 = vld [vmem:[#allocation5 + $0x350] sm:$0xff]  ;;  %v272_v36 = vld [vmem:[#allocation5 + $0x498] sm:$0xff] }
 0x176   :  { %v7888_v59 = vcombine.low %v231_v44, %v235_v45 }
 0x178   :  { %3580 = vmatpush1.bf16.msra.mxu0 %v7832_v51  ;;  %3744 = vmatpush1.bf16.msra.mxu1 %v7834_v63  ;;  %v7882_v51 = vcombine.low %v224_v37, %v228_v38  ;;  %v7889_v63 = vcombine.high %v231_v44, %v235_v45  ;;  %v276_v37 = vld [vmem:[#allocation5 + $0x4b8] sm:$0xff]  ;;  %v283_v44 = vld [vmem:[#allocation5 + $0x4f0] sm:$0xff] }
 0x179   :  { %3581 = vmatprep.subr.bf16.mxu0 %v7841_v0  ;;  %3745 = vmatprep.subr.bf16.mxu1 %v7843_v52  ;;  %v7891_v0 = vcombine.high %v232_v46, %v236_v48  ;;  %v239_v52 = vld [vmem:[#allocation5 + $0x390] sm:$0xff]  ;;  %v280_v45 = vld [vmem:[#allocation5 + $0x4d8] sm:$0xff] }
 0x17a   :  { %v7896_v32 = vcombine.low %v239_v52, %v243_v55 }
 0x17c   :  { %3582 = vmatpush1.bf16.msra.mxu0 %v7840_v60  ;;  %3746 = vmatpush1.bf16.msra.mxu1 %v7842_v1  ;;  %v7890_v60 = vcombine.low %v232_v46, %v236_v48  ;;  %v7897_v1 = vcombine.high %v239_v52, %v243_v55  ;;  %v284_v46 = vld [vmem:[#allocation5 + $0x4f8] sm:$0xff] }
 0x17d   :  { %3583 = vmatprep.subr.bf16.mxu0 %v7849_v2  ;;  %3747 = vmatprep.subr.bf16.mxu1 %v7851_v3  ;;  %v7899_v2 = vcombine.high %v240_v56, %v244_v57  ;;  %v247_v3 = vld [vmem:[#allocation5 + $0x3d0] sm:$0xff]  ;;  %v288_v52 = vld [vmem:[#allocation5 + $0x518] sm:$0xff] }
 0x17e   :  { %v7904_v54 = vcombine.low %v247_v3, %v251_v4  ;;  %v292_v55 = vld [vmem:[#allocation5 + $0x538] sm:$0xff] }
 0x180   :  { %3584 = vmatpush1.bf16.msra.mxu0 %v7848_v8  ;;  %3748 = vmatpush1.bf16.msra.mxu1 %v7850_v9  ;;  %v7898_v8 = vcombine.low %v240_v56, %v244_v57  ;;  %v7905_v9 = vcombine.high %v247_v3, %v251_v4  ;;  %v7938_v57 = vcombine.low %v280_v45, %v284_v46  ;;  %v300_v3 = vld [vmem:[#allocation5 + $0x578] sm:$0xff] }
 0x181   :  { %3585 = vmatprep.subr.bf16.mxu0 %v7857_v13  ;;  %3749 = vmatprep.subr.bf16.mxu1 %v7859_v14  ;;  %v7907_v13 = vcombine.high %v248_v5, %v252_v6  ;;  %v255_v14 = vld [vmem:[#allocation5 + $0x410] sm:$0xff] }
 0x182   :  { %v7912_v26 = vcombine.low %v255_v14, %v259_v15 }
 0x184   :  { %3586 = vmatpush1.bf16.msra.mxu0 %v7856_v20  ;;  %3750 = vmatpush1.bf16.msra.mxu1 %v7858_v21  ;;  %v7906_v20 = vcombine.low %v248_v5, %v252_v6  ;;  %v7913_v21 = vcombine.high %v255_v14, %v259_v15  ;;  %v7946_v5 = vcombine.low %v288_v52, %v292_v55  ;;  %v308_v14 = vld [vmem:[#allocation5 + $0x5b8] sm:$0xff] }
 0x185   :  { %3587 = vmatprep.subr.bf16.mxu0 %v7865_v22  ;;  %3751 = vmatprep.subr.bf16.mxu1 %v7867_v23  ;;  %v7915_v22 = vcombine.high %v256_v16, %v260_v17  ;;  %v263_v23 = vld [vmem:[#allocation5 + $0x450] sm:$0xff] }
 0x186   :  { %v7920_v38 = vcombine.low %v263_v23, %v267_v62 }
 0x188   :  { %3588 = vmatpush1.bf16.msra.mxu0 %v7864_v28  ;;  %3752 = vmatpush1.bf16.msra.mxu1 %v7866_v29  ;;  %v7914_v28 = vcombine.low %v256_v16, %v260_v17  ;;  %v7921_v29 = vcombine.high %v263_v23, %v267_v62  ;;  %v316_v23 = vld [vmem:[#allocation5 + $0x5f8] sm:$0xff] }
 0x189   :  { %3589 = vmatprep.subr.bf16.mxu0 %v7873_v33  ;;  %3753 = vmatprep.subr.bf16.mxu1 %v7875_v34  ;;  %v7923_v33 = vcombine.high %v264_v24, %v268_v25  ;;  %v271_v34 = vld [vmem:[#allocation5 + $0x490] sm:$0xff] }
 0x18a   :  { %v7928_v48 = vcombine.low %v271_v34, %v275_v35 }
 0x18c   :  { %3590 = vmatpush1.bf16.msra.mxu0 %v7872_v40  ;;  %3754 = vmatpush1.bf16.msra.mxu1 %v7874_v41  ;;  %v7922_v40 = vcombine.low %v264_v24, %v268_v25  ;;  %v7929_v41 = vcombine.high %v271_v34, %v275_v35  ;;  %v324_v34 = vld [vmem:[#allocation5 + $0x638] sm:$0xff] }
 0x18d   :  { %3591 = vmatprep.subr.bf16.mxu0 %v7881_v42  ;;  %3755 = vmatprep.subr.bf16.mxu1 %v7883_v43  ;;  %v7931_v42 = vcombine.high %v272_v36, %v276_v37  ;;  %v279_v43 = vld [vmem:[#allocation5 + $0x4d0] sm:$0xff] }
 0x18e   :  { %v7936_v56 = vcombine.low %v279_v43, %v283_v44 }
 0x190   :  { %3592 = vmatpush1.bf16.msra.mxu0 %v7880_v50  ;;  %3756 = vmatpush1.bf16.msra.mxu1 %v7882_v51  ;;  %v7937_v50 = vcombine.high %v279_v43, %v283_v44  ;;  %v7939_v51 = vcombine.high %v280_v45, %v284_v46  ;;  %v332_v43 = vld [vmem:[#allocation5 + $0x678] sm:$0xff] }
 0x191   :  { %3593 = vmatprep.subr.bf16.mxu0 %v7889_v63  ;;  %3757 = vmatprep.subr.bf16.mxu1 %v7891_v0  ;;  %v287_v63 = vld [vmem:[#allocation5 + $0x510] sm:$0xff] }
 0x192   :  { %v291_v0 = vld [vmem:[#allocation5 + $0x530] sm:$0xff] }
 0x193   :  { %v7944_v4 = vcombine.low %v287_v63, %v291_v0 }
 0x194   :  { %3594 = vmatpush1.bf16.msra.mxu0 %v7888_v59  ;;  %3758 = vmatpush1.bf16.msra.mxu1 %v7890_v60  ;;  %v7945_v59 = vcombine.high %v287_v63, %v291_v0  ;;  %v295_v60 = vld [vmem:[#allocation5 + $0x550] sm:$0xff]  ;;  %v340_v63 = vld [vmem:[#allocation5 + $0x6b8] sm:$0xff] }
 0x195   :  { %3595 = vmatprep.subr.bf16.mxu0 %v7897_v1  ;;  %3759 = vmatprep.subr.bf16.mxu1 %v7899_v2  ;;  %v299_v1 = vld [vmem:[#allocation5 + $0x570] sm:$0xff]  ;;  %v296_v2 = vld [vmem:[#allocation5 + $0x558] sm:$0xff] }
 0x196   :  { %v7953_v6 = vcombine.high %v295_v60, %v299_v1  ;;  %v7952_v15 = vcombine.low %v295_v60, %v299_v1  ;;  %v7954_v16 = vcombine.low %v296_v2, %v300_v3  ;;  %v348_v60 = vld [vmem:[#allocation5 + $0x6f8] sm:$0xff] }
 0x198   :  { %3596 = vmatpush1.bf16.msra.mxu0 %v7896_v32  ;;  %3760 = vmatpush1.bf16.msra.mxu1 %v7898_v8  ;;  %v7955_v32 = vcombine.high %v296_v2, %v300_v3  ;;  %v303_v8 = vld [vmem:[#allocation5 + $0x590] sm:$0xff] }
 0x199   :  { %3597 = vmatprep.subr.bf16.mxu0 %v7905_v9  ;;  %3761 = vmatprep.subr.bf16.mxu1 %v7907_v13  ;;  %v307_v9 = vld [vmem:[#allocation5 + $0x5b0] sm:$0xff]  ;;  %v304_v13 = vld [vmem:[#allocation5 + $0x598] sm:$0xff] }
 0x19a   :  { %v7961_v17 = vcombine.high %v303_v8, %v307_v9  ;;  %v7960_v62 = vcombine.low %v303_v8, %v307_v9  ;;  %v7962_v24 = vcombine.low %v304_v13, %v308_v14  ;;  %v356_v8 = vld [vmem:[#allocation5 + $0x738] sm:$0xff] }
 0x19c   :  { %3598 = vmatpush1.bf16.msra.mxu0 %v7904_v54  ;;  %3762 = vmatpush1.bf16.msra.mxu1 %v7906_v20  ;;  %v7963_v54 = vcombine.high %v304_v13, %v308_v14  ;;  %v311_v20 = vld [vmem:[#allocation5 + $0x5d0] sm:$0xff] }
 0x19d   :  { %3608 = vmatprep.subr.bf16.mxu0 %v7913_v21  ;;  %3772 = vmatprep.subr.bf16.mxu1 %v7915_v22  ;;  %v315_v21 = vld [vmem:[#allocation5 + $0x5f0] sm:$0xff]  ;;  %v312_v22 = vld [vmem:[#allocation5 + $0x5d8] sm:$0xff] }
 0x19e   :  { %v7969_v25 = vcombine.high %v311_v20, %v315_v21  ;;  %v7968_v35 = vcombine.low %v311_v20, %v315_v21  ;;  %v364_v20 = vld [vmem:[#allocation5 + $0x778] sm:$0xff] }
 0x19f   :  { %3600 = vmatmul.mubr.bf16.vlgmr.msra.gmra.mrb[4].mxu0 %v9207_v53  ;;  %3764 = vmatmul.mubr.bf16.vlgmr.msra.gmra.mrb[4].mxu1 %v9207_v53  ;;  %v7930_v53 = vcombine.low %v272_v36, %v276_v37  ;;  %v7970_v36 = vcombine.low %v312_v22, %v316_v23 }
 0x1a0   :  { %3609 = vmatpush1.bf16.msra.mxu0 %v7912_v26  ;;  %3773 = vmatpush1.bf16.msra.mxu1 %v7914_v28  ;;  %v7971_v26 = vcombine.high %v312_v22, %v316_v23  ;;  %v319_v28 = vld [vmem:[#allocation5 + $0x610] sm:$0xff] }
 0x1a1   :  { %3610 = vmatprep.subr.bf16.mxu0 %v7921_v29  ;;  %3774 = vmatprep.subr.bf16.mxu1 %v7923_v33  ;;  %v323_v29 = vld [vmem:[#allocation5 + $0x630] sm:$0xff]  ;;  %v320_v33 = vld [vmem:[#allocation5 + $0x618] sm:$0xff] }
 0x1a2   :  { %3640 = vmatprep.mubr.bf16.mxu0 %v9211_v27  ;;  %3804 = vmatprep.mubr.bf16.mxu1 %v9211_v27  ;;  %v7947_v27 = vcombine.high %v288_v52, %v292_v55  ;;  %v7977_v37 = vcombine.high %v319_v28, %v323_v29  ;;  %v7976_v44 = vcombine.low %v319_v28, %v323_v29  ;;  %v372_v28 = vld [vmem:[#allocation5 + $0x7b8] sm:$0xff] }
 0x1a3   :  { %v7978_v45 = vcombine.low %v320_v33, %v324_v34 }
 0x1a4   :  { %3611 = vmatpush1.bf16.msra.mxu0 %v7920_v38  ;;  %3775 = vmatpush1.bf16.msra.mxu1 %v7922_v40  ;;  %v7979_v38 = vcombine.high %v320_v33, %v324_v34  ;;  %v327_v40 = vld [vmem:[#allocation5 + $0x650] sm:$0xff] }
 0x1a5   :  { %3612 = vmatprep.subr.bf16.mxu0 %v7929_v41  ;;  %3776 = vmatprep.subr.bf16.mxu1 %v7931_v42  ;;  %v331_v41 = vld [vmem:[#allocation5 + $0x670] sm:$0xff]  ;;  %v328_v42 = vld [vmem:[#allocation5 + $0x658] sm:$0xff] }
 0x1a6   :  { %v7985_v46 = vcombine.high %v327_v40, %v331_v41  ;;  %v7984_v0 = vcombine.low %v327_v40, %v331_v41  ;;  %v7986_v52 = vcombine.low %v328_v42, %v332_v43  ;;  %v380_v40 = vld [vmem:[#allocation5 + $0x7f8] sm:$0xff] }
 0x1a8   :  { %3613 = vmatpush1.bf16.msra.mxu0 %v7928_v48  ;;  %3777 = vmatpush1.bf16.msra.mxu1 %v7930_v53  ;;  %v7987_v48 = vcombine.high %v328_v42, %v332_v43  ;;  %v335_v53 = vld [vmem:[#allocation5 + $0x690] sm:$0xff] }
 0x1a9   :  { %3614 = vmatprep.subr.bf16.mxu0 %v7937_v50  ;;  %3778 = vmatprep.subr.bf16.mxu1 %v7939_v51  ;;  %v339_v50 = vld [vmem:[#allocation5 + $0x6b0] sm:$0xff]  ;;  %v336_v51 = vld [vmem:[#allocation5 + $0x698] sm:$0xff] }
 0x1aa   :  { %v7993_v55 = vcombine.high %v335_v53, %v339_v50  ;;  %v7992_v1 = vcombine.low %v335_v53, %v339_v50  ;;  %v7994_v2 = vcombine.low %v336_v51, %v340_v63  ;;  %v388_v53 = vld [vmem:[#allocation5 + $0x838] sm:$0xff] }
 0x1ac   :  { %3615 = vmatpush1.bf16.msra.mxu0 %v7936_v56  ;;  %3779 = vmatpush1.bf16.msra.mxu1 %v7938_v57  ;;  %v7995_v56 = vcombine.high %v336_v51, %v340_v63  ;;  %v343_v57 = vld [vmem:[#allocation5 + $0x6d0] sm:$0xff] }
 0x1ad   :  { %3616 = vmatprep.subr.bf16.mxu0 %v7945_v59  ;;  %3780 = vmatprep.subr.bf16.mxu1 %v7947_v27  ;;  %v347_v59 = vld [vmem:[#allocation5 + $0x6f0] sm:$0xff]  ;;  %v344_v27 = vld [vmem:[#allocation5 + $0x6d8] sm:$0xff] }
 0x1ae   :  { %v8001_v3 = vcombine.high %v343_v57, %v347_v59  ;;  %v8000_v9 = vcombine.low %v343_v57, %v347_v59  ;;  %v8002_v13 = vcombine.low %v344_v27, %v348_v60  ;;  %v396_v57 = vld [vmem:[#allocation5 + $0x878] sm:$0xff] }
 0x1b0   :  { %3617 = vmatpush1.bf16.msra.mxu0 %v7944_v4  ;;  %3781 = vmatpush1.bf16.msra.mxu1 %v7946_v5  ;;  %v8003_v4 = vcombine.high %v344_v27, %v348_v60  ;;  %v351_v5 = vld [vmem:[#allocation5 + $0x710] sm:$0xff] }
 0x1b1   :  { %3618 = vmatprep.subr.bf16.mxu0 %v7953_v6  ;;  %3782 = vmatprep.subr.bf16.mxu1 %v7955_v32  ;;  %v355_v6 = vld [vmem:[#allocation5 + $0x730] sm:$0xff]  ;;  %v352_v32 = vld [vmem:[#allocation5 + $0x718] sm:$0xff] }
 0x1b2   :  { %v8009_v14 = vcombine.high %v351_v5, %v355_v6  ;;  %v8008_v21 = vcombine.low %v351_v5, %v355_v6  ;;  %v8010_v22 = vcombine.low %v352_v32, %v356_v8  ;;  %v404_v5 = vld [vmem:[#allocation5 + $0x8b8] sm:$0xff] }
 0x1b4   :  { %3619 = vmatpush1.bf16.msra.mxu0 %v7952_v15  ;;  %3783 = vmatpush1.bf16.msra.mxu1 %v7954_v16  ;;  %v8011_v15 = vcombine.high %v352_v32, %v356_v8  ;;  %v359_v16 = vld [vmem:[#allocation5 + $0x750] sm:$0xff] }
 0x1b5   :  { %3620 = vmatprep.subr.bf16.mxu0 %v7961_v17  ;;  %3784 = vmatprep.subr.bf16.mxu1 %v7963_v54  ;;  %v363_v17 = vld [vmem:[#allocation5 + $0x770] sm:$0xff]  ;;  %v360_v54 = vld [vmem:[#allocation5 + $0x758] sm:$0xff] }
 0x1b6   :  { %v8017_v23 = vcombine.high %v359_v16, %v363_v17  ;;  %v8016_v29 = vcombine.low %v359_v16, %v363_v17  ;;  %v8018_v33 = vcombine.low %v360_v54, %v364_v20  ;;  %v412_v16 = vld [vmem:[#allocation5 + $0x8f8] sm:$0xff] }
 0x1b8   :  { %3621 = vmatpush1.bf16.msra.mxu0 %v7960_v62  ;;  %3785 = vmatpush1.bf16.msra.mxu1 %v7962_v24  ;;  %v8019_v62 = vcombine.high %v360_v54, %v364_v20  ;;  %v367_v24 = vld [vmem:[#allocation5 + $0x790] sm:$0xff] }
 0x1b9   :  { %3622 = vmatprep.subr.bf16.mxu0 %v7969_v25  ;;  %3786 = vmatprep.subr.bf16.mxu1 %v7971_v26  ;;  %v371_v25 = vld [vmem:[#allocation5 + $0x7b0] sm:$0xff]  ;;  %v368_v26 = vld [vmem:[#allocation5 + $0x798] sm:$0xff] }
 0x1ba   :  { %v8025_v34 = vcombine.high %v367_v24, %v371_v25  ;;  %v8024_v41 = vcombine.low %v367_v24, %v371_v25  ;;  %v8026_v42 = vcombine.low %v368_v26, %v372_v28 }
 0x1bc   :  { %3623 = vmatpush1.bf16.msra.mxu0 %v7968_v35  ;;  %3787 = vmatpush1.bf16.msra.mxu1 %v7970_v36  ;;  %v8027_v35 = vcombine.high %v368_v26, %v372_v28  ;;  %v375_v36 = vld [vmem:[#allocation5 + $0x7d0] sm:$0xff] }
 0x1bd   :  { %3624 = vmatprep.subr.bf16.mxu0 %v7977_v37  ;;  %3788 = vmatprep.subr.bf16.mxu1 %v7979_v38  ;;  %v379_v37 = vld [vmem:[#allocation5 + $0x7f0] sm:$0xff]  ;;  %v376_v38 = vld [vmem:[#allocation5 + $0x7d8] sm:$0xff] }
 0x1be   :  { %v8033_v43 = vcombine.high %v375_v36, %v379_v37  ;;  %v8032_v50 = vcombine.low %v375_v36, %v379_v37  ;;  %v8034_v51 = vcombine.low %v376_v38, %v380_v40  ;;  %v423_v28 = vld [vmem:[#allocation5 + $0x950] sm:$0xff] }
 0x1c0   :  { %3625 = vmatpush1.bf16.msra.mxu0 %v7976_v44  ;;  %3789 = vmatpush1.bf16.msra.mxu1 %v7978_v45  ;;  %v8035_v44 = vcombine.high %v376_v38, %v380_v40  ;;  %v383_v45 = vld [vmem:[#allocation5 + $0x810] sm:$0xff] }
 0x1c1   :  { %3626 = vmatprep.subr.bf16.mxu0 %v7985_v46  ;;  %3790 = vmatprep.subr.bf16.mxu1 %v7987_v48  ;;  %v387_v46 = vld [vmem:[#allocation5 + $0x830] sm:$0xff]  ;;  %v384_v48 = vld [vmem:[#allocation5 + $0x818] sm:$0xff] }
 0x1c2   :  { %v8041_v63 = vcombine.high %v383_v45, %v387_v46  ;;  %v8040_v59 = vcombine.low %v383_v45, %v387_v46  ;;  %v8042_v27 = vcombine.low %v384_v48, %v388_v53  ;;  %v431_v40 = vld [vmem:[#allocation5 + $0x990] sm:$0xff] }
 0x1c4   :  { %3627 = vmatpush1.bf16.msra.mxu0 %v7984_v0  ;;  %3791 = vmatpush1.bf16.msra.mxu1 %v7986_v52  ;;  %v8043_v0 = vcombine.high %v384_v48, %v388_v53  ;;  %v391_v52 = vld [vmem:[#allocation5 + $0x850] sm:$0xff] }
 0x1c5   :  { %3628 = vmatprep.subr.bf16.mxu0 %v7993_v55  ;;  %3792 = vmatprep.subr.bf16.mxu1 %v7995_v56  ;;  %v395_v55 = vld [vmem:[#allocation5 + $0x870] sm:$0xff]  ;;  %v392_v56 = vld [vmem:[#allocation5 + $0x858] sm:$0xff] }
 0x1c6   :  { %v8049_v60 = vcombine.high %v391_v52, %v395_v55  ;;  %v8048_v6 = vcombine.low %v391_v52, %v395_v55  ;;  %v8050_v32 = vcombine.low %v392_v56, %v396_v57  ;;  %v439_v53 = vld [vmem:[#allocation5 + $0x9d0] sm:$0xff] }
 0x1c8   :  { %3629 = vmatpush1.bf16.msra.mxu0 %v7992_v1  ;;  %3793 = vmatpush1.bf16.msra.mxu1 %v7994_v2  ;;  %v8051_v1 = vcombine.high %v392_v56, %v396_v57  ;;  %v399_v2 = vld [vmem:[#allocation5 + $0x890] sm:$0xff] }
 0x1c9   :  { %3630 = vmatprep.subr.bf16.mxu0 %v8001_v3  ;;  %3794 = vmatprep.subr.bf16.mxu1 %v8003_v4  ;;  %v403_v3 = vld [vmem:[#allocation5 + $0x8b0] sm:$0xff]  ;;  %v400_v4 = vld [vmem:[#allocation5 + $0x898] sm:$0xff] }
 0x1ca   :  { %v8057_v8 = vcombine.high %v399_v2, %v403_v3  ;;  %v8056_v17 = vcombine.low %v399_v2, %v403_v3  ;;  %v447_v57 = vld [vmem:[#allocation5 + $0xa10] sm:$0xff] }
 0x1cc   :  { %3631 = vmatpush1.bf16.msra.mxu0 %v8000_v9  ;;  %3795 = vmatpush1.bf16.msra.mxu1 %v8002_v13  ;;  %v8059_v9 = vcombine.high %v400_v4, %v404_v5  ;;  %v407_v13 = vld [vmem:[#allocation5 + $0x8d0] sm:$0xff] }
 0x1cd   :  { %3632 = vmatprep.subr.bf16.mxu0 %v8009_v14  ;;  %3796 = vmatprep.subr.bf16.mxu1 %v8011_v15  ;;  %v411_v14 = vld [vmem:[#allocation5 + $0x8f0] sm:$0xff]  ;;  %v408_v15 = vld [vmem:[#allocation5 + $0x8d8] sm:$0xff] }
 0x1ce   :  { %v8065_v54 = vcombine.high %v407_v13, %v411_v14  ;;  %v8067_v20 = vcombine.high %v408_v15, %v412_v16  ;;  %v8064_v24 = vcombine.low %v407_v13, %v411_v14  ;;  %v8066_v25 = vcombine.low %v408_v15, %v412_v16  ;;  %v463_v16 = vld [vmem:[#allocation5 + $0xa90] sm:$0xff] }
 0x1d0   :  { %3633 = vmatpush1.bf16.msra.mxu0 %v8008_v21  ;;  %3797 = vmatpush1.bf16.msra.mxu1 %v8010_v22  ;;  %v415_v21 = vld [vmem:[#allocation5 + $0x910] sm:$0xff] }
 0x1d1   :  { %3634 = vmatprep.subr.bf16.mxu0 %v8017_v23  ;;  %3798 = vmatprep.subr.bf16.mxu1 %v8019_v62  ;;  %v419_v22 = vld [vmem:[#allocation5 + $0x930] sm:$0xff]  ;;  %v416_v23 = vld [vmem:[#allocation5 + $0x918] sm:$0xff] }
 0x1d2   :  { %v420_v62 = vld [vmem:[#allocation5 + $0x938] sm:$0xff]  ;;  %v8073_v26 = vcombine.high %v415_v21, %v419_v22 }
 0x1d3   :  { %v8074_v36 = vcombine.low %v416_v23, %v420_v62 }
 0x1d4   :  { %3635 = vmatpush1.bf16.msra.mxu0 %v8016_v29  ;;  %3799 = vmatpush1.bf16.msra.mxu1 %v8018_v33  ;;  %v427_v29 = vld [vmem:[#allocation5 + $0x970] sm:$0xff]  ;;  %v424_v33 = vld [vmem:[#allocation5 + $0x958] sm:$0xff] }
 0x1d5   :  { %3636 = vmatprep.subr.bf16.mxu0 %v8025_v34  ;;  %3800 = vmatprep.subr.bf16.mxu1 %v8027_v35  ;;  %v428_v34 = vld [vmem:[#allocation5 + $0x978] sm:$0xff]  ;;  %v8072_v35 = vcombine.low %v415_v21, %v419_v22  ;;  %v8081_v37 = vcombine.high %v423_v28, %v427_v29 }
 0x1d6   :  { %v8083_v38 = vcombine.high %v424_v33, %v428_v34  ;;  %v8082_v45 = vcombine.low %v424_v33, %v428_v34  ;;  %v479_v34 = vld [vmem:[#allocation5 + $0xb10] sm:$0xff] }
 0x1d8   :  { %3637 = vmatpush1.bf16.msra.mxu0 %v8024_v41  ;;  %3801 = vmatpush1.bf16.msra.mxu1 %v8026_v42  ;;  %v435_v41 = vld [vmem:[#allocation5 + $0x9b0] sm:$0xff]  ;;  %v432_v42 = vld [vmem:[#allocation5 + $0x998] sm:$0xff] }
 0x1d9   :  { %3638 = vmatprep.subr.bf16.mxu0 %v8033_v43  ;;  %3802 = vmatprep.subr.bf16.mxu1 %v8035_v44  ;;  %v436_v43 = vld [vmem:[#allocation5 + $0x9b8] sm:$0xff]  ;;  %v8080_v44 = vcombine.low %v423_v28, %v427_v29  ;;  %v8089_v46 = vcombine.high %v431_v40, %v435_v41 }
 0x1da   :  { %v8091_v48 = vcombine.high %v432_v42, %v436_v43  ;;  %v8090_v52 = vcombine.low %v432_v42, %v436_v43  ;;  %v487_v43 = vld [vmem:[#allocation5 + $0xb50] sm:$0xff] }
 0x1dc   :  { %3639 = vmatpush1.bf16.msra.mxu0 %v8032_v50  ;;  %3803 = vmatpush1.bf16.msra.mxu1 %v8034_v51  ;;  %v443_v50 = vld [vmem:[#allocation5 + $0x9f0] sm:$0xff]  ;;  %v440_v51 = vld [vmem:[#allocation5 + $0x9d8] sm:$0xff] }
 0x1dd   :  { %3649 = vmatprep.subr.bf16.mxu0 %v8041_v63  ;;  %3813 = vmatprep.subr.bf16.mxu1 %v8043_v0  ;;  %v444_v63 = vld [vmem:[#allocation5 + $0x9f8] sm:$0xff]  ;;  %v8088_v0 = vcombine.low %v431_v40, %v435_v41  ;;  %v8097_v55 = vcombine.high %v439_v53, %v443_v50 }
 0x1de   :  { %v8099_v56 = vcombine.high %v440_v51, %v444_v63  ;;  %v8098_v2 = vcombine.low %v440_v51, %v444_v63  ;;  %v495_v63 = vld [vmem:[#allocation5 + $0xb90] sm:$0xff] }
 0x1df   :  { %3641 = vmatmul.mubr.bf16.vlgmr.msra.gmra.mrb[4].mxu0 %v9231_v11  ;;  %3805 = vmatmul.mubr.bf16.vlgmr.msra.gmra.mrb[4].mxu1 %v9231_v11  ;;  %v8058_v11 = vcombine.low %v400_v4, %v404_v5  ;;  %v455_v5 = vld [vmem:[#allocation5 + $0xa50] sm:$0xff] }
 0x1e0   :  { %3650 = vmatpush1.bf16.msra.mxu0 %v8040_v59  ;;  %3814 = vmatpush1.bf16.msra.mxu1 %v8042_v27  ;;  %v451_v59 = vld [vmem:[#allocation5 + $0xa30] sm:$0xff]  ;;  %v448_v27 = vld [vmem:[#allocation5 + $0xa18] sm:$0xff] }
 0x1e1   :  { %3651 = vmatprep.subr.bf16.mxu0 %v8049_v60  ;;  %3815 = vmatprep.subr.bf16.mxu1 %v8051_v1  ;;  %v452_v60 = vld [vmem:[#allocation5 + $0xa38] sm:$0xff]  ;;  %v8096_v1 = vcombine.low %v439_v53, %v443_v50  ;;  %v8105_v3 = vcombine.high %v447_v57, %v451_v59 }
 0x1e2   :  { %3681 = vmatprep.mubr.bf16.mxu0 %v9235_v47  ;;  %3845 = vmatprep.mubr.bf16.mxu1 %v9235_v47  ;;  %v8075_v47 = vcombine.high %v416_v23, %v420_v62  ;;  %v8107_v4 = vcombine.high %v448_v27, %v452_v60  ;;  %v8106_v13 = vcombine.low %v448_v27, %v452_v60  ;;  %v471_v62 = vld [vmem:[#allocation5 + $0xad0] sm:$0xff] }
 0x1e3   :  { %v503_v60 = vld [vmem:[#allocation5 + $0xbd0] sm:$0xff] }
 0x1e4   :  { %3652 = vmatpush1.bf16.msra.mxu0 %v8048_v6  ;;  %3816 = vmatpush1.bf16.msra.mxu1 %v8050_v32  ;;  %v459_v6 = vld [vmem:[#allocation5 + $0xa70] sm:$0xff]  ;;  %v456_v32 = vld [vmem:[#allocation5 + $0xa58] sm:$0xff] }
 0x1e5   :  { %3653 = vmatprep.subr.bf16.mxu0 %v8057_v8  ;;  %3817 = vmatprep.subr.bf16.mxu1 %v8059_v9  ;;  %v460_v8 = vld [vmem:[#allocation5 + $0xa78] sm:$0xff]  ;;  %v8104_v9 = vcombine.low %v447_v57, %v451_v59  ;;  %v8113_v14 = vcombine.high %v455_v5, %v459_v6 }
 0x1e6   :  { %v8115_v15 = vcombine.high %v456_v32, %v460_v8  ;;  %v8114_v21 = vcombine.low %v456_v32, %v460_v8  ;;  %v511_v8 = vld [vmem:[#allocation5 + $0xc10] sm:$0xff] }
 0x1e8   :  { %3654 = vmatpush1.bf16.msra.mxu0 %v8056_v17  ;;  %3818 = vmatpush1.bf16.msra.mxu1 %v8058_v11  ;;  %v467_v17 = vld [vmem:[#allocation5 + $0xab0] sm:$0xff]  ;;  %v464_v11 = vld [vmem:[#allocation5 + $0xa98] sm:$0xff] }
 0x1e9   :  { %3655 = vmatprep.subr.bf16.mxu0 %v8065_v54  ;;  %3819 = vmatprep.subr.bf16.mxu1 %v8067_v20  ;;  %v468_v54 = vld [vmem:[#allocation5 + $0xab8] sm:$0xff]  ;;  %v8112_v20 = vcombine.low %v455_v5, %v459_v6  ;;  %v8121_v22 = vcombine.high %v463_v16, %v467_v17 }
 0x1ea   :  { %v8123_v23 = vcombine.high %v464_v11, %v468_v54  ;;  %v8122_v28 = vcombine.low %v464_v11, %v468_v54  ;;  %v519_v54 = vld [vmem:[#allocation5 + $0xc50] sm:$0xff] }
 0x1ec   :  { %3656 = vmatpush1.bf16.msra.mxu0 %v8064_v24  ;;  %3820 = vmatpush1.bf16.msra.mxu1 %v8066_v25  ;;  %v475_v24 = vld [vmem:[#allocation5 + $0xaf0] sm:$0xff]  ;;  %v472_v25 = vld [vmem:[#allocation5 + $0xad8] sm:$0xff] }
 0x1ed   :  { %3657 = vmatprep.subr.bf16.mxu0 %v8073_v26  ;;  %3821 = vmatprep.subr.bf16.mxu1 %v8075_v47  ;;  %v476_v26 = vld [vmem:[#allocation5 + $0xaf8] sm:$0xff]  ;;  %v8120_v47 = vcombine.low %v463_v16, %v467_v17  ;;  %v8129_v29 = vcombine.high %v471_v62, %v475_v24 }
 0x1ee   :  { %v8131_v33 = vcombine.high %v472_v25, %v476_v26  ;;  %v8130_v40 = vcombine.low %v472_v25, %v476_v26  ;;  %v527_v26 = vld [vmem:[#allocation5 + $0xc90] sm:$0xff] }
 0x1f0   :  { %3658 = vmatpush1.bf16.msra.mxu0 %v8072_v35  ;;  %3822 = vmatpush1.bf16.msra.mxu1 %v8074_v36  ;;  %v483_v35 = vld [vmem:[#allocation5 + $0xb30] sm:$0xff]  ;;  %v480_v36 = vld [vmem:[#allocation5 + $0xb18] sm:$0xff] }
 0x1f1   :  { %3659 = vmatprep.subr.bf16.mxu0 %v8081_v37  ;;  %3823 = vmatprep.subr.bf16.mxu1 %v8083_v38  ;;  %v484_v37 = vld [vmem:[#allocation5 + $0xb38] sm:$0xff]  ;;  %v8128_v38 = vcombine.low %v471_v62, %v475_v24  ;;  %v8137_v41 = vcombine.high %v479_v34, %v483_v35 }
 0x1f2   :  { %v8139_v42 = vcombine.high %v480_v36, %v484_v37  ;;  %v8138_v53 = vcombine.low %v480_v36, %v484_v37  ;;  %v535_v37 = vld [vmem:[#allocation5 + $0xcd0] sm:$0xff] }
 0x1f4   :  { %3660 = vmatpush1.bf16.msra.mxu0 %v8080_v44  ;;  %3824 = vmatpush1.bf16.msra.mxu1 %v8082_v45  ;;  %v491_v44 = vld [vmem:[#allocation5 + $0xb70] sm:$0xff]  ;;  %v488_v45 = vld [vmem:[#allocation5 + $0xb58] sm:$0xff] }
 0x1f5   :  { %3661 = vmatprep.subr.bf16.mxu0 %v8089_v46  ;;  %3825 = vmatprep.subr.bf16.mxu1 %v8091_v48  ;;  %v492_v46 = vld [vmem:[#allocation5 + $0xb78] sm:$0xff]  ;;  %v8136_v48 = vcombine.low %v479_v34, %v483_v35  ;;  %v8145_v50 = vcombine.high %v487_v43, %v491_v44 }
 0x1f6   :  { %v8147_v51 = vcombine.high %v488_v45, %v492_v46  ;;  %v8146_v57 = vcombine.low %v488_v45, %v492_v46  ;;  %v543_v45 = vld [vmem:[#allocation5 + $0xd10] sm:$0xff] }
 0x1f7   :  { %v547_v46 = vld [vmem:[#allocation5 + $0xd30] sm:$0xff] }
 0x1f8   :  { %3662 = vmatpush1.bf16.msra.mxu0 %v8088_v0  ;;  %3826 = vmatpush1.bf16.msra.mxu1 %v8090_v52  ;;  %v499_v0 = vld [vmem:[#allocation5 + $0xbb0] sm:$0xff]  ;;  %v496_v52 = vld [vmem:[#allocation5 + $0xb98] sm:$0xff] }
 0x1f9   :  { %3663 = vmatprep.subr.bf16.mxu0 %v8097_v55  ;;  %3827 = vmatprep.subr.bf16.mxu1 %v8099_v56  ;;  %v500_v55 = vld [vmem:[#allocation5 + $0xbb8] sm:$0xff]  ;;  %v8144_v56 = vcombine.low %v487_v43, %v491_v44  ;;  %v8153_v59 = vcombine.high %v495_v63, %v499_v0 }
 0x1fa   :  { %v8155_v27 = vcombine.high %v496_v52, %v500_v55  ;;  %v8154_v5 = vcombine.low %v496_v52, %v500_v55  ;;  %v555_v52 = vld [vmem:[#allocation5 + $0xd70] sm:$0xff]  ;;  %v552_v55 = vld [vmem:[#allocation5 + $0xd58] sm:$0xff] }
 0x1fc   :  { %3664 = vmatpush1.bf16.msra.mxu0 %v8096_v1  ;;  %3828 = vmatpush1.bf16.msra.mxu1 %v8098_v2  ;;  %v507_v1 = vld [vmem:[#allocation5 + $0xbf0] sm:$0xff]  ;;  %v504_v2 = vld [vmem:[#allocation5 + $0xbd8] sm:$0xff] }
 0x1fd   :  { %3665 = vmatprep.subr.bf16.mxu0 %v8105_v3  ;;  %3829 = vmatprep.subr.bf16.mxu1 %v8107_v4  ;;  %v508_v3 = vld [vmem:[#allocation5 + $0xbf8] sm:$0xff]  ;;  %v8152_v4 = vcombine.low %v495_v63, %v499_v0  ;;  %v8161_v6 = vcombine.high %v503_v60, %v507_v1  ;;  %v8201_v63 = vcombine.high %v543_v45, %v547_v46  ;;  %v551_v0 = vld [vmem:[#allocation5 + $0xd50] sm:$0xff] }
 0x1fe   :  { %v8163_v32 = vcombine.high %v504_v2, %v508_v3  ;;  %v8162_v16 = vcombine.low %v504_v2, %v508_v3  ;;  %v563_v2 = vld [vmem:[#allocation5 + $0xdb0] sm:$0xff]  ;;  %v560_v3 = vld [vmem:[#allocation5 + $0xd98] sm:$0xff] }
 0x200   :  { %3666 = vmatpush1.bf16.msra.mxu0 %v8104_v9  ;;  %3830 = vmatpush1.bf16.msra.mxu1 %v8106_v13  ;;  %v515_v9 = vld [vmem:[#allocation5 + $0xc30] sm:$0xff]  ;;  %v512_v13 = vld [vmem:[#allocation5 + $0xc18] sm:$0xff] }
 0x201   :  { %3667 = vmatprep.subr.bf16.mxu0 %v8113_v14  ;;  %3831 = vmatprep.subr.bf16.mxu1 %v8115_v15  ;;  %v516_v14 = vld [vmem:[#allocation5 + $0xc38] sm:$0xff]  ;;  %v8160_v15 = vcombine.low %v503_v60, %v507_v1  ;;  %v8169_v17 = vcombine.high %v511_v8, %v515_v9  ;;  %v559_v1 = vld [vmem:[#allocation5 + $0xd90] sm:$0xff] }
 0x202   :  { %v8171_v11 = vcombine.high %v512_v13, %v516_v14  ;;  %v8170_v62 = vcombine.low %v512_v13, %v516_v14  ;;  %v567_v13 = vld [vmem:[#allocation5 + $0xdd0] sm:$0xff] }
 0x203   :  { %v571_v14 = vld [vmem:[#allocation5 + $0xdf0] sm:$0xff] }
 0x204   :  { %3668 = vmatpush1.bf16.msra.mxu0 %v8112_v20  ;;  %3832 = vmatpush1.bf16.msra.mxu1 %v8114_v21  ;;  %v523_v20 = vld [vmem:[#allocation5 + $0xc70] sm:$0xff]  ;;  %v520_v21 = vld [vmem:[#allocation5 + $0xc58] sm:$0xff] }
 0x205   :  { %3669 = vmatprep.subr.bf16.mxu0 %v8121_v22  ;;  %3833 = vmatprep.subr.bf16.mxu1 %v8123_v23  ;;  %v524_v22 = vld [vmem:[#allocation5 + $0xc78] sm:$0xff]  ;;  %v8168_v23 = vcombine.low %v511_v8, %v515_v9  ;;  %v8177_v24 = vcombine.high %v519_v54, %v523_v20 }
 0x206   :  { %v8179_v25 = vcombine.high %v520_v21, %v524_v22  ;;  %v8178_v34 = vcombine.low %v520_v21, %v524_v22  ;;  %v8216_v21 = vcombine.low %v559_v1, %v563_v2 }
 0x208   :  { %3670 = vmatpush1.bf16.msra.mxu0 %v8120_v47  ;;  %3834 = vmatpush1.bf16.msra.mxu1 %v8122_v28  ;;  %v531_v47 = vld [vmem:[#allocation5 + $0xcb0] sm:$0xff]  ;;  %v528_v28 = vld [vmem:[#allocation5 + $0xc98] sm:$0xff] }
 0x209   :  { %3671 = vmatprep.subr.bf16.mxu0 %v8129_v29  ;;  %3835 = vmatprep.subr.bf16.mxu1 %v8131_v33  ;;  %v532_v29 = vld [vmem:[#allocation5 + $0xcb8] sm:$0xff]  ;;  %v8176_v33 = vcombine.low %v519_v54, %v523_v20  ;;  %v8185_v35 = vcombine.high %v527_v26, %v531_v47 }
 0x20a   :  { %v8187_v36 = vcombine.high %v528_v28, %v532_v29 }
 0x20c   :  { %3672 = vmatpush1.bf16.msra.mxu0 %v8128_v38  ;;  %3836 = vmatpush1.bf16.msra.mxu1 %v8130_v40  ;;  %v539_v38 = vld [vmem:[#allocation5 + $0xcf0] sm:$0xff]  ;;  %v536_v40 = vld [vmem:[#allocation5 + $0xcd8] sm:$0xff] }
 0x20d   :  { %3673 = vmatprep.subr.bf16.mxu0 %v8137_v41  ;;  %3837 = vmatprep.subr.bf16.mxu1 %v8139_v42  ;;  %v540_v41 = vld [vmem:[#allocation5 + $0xcf8] sm:$0xff]  ;;  %v8184_v42 = vcombine.low %v527_v26, %v531_v47  ;;  %v8193_v43 = vcombine.high %v535_v37, %v539_v38  ;;  %v575_v26 = vld [vmem:[#allocation5 + $0xe10] sm:$0xff] }
 0x20e   :  { %v8195_v44 = vcombine.high %v536_v40, %v540_v41  ;;  %v579_v47 = vld [vmem:[#allocation5 + $0xe30] sm:$0xff] }
 0x210   :  { %3674 = vmatpush1.bf16.msra.mxu0 %v8136_v48  ;;  %3838 = vmatpush1.bf16.msra.mxu1 %v8138_v53  ;;  %v544_v48 = vld [vmem:[#allocation5 + $0xd18] sm:$0xff] }
 0x211   :  { %3675 = vmatprep.subr.bf16.mxu0 %v8145_v50  ;;  %3839 = vmatprep.subr.bf16.mxu1 %v8147_v51  ;;  %v548_v53 = vld [vmem:[#allocation5 + $0xd38] sm:$0xff]  ;;  %v8192_v50 = vcombine.low %v535_v37, %v539_v38  ;;  %v8194_v51 = vcombine.low %v536_v40, %v540_v41  ;;  %v583_v38 = vld [vmem:[#allocation5 + $0xe50] sm:$0xff] }
 0x212   :  { %v587_v40 = vld [vmem:[#allocation5 + $0xe70] sm:$0xff]  ;;  %v584_v41 = vld [vmem:[#allocation5 + $0xe58] sm:$0xff] }
 0x214   :  { %3676 = vmatpush1.bf16.msra.mxu0 %v8144_v56  ;;  %3840 = vmatpush1.bf16.msra.mxu1 %v8146_v57  ;;  %v556_v56 = vld [vmem:[#allocation5 + $0xd78] sm:$0xff]  ;;  %v8200_v57 = vcombine.low %v543_v45, %v547_v46  ;;  %v591_v46 = vld [vmem:[#allocation5 + $0xe90] sm:$0xff] }
 0x215   :  { %3677 = vmatprep.subr.bf16.mxu0 %v8153_v59  ;;  %3841 = vmatprep.subr.bf16.mxu1 %v8155_v27  ;;  %v8202_v59 = vcombine.low %v544_v48, %v548_v53  ;;  %v8209_v27 = vcombine.high %v551_v0, %v555_v52  ;;  %v8211_v60 = vcombine.high %v552_v55, %v556_v56 }
 0x218   :  { %3678 = vmatpush1.bf16.msra.mxu0 %v8152_v4  ;;  %3842 = vmatpush1.bf16.msra.mxu1 %v8154_v5  ;;  %v564_v4 = vld [vmem:[#allocation5 + $0xdb8] sm:$0xff]  ;;  %v8208_v5 = vcombine.low %v551_v0, %v555_v52  ;;  %v599_v52 = vld [vmem:[#allocation5 + $0xed0] sm:$0xff] }
 0x219   :  { %3679 = vmatprep.subr.bf16.mxu0 %v8161_v6  ;;  %3843 = vmatprep.subr.bf16.mxu1 %v8163_v32  ;;  %v8210_v6 = vcombine.low %v552_v55, %v556_v56  ;;  %v8217_v32 = vcombine.high %v559_v1, %v563_v2  ;;  %v8219_v9 = vcombine.high %v560_v3, %v564_v4  ;;  %v603_v55 = vld [vmem:[#allocation5 + $0xef0] sm:$0xff]  ;;  %v600_v56 = vld [vmem:[#allocation5 + $0xed8] sm:$0xff] }
 0x21a   :  { %v8257_v1 = vcombine.high %v599_v52, %v603_v55 }
 0x21c   :  { %3680 = vmatpush1.bf16.msra.mxu0 %v8160_v15  ;;  %3844 = vmatpush1.bf16.msra.mxu1 %v8162_v16 }
 0x21d   :  { %3690 = vmatprep.subr.bf16.mxu0 %v8169_v17  ;;  %3854 = vmatprep.subr.bf16.mxu1 %v8171_v11  ;;  %v568_v17 = vld [vmem:[#allocation5 + $0xdd8] sm:$0xff] }
 0x21e   :  { %v572_v11 = vld [vmem:[#allocation5 + $0xdf8] sm:$0xff] }
 0x21f   :  { %3682 = vmatmul.mubr.bf16.vlgmr.msra.gmra.mrb[4].mxu0 %v9255_v31  ;;  %3846 = vmatmul.mubr.bf16.vlgmr.msra.gmra.mrb[4].mxu1 %v9255_v31  ;;  %v8186_v31 = vcombine.low %v528_v28, %v532_v29  ;;  %v576_v29 = vld [vmem:[#allocation5 + $0xe18] sm:$0xff] }
 0x220   :  { %3691 = vmatpush1.bf16.msra.mxu0 %v8168_v23  ;;  %3855 = vmatpush1.bf16.msra.mxu1 %v8170_v62  ;;  %v8218_v62 = vcombine.low %v560_v3, %v564_v4  ;;  %v607_v3 = vld [vmem:[#allocation5 + $0xf10] sm:$0xff] }
 0x221   :  { %3692 = vmatprep.subr.bf16.mxu0 %v8177_v24  ;;  %3856 = vmatprep.subr.bf16.mxu1 %v8179_v25  ;;  %v8225_v24 = vcombine.high %v567_v13, %v571_v14  ;;  %v8227_v25 = vcombine.high %v568_v17, %v572_v11  ;;  %v611_v4 = vld [vmem:[#allocation5 + $0xf30] sm:$0xff] }
 0x222   :  { %3722 = vmatprep.mubr.bf16.mxu0 %v9259_v18  ;;  %3886 = vmatprep.mubr.bf16.mxu1 %v9259_v18  ;;  %v8203_v18 = vcombine.high %v544_v48, %v548_v53  ;;  %v595_v48 = vld [vmem:[#allocation5 + $0xeb0] sm:$0xff]  ;;  %v592_v53 = vld [vmem:[#allocation5 + $0xe98] sm:$0xff] }
 0x224   :  { %3693 = vmatpush1.bf16.msra.mxu0 %v8176_v33  ;;  %3857 = vmatpush1.bf16.msra.mxu1 %v8178_v34  ;;  %v580_v33 = vld [vmem:[#allocation5 + $0xe38] sm:$0xff]  ;;  %v8224_v34 = vcombine.low %v567_v13, %v571_v14  ;;  %v8265_v14 = vcombine.high %v607_v3, %v611_v4 }
 0x225   :  { %3694 = vmatprep.subr.bf16.mxu0 %v8185_v35  ;;  %3858 = vmatprep.subr.bf16.mxu1 %v8187_v36  ;;  %v8226_v35 = vcombine.low %v568_v17, %v572_v11  ;;  %v8233_v36 = vcombine.high %v575_v26, %v579_v47  ;;  %v8235_v37 = vcombine.high %v576_v29, %v580_v33  ;;  %v615_v11 = vld [vmem:[#allocation5 + $0xf50] sm:$0xff] }
 0x228   :  { %3695 = vmatpush1.bf16.msra.mxu0 %v8184_v42  ;;  %3859 = vmatpush1.bf16.msra.mxu1 %v8186_v31  ;;  %v588_v42 = vld [vmem:[#allocation5 + $0xe78] sm:$0xff]  ;;  %v8232_v31 = vcombine.low %v575_v26, %v579_v47 }
 0x229   :  { %3696 = vmatprep.subr.bf16.mxu0 %v8193_v43  ;;  %3860 = vmatprep.subr.bf16.mxu1 %v8195_v44  ;;  %v8234_v43 = vcombine.low %v576_v29, %v580_v33  ;;  %v8241_v44 = vcombine.high %v583_v38, %v587_v40  ;;  %v8243_v45 = vcombine.high %v584_v41, %v588_v42  ;;  %v627_v29 = vld [vmem:[#allocation5 + $0xfb0] sm:$0xff]  ;;  %v624_v33 = vld [vmem:[#allocation5 + $0xf98] sm:$0xff] }
 0x22c   :  { %3697 = vmatpush1.bf16.msra.mxu0 %v8192_v50  ;;  %3861 = vmatpush1.bf16.msra.mxu1 %v8194_v51  ;;  %v596_v50 = vld [vmem:[#allocation5 + $0xeb8] sm:$0xff]  ;;  %v8240_v51 = vcombine.low %v583_v38, %v587_v40 }
 0x22d   :  { %3698 = vmatprep.subr.bf16.mxu0 %v8201_v63  ;;  %3862 = vmatprep.subr.bf16.mxu1 %v8203_v18  ;;  %v8242_v63 = vcombine.low %v584_v41, %v588_v42  ;;  %v8249_v18 = vcombine.high %v591_v46, %v595_v48  ;;  %v8251_v0 = vcombine.high %v592_v53, %v596_v50  ;;  %v631_v41 = vld [vmem:[#allocation5 + $0xfd0] sm:$0xff] }
 0x22e   :  { %v635_v42 = vld [vmem:[#allocation5 + $0xff0] sm:$0xff] }
 0x230   :  { %3699 = vmatpush1.bf16.msra.mxu0 %v8200_v57  ;;  %3863 = vmatpush1.bf16.msra.mxu1 %v8202_v59  ;;  %v604_v57 = vld [vmem:[#allocation5 + $0xef8] sm:$0xff]  ;;  %v639_v59 = vlaneseq }
 0x231   :  { %3700 = vmatprep.subr.bf16.mxu0 %v8209_v27  ;;  %3864 = vmatprep.subr.bf16.mxu1 %v8211_v60  ;;  %v8248_v27 = vcombine.low %v591_v46, %v595_v48  ;;  %v8250_v60 = vcombine.low %v592_v53, %v596_v50  ;;  %v8259_v2 = vcombine.high %v600_v56, %v604_v57  ;;  %v3927_v50 = vld [vmem:[#allocation8] sm:$0xff] }
 0x232   :  { %v9289_v8 = vpop.f32.mrb[0].mxu0  ;;  %v9291_v15 = vpop.f32.mrb[0].mxu1  ;;  %v8258_v13 = vcombine.low %v600_v56, %v604_v57  ;;  %v8289_v48 = vcombine.high %v631_v41, %v635_v42  ;;  %v3935_v57 = vld [vmem:[#allocation8 + $0x40] sm:$0xff] }
 0x233   :  { %v9293_v16 = vpop.f32.mrb[1].mxu0  ;;  %v9295_v54 = vpop.f32.mrb[1].mxu1 }
 0x234   :  { %v3400_v20 = vpop.f32.mrb[2].mxu0  ;;  %3701 = vmatpush1.bf16.msra.mxu0 %v8208_v5  ;;  %v3564_v22 = vpop.f32.mrb[2].mxu1  ;;  %3865 = vmatpush1.bf16.msra.mxu1 %v8210_v6  ;;  %v608_v5 = vld [vmem:[#allocation5 + $0xf18] sm:$0xff] }
 0x235   :  { %v3401_v23 = vpop.f32.mrb[3].mxu0  ;;  %3702 = vmatprep.subr.bf16.mxu0 %v8217_v32  ;;  %3866 = vmatprep.subr.bf16.mxu1 %v8219_v9  ;;  %v3565_v28 = vpop.f32.mrb[3].mxu1  ;;  %v612_v6 = vld [vmem:[#allocation5 + $0xf38] sm:$0xff]  ;;  %v9297_v32 = vshrl.u32 %v639_v59, 7  ;;  %v8256_v9 = vcombine.low %v599_v52, %v603_v55  ;;  %v619_v20 = vld [vmem:[#allocation5 + $0xf70] sm:$0xff]  ;;  %v8288_v52 = vcombine.low %v631_v41, %v635_v42  ;;  %v3939_v59 = vld [vmem:[#allocation8 + $0x60] sm:$0xff] }
 0x236   :  { %v8267_v17 = vcombine.high %v608_v5, %v612_v6  ;;  %v620_v22 = vld [vmem:[#allocation5 + $0xf78] sm:$0xff]  ;;  %v8273_v26 = vcombine.high %v615_v11, %v619_v20  ;;  %v623_v28 = vld [vmem:[#allocation5 + $0xf90] sm:$0xff] }
 0x237   :  { %v645_v23 = vsub.s32 1, %v9297_v32  ;;  %v8281_v38 = vcombine.high %v623_v28, %v627_v29 }
 0x238   :  { %3703 = vmatpush1.bf16.msra.mxu0 %v8216_v21  ;;  %3867 = vmatpush1.bf16.msra.mxu1 %v8218_v62  ;;  %v616_v21 = vld [vmem:[#allocation5 + $0xf58] sm:$0xff]  ;;  %v8264_v62 = vcombine.low %v607_v3, %v611_v4  ;;  %v8301_v4 = vcombine.high %v3935_v57, %v3939_v59 }
 0x239   :  { %3704 = vmatprep.subr.bf16.mxu0 %v8225_v24  ;;  %3868 = vmatprep.subr.bf16.mxu1 %v8227_v25  ;;  %v9300_v24 = vld [vmem:[#allocation7] sm:$0xff]  ;;  %v8266_v25 = vcombine.low %v608_v5, %v612_v6  ;;  %v8275_v47 = vcombine.high %v616_v21, %v620_v22  ;;  %v3943_v5 = vld [vmem:[#allocation8 + $0x80] sm:$0xff] }
 0x23a   :  { %v3947_v6 = vld [vmem:[#allocation8 + $0xa0] sm:$0xff] }
 0x23c   :  { %3705 = vmatpush1.bf16.msra.mxu0 %v8224_v34  ;;  %3869 = vmatpush1.bf16.msra.mxu1 %v8226_v35  ;;  %v628_v34 = vld [vmem:[#allocation5 + $0xfb8] sm:$0xff]  ;;  %v646_v35 = vrot.slane %v9300_v24, %v645_v23 }
 0x23d   :  { %3706 = vmatprep.subr.bf16.mxu0 %v8233_v36  ;;  %3870 = vmatprep.subr.bf16.mxu1 %v8235_v37  ;;  %v8272_v36 = vcombine.low %v615_v11, %v619_v20  ;;  %v8274_v37 = vcombine.low %v616_v21, %v620_v22  ;;  %v8283_v40 = vcombine.high %v624_v33, %v628_v34 }
 0x23e   :  { %v8282_v46 = vcombine.low %v624_v33, %v628_v34  ;;  %v8300_v11 = vcombine.low %v3935_v57, %v3939_v59  ;;  %v8309_v21 = vcombine.high %v3943_v5, %v3947_v6  ;;  %v3959_v34 = vld [vmem:[#allocation8 + $0x100] sm:$0xff] }
 0x23f   :  { %v3983_v57 = vld [vmem:[#allocation8 + $0x1c0] sm:$0xff] }
 0x240   :  { %3707 = vmatpush1.bf16.msra.mxu0 %v8232_v31  ;;  %3871 = vmatpush1.bf16.msra.mxu1 %v8234_v43  ;;  %v632_v31 = vld [vmem:[#allocation5 + $0xfd8] sm:$0xff]  ;;  %v3987_v59 = vld [vmem:[#allocation8 + $0x1e0] sm:$0xff] }
 0x241   :  { %3708 = vmatprep.subr.bf16.mxu0 %v8241_v44  ;;  %3872 = vmatprep.subr.bf16.mxu1 %v8243_v45  ;;  %v636_v43 = vld [vmem:[#allocation5 + $0xff8] sm:$0xff]  ;;  %v8805_v44 = vadd.f32 %v9293_v16, %v646_v35  ;;  %v8280_v45 = vcombine.low %v623_v28, %v627_v29  ;;  %v8308_v28 = vcombine.low %v3943_v5, %v3947_v6  ;;  %v3963_v35 = vld [vmem:[#allocation8 + $0x120] sm:$0xff] }
 0x242   :  { %v8291_v53 = vcombine.high %v632_v31, %v636_v43  ;;  %v8290_v55 = vcombine.low %v632_v31, %v636_v43  ;;  %v8325_v41 = vcombine.high %v3959_v34, %v3963_v35  ;;  %v3967_v31 = vld [vmem:[#allocation8 + $0x140] sm:$0xff] }
 0x243   :  { %vm3896_vm0 = vcmp.gt.f32.partialorder %v8805_v44, 0.0  ;;  %v3971_v43 = vld [vmem:[#allocation8 + $0x160] sm:$0xff] }
 0x244   :  { %3709 = vmatpush1.bf16.msra.mxu0 %v8240_v51  ;;  %3873 = vmatpush1.bf16.msra.mxu1 %v8242_v63  ;;  %v3931_v51 = vld [vmem:[#allocation8 + $0x20] sm:$0xff]  ;;  %v3928_v63 = vld [vmem:[#allocation8 + $0x8] sm:$0xff] }
 0x245   :  { %3710 = vmatprep.subr.bf16.mxu0 %v8249_v18  ;;  %3874 = vmatprep.subr.bf16.mxu1 %v8251_v0  ;;  %v3932_v18 = vld [vmem:[#allocation8 + $0x28] sm:$0xff]  ;;  %v3904_v0 = vmul.f32 0.01, %v8805_v44  ;;  %v8293_v16 = vcombine.high %v3927_v50, %v3931_v51  ;;  %v3991_v5 = vld [vmem:[#allocation8 + $0x200] sm:$0xff] }
 0x246   :  { %v8295_v56 = vcombine.high %v3928_v63, %v3932_v18  ;;  %v8294_v3 = vcombine.low %v3928_v63, %v3932_v18  ;;  %v3979_v63 = vld [vmem:[#allocation8 + $0x1a0] sm:$0xff]  ;;  %v3976_v18 = vld [vmem:[#allocation8 + $0x188] sm:$0xff] }
 0x247   :  { %v3995_v6 = vld [vmem:[#allocation8 + $0x220] sm:$0xff] }
 0x248   :  { %3711 = vmatpush1.bf16.msra.mxu0 %v8248_v27  ;;  %3875 = vmatpush1.bf16.msra.mxu1 %v8250_v60  ;;  %v3912_v27 = vsel %vm3896_vm0, %v8805_v44, %v3904_v0  ;;  %v8292_v60 = vcombine.low %v3927_v50, %v3931_v51  ;;  %v3968_v44 = vld [vmem:[#allocation8 + $0x148] sm:$0xff]  ;;  %v3975_v51 = vld [vmem:[#allocation8 + $0x180] sm:$0xff] }
 0x249   :  { %3712 = vmatprep.subr.bf16.mxu0 %v8257_v1  ;;  %3876 = vmatprep.subr.bf16.mxu1 %v8259_v2  ;;  %v3936_v1 = vld [vmem:[#allocation8 + $0x48] sm:$0xff] }
 0x24a   :  { %v3940_v2 = vld [vmem:[#allocation8 + $0x68] sm:$0xff] }
 0x24b   :  { %v8302_v20 = vcombine.low %v3936_v1, %v3940_v2  ;;  %v3980_v0 = vld [vmem:[#allocation8 + $0x1a8] sm:$0xff] }
 0x24c   :  { %3713 = vmatpush1.bf16.msra.mxu0 %v8256_v9  ;;  %3877 = vmatpush1.bf16.msra.mxu1 %v8258_v13  ;;  %v9306_v9 = vpack.c.bf16 %v3912_v27, %v3912_v27  ;;  %v8303_v13 = vcombine.high %v3936_v1, %v3940_v2  ;;  %v3984_v27 = vld [vmem:[#allocation8 + $0x1c8] sm:$0xff]  ;;  %v8340_v1 = vcombine.low %v3975_v51, %v3979_v63 }
 0x24d   :  { %3714 = vmatprep.subr.bf16.mxu0 %v8265_v14  ;;  %3878 = vmatprep.subr.bf16.mxu1 %v8267_v17  ;;  %v3944_v14 = vld [vmem:[#allocation8 + $0x88] sm:$0xff]  ;;  %v8342_v2 = vcombine.low %v3976_v18, %v3980_v0 }
 0x24e   :  { %v3948_v17 = vld [vmem:[#allocation8 + $0xa8] sm:$0xff] }
 0x24f   :  { %v8311_v22 = vcombine.high %v3944_v14, %v3948_v17 }
 0x250   :  { %3715 = vmatpush1.bf16.msra.mxu0 %v8264_v62  ;;  %3879 = vmatpush1.bf16.msra.mxu1 %v8266_v25  ;;  %v3951_v62 = vld [vmem:[#allocation8 + $0xc0] sm:$0xff] }
 0x251   :  { %3716 = vmatprep.subr.bf16.mxu0 %v8273_v26  ;;  %3880 = vmatprep.subr.bf16.mxu1 %v8275_v47  ;;  %v3955_v25 = vld [vmem:[#allocation8 + $0xe0] sm:$0xff]  ;;  %v3952_v26 = vld [vmem:[#allocation8 + $0xc8] sm:$0xff] }
 0x252   :  { %v3956_v47 = vld [vmem:[#allocation8 + $0xe8] sm:$0xff]  ;;  %v8317_v29 = vcombine.high %v3951_v62, %v3955_v25 }
 0x253   :  { %v8319_v33 = vcombine.high %v3952_v26, %v3956_v47 }
 0x254   :  { %3717 = vmatpush1.bf16.msra.mxu0 %v8272_v36  ;;  %3881 = vmatpush1.bf16.msra.mxu1 %v8274_v37  ;;  %v3960_v36 = vld [vmem:[#allocation8 + $0x108] sm:$0xff] }
 0x255   :  { %3718 = vmatprep.subr.bf16.mxu0 %v8281_v38  ;;  %3882 = vmatprep.subr.bf16.mxu1 %v8283_v40  ;;  %v3964_v37 = vld [vmem:[#allocation8 + $0x128] sm:$0xff]  ;;  %v8316_v38 = vcombine.low %v3951_v62, %v3955_v25  ;;  %v8318_v40 = vcombine.low %v3952_v26, %v3956_v47  ;;  %v4003_v62 = vld [vmem:[#allocation8 + $0x260] sm:$0xff]  ;;  %v8356_v47 = vcombine.low %v3991_v5, %v3995_v6 }
 0x256   :  { %v8327_v42 = vcombine.high %v3960_v36, %v3964_v37  ;;  %v4000_v25 = vld [vmem:[#allocation8 + $0x248] sm:$0xff] }
 0x257   :  { %v4004_v26 = vld [vmem:[#allocation8 + $0x268] sm:$0xff] }
 0x258   :  { %3719 = vmatpush1.bf16.msra.mxu0 %v8280_v45  ;;  %3883 = vmatpush1.bf16.msra.mxu1 %v8282_v46  ;;  %v3972_v45 = vld [vmem:[#allocation8 + $0x168] sm:$0xff]  ;;  %v8324_v46 = vcombine.low %v3959_v34, %v3963_v35  ;;  %v4011_v34 = vld [vmem:[#allocation8 + $0x2a0] sm:$0xff] }
 0x259   :  { %3720 = vmatprep.subr.bf16.mxu0 %v8289_v48  ;;  %3884 = vmatprep.subr.bf16.mxu1 %v8291_v53  ;;  %v8326_v48 = vcombine.low %v3960_v36, %v3964_v37  ;;  %v8333_v53 = vcombine.high %v3967_v31, %v3971_v43  ;;  %v8335_v50 = vcombine.high %v3968_v44, %v3972_v45  ;;  %v4008_v35 = vld [vmem:[#allocation8 + $0x288] sm:$0xff] }
 0x25a   :  { %v4012_v36 = vld [vmem:[#allocation8 + $0x2a8] sm:$0xff] }
 0x25c   :  { %3721 = vmatpush1.bf16.msra.mxu0 %v8288_v52  ;;  %3885 = vmatpush1.bf16.msra.mxu1 %v8290_v55  ;;  %v8332_v52 = vcombine.low %v3967_v31, %v3971_v43  ;;  %v8334_v55 = vcombine.low %v3968_v44, %v3972_v45  ;;  %v4019_v31 = vld [vmem:[#allocation8 + $0x2e0] sm:$0xff]  ;;  %v4016_v43 = vld [vmem:[#allocation8 + $0x2c8] sm:$0xff] }
 0x25d   :  { %7041 = vmatprep.subr.bf16.mxu0 %v8293_v16  ;;  %7205 = vmatprep.subr.bf16.mxu1 %v8295_v56  ;;  %v8341_v16 = vcombine.high %v3975_v51, %v3979_v63  ;;  %v8343_v56 = vcombine.high %v3976_v18, %v3980_v0  ;;  %v4020_v44 = vld [vmem:[#allocation8 + $0x2e8] sm:$0xff]  ;;  %v4027_v51 = vld [vmem:[#allocation8 + $0x320] sm:$0xff] }
 0x25e   :  { %v4024_v63 = vld [vmem:[#allocation8 + $0x308] sm:$0xff] }
 0x25f   :  { %3723 = vmatmul.mubr.bf16.vlgmr.msra.gmra.mrb[4].mxu0 %v9271_v49  ;;  %3887 = vmatmul.mubr.bf16.vlgmr.msra.gmra.mrb[4].mxu1 %v9271_v49  ;;  %v8310_v49 = vcombine.low %v3944_v14, %v3948_v17  ;;  %v3996_v14 = vld [vmem:[#allocation8 + $0x228] sm:$0xff]  ;;  %v8348_v17 = vcombine.low %v3983_v57, %v3987_v59 }
 0x260   :  { %7042 = vmatpush1.bf16.msra.mxu0 %v8292_v60  ;;  %7073 = vmatprep.mubr.bf16.mxu0 %v9306_v9  ;;  %v3988_v60 = vld [vmem:[#allocation8 + $0x1e8] sm:$0xff] }
 0x261   :  { %7206 = vmatpush1.bf16.msra.mxu1 %v8294_v3  ;;  %7237 = vmatprep.mubr.bf16.mxu1 %v9306_v9  ;;  %v8349_v3 = vcombine.high %v3983_v57, %v3987_v59  ;;  %v4028_v18 = vld [vmem:[#allocation8 + $0x328] sm:$0xff]  ;;  %v4031_v57 = vld [vmem:[#allocation8 + $0x340] sm:$0xff] }
 0x262   :  { %7043 = vmatprep.subr.bf16.mxu0 %v8301_v4  ;;  %7207 = vmatprep.subr.bf16.mxu1 %v8303_v13  ;;  %v8351_v4 = vcombine.high %v3984_v27, %v3988_v60  ;;  %v3992_v13 = vld [vmem:[#allocation8 + $0x208] sm:$0xff]  ;;  %v4035_v59 = vld [vmem:[#allocation8 + $0x360] sm:$0xff] }
 0x264   :  { %7044 = vmatpush1.bf16.msra.mxu0 %v8300_v11  ;;  %v8350_v11 = vcombine.low %v3984_v27, %v3988_v60  ;;  %v4032_v27 = vld [vmem:[#allocation8 + $0x348] sm:$0xff] }
 0x265   :  { %7208 = vmatpush1.bf16.msra.mxu1 %v8302_v20  ;;  %7045 = vmatprep.subr.bf16.mxu0 %v8309_v21  ;;  %v8357_v20 = vcombine.high %v3991_v5, %v3995_v6  ;;  %v8359_v21 = vcombine.high %v3992_v13, %v3996_v14  ;;  %v4036_v60 = vld [vmem:[#allocation8 + $0x368] sm:$0xff] }
 0x266   :  { %7209 = vmatprep.subr.bf16.mxu1 %v8311_v22  ;;  %v3999_v22 = vld [vmem:[#allocation8 + $0x240] sm:$0xff]  ;;  %v8399_v6 = vcombine.high %v4032_v27, %v4036_v60 }
 0x267   :  { %v8364_v37 = vcombine.low %v3999_v22, %v4003_v62 }
 0x268   :  { %7046 = vmatpush1.bf16.msra.mxu0 %v8308_v28  ;;  %v8358_v28 = vcombine.low %v3992_v13, %v3996_v14  ;;  %v4039_v13 = vld [vmem:[#allocation8 + $0x380] sm:$0xff] }
 0x269   :  { %7210 = vmatpush1.bf16.msra.mxu1 %v8310_v49  ;;  %7047 = vmatprep.subr.bf16.mxu0 %v8317_v29  ;;  %v8365_v49 = vcombine.high %v3999_v22, %v4003_v62  ;;  %v8367_v29 = vcombine.high %v4000_v25, %v4004_v26  ;;  %v4043_v14 = vld [vmem:[#allocation8 + $0x3a0] sm:$0xff]  ;;  %v8398_v22 = vcombine.low %v4032_v27, %v4036_v60  ;;  %v4072_v60 = vld [vmem:[#allocation8 + $0x488] sm:$0xff] }
 0x26a   :  { %7211 = vmatprep.subr.bf16.mxu1 %v8319_v33  ;;  %v4007_v33 = vld [vmem:[#allocation8 + $0x280] sm:$0xff]  ;;  %v8405_v62 = vcombine.high %v4039_v13, %v4043_v14 }
 0x26b   :  { %v8372_v45 = vcombine.low %v4007_v33, %v4011_v34 }
 0x26c   :  { %7048 = vmatpush1.bf16.msra.mxu0 %v8316_v38  ;;  %v8366_v38 = vcombine.low %v4000_v25, %v4004_v26 }
 0x26d   :  { %7212 = vmatpush1.bf16.msra.mxu1 %v8318_v40  ;;  %7049 = vmatprep.subr.bf16.mxu0 %v8325_v41  ;;  %v8373_v40 = vcombine.high %v4007_v33, %v4011_v34  ;;  %v8375_v41 = vcombine.high %v4008_v35, %v4012_v36  ;;  %v8404_v34 = vcombine.low %v4039_v13, %v4043_v14  ;;  %v4079_v13 = vld [vmem:[#allocation8 + $0x4c0] sm:$0xff] }
 0x26e   :  { %7213 = vmatprep.subr.bf16.mxu1 %v8327_v42  ;;  %v4015_v42 = vld [vmem:[#allocation8 + $0x2c0] sm:$0xff] }
 0x26f   :  { %v8380_v0 = vcombine.low %v4015_v42, %v4019_v31  ;;  %v4083_v14 = vld [vmem:[#allocation8 + $0x4e0] sm:$0xff] }
 0x270   :  { %7050 = vmatpush1.bf16.msra.mxu0 %v8324_v46  ;;  %v8374_v46 = vcombine.low %v4008_v35, %v4012_v36 }
 0x271   :  { %7214 = vmatpush1.bf16.msra.mxu1 %v8326_v48  ;;  %7051 = vmatprep.subr.bf16.mxu0 %v8333_v53  ;;  %v8381_v48 = vcombine.high %v4015_v42, %v4019_v31  ;;  %v8383_v53 = vcombine.high %v4016_v43, %v4020_v44  ;;  %v4060_v42 = vld [vmem:[#allocation8 + $0x428] sm:$0xff] }
 0x272   :  { %7215 = vmatprep.subr.bf16.mxu1 %v8335_v50  ;;  %v4023_v50 = vld [vmem:[#allocation8 + $0x300] sm:$0xff] }
 0x274   :  { %7052 = vmatpush1.bf16.msra.mxu0 %v8332_v52  ;;  %v8382_v52 = vcombine.low %v4016_v43, %v4020_v44 }
 0x275   :  { %7216 = vmatpush1.bf16.msra.mxu1 %v8334_v55  ;;  %7053 = vmatprep.subr.bf16.mxu0 %v8341_v16  ;;  %v8389_v55 = vcombine.high %v4023_v50, %v4027_v51  ;;  %v641_v16 = vsub.s32 0, %v9297_v32 }
 0x276   :  { %7217 = vmatprep.subr.bf16.mxu1 %v8343_v56  ;;  %v8391_v56 = vcombine.high %v4024_v63, %v4028_v18 }
 0x277   :  { %v642_v5 = vrot.slane %v9300_v24, %v641_v16 }
 0x278   :  { %7054 = vmatpush1.bf16.msra.mxu0 %v8340_v1  ;;  %v653_v1 = vsub.s32 3, %v9297_v32 }
 0x279   :  { %7218 = vmatpush1.bf16.msra.mxu1 %v8342_v2  ;;  %7055 = vmatprep.subr.bf16.mxu0 %v8349_v3  ;;  %v8388_v2 = vcombine.low %v4023_v50, %v4027_v51  ;;  %v8390_v3 = vcombine.low %v4024_v63, %v4028_v18  ;;  %v8804_v25 = vadd.f32 %v9289_v8, %v642_v5  ;;  %v4056_v8 = vld [vmem:[#allocation8 + $0x408] sm:$0xff] }
 0x27a   :  { %7219 = vmatprep.subr.bf16.mxu1 %v8351_v4  ;;  %v8397_v4 = vcombine.high %v4031_v57, %v4035_v59  ;;  %v4064_v63 = vld [vmem:[#allocation8 + $0x448] sm:$0xff] }
 0x27b   :  { %vm3895_vm1 = vcmp.gt.f32.partialorder %v8804_v25, 0.0  ;;  %v4068_v18 = vld [vmem:[#allocation8 + $0x468] sm:$0xff] }
 0x27c   :  { %7056 = vmatpush1.bf16.msra.mxu0 %v8348_v17  ;;  %v4040_v17 = vld [vmem:[#allocation8 + $0x388] sm:$0xff]  ;;  %v8431_v27 = vcombine.high %v4064_v63, %v4068_v18 }
 0x27d   :  { %7220 = vmatpush1.bf16.msra.mxu1 %v8350_v11  ;;  %7057 = vmatprep.subr.bf16.mxu0 %v8357_v20  ;;  %v4044_v11 = vld [vmem:[#allocation8 + $0x3a8] sm:$0xff]  ;;  %v654_v20 = vrot.slane %v9300_v24, %v653_v1 }
 0x27e   :  { %7221 = vmatprep.subr.bf16.mxu1 %v8359_v21  ;;  %v8396_v21 = vcombine.low %v4031_v57, %v4035_v59  ;;  %v8407_v26 = vcombine.high %v4040_v17, %v4044_v11  ;;  %v8406_v35 = vcombine.low %v4040_v17, %v4044_v11  ;;  %v4075_v57 = vld [vmem:[#allocation8 + $0x4a0] sm:$0xff]  ;;  %v4080_v17 = vld [vmem:[#allocation8 + $0x4c8] sm:$0xff] }
 0x27f   :  { %v8807_v33 = vadd.f32 %v9295_v54, %v654_v20  ;;  %v4084_v11 = vld [vmem:[#allocation8 + $0x4e8] sm:$0xff] }
 0x280   :  { %7058 = vmatpush1.bf16.msra.mxu0 %v8356_v47  ;;  %v4047_v47 = vld [vmem:[#allocation8 + $0x3c0] sm:$0xff] }
 0x281   :  { %7222 = vmatpush1.bf16.msra.mxu1 %v8358_v28  ;;  %7059 = vmatprep.subr.bf16.mxu0 %v8365_v49  ;;  %v4051_v28 = vld [vmem:[#allocation8 + $0x3e0] sm:$0xff]  ;;  %v4048_v49 = vld [vmem:[#allocation8 + $0x3c8] sm:$0xff]  ;;  %v3906_v31 = vmul.f32 0.01, %v8807_v33  ;;  %vm3898_vm2 = vcmp.gt.f32.partialorder %v8807_v33, 0.0 }
 0x282   :  { %7223 = vmatprep.subr.bf16.mxu1 %v8367_v29  ;;  %v4052_v29 = vld [vmem:[#allocation8 + $0x3e8] sm:$0xff]  ;;  %v8413_v36 = vcombine.high %v4047_v47, %v4051_v28  ;;  %v8412_v43 = vcombine.low %v4047_v47, %v4051_v28 }
 0x283   :  { %v8414_v54 = vcombine.low %v4048_v49, %v4052_v29  ;;  %v3914_v50 = vsel %vm3898_vm2, %v8807_v33, %v3906_v31  ;;  %v4088_v47 = vld [vmem:[#allocation8 + $0x508] sm:$0xff]  ;;  %v4103_v31 = vld [vmem:[#allocation8 + $0x580] sm:$0xff] }
 0x284   :  { %7060 = vmatpush1.bf16.msra.mxu0 %v8364_v37  ;;  %v3903_v37 = vmul.f32 0.01, %v8804_v25  ;;  %v9324_v59 = vpack.c.bf16 %v3914_v50, %v3914_v50  ;;  %v4092_v28 = vld [vmem:[#allocation8 + $0x528] sm:$0xff]  ;;  %v4111_v50 = vld [vmem:[#allocation8 + $0x5c0] sm:$0xff] }
 0x285   :  { %7224 = vmatpush1.bf16.msra.mxu1 %v8366_v38  ;;  %7061 = vmatprep.subr.bf16.mxu0 %v8373_v40  ;;  %v8415_v38 = vcombine.high %v4048_v49, %v4052_v29  ;;  %v4055_v40 = vld [vmem:[#allocation8 + $0x400] sm:$0xff]  ;;  %v8444_v49 = vcombine.low %v4079_v13, %v4083_v14  ;;  %v8446_v29 = vcombine.low %v4080_v17, %v4084_v11 }
 0x286   :  { %7225 = vmatprep.subr.bf16.mxu1 %v8375_v41  ;;  %v4059_v41 = vld [vmem:[#allocation8 + $0x420] sm:$0xff] }
 0x287   :  { %v8421_v44 = vcombine.high %v4055_v40, %v4059_v41  ;;  %v8420_v51 = vcombine.low %v4055_v40, %v4059_v41  ;;  %v8454_v41 = vcombine.low %v4088_v47, %v4092_v28 }
 0x288   :  { %7062 = vmatpush1.bf16.msra.mxu0 %v8372_v45  ;;  %v3911_v45 = vsel %vm3895_vm1, %v8804_v25, %v3903_v37  ;;  %v4087_v25 = vld [vmem:[#allocation8 + $0x500] sm:$0xff]  ;;  %v4096_v37 = vld [vmem:[#allocation8 + $0x548] sm:$0xff] }
 0x289   :  { %7226 = vmatpush1.bf16.msra.mxu1 %v8374_v46  ;;  %7063 = vmatprep.subr.bf16.mxu0 %v8381_v48  ;;  %v8423_v46 = vcombine.high %v4056_v8, %v4060_v42  ;;  %v4063_v48 = vld [vmem:[#allocation8 + $0x440] sm:$0xff] }
 0x28a   :  { %7227 = vmatprep.subr.bf16.mxu1 %v8383_v53  ;;  %v4067_v53 = vld [vmem:[#allocation8 + $0x460] sm:$0xff] }
 0x28c   :  { %7064 = vmatpush1.bf16.msra.mxu0 %v8380_v0  ;;  %v9322_v0 = vpack.c.bf16 %v3911_v45, %v3911_v45 }
 0x28d   :  { %7228 = vmatpush1.bf16.msra.mxu1 %v8382_v52  ;;  %7065 = vmatprep.subr.bf16.mxu0 %v8389_v55  ;;  %v8422_v52 = vcombine.low %v4056_v8, %v4060_v42  ;;  %v8429_v55 = vcombine.high %v4063_v48, %v4067_v53 }
 0x28e   :  { %7229 = vmatprep.subr.bf16.mxu1 %v8391_v56  ;;  %v4071_v56 = vld [vmem:[#allocation8 + $0x480] sm:$0xff] }
 0x28f   :  { %v8437_v5 = vcombine.high %v4071_v56, %v4075_v57  ;;  %v8436_v20 = vcombine.low %v4071_v56, %v4075_v57 }
 0x290   :  { %7066 = vmatpush1.bf16.msra.mxu0 %v8388_v2  ;;  %v4076_v2 = vld [vmem:[#allocation8 + $0x4a8] sm:$0xff] }
 0x291   :  { %7230 = vmatpush1.bf16.msra.mxu1 %v8390_v3  ;;  %7067 = vmatprep.subr.bf16.mxu0 %v8397_v4  ;;  %v8428_v3 = vcombine.low %v4063_v48, %v4067_v53  ;;  %v8430_v4 = vcombine.low %v4064_v63, %v4068_v18  ;;  %v4112_v63 = vld [vmem:[#allocation8 + $0x5c8] sm:$0xff] }
 0x292   :  { %7231 = vmatprep.subr.bf16.mxu1 %v8399_v6  ;;  %v8439_v6 = vcombine.high %v4072_v60, %v4076_v2  ;;  %v4116_v18 = vld [vmem:[#allocation8 + $0x5e8] sm:$0xff] }
 0x293   :  { %v8479_v57 = vcombine.high %v4112_v63, %v4116_v18 }
 0x294   :  { %7068 = vmatpush1.bf16.msra.mxu0 %v8396_v21  ;;  %v8438_v21 = vcombine.low %v4072_v60, %v4076_v2  ;;  %v4123_v60 = vld [vmem:[#allocation8 + $0x620] sm:$0xff]  ;;  %v4120_v2 = vld [vmem:[#allocation8 + $0x608] sm:$0xff] }
 0x295   :  { %7232 = vmatpush1.bf16.msra.mxu1 %v8398_v22  ;;  %7069 = vmatprep.subr.bf16.mxu0 %v8405_v62  ;;  %v8445_v22 = vcombine.high %v4079_v13, %v4083_v14  ;;  %v8447_v62 = vcombine.high %v4080_v17, %v4084_v11  ;;  %v4127_v14 = vld [vmem:[#allocation8 + $0x640] sm:$0xff]  ;;  %v4128_v11 = vld [vmem:[#allocation8 + $0x648] sm:$0xff] }
 0x296   :  { %7233 = vmatprep.subr.bf16.mxu1 %v8407_v26  ;;  %v4091_v26 = vld [vmem:[#allocation8 + $0x520] sm:$0xff] }
 0x297   :  { %v8453_v33 = vcombine.high %v4087_v25, %v4091_v26  ;;  %v8452_v40 = vcombine.low %v4087_v25, %v4091_v26  ;;  %v4131_v17 = vld [vmem:[#allocation8 + $0x660] sm:$0xff] }
 0x298   :  { %7070 = vmatpush1.bf16.msra.mxu0 %v8404_v34  ;;  %v8455_v34 = vcombine.high %v4088_v47, %v4092_v28  ;;  %v4135_v26 = vld [vmem:[#allocation8 + $0x680] sm:$0xff]  ;;  %v4136_v28 = vld [vmem:[#allocation8 + $0x688] sm:$0xff] }
 0x299   :  { %7234 = vmatpush1.bf16.msra.mxu1 %v8406_v35  ;;  %7071 = vmatprep.subr.bf16.mxu0 %v8413_v36  ;;  %v4095_v35 = vld [vmem:[#allocation8 + $0x540] sm:$0xff] }
 0x29a   :  { %7235 = vmatprep.subr.bf16.mxu1 %v8415_v38  ;;  %v4099_v36 = vld [vmem:[#allocation8 + $0x560] sm:$0xff]  ;;  %v4100_v38 = vld [vmem:[#allocation8 + $0x568] sm:$0xff] }
 0x29b   :  { %v8461_v8 = vcombine.high %v4095_v35, %v4099_v36  ;;  %v8463_v42 = vcombine.high %v4096_v37, %v4100_v38  ;;  %v8460_v45 = vcombine.low %v4095_v35, %v4099_v36  ;;  %v4139_v47 = vld [vmem:[#allocation8 + $0x6a0] sm:$0xff] }
 0x29c   :  { %7072 = vmatpush1.bf16.msra.mxu0 %v8412_v43  ;;  %v4107_v43 = vld [vmem:[#allocation8 + $0x5a0] sm:$0xff] }
 0x29d   :  { %7236 = vmatpush1.bf16.msra.mxu1 %v8414_v54  ;;  %7082 = vmatprep.subr.bf16.mxu0 %v8421_v44  ;;  %v4104_v54 = vld [vmem:[#allocation8 + $0x588] sm:$0xff]  ;;  %v8469_v48 = vcombine.high %v4103_v31, %v4107_v43  ;;  %v4143_v36 = vld [vmem:[#allocation8 + $0x6c0] sm:$0xff] }
 0x29e   :  { %7246 = vmatprep.subr.bf16.mxu1 %v8423_v46  ;;  %v4108_v44 = vld [vmem:[#allocation8 + $0x5a8] sm:$0xff]  ;;  %v8462_v46 = vcombine.low %v4096_v37, %v4100_v38  ;;  %v4147_v37 = vld [vmem:[#allocation8 + $0x6e0] sm:$0xff] }
 0x29f   :  { %7074 = vmatmul.mubr.bf16.vlgmr.msra.gmra.mrb[8].mxu0 %v9322_v0  ;;  %v8471_v53 = vcombine.high %v4104_v54, %v4108_v44  ;;  %v4144_v38 = vld [vmem:[#allocation8 + $0x6c8] sm:$0xff] }
 0x2a0   :  { %7238 = vmatmul.mubr.bf16.vlgmr.msra.gmra.mrb[8].mxu1 %v9322_v0  ;;  %7083 = vmatpush1.bf16.msra.mxu0 %v8420_v51  ;;  %v4115_v51 = vld [vmem:[#allocation8 + $0x5e0] sm:$0xff] }
 0x2a1   :  { %7114 = vmatprep.mubr.bf16.mxu0 %v9324_v59  ;;  %7247 = vmatpush1.bf16.msra.mxu1 %v8422_v52  ;;  %v8468_v52 = vcombine.low %v4103_v31, %v4107_v43  ;;  %v8477_v56 = vcombine.high %v4111_v50, %v4115_v51  ;;  %v4151_v43 = vld [vmem:[#allocation8 + $0x700] sm:$0xff] }
 0x2a2   :  { %7278 = vmatprep.mubr.bf16.mxu1 %v9324_v59  ;;  %7084 = vmatprep.subr.bf16.mxu0 %v8429_v55  ;;  %v8470_v55 = vcombine.low %v4104_v54, %v4108_v44  ;;  %v4155_v54 = vld [vmem:[#allocation8 + $0x720] sm:$0xff]  ;;  %v4152_v44 = vld [vmem:[#allocation8 + $0x708] sm:$0xff] }
 0x2a3   :  { %7248 = vmatprep.subr.bf16.mxu1 %v8431_v27  ;;  %v4119_v27 = vld [vmem:[#allocation8 + $0x600] sm:$0xff] }
 0x2a4   :  { %7085 = vmatpush1.bf16.msra.mxu0 %v8428_v3  ;;  %v4124_v3 = vld [vmem:[#allocation8 + $0x628] sm:$0xff] }
 0x2a5   :  { %7249 = vmatpush1.bf16.msra.mxu1 %v8430_v4  ;;  %7086 = vmatprep.subr.bf16.mxu0 %v8437_v5  ;;  %v8476_v4 = vcombine.low %v4111_v50, %v4115_v51  ;;  %v8478_v5 = vcombine.low %v4112_v63, %v4116_v18  ;;  %v8487_v13 = vcombine.high %v4120_v2, %v4124_v3  ;;  %v649_v50 = vsub.s32 2, %v9297_v32  ;;  %v4159_v63 = vld [vmem:[#allocation8 + $0x740] sm:$0xff] }
 0x2a6   :  { %7250 = vmatprep.subr.bf16.mxu1 %v8439_v6  ;;  %v8485_v6 = vcombine.high %v4119_v27, %v4123_v60  ;;  %v4163_v18 = vld [vmem:[#allocation8 + $0x760] sm:$0xff] }
 0x2a8   :  { %7087 = vmatpush1.bf16.msra.mxu0 %v8436_v20  ;;  %v4132_v20 = vld [vmem:[#allocation8 + $0x668] sm:$0xff] }
 0x2a9   :  { %7251 = vmatpush1.bf16.msra.mxu1 %v8438_v21  ;;  %7088 = vmatprep.subr.bf16.mxu0 %v8445_v22  ;;  %v8484_v21 = vcombine.low %v4119_v27, %v4123_v60  ;;  %v8486_v22 = vcombine.low %v4120_v2, %v4124_v3  ;;  %v8495_v25 = vcombine.high %v4128_v11, %v4132_v20  ;;  %v4167_v3 = vld [vmem:[#allocation8 + $0x780] sm:$0xff] }
 0x2aa   :  { %7252 = vmatprep.subr.bf16.mxu1 %v8447_v62  ;;  %v8493_v62 = vcombine.high %v4127_v14, %v4131_v17  ;;  %v8525_v27 = vcombine.high %v4159_v63, %v4163_v18  ;;  %v650_v60 = vrot.slane %v9300_v24, %v649_v50  ;;  %v4180_v24 = vld [vmem:[#allocation8 + $0x7e8] sm:$0xff] }
 0x2ac   :  { %7089 = vmatpush1.bf16.msra.mxu0 %v8444_v49  ;;  %v4140_v49 = vld [vmem:[#allocation8 + $0x6a8] sm:$0xff] }
 0x2ad   :  { %7253 = vmatpush1.bf16.msra.mxu1 %v8446_v29  ;;  %7090 = vmatprep.subr.bf16.mxu0 %v8453_v33  ;;  %v8492_v29 = vcombine.low %v4127_v14, %v4131_v17  ;;  %v8494_v33 = vcombine.low %v4128_v11, %v4132_v20  ;;  %v8503_v35 = vcombine.high %v4136_v28, %v4140_v49 }
 0x2ae   :  { %7254 = vmatprep.subr.bf16.mxu1 %v8455_v34  ;;  %v8501_v34 = vcombine.high %v4135_v26, %v4139_v47  ;;  %v8806_v11 = vadd.f32 %v9291_v15, %v650_v60  ;;  %v4188_v15 = vld [vmem:[#allocation8 + $0x828] sm:$0xff] }
 0x2af   :  { %v4208_v60 = vld [vmem:[#allocation8 + $0x8c8] sm:$0xff] }
 0x2b0   :  { %7091 = vmatpush1.bf16.msra.mxu0 %v8452_v40  ;;  %v4148_v40 = vld [vmem:[#allocation8 + $0x6e8] sm:$0xff]  ;;  %vm3897_vm3 = vcmp.gt.f32.partialorder %v8806_v11, 0.0 }
 0x2b1   :  { %7255 = vmatpush1.bf16.msra.mxu1 %v8454_v41  ;;  %7092 = vmatprep.subr.bf16.mxu0 %v8461_v8  ;;  %v8500_v41 = vcombine.low %v4135_v26, %v4139_v47  ;;  %v8502_v8 = vcombine.low %v4136_v28, %v4140_v49  ;;  %v8511_v31 = vcombine.high %v4144_v38, %v4148_v40  ;;  %v3905_v28 = vmul.f32 0.01, %v8806_v11 }
 0x2b2   :  { %7256 = vmatprep.subr.bf16.mxu1 %v8463_v42  ;;  %v8509_v42 = vcombine.high %v4143_v36, %v4147_v37 }
 0x2b4   :  { %7093 = vmatpush1.bf16.msra.mxu0 %v8460_v45  ;;  %v4156_v45 = vld [vmem:[#allocation8 + $0x728] sm:$0xff] }
 0x2b5   :  { %7257 = vmatpush1.bf16.msra.mxu1 %v8462_v46  ;;  %7094 = vmatprep.subr.bf16.mxu0 %v8469_v48  ;;  %v8508_v46 = vcombine.low %v4143_v36, %v4147_v37  ;;  %v8510_v48 = vcombine.low %v4144_v38, %v4148_v40  ;;  %v8519_v51 = vcombine.high %v4152_v44, %v4156_v45 }
 0x2b6   :  { %7258 = vmatprep.subr.bf16.mxu1 %v8471_v53  ;;  %v8517_v53 = vcombine.high %v4151_v43, %v4155_v54  ;;  %v3913_v38 = vsel %vm3897_vm3, %v8806_v11, %v3905_v28  ;;  %v4220_v11 = vld [vmem:[#allocation8 + $0x928] sm:$0xff] }
 0x2b8   :  { %7095 = vmatpush1.bf16.msra.mxu0 %v8468_v52  ;;  %v4160_v52 = vld [vmem:[#allocation8 + $0x748] sm:$0xff] }
 0x2b9   :  { %7259 = vmatpush1.bf16.msra.mxu1 %v8470_v55  ;;  %7096 = vmatprep.subr.bf16.mxu0 %v8477_v56  ;;  %v4164_v55 = vld [vmem:[#allocation8 + $0x768] sm:$0xff]  ;;  %v8516_v56 = vcombine.low %v4151_v43, %v4155_v54  ;;  %v9335_v54 = vpack.c.bf16 %v3913_v38, %v3913_v38 }
 0x2ba   :  { %7260 = vmatprep.subr.bf16.mxu1 %v8479_v57  ;;  %v8518_v57 = vcombine.low %v4152_v44, %v4156_v45  ;;  %v8527_v2 = vcombine.high %v4160_v52, %v4164_v55  ;;  %v8526_v14 = vcombine.low %v4160_v52, %v4164_v55 }
 0x2bc   :  { %7097 = vmatpush1.bf16.msra.mxu0 %v8476_v4  ;;  %v4171_v4 = vld [vmem:[#allocation8 + $0x7a0] sm:$0xff] }
 0x2bd   :  { %7261 = vmatpush1.bf16.msra.mxu1 %v8478_v5  ;;  %7098 = vmatprep.subr.bf16.mxu0 %v8485_v6  ;;  %v4168_v5 = vld [vmem:[#allocation8 + $0x788] sm:$0xff]  ;;  %v8533_v17 = vcombine.high %v4167_v3, %v4171_v4 }
 0x2be   :  { %7262 = vmatprep.subr.bf16.mxu1 %v8487_v13  ;;  %v4172_v6 = vld [vmem:[#allocation8 + $0x7a8] sm:$0xff]  ;;  %v8524_v13 = vcombine.low %v4159_v63, %v4163_v18 }
 0x2bf   :  { %v8535_v20 = vcombine.high %v4168_v5, %v4172_v6  ;;  %v8534_v26 = vcombine.low %v4168_v5, %v4172_v6  ;;  %v4204_v63 = vld [vmem:[#allocation8 + $0x8a8] sm:$0xff] }
 0x2c0   :  { %7099 = vmatpush1.bf16.msra.mxu0 %v8484_v21  ;;  %v4175_v21 = vld [vmem:[#allocation8 + $0x7c0] sm:$0xff] }
 0x2c1   :  { %7263 = vmatpush1.bf16.msra.mxu1 %v8486_v22  ;;  %7100 = vmatprep.subr.bf16.mxu0 %v8493_v62  ;;  %v4179_v22 = vld [vmem:[#allocation8 + $0x7e0] sm:$0xff]  ;;  %v4176_v62 = vld [vmem:[#allocation8 + $0x7c8] sm:$0xff] }
 0x2c2   :  { %7264 = vmatprep.subr.bf16.mxu1 %v8495_v25  ;;  %v8532_v25 = vcombine.low %v4167_v3, %v4171_v4  ;;  %v8541_v47 = vcombine.high %v4175_v21, %v4179_v22  ;;  %v8543_v49 = vcombine.high %v4176_v62, %v4180_v24  ;;  %v8542_v36 = vcombine.low %v4176_v62, %v4180_v24  ;;  %v4223_v24 = vld [vmem:[#allocation8 + $0x940] sm:$0xff] }
 0x2c4   :  { %7101 = vmatpush1.bf16.msra.mxu0 %v8492_v29  ;;  %v4183_v29 = vld [vmem:[#allocation8 + $0x800] sm:$0xff] }
 0x2c5   :  { %7265 = vmatpush1.bf16.msra.mxu1 %v8494_v33  ;;  %7102 = vmatprep.subr.bf16.mxu0 %v8501_v34  ;;  %v4187_v33 = vld [vmem:[#allocation8 + $0x820] sm:$0xff]  ;;  %v4184_v34 = vld [vmem:[#allocation8 + $0x808] sm:$0xff] }
 0x2c6   :  { %7266 = vmatprep.subr.bf16.mxu1 %v8503_v35  ;;  %v8540_v35 = vcombine.low %v4175_v21, %v4179_v22  ;;  %v8549_v37 = vcombine.high %v4183_v29, %v4187_v33  ;;  %v8551_v40 = vcombine.high %v4184_v34, %v4188_v15  ;;  %v8548_v43 = vcombine.low %v4183_v29, %v4187_v33 }
 0x2c7   :  { %v8550_v44 = vcombine.low %v4184_v34, %v4188_v15  ;;  %v4231_v34 = vld [vmem:[#allocation8 + $0x980] sm:$0xff] }
 0x2c8   :  { %7103 = vmatpush1.bf16.msra.mxu0 %v8500_v41  ;;  %v4191_v41 = vld [vmem:[#allocation8 + $0x840] sm:$0xff] }
 0x2c9   :  { %7267 = vmatpush1.bf16.msra.mxu1 %v8502_v8  ;;  %7104 = vmatprep.subr.bf16.mxu0 %v8509_v42  ;;  %v4195_v8 = vld [vmem:[#allocation8 + $0x860] sm:$0xff]  ;;  %v4192_v42 = vld [vmem:[#allocation8 + $0x848] sm:$0xff] }
 0x2ca   :  { %7268 = vmatprep.subr.bf16.mxu1 %v8511_v31  ;;  %v4196_v31 = vld [vmem:[#allocation8 + $0x868] sm:$0xff]  ;;  %v8557_v45 = vcombine.high %v4191_v41, %v4195_v8  ;;  %v8556_v18 = vcombine.low %v4191_v41, %v4195_v8  ;;  %v4235_v15 = vld [vmem:[#allocation8 + $0x9a0] sm:$0xff] }
 0x2cb   :  { %v8558_v52 = vcombine.low %v4192_v42, %v4196_v31  ;;  %v4239_v8 = vld [vmem:[#allocation8 + $0x9c0] sm:$0xff] }
 0x2cc   :  { %7105 = vmatpush1.bf16.msra.mxu0 %v8508_v46  ;;  %v8559_v46 = vcombine.high %v4192_v42, %v4196_v31  ;;  %v4243_v42 = vld [vmem:[#allocation8 + $0x9e0] sm:$0xff]  ;;  %v4240_v31 = vld [vmem:[#allocation8 + $0x9c8] sm:$0xff] }
 0x2cd   :  { %7269 = vmatpush1.bf16.msra.mxu1 %v8510_v48  ;;  %7106 = vmatprep.subr.bf16.mxu0 %v8517_v53  ;;  %v4199_v48 = vld [vmem:[#allocation8 + $0x880] sm:$0xff] }
 0x2ce   :  { %7270 = vmatprep.subr.bf16.mxu1 %v8519_v51  ;;  %v4203_v53 = vld [vmem:[#allocation8 + $0x8a0] sm:$0xff]  ;;  %v4200_v51 = vld [vmem:[#allocation8 + $0x888] sm:$0xff] }
 0x2cf   :  { %v8565_v55 = vcombine.high %v4199_v48, %v4203_v53  ;;  %v8564_v3 = vcombine.low %v4199_v48, %v4203_v53  ;;  %v8566_v4 = vcombine.low %v4200_v51, %v4204_v63  ;;  %v4247_v53 = vld [vmem:[#allocation8 + $0xa00] sm:$0xff] }
 0x2d0   :  { %7107 = vmatpush1.bf16.msra.mxu0 %v8516_v56  ;;  %v8567_v56 = vcombine.high %v4200_v51, %v4204_v63  ;;  %v4251_v51 = vld [vmem:[#allocation8 + $0xa20] sm:$0xff]  ;;  %v4248_v63 = vld [vmem:[#allocation8 + $0xa08] sm:$0xff] }
 0x2d1   :  { %7271 = vmatpush1.bf16.msra.mxu1 %v8518_v57  ;;  %7108 = vmatprep.subr.bf16.mxu0 %v8525_v27  ;;  %v4207_v57 = vld [vmem:[#allocation8 + $0x8c0] sm:$0xff] }
 0x2d2   :  { %7272 = vmatprep.subr.bf16.mxu1 %v8527_v2  ;;  %v4211_v27 = vld [vmem:[#allocation8 + $0x8e0] sm:$0xff]  ;;  %v4212_v2 = vld [vmem:[#allocation8 + $0x8e8] sm:$0xff] }
 0x2d3   :  { %v8573_v5 = vcombine.high %v4207_v57, %v4211_v27  ;;  %v8575_v6 = vcombine.high %v4208_v60, %v4212_v2  ;;  %v8574_v21 = vcombine.low %v4208_v60, %v4212_v2  ;;  %v4259_v60 = vld [vmem:[#allocation8 + $0xa60] sm:$0xff]  ;;  %v4256_v2 = vld [vmem:[#allocation8 + $0xa48] sm:$0xff] }
 0x2d4   :  { %7109 = vmatpush1.bf16.msra.mxu0 %v8524_v13  ;;  %v4215_v13 = vld [vmem:[#allocation8 + $0x900] sm:$0xff] }
 0x2d5   :  { %7273 = vmatpush1.bf16.msra.mxu1 %v8526_v14  ;;  %7110 = vmatprep.subr.bf16.mxu0 %v8533_v17  ;;  %v4219_v14 = vld [vmem:[#allocation8 + $0x920] sm:$0xff]  ;;  %v4216_v17 = vld [vmem:[#allocation8 + $0x908] sm:$0xff] }
 0x2d6   :  { %7274 = vmatprep.subr.bf16.mxu1 %v8535_v20  ;;  %v8572_v20 = vcombine.low %v4207_v57, %v4211_v27  ;;  %v8581_v22 = vcombine.high %v4215_v13, %v4219_v14  ;;  %v8583_v62 = vcombine.high %v4216_v17, %v4220_v11  ;;  %v8580_v28 = vcombine.low %v4215_v13, %v4219_v14  ;;  %v4255_v27 = vld [vmem:[#allocation8 + $0xa40] sm:$0xff] }
 0x2d7   :  { %v4263_v14 = vld [vmem:[#allocation8 + $0xa80] sm:$0xff] }
 0x2d8   :  { %7111 = vmatpush1.bf16.msra.mxu0 %v8532_v25  ;;  %v4227_v25 = vld [vmem:[#allocation8 + $0x960] sm:$0xff] }
 0x2d9   :  { %7275 = vmatpush1.bf16.msra.mxu1 %v8534_v26  ;;  %7112 = vmatprep.subr.bf16.mxu0 %v8541_v47  ;;  %v4224_v26 = vld [vmem:[#allocation8 + $0x948] sm:$0xff]  ;;  %v8589_v29 = vcombine.high %v4223_v24, %v4227_v25 }
 0x2da   :  { %7276 = vmatprep.subr.bf16.mxu1 %v8543_v49  ;;  %v4228_v47 = vld [vmem:[#allocation8 + $0x968] sm:$0xff]  ;;  %v8582_v49 = vcombine.low %v4216_v17, %v4220_v11  ;;  %v4267_v17 = vld [vmem:[#allocation8 + $0xaa0] sm:$0xff] }
 0x2db   :  { %v8591_v33 = vcombine.high %v4224_v26, %v4228_v47  ;;  %v8590_v38 = vcombine.low %v4224_v26, %v4228_v47  ;;  %v4264_v11 = vld [vmem:[#allocation8 + $0xa88] sm:$0xff]  ;;  %v4275_v26 = vld [vmem:[#allocation8 + $0xae0] sm:$0xff] }
 0x2dc   :  { %7113 = vmatpush1.bf16.msra.mxu0 %v8540_v35  ;;  %v4232_v35 = vld [vmem:[#allocation8 + $0x988] sm:$0xff] }
 0x2dd   :  { %7277 = vmatpush1.bf16.msra.mxu1 %v8542_v36  ;;  %7123 = vmatprep.subr.bf16.mxu0 %v8549_v37  ;;  %v4236_v36 = vld [vmem:[#allocation8 + $0x9a8] sm:$0xff]  ;;  %v8588_v37 = vcombine.low %v4223_v24, %v4227_v25  ;;  %v4271_v25 = vld [vmem:[#allocation8 + $0xac0] sm:$0xff] }
 0x2de   :  { %7287 = vmatprep.subr.bf16.mxu1 %v8551_v40  ;;  %v8597_v40 = vcombine.high %v4231_v34, %v4235_v15  ;;  %v8599_v41 = vcombine.high %v4232_v35, %v4236_v36  ;;  %v4272_v47 = vld [vmem:[#allocation8 + $0xac8] sm:$0xff] }
 0x2df   :  { %7115 = vmatmul.mubr.bf16.vlgmr.msra.gmra.mrb[8].mxu0 %v9335_v54 }
 0x2e0   :  { %7279 = vmatmul.mubr.bf16.vlgmr.msra.gmra.mrb[8].mxu1 %v9335_v54  ;;  %7124 = vmatpush1.bf16.msra.mxu0 %v8548_v43  ;;  %v4244_v43 = vld [vmem:[#allocation8 + $0x9e8] sm:$0xff] }
 0x2e1   :  { %7288 = vmatpush1.bf16.msra.mxu1 %v8550_v44  ;;  %7125 = vmatprep.subr.bf16.mxu0 %v8557_v45  ;;  %v8596_v44 = vcombine.low %v4231_v34, %v4235_v15  ;;  %v8598_v45 = vcombine.low %v4232_v35, %v4236_v36  ;;  %v8607_v48 = vcombine.high %v4240_v31, %v4244_v43  ;;  %v4279_v15 = vld [vmem:[#allocation8 + $0xb00] sm:$0xff]  ;;  %v4280_v36 = vld [vmem:[#allocation8 + $0xb08] sm:$0xff] }
 0x2e2   :  { %7289 = vmatprep.subr.bf16.mxu1 %v8559_v46  ;;  %v8605_v46 = vcombine.high %v4239_v8, %v4243_v42  ;;  %v4283_v35 = vld [vmem:[#allocation8 + $0xb20] sm:$0xff] }
 0x2e4   :  { %7126 = vmatpush1.bf16.msra.mxu0 %v8556_v18  ;;  %v4252_v18 = vld [vmem:[#allocation8 + $0xa28] sm:$0xff] }
 0x2e5   :  { %7290 = vmatpush1.bf16.msra.mxu1 %v8558_v52  ;;  %7127 = vmatprep.subr.bf16.mxu0 %v8565_v55  ;;  %v8604_v52 = vcombine.low %v4239_v8, %v4243_v42  ;;  %v8606_v55 = vcombine.low %v4240_v31, %v4244_v43  ;;  %v8615_v57 = vcombine.high %v4248_v63, %v4252_v18  ;;  %v4287_v42 = vld [vmem:[#allocation8 + $0xb40] sm:$0xff]  ;;  %v4288_v43 = vld [vmem:[#allocation8 + $0xb48] sm:$0xff] }
 0x2e6   :  { %7291 = vmatprep.subr.bf16.mxu1 %v8567_v56  ;;  %v8613_v56 = vcombine.high %v4247_v53, %v4251_v51  ;;  %v4291_v31 = vld [vmem:[#allocation8 + $0xb60] sm:$0xff] }
 0x2e8   :  { %7128 = vmatpush1.bf16.msra.mxu0 %v8564_v3  ;;  %v4260_v3 = vld [vmem:[#allocation8 + $0xa68] sm:$0xff] }
 0x2e9   :  { %7292 = vmatpush1.bf16.msra.mxu1 %v8566_v4  ;;  %7129 = vmatprep.subr.bf16.mxu0 %v8573_v5  ;;  %v8612_v4 = vcombine.low %v4247_v53, %v4251_v51  ;;  %v8614_v5 = vcombine.low %v4248_v63, %v4252_v18  ;;  %v8623_v13 = vcombine.high %v4256_v2, %v4260_v3  ;;  %v4295_v51 = vld [vmem:[#allocation8 + $0xb80] sm:$0xff]  ;;  %v4296_v18 = vld [vmem:[#allocation8 + $0xb88] sm:$0xff] }
 0x2ea   :  { %7293 = vmatprep.subr.bf16.mxu1 %v8575_v6  ;;  %v8621_v6 = vcombine.high %v4255_v27, %v4259_v60  ;;  %v4299_v63 = vld [vmem:[#allocation8 + $0xba0] sm:$0xff] }
 0x2ec   :  { %7130 = vmatpush1.bf16.msra.mxu0 %v8572_v20  ;;  %v4268_v20 = vld [vmem:[#allocation8 + $0xaa8] sm:$0xff] }
 0x2ed   :  { %7294 = vmatpush1.bf16.msra.mxu1 %v8574_v21  ;;  %7131 = vmatprep.subr.bf16.mxu0 %v8581_v22  ;;  %v8620_v21 = vcombine.low %v4255_v27, %v4259_v60  ;;  %v8622_v22 = vcombine.low %v4256_v2, %v4260_v3  ;;  %v8631_v24 = vcombine.high %v4264_v11, %v4268_v20  ;;  %v4303_v60 = vld [vmem:[#allocation8 + $0xbc0] sm:$0xff]  ;;  %v4304_v3 = vld [vmem:[#allocation8 + $0xbc8] sm:$0xff] }
 0x2ee   :  { %7295 = vmatprep.subr.bf16.mxu1 %v8583_v62  ;;  %v8629_v62 = vcombine.high %v4263_v14, %v4267_v17  ;;  %v4307_v2 = vld [vmem:[#allocation8 + $0xbe0] sm:$0xff] }
 0x2f0   :  { %7132 = vmatpush1.bf16.msra.mxu0 %v8580_v28  ;;  %v4276_v28 = vld [vmem:[#allocation8 + $0xae8] sm:$0xff] }
 0x2f1   :  { %7296 = vmatpush1.bf16.msra.mxu1 %v8582_v49  ;;  %7133 = vmatprep.subr.bf16.mxu0 %v8589_v29  ;;  %v8628_v49 = vcombine.low %v4263_v14, %v4267_v17  ;;  %v8630_v29 = vcombine.low %v4264_v11, %v4268_v20  ;;  %v8639_v34 = vcombine.high %v4272_v47, %v4276_v28  ;;  %v4311_v17 = vld [vmem:[#allocation8 + $0xc00] sm:$0xff]  ;;  %v4312_v20 = vld [vmem:[#allocation8 + $0xc08] sm:$0xff] }
 0x2f2   :  { %7297 = vmatprep.subr.bf16.mxu1 %v8591_v33  ;;  %v8637_v33 = vcombine.high %v4271_v25, %v4275_v26  ;;  %v4315_v11 = vld [vmem:[#allocation8 + $0xc20] sm:$0xff] }
 0x2f4   :  { %7134 = vmatpush1.bf16.msra.mxu0 %v8588_v37  ;;  %v4284_v37 = vld [vmem:[#allocation8 + $0xb28] sm:$0xff] }
 0x2f5   :  { %7298 = vmatpush1.bf16.msra.mxu1 %v8590_v38  ;;  %7135 = vmatprep.subr.bf16.mxu0 %v8597_v40  ;;  %v8636_v38 = vcombine.low %v4271_v25, %v4275_v26  ;;  %v8638_v40 = vcombine.low %v4272_v47, %v4276_v28  ;;  %v8647_v8 = vcombine.high %v4280_v36, %v4284_v37  ;;  %v657_v26 = vsub.s32 4, %v9297_v32 }
 0x2f6   :  { %7299 = vmatprep.subr.bf16.mxu1 %v8599_v41  ;;  %v8645_v41 = vcombine.high %v4279_v15, %v4283_v35  ;;  %v661_v47 = vsub.s32 5, %v9297_v32  ;;  %v669_v28 = vsub.s32 7, %v9297_v32 }
 0x2f8   :  { %7136 = vmatpush1.bf16.msra.mxu0 %v8596_v44  ;;  %v4292_v44 = vld [vmem:[#allocation8 + $0xb68] sm:$0xff] }
 0x2f9   :  { %7300 = vmatpush1.bf16.msra.mxu1 %v8598_v45  ;;  %7137 = vmatprep.subr.bf16.mxu0 %v8605_v46  ;;  %v8644_v45 = vcombine.low %v4279_v15, %v4283_v35  ;;  %v8646_v46 = vcombine.low %v4280_v36, %v4284_v37  ;;  %v8655_v53 = vcombine.high %v4288_v43, %v4292_v44 }
 0x2fa   :  { %7301 = vmatprep.subr.bf16.mxu1 %v8607_v48  ;;  %v8653_v48 = vcombine.high %v4287_v42, %v4291_v31 }
 0x2fc   :  { %7138 = vmatpush1.bf16.msra.mxu0 %v8604_v52  ;;  %v4300_v52 = vld [vmem:[#allocation8 + $0xba8] sm:$0xff] }
 0x2fd   :  { %7302 = vmatpush1.bf16.msra.mxu1 %v8606_v55  ;;  %7139 = vmatprep.subr.bf16.mxu0 %v8613_v56  ;;  %v8652_v55 = vcombine.low %v4287_v42, %v4291_v31  ;;  %v8654_v56 = vcombine.low %v4288_v43, %v4292_v44  ;;  %v8663_v27 = vcombine.high %v4296_v18, %v4300_v52 }
 0x2fe   :  { %7303 = vmatprep.subr.bf16.mxu1 %v8615_v57  ;;  %v8661_v57 = vcombine.high %v4295_v51, %v4299_v63 }
 0x300   :  { %7140 = vmatpush1.bf16.msra.mxu0 %v8612_v4  ;;  %v4308_v4 = vld [vmem:[#allocation8 + $0xbe8] sm:$0xff] }
 0x301   :  { %7304 = vmatpush1.bf16.msra.mxu1 %v8614_v5  ;;  %7141 = vmatprep.subr.bf16.mxu0 %v8621_v6  ;;  %v8660_v5 = vcombine.low %v4295_v51, %v4299_v63  ;;  %v8662_v6 = vcombine.low %v4296_v18, %v4300_v52  ;;  %v8671_v14 = vcombine.high %v4304_v3, %v4308_v4  ;;  %v4323_v63 = vld [vmem:[#allocation8 + $0xc60] sm:$0xff]  ;;  %v4320_v18 = vld [vmem:[#allocation8 + $0xc48] sm:$0xff] }
 0x302   :  { %7305 = vmatprep.subr.bf16.mxu1 %v8623_v13  ;;  %v8669_v13 = vcombine.high %v4303_v60, %v4307_v2  ;;  %v4324_v52 = vld [vmem:[#allocation8 + $0xc68] sm:$0xff] }
 0x304   :  { %7142 = vmatpush1.bf16.msra.mxu0 %v8620_v21  ;;  %v4316_v21 = vld [vmem:[#allocation8 + $0xc28] sm:$0xff] }
 0x305   :  { %7306 = vmatpush1.bf16.msra.mxu1 %v8622_v22  ;;  %7143 = vmatprep.subr.bf16.mxu0 %v8629_v62  ;;  %v8668_v22 = vcombine.low %v4303_v60, %v4307_v2  ;;  %v8670_v62 = vcombine.low %v4304_v3, %v4308_v4  ;;  %v8679_v25 = vcombine.high %v4312_v20, %v4316_v21  ;;  %v4327_v2 = vld [vmem:[#allocation8 + $0xc80] sm:$0xff] }
 0x306   :  { %7307 = vmatprep.subr.bf16.mxu1 %v8631_v24  ;;  %v8677_v24 = vcombine.high %v4311_v17, %v4315_v11  ;;  %v8687_v4 = vcombine.high %v4320_v18, %v4324_v52 }
 0x308   :  { %7144 = vmatpush1.bf16.msra.mxu0 %v8628_v49  ;;  %v9342_v49 = vld [vmem:[#allocation7] sm:$0xff] }
 0x309   :  { %7308 = vmatpush1.bf16.msra.mxu1 %v8630_v29  ;;  %7145 = vmatprep.subr.bf16.mxu0 %v8637_v33  ;;  %v658_v29 = vrot.slane %v9342_v49, %v657_v26  ;;  %v662_v33 = vrot.slane %v9342_v49, %v661_v47 }
 0x30a   :  { %7309 = vmatprep.subr.bf16.mxu1 %v8639_v34  ;;  %v670_v34 = vrot.slane %v9342_v49, %v669_v28 }
 0x30c   :  { %7146 = vmatpush1.bf16.msra.mxu0 %v8636_v38 }
 0x30d   :  { %7310 = vmatpush1.bf16.msra.mxu1 %v8638_v40  ;;  %7147 = vmatprep.subr.bf16.mxu0 %v8645_v41 }
 0x30e   :  { %7311 = vmatprep.subr.bf16.mxu1 %v8647_v8 }
 0x310   :  { %7148 = vmatpush1.bf16.msra.mxu0 %v8644_v45 }
 0x311   :  { %7312 = vmatpush1.bf16.msra.mxu1 %v8646_v46  ;;  %7149 = vmatprep.subr.bf16.mxu0 %v8653_v48 }
 0x312   :  { %7313 = vmatprep.subr.bf16.mxu1 %v8655_v53  ;;  %v4319_v53 = vld [vmem:[#allocation8 + $0xc40] sm:$0xff] }
 0x313   :  { %v8685_v3 = vcombine.high %v4319_v53, %v4323_v63 }
 0x314   :  { %7150 = vmatpush1.bf16.msra.mxu0 %v8652_v55 }
 0x315   :  { %7314 = vmatpush1.bf16.msra.mxu1 %v8654_v56  ;;  %7151 = vmatprep.subr.bf16.mxu0 %v8661_v57  ;;  %v8676_v57 = vcombine.low %v4311_v17, %v4315_v11  ;;  %v8684_v17 = vcombine.low %v4319_v53, %v4323_v63  ;;  %v8686_v11 = vcombine.low %v4320_v18, %v4324_v52  ;;  %v4359_v18 = vld [vmem:[#allocation8 + $0xd80] sm:$0xff] }
 0x316   :  { %7315 = vmatprep.subr.bf16.mxu1 %v8663_v27  ;;  %v8678_v27 = vcombine.low %v4312_v20, %v4316_v21  ;;  %v4363_v52 = vld [vmem:[#allocation8 + $0xda0] sm:$0xff] }
 0x318   :  { %7152 = vmatpush1.bf16.msra.mxu0 %v8660_v5  ;;  %v4331_v5 = vld [vmem:[#allocation8 + $0xca0] sm:$0xff] }
 0x319   :  { %7316 = vmatpush1.bf16.msra.mxu1 %v8662_v6  ;;  %7153 = vmatprep.subr.bf16.mxu0 %v8669_v13  ;;  %v4328_v6 = vld [vmem:[#allocation8 + $0xc88] sm:$0xff]  ;;  %v8693_v20 = vcombine.high %v4327_v2, %v4331_v5 }
 0x31a   :  { %7317 = vmatprep.subr.bf16.mxu1 %v8671_v14  ;;  %v4332_v13 = vld [vmem:[#allocation8 + $0xca8] sm:$0xff] }
 0x31b   :  { %v8695_v21 = vcombine.high %v4328_v6, %v4332_v13 }
 0x31c   :  { %7154 = vmatpush1.bf16.msra.mxu0 %v8668_v22  ;;  %v4335_v22 = vld [vmem:[#allocation8 + $0xcc0] sm:$0xff] }
 0x31d   :  { %7318 = vmatpush1.bf16.msra.mxu1 %v8670_v62  ;;  %7164 = vmatprep.subr.bf16.mxu0 %v8677_v24  ;;  %v4339_v62 = vld [vmem:[#allocation8 + $0xce0] sm:$0xff]  ;;  %v4336_v24 = vld [vmem:[#allocation8 + $0xcc8] sm:$0xff] }
 0x31e   :  { %7328 = vmatprep.subr.bf16.mxu1 %v8679_v25  ;;  %v4340_v25 = vld [vmem:[#allocation8 + $0xce8] sm:$0xff] }
 0x332   :  { %v3724_v15 = vpop.f32.mrb[4].mxu0  ;;  %v9353_v36 = vpop.f32.mrb[4].mxu1 }
 0x333   :  { %v8808_v35 = vadd.f32 %v3724_v15, %v658_v29  ;;  %v3726_v37 = vpop.f32.mrb[5].mxu0  ;;  %v3890_v40 = vpop.f32.mrb[5].mxu1  ;;  %v8692_v29 = vcombine.low %v4327_v2, %v4331_v5  ;;  %v8703_v15 = vcombine.high %v4336_v24, %v4340_v25  ;;  %v4367_v5 = vld [vmem:[#allocation8 + $0xdc0] sm:$0xff] }
 0x334   :  { %v8809_v38 = vadd.f32 %v3726_v37, %v662_v33  ;;  %v3728_v41 = vpop.f32.mrb[6].mxu0  ;;  %v8811_v42 = vadd.f32 %v3890_v40, %v670_v34  ;;  %v3892_v31 = vpop.f32.mrb[6].mxu1  ;;  %v8694_v33 = vcombine.low %v4328_v6, %v4332_v13  ;;  %v8701_v34 = vcombine.high %v4335_v22, %v4339_v62  ;;  %v4347_v37 = vld [vmem:[#allocation8 + $0xd20] sm:$0xff]  ;;  %v4348_v40 = vld [vmem:[#allocation8 + $0xd28] sm:$0xff] }
 0x335   :  { %vm3899_vm4 = vcmp.gt.f32.partialorder %v8808_v35, 0.0  ;;  %v3907_v8 = vmul.f32 0.01, %v8808_v35  ;;  %v3729_v43 = vpop.f32.mrb[7].mxu0  ;;  %v3893_v48 = vpop.f32.mrb[7].mxu1  ;;  %v8700_v41 = vcombine.low %v4335_v22, %v4339_v62  ;;  %v4371_v6 = vld [vmem:[#allocation8 + $0xde0] sm:$0xff] }
 0x336   :  { %vm3900_vm5 = vcmp.gt.f32.partialorder %v8809_v38, 0.0  ;;  %v3908_v44 = vmul.f32 0.01, %v8809_v38  ;;  %vm3902_vm6 = vcmp.gt.f32.partialorder %v8811_v42, 0.0  ;;  %v3910_v46 = vmul.f32 0.01, %v8811_v42 }
 0x337   :  { %v3915_v45 = vsel %vm3899_vm4, %v8808_v35, %v3907_v8  ;;  %v4343_v35 = vld [vmem:[#allocation8 + $0xd00] sm:$0xff]  ;;  %v8702_v8 = vcombine.low %v4336_v24, %v4340_v25  ;;  %v4368_v13 = vld [vmem:[#allocation8 + $0xdc8] sm:$0xff] }
 0x338   :  { %v3916_v51 = vsel %vm3900_vm5, %v8809_v38, %v3908_v44  ;;  %v3918_v56 = vsel %vm3902_vm6, %v8811_v42, %v3910_v46  ;;  %v9357_v60 = vpack.c.bf16 %v3915_v45, %v3915_v45  ;;  %v4344_v38 = vld [vmem:[#allocation8 + $0xd08] sm:$0xff]  ;;  %v8709_v42 = vcombine.high %v4343_v35, %v4347_v37  ;;  %v4351_v43 = vld [vmem:[#allocation8 + $0xd40] sm:$0xff] }
 0x339   :  { %v9355_v55 = vpack.c.bf16 %v3916_v51, %v3916_v51  ;;  %v9361_v14 = vpack.c.bf16 %v3918_v56, %v3918_v56  ;;  %v8711_v31 = vcombine.high %v4344_v38, %v4348_v40  ;;  %v4355_v44 = vld [vmem:[#allocation8 + $0xd60] sm:$0xff]  ;;  %v4352_v45 = vld [vmem:[#allocation8 + $0xd48] sm:$0xff]  ;;  %v8708_v48 = vcombine.low %v4343_v35, %v4347_v37 }
 0x33a   :  { %v4356_v46 = vld [vmem:[#allocation8 + $0xd68] sm:$0xff]  ;;  %v8710_v53 = vcombine.low %v4344_v38, %v4348_v40  ;;  %v8717_v51 = vcombine.high %v4351_v43, %v4355_v44  ;;  %v4375_v62 = vld [vmem:[#allocation8 + $0xe00] sm:$0xff] }
 0x33b   :  { %7155 = vmatprep.mubr.bf16.mxu0 %v9355_v55  ;;  %7319 = vmatprep.mubr.bf16.mxu1 %v9355_v55  ;;  %v8719_v63 = vcombine.high %v4352_v45, %v4356_v46  ;;  %v4360_v56 = vld [vmem:[#allocation8 + $0xd88] sm:$0xff]  ;;  %v8718_v2 = vcombine.low %v4352_v45, %v4356_v46  ;;  %v4379_v24 = vld [vmem:[#allocation8 + $0xe20] sm:$0xff] }
 0x33c   :  { %7156 = vmatmul.mubr.bf16.vlgmr.msra.gmra.mrb[8].mxu0 %v9357_v60  ;;  %7320 = vmatmul.mubr.bf16.vlgmr.msra.gmra.mrb[8].mxu1 %v9357_v60  ;;  %v4376_v25 = vld [vmem:[#allocation8 + $0xe08] sm:$0xff]  ;;  %v4383_v37 = vld [vmem:[#allocation8 + $0xe40] sm:$0xff] }
 0x33d   :  { %7165 = vmatpush1.bf16.msra.mxu0 %v8676_v57  ;;  %7329 = vmatpush1.bf16.msra.mxu1 %v8678_v27  ;;  %v4364_v57 = vld [vmem:[#allocation8 + $0xda8] sm:$0xff]  ;;  %v8716_v27 = vcombine.low %v4351_v43, %v4355_v44  ;;  %v4387_v38 = vld [vmem:[#allocation8 + $0xe60] sm:$0xff] }
 0x33e   :  { %7196 = vmatprep.mubr.bf16.mxu0 %v9361_v14  ;;  %7360 = vmatprep.mubr.bf16.mxu1 %v9361_v14  ;;  %v4384_v40 = vld [vmem:[#allocation8 + $0xe48] sm:$0xff]  ;;  %v4391_v44 = vld [vmem:[#allocation8 + $0xe80] sm:$0xff] }
 0x33f   :  { %7166 = vmatprep.subr.bf16.mxu0 %v8685_v3  ;;  %7330 = vmatprep.subr.bf16.mxu1 %v8687_v4  ;;  %v8725_v3 = vcombine.high %v4359_v18, %v4363_v52  ;;  %v8727_v4 = vcombine.high %v4360_v56, %v4364_v57  ;;  %v4395_v45 = vld [vmem:[#allocation8 + $0xea0] sm:$0xff]  ;;  %v4392_v46 = vld [vmem:[#allocation8 + $0xe88] sm:$0xff] }
 0x341   :  { %7167 = vmatpush1.bf16.msra.mxu0 %v8684_v17  ;;  %7331 = vmatpush1.bf16.msra.mxu1 %v8686_v11  ;;  %v4372_v17 = vld [vmem:[#allocation8 + $0xde8] sm:$0xff]  ;;  %v8724_v11 = vcombine.low %v4359_v18, %v4363_v52  ;;  %v4399_v52 = vld [vmem:[#allocation8 + $0xec0] sm:$0xff] }
 0x342   :  { %7168 = vmatprep.subr.bf16.mxu0 %v8693_v20  ;;  %7332 = vmatprep.subr.bf16.mxu1 %v8695_v21  ;;  %v8726_v20 = vcombine.low %v4360_v56, %v4364_v57  ;;  %v8733_v21 = vcombine.high %v4367_v5, %v4371_v6  ;;  %v8735_v22 = vcombine.high %v4368_v13, %v4372_v17  ;;  %v4403_v56 = vld [vmem:[#allocation8 + $0xee0] sm:$0xff]  ;;  %v4400_v57 = vld [vmem:[#allocation8 + $0xec8] sm:$0xff] }
 0x345   :  { %7169 = vmatpush1.bf16.msra.mxu0 %v8692_v29  ;;  %7333 = vmatpush1.bf16.msra.mxu1 %v8694_v33  ;;  %v4380_v29 = vld [vmem:[#allocation8 + $0xe28] sm:$0xff]  ;;  %v8732_v33 = vcombine.low %v4367_v5, %v4371_v6  ;;  %v4407_v6 = vld [vmem:[#allocation8 + $0xf00] sm:$0xff] }
 0x346   :  { %7170 = vmatprep.subr.bf16.mxu0 %v8701_v34  ;;  %7334 = vmatprep.subr.bf16.mxu1 %v8703_v15  ;;  %v8734_v34 = vcombine.low %v4368_v13, %v4372_v17  ;;  %v8741_v15 = vcombine.high %v4375_v62, %v4379_v24  ;;  %v8743_v35 = vcombine.high %v4376_v25, %v4380_v29  ;;  %v4411_v13 = vld [vmem:[#allocation8 + $0xf20] sm:$0xff]  ;;  %v4408_v17 = vld [vmem:[#allocation8 + $0xf08] sm:$0xff] }
 0x349   :  { %7171 = vmatpush1.bf16.msra.mxu0 %v8700_v41  ;;  %7335 = vmatpush1.bf16.msra.mxu1 %v8702_v8  ;;  %v4388_v41 = vld [vmem:[#allocation8 + $0xe68] sm:$0xff]  ;;  %v8740_v8 = vcombine.low %v4375_v62, %v4379_v24  ;;  %v4415_v24 = vld [vmem:[#allocation8 + $0xf40] sm:$0xff] }
 0x34a   :  { %7172 = vmatprep.subr.bf16.mxu0 %v8709_v42  ;;  %7336 = vmatprep.subr.bf16.mxu1 %v8711_v31  ;;  %v8742_v42 = vcombine.low %v4376_v25, %v4380_v29  ;;  %v8749_v31 = vcombine.high %v4383_v37, %v4387_v38  ;;  %v8751_v43 = vcombine.high %v4384_v40, %v4388_v41  ;;  %v665_v25 = vsub.s32 6, %v9297_v32  ;;  %v4419_v29 = vld [vmem:[#allocation8 + $0xf60] sm:$0xff] }
 0x34d   :  { %7173 = vmatpush1.bf16.msra.mxu0 %v8708_v48  ;;  %7337 = vmatpush1.bf16.msra.mxu1 %v8710_v53  ;;  %v4396_v48 = vld [vmem:[#allocation8 + $0xea8] sm:$0xff]  ;;  %v8748_v53 = vcombine.low %v4383_v37, %v4387_v38  ;;  %v8781_v37 = vcombine.high %v4415_v24, %v4419_v29 }
 0x34e   :  { %7174 = vmatprep.subr.bf16.mxu0 %v8717_v51  ;;  %7338 = vmatprep.subr.bf16.mxu1 %v8719_v63  ;;  %v8750_v51 = vcombine.low %v4384_v40, %v4388_v41  ;;  %v8757_v63 = vcombine.high %v4391_v44, %v4395_v45  ;;  %v8759_v18 = vcombine.high %v4392_v46, %v4396_v48  ;;  %v4423_v40 = vld [vmem:[#allocation8 + $0xf80] sm:$0xff] }
 0x34f   :  { %v666_v41 = vrot.slane %v9342_v49, %v665_v25 }
 0x351   :  { %7175 = vmatpush1.bf16.msra.mxu0 %v8716_v27  ;;  %7339 = vmatpush1.bf16.msra.mxu1 %v8718_v2  ;;  %v4404_v27 = vld [vmem:[#allocation8 + $0xee8] sm:$0xff]  ;;  %v8756_v2 = vcombine.low %v4391_v44, %v4395_v45 }
 0x352   :  { %7176 = vmatprep.subr.bf16.mxu0 %v8725_v3  ;;  %7340 = vmatprep.subr.bf16.mxu1 %v8727_v4  ;;  %v8758_v3 = vcombine.low %v4392_v46, %v4396_v48  ;;  %v8765_v4 = vcombine.high %v4399_v52, %v4403_v56  ;;  %v8767_v5 = vcombine.high %v4400_v57, %v4404_v27  ;;  %v4431_v48 = vld [vmem:[#allocation8 + $0xfc0] sm:$0xff] }
 0x355   :  { %7177 = vmatpush1.bf16.msra.mxu0 %v8724_v11  ;;  %7341 = vmatpush1.bf16.msra.mxu1 %v8726_v20  ;;  %v4412_v11 = vld [vmem:[#allocation8 + $0xf28] sm:$0xff]  ;;  %v8764_v20 = vcombine.low %v4399_v52, %v4403_v56 }
 0x356   :  { %7178 = vmatprep.subr.bf16.mxu0 %v8733_v21  ;;  %7342 = vmatprep.subr.bf16.mxu1 %v8735_v22  ;;  %v8766_v21 = vcombine.low %v4400_v57, %v4404_v27  ;;  %v8773_v22 = vcombine.high %v4407_v6, %v4411_v13  ;;  %v8775_v62 = vcombine.high %v4408_v17, %v4412_v11  ;;  %v3929_v27 = vld [vmem:[#allocation8 + $0x10] sm:$0xff] }
 0x359   :  { %7179 = vmatpush1.bf16.msra.mxu0 %v8732_v33  ;;  %7343 = vmatpush1.bf16.msra.mxu1 %v8734_v34  ;;  %v4416_v33 = vld [vmem:[#allocation8 + $0xf48] sm:$0xff] }
 0x35a   :  { %7180 = vmatprep.subr.bf16.mxu0 %v8741_v15  ;;  %7344 = vmatprep.subr.bf16.mxu1 %v8743_v35  ;;  %v4420_v34 = vld [vmem:[#allocation8 + $0xf68] sm:$0xff]  ;;  %v8772_v15 = vcombine.low %v4407_v6, %v4411_v13  ;;  %v8774_v35 = vcombine.low %v4408_v17, %v4412_v11 }
 0x35b   :  { %v8783_v38 = vcombine.high %v4416_v33, %v4420_v34  ;;  %v8782_v44 = vcombine.low %v4416_v33, %v4420_v34 }
 0x35d   :  { %7181 = vmatpush1.bf16.msra.mxu0 %v8740_v8  ;;  %7345 = vmatpush1.bf16.msra.mxu1 %v8742_v42  ;;  %v4427_v8 = vld [vmem:[#allocation8 + $0xfa0] sm:$0xff]  ;;  %v4424_v42 = vld [vmem:[#allocation8 + $0xf88] sm:$0xff] }
 0x35e   :  { %7182 = vmatprep.subr.bf16.mxu0 %v8749_v31  ;;  %7346 = vmatprep.subr.bf16.mxu1 %v8751_v43  ;;  %v4428_v31 = vld [vmem:[#allocation8 + $0xfa8] sm:$0xff]  ;;  %v8780_v43 = vcombine.low %v4415_v24, %v4419_v29  ;;  %v8789_v45 = vcombine.high %v4423_v40, %v4427_v8  ;;  %v8788_v49 = vcombine.low %v4423_v40, %v4427_v8  ;;  %v3950_v40 = vld [vmem:[#allocation8 + $0xb8] sm:$0xff] }
 0x35f   :  { %v8791_v46 = vcombine.high %v4424_v42, %v4428_v31  ;;  %v8790_v52 = vcombine.low %v4424_v42, %v4428_v31 }
 0x361   :  { %7183 = vmatpush1.bf16.msra.mxu0 %v8748_v53  ;;  %7347 = vmatpush1.bf16.msra.mxu1 %v8750_v51  ;;  %v8810_v53 = vadd.f32 %v9353_v36, %v666_v41  ;;  %v4435_v51 = vld [vmem:[#allocation8 + $0xfe0] sm:$0xff] }
 0x362   :  { %7184 = vmatprep.subr.bf16.mxu0 %v8757_v63  ;;  %7348 = vmatprep.subr.bf16.mxu1 %v8759_v18  ;;  %v4432_v63 = vld [vmem:[#allocation8 + $0xfc8] sm:$0xff]  ;;  %v8797_v56 = vcombine.high %v4431_v48, %v4435_v51  ;;  %v8796_v36 = vcombine.low %v4431_v48, %v4435_v51 }
 0x363   :  { %v4436_v18 = vld [vmem:[#allocation8 + $0xfe8] sm:$0xff]  ;;  %vm3901_vm7 = vcmp.gt.f32.partialorder %v8810_v53, 0.0 }
 0x364   :  { %v8799_v57 = vcombine.high %v4432_v63, %v4436_v18  ;;  %v8798_v6 = vcombine.low %v4432_v63, %v4436_v18  ;;  %v3961_v18 = vld [vmem:[#allocation8 + $0x110] sm:$0xff] }
 0x365   :  { %7185 = vmatpush1.bf16.msra.mxu0 %v8756_v2  ;;  %7349 = vmatpush1.bf16.msra.mxu1 %v8758_v3  ;;  %v3909_v2 = vmul.f32 0.01, %v8810_v53  ;;  %v3933_v3 = vld [vmem:[#allocation8 + $0x30] sm:$0xff] }
 0x366   :  { %7186 = vmatprep.subr.bf16.mxu0 %v8765_v4  ;;  %7350 = vmatprep.subr.bf16.mxu1 %v8767_v5  ;;  %v3930_v4 = vld [vmem:[#allocation8 + $0x18] sm:$0xff]  ;;  %v8297_v13 = vcombine.high %v3929_v27, %v3933_v3  ;;  %v8296_v24 = vcombine.low %v3929_v27, %v3933_v3  ;;  %v3969_v3 = vld [vmem:[#allocation8 + $0x150] sm:$0xff] }
 0x367   :  { %v3934_v5 = vld [vmem:[#allocation8 + $0x38] sm:$0xff]  ;;  %v3917_v11 = vsel %vm3901_vm7, %v8810_v53, %v3909_v2 }
 0x368   :  { %v8299_v17 = vcombine.high %v3930_v4, %v3934_v5  ;;  %v9372_v29 = vpack.c.bf16 %v3917_v11, %v3917_v11  ;;  %v8298_v33 = vcombine.low %v3930_v4, %v3934_v5  ;;  %v3973_v4 = vld [vmem:[#allocation8 + $0x170] sm:$0xff]  ;;  %v3970_v5 = vld [vmem:[#allocation8 + $0x158] sm:$0xff] }
 0x369   :  { %7187 = vmatpush1.bf16.msra.mxu0 %v8764_v20  ;;  %7351 = vmatpush1.bf16.msra.mxu1 %v8766_v21  ;;  %v3937_v20 = vld [vmem:[#allocation8 + $0x50] sm:$0xff] }
 0x36a   :  { %7188 = vmatprep.subr.bf16.mxu0 %v8773_v22  ;;  %7352 = vmatprep.subr.bf16.mxu1 %v8775_v62  ;;  %v3941_v21 = vld [vmem:[#allocation8 + $0x70] sm:$0xff]  ;;  %v3938_v22 = vld [vmem:[#allocation8 + $0x58] sm:$0xff] }
 0x36b   :  { %v3942_v62 = vld [vmem:[#allocation8 + $0x78] sm:$0xff]  ;;  %v8305_v34 = vcombine.high %v3937_v20, %v3941_v21  ;;  %v8304_v41 = vcombine.low %v3937_v20, %v3941_v21  ;;  %v3977_v20 = vld [vmem:[#allocation8 + $0x190] sm:$0xff] }
 0x36c   :  { %v8306_v8 = vcombine.low %v3938_v22, %v3942_v62  ;;  %v3981_v21 = vld [vmem:[#allocation8 + $0x1b0] sm:$0xff] }
 0x36d   :  { %7189 = vmatpush1.bf16.msra.mxu0 %v8772_v15  ;;  %7353 = vmatpush1.bf16.msra.mxu1 %v8774_v35  ;;  %v8307_v15 = vcombine.high %v3938_v22, %v3942_v62  ;;  %v3945_v35 = vld [vmem:[#allocation8 + $0x90] sm:$0xff]  ;;  %v3978_v22 = vld [vmem:[#allocation8 + $0x198] sm:$0xff] }
 0x36e   :  { %7190 = vmatprep.subr.bf16.mxu0 %v8781_v37  ;;  %7354 = vmatprep.subr.bf16.mxu1 %v8783_v38  ;;  %v3949_v37 = vld [vmem:[#allocation8 + $0xb0] sm:$0xff]  ;;  %v3946_v38 = vld [vmem:[#allocation8 + $0x98] sm:$0xff] }
 0x36f   :  { %v8313_v42 = vcombine.high %v3945_v35, %v3949_v37  ;;  %v8315_v31 = vcombine.high %v3946_v38, %v3950_v40  ;;  %v8312_v48 = vcombine.low %v3945_v35, %v3949_v37  ;;  %v8314_v53 = vcombine.low %v3946_v38, %v3950_v40  ;;  %v3982_v62 = vld [vmem:[#allocation8 + $0x1b8] sm:$0xff]  ;;  %v3985_v35 = vld [vmem:[#allocation8 + $0x1d0] sm:$0xff] }
 0x370   :  { %v3989_v37 = vld [vmem:[#allocation8 + $0x1f0] sm:$0xff]  ;;  %v3986_v38 = vld [vmem:[#allocation8 + $0x1d8] sm:$0xff] }
 0x371   :  { %7191 = vmatpush1.bf16.msra.mxu0 %v8780_v43  ;;  %7355 = vmatpush1.bf16.msra.mxu1 %v8782_v44  ;;  %v3953_v43 = vld [vmem:[#allocation8 + $0xd0] sm:$0xff]  ;;  %v3990_v40 = vld [vmem:[#allocation8 + $0x1f8] sm:$0xff] }
 0x372   :  { %7192 = vmatprep.subr.bf16.mxu0 %v8789_v45  ;;  %7356 = vmatprep.subr.bf16.mxu1 %v8791_v46  ;;  %v3957_v44 = vld [vmem:[#allocation8 + $0xf0] sm:$0xff]  ;;  %v3954_v45 = vld [vmem:[#allocation8 + $0xd8] sm:$0xff] }
 0x373   :  { %v3958_v46 = vld [vmem:[#allocation8 + $0xf8] sm:$0xff]  ;;  %v8321_v51 = vcombine.high %v3953_v43, %v3957_v44 }
 0x374   :  { %v8323_v63 = vcombine.high %v3954_v45, %v3958_v46 }
 0x375   :  { %7193 = vmatpush1.bf16.msra.mxu0 %v8788_v49  ;;  %7357 = vmatpush1.bf16.msra.mxu1 %v8790_v52  ;;  %v3965_v49 = vld [vmem:[#allocation8 + $0x130] sm:$0xff]  ;;  %v3966_v52 = vld [vmem:[#allocation8 + $0x138] sm:$0xff] }
 0x376   :  { %7194 = vmatprep.subr.bf16.mxu0 %v8797_v56  ;;  %7358 = vmatprep.subr.bf16.mxu1 %v8799_v57  ;;  %v8320_v56 = vcombine.low %v3953_v43, %v3957_v44  ;;  %v8322_v57 = vcombine.low %v3954_v45, %v3958_v46  ;;  %v8329_v27 = vcombine.high %v3961_v18, %v3965_v49  ;;  %v3993_v43 = vld [vmem:[#allocation8 + $0x210] sm:$0xff]  ;;  %v3994_v45 = vld [vmem:[#allocation8 + $0x218] sm:$0xff] }
 0x377   :  { %v3997_v44 = vld [vmem:[#allocation8 + $0x230] sm:$0xff]  ;;  %v3998_v46 = vld [vmem:[#allocation8 + $0x238] sm:$0xff] }
 0x379   :  { %7195 = vmatpush1.bf16.msra.mxu0 %v8796_v36  ;;  %7359 = vmatpush1.bf16.msra.mxu1 %v8798_v6  ;;  %v3974_v36 = vld [vmem:[#allocation8 + $0x178] sm:$0xff]  ;;  %v8328_v6 = vcombine.low %v3961_v18, %v3965_v49  ;;  %v4001_v18 = vld [vmem:[#allocation8 + $0x250] sm:$0xff] }
 0x37a   :  { %7369 = vmatprep.subr.bf16.mxu0 %v8297_v13  ;;  %7533 = vmatprep.subr.bf16.mxu1 %v8299_v17  ;;  %v8337_v17 = vcombine.high %v3969_v3, %v3973_v4  ;;  %v8339_v11 = vcombine.high %v3970_v5, %v3974_v36  ;;  %v4005_v49 = vld [vmem:[#allocation8 + $0x270] sm:$0xff] }
 0x37c   :  { %7197 = vmatmul.mubr.bf16.vlgmr.msra.gmra.mrb[8].mxu0 %v9372_v29  ;;  %7361 = vmatmul.mubr.bf16.vlgmr.msra.gmra.mrb[8].mxu1 %v9372_v29 }
 0x37d   :  { %7370 = vmatpush1.bf16.msra.mxu0 %v8296_v24  ;;  %7401 = vmatprep.mubr.bf16.mxu0 %v9306_v9  ;;  %v8336_v24 = vcombine.low %v3969_v3, %v3973_v4  ;;  %v4009_v3 = vld [vmem:[#allocation8 + $0x290] sm:$0xff] }
 0x37e   :  { %7534 = vmatpush1.bf16.msra.mxu1 %v8298_v33  ;;  %7565 = vmatprep.mubr.bf16.mxu1 %v9306_v9  ;;  %v3962_v9 = vld [vmem:[#allocation8 + $0x118] sm:$0xff]  ;;  %v8338_v33 = vcombine.low %v3970_v5, %v3974_v36  ;;  %v4013_v4 = vld [vmem:[#allocation8 + $0x2b0] sm:$0xff] }
 0x37f   :  { %7371 = vmatprep.subr.bf16.mxu0 %v8305_v34  ;;  %7535 = vmatprep.subr.bf16.mxu1 %v8307_v15  ;;  %v8331_v2 = vcombine.high %v3962_v9, %v3966_v52  ;;  %v8330_v13 = vcombine.low %v3962_v9, %v3966_v52  ;;  %v8345_v34 = vcombine.high %v3977_v20, %v3981_v21  ;;  %v4002_v9 = vld [vmem:[#allocation8 + $0x258] sm:$0xff] }
 0x380   :  { %v8347_v15 = vcombine.high %v3978_v22, %v3982_v62  ;;  %v4006_v52 = vld [vmem:[#allocation8 + $0x278] sm:$0xff] }
 0x381   :  { %7372 = vmatpush1.bf16.msra.mxu0 %v8304_v41  ;;  %v8344_v41 = vcombine.low %v3977_v20, %v3981_v21  ;;  %v4010_v5 = vld [vmem:[#allocation8 + $0x298] sm:$0xff]  ;;  %v4017_v20 = vld [vmem:[#allocation8 + $0x2d0] sm:$0xff] }
 0x382   :  { %7536 = vmatpush1.bf16.msra.mxu1 %v8306_v8  ;;  %7373 = vmatprep.subr.bf16.mxu0 %v8313_v42  ;;  %v8346_v8 = vcombine.low %v3978_v22, %v3982_v62  ;;  %v8353_v42 = vcombine.high %v3985_v35, %v3989_v37  ;;  %v4014_v36 = vld [vmem:[#allocation8 + $0x2b8] sm:$0xff]  ;;  %v4021_v21 = vld [vmem:[#allocation8 + $0x2f0] sm:$0xff] }
 0x383   :  { %7537 = vmatprep.subr.bf16.mxu1 %v8315_v31  ;;  %v8355_v31 = vcombine.high %v3986_v38, %v3990_v40  ;;  %v4018_v22 = vld [vmem:[#allocation8 + $0x2d8] sm:$0xff] }
 0x384   :  { %v4022_v62 = vld [vmem:[#allocation8 + $0x2f8] sm:$0xff] }
 0x385   :  { %7374 = vmatpush1.bf16.msra.mxu0 %v8312_v48  ;;  %v8352_v48 = vcombine.low %v3985_v35, %v3989_v37  ;;  %v4025_v35 = vld [vmem:[#allocation8 + $0x310] sm:$0xff] }
 0x386   :  { %7538 = vmatpush1.bf16.msra.mxu1 %v8314_v53  ;;  %7375 = vmatprep.subr.bf16.mxu0 %v8321_v51  ;;  %v8354_v53 = vcombine.low %v3986_v38, %v3990_v40  ;;  %v8361_v51 = vcombine.high %v3993_v43, %v3997_v44  ;;  %v4029_v37 = vld [vmem:[#allocation8 + $0x330] sm:$0xff]  ;;  %v4026_v38 = vld [vmem:[#allocation8 + $0x318] sm:$0xff] }
 0x387   :  { %7539 = vmatprep.subr.bf16.mxu1 %v8323_v63  ;;  %v8363_v63 = vcombine.high %v3994_v45, %v3998_v46  ;;  %v4030_v40 = vld [vmem:[#allocation8 + $0x338] sm:$0xff] }
 0x389   :  { %7376 = vmatpush1.bf16.msra.mxu0 %v8320_v56  ;;  %v8360_v56 = vcombine.low %v3993_v43, %v3997_v44  ;;  %v4033_v43 = vld [vmem:[#allocation8 + $0x350] sm:$0xff] }
 0x38a   :  { %7540 = vmatpush1.bf16.msra.mxu1 %v8322_v57  ;;  %7377 = vmatprep.subr.bf16.mxu0 %v8329_v27  ;;  %v8362_v57 = vcombine.low %v3994_v45, %v3998_v46  ;;  %v8369_v27 = vcombine.high %v4001_v18, %v4005_v49  ;;  %v4037_v44 = vld [vmem:[#allocation8 + $0x370] sm:$0xff]  ;;  %v4034_v45 = vld [vmem:[#allocation8 + $0x358] sm:$0xff] }
 0x38b   :  { %7541 = vmatprep.subr.bf16.mxu1 %v8331_v2  ;;  %v8371_v2 = vcombine.high %v4002_v9, %v4006_v52  ;;  %v4038_v46 = vld [vmem:[#allocation8 + $0x378] sm:$0xff] }
 0x38d   :  { %7378 = vmatpush1.bf16.msra.mxu0 %v8328_v6  ;;  %v8368_v6 = vcombine.low %v4001_v18, %v4005_v49  ;;  %v4041_v18 = vld [vmem:[#allocation8 + $0x390] sm:$0xff] }
 0x38e   :  { %7542 = vmatpush1.bf16.msra.mxu1 %v8330_v13  ;;  %7379 = vmatprep.subr.bf16.mxu0 %v8337_v17  ;;  %v8370_v13 = vcombine.low %v4002_v9, %v4006_v52  ;;  %v8377_v17 = vcombine.high %v4009_v3, %v4013_v4  ;;  %v4045_v49 = vld [vmem:[#allocation8 + $0x3b0] sm:$0xff]  ;;  %v4042_v9 = vld [vmem:[#allocation8 + $0x398] sm:$0xff] }
 0x38f   :  { %7543 = vmatprep.subr.bf16.mxu1 %v8339_v11  ;;  %v8379_v11 = vcombine.high %v4010_v5, %v4014_v36  ;;  %v4046_v52 = vld [vmem:[#allocation8 + $0x3b8] sm:$0xff] }
 0x391   :  { %7380 = vmatpush1.bf16.msra.mxu0 %v8336_v24  ;;  %v8376_v24 = vcombine.low %v4009_v3, %v4013_v4  ;;  %v4049_v3 = vld [vmem:[#allocation8 + $0x3d0] sm:$0xff] }
 0x392   :  { %7544 = vmatpush1.bf16.msra.mxu1 %v8338_v33  ;;  %7381 = vmatprep.subr.bf16.mxu0 %v8345_v34  ;;  %v8378_v33 = vcombine.low %v4010_v5, %v4014_v36  ;;  %v8385_v34 = vcombine.high %v4017_v20, %v4021_v21  ;;  %v4053_v4 = vld [vmem:[#allocation8 + $0x3f0] sm:$0xff]  ;;  %v4050_v5 = vld [vmem:[#allocation8 + $0x3d8] sm:$0xff] }
 0x393   :  { %7545 = vmatprep.subr.bf16.mxu1 %v8347_v15  ;;  %v8387_v15 = vcombine.high %v4018_v22, %v4022_v62  ;;  %v4054_v36 = vld [vmem:[#allocation8 + $0x3f8] sm:$0xff] }
 0x395   :  { %7382 = vmatpush1.bf16.msra.mxu0 %v8344_v41  ;;  %v8384_v41 = vcombine.low %v4017_v20, %v4021_v21  ;;  %v4057_v20 = vld [vmem:[#allocation8 + $0x410] sm:$0xff] }
 0x396   :  { %7546 = vmatpush1.bf16.msra.mxu1 %v8346_v8  ;;  %7383 = vmatprep.subr.bf16.mxu0 %v8353_v42  ;;  %v8386_v8 = vcombine.low %v4018_v22, %v4022_v62  ;;  %v8393_v42 = vcombine.high %v4025_v35, %v4029_v37  ;;  %v4061_v21 = vld [vmem:[#allocation8 + $0x430] sm:$0xff]  ;;  %v4058_v22 = vld [vmem:[#allocation8 + $0x418] sm:$0xff] }
 0x397   :  { %7547 = vmatprep.subr.bf16.mxu1 %v8355_v31  ;;  %v8395_v31 = vcombine.high %v4026_v38, %v4030_v40  ;;  %v4062_v62 = vld [vmem:[#allocation8 + $0x438] sm:$0xff] }
 0x399   :  { %7384 = vmatpush1.bf16.msra.mxu0 %v8352_v48  ;;  %v8392_v48 = vcombine.low %v4025_v35, %v4029_v37  ;;  %v4065_v35 = vld [vmem:[#allocation8 + $0x450] sm:$0xff] }
 0x39a   :  { %7548 = vmatpush1.bf16.msra.mxu1 %v8354_v53  ;;  %7385 = vmatprep.subr.bf16.mxu0 %v8361_v51  ;;  %v8394_v53 = vcombine.low %v4026_v38, %v4030_v40  ;;  %v8401_v51 = vcombine.high %v4033_v43, %v4037_v44  ;;  %v4069_v37 = vld [vmem:[#allocation8 + $0x470] sm:$0xff]  ;;  %v8424_v38 = vcombine.low %v4057_v20, %v4061_v21  ;;  %v4066_v40 = vld [vmem:[#allocation8 + $0x458] sm:$0xff] }
 0x39b   :  { %7549 = vmatprep.subr.bf16.mxu1 %v8363_v63  ;;  %v8403_v63 = vcombine.high %v4034_v45, %v4038_v46 }
 0x39d   :  { %7386 = vmatpush1.bf16.msra.mxu0 %v8360_v56  ;;  %v8400_v56 = vcombine.low %v4033_v43, %v4037_v44  ;;  %v4077_v43 = vld [vmem:[#allocation8 + $0x4b0] sm:$0xff] }
 0x39e   :  { %7550 = vmatpush1.bf16.msra.mxu1 %v8362_v57  ;;  %7387 = vmatprep.subr.bf16.mxu0 %v8369_v27  ;;  %v8402_v57 = vcombine.low %v4034_v45, %v4038_v46  ;;  %v8409_v27 = vcombine.high %v4041_v18, %v4045_v49  ;;  %v4074_v45 = vld [vmem:[#allocation8 + $0x498] sm:$0xff] }
 0x39f   :  { %7551 = vmatprep.subr.bf16.mxu1 %v8371_v2  ;;  %v8411_v2 = vcombine.high %v4042_v9, %v4046_v52  ;;  %v4078_v46 = vld [vmem:[#allocation8 + $0x4b8] sm:$0xff] }
 0x3a1   :  { %7388 = vmatpush1.bf16.msra.mxu0 %v8368_v6  ;;  %v8408_v6 = vcombine.low %v4041_v18, %v4045_v49  ;;  %v4081_v18 = vld [vmem:[#allocation8 + $0x4d0] sm:$0xff] }
 0x3a2   :  { %7552 = vmatpush1.bf16.msra.mxu1 %v8370_v13  ;;  %7389 = vmatprep.subr.bf16.mxu0 %v8377_v17  ;;  %v8410_v13 = vcombine.low %v4042_v9, %v4046_v52  ;;  %v8417_v17 = vcombine.high %v4049_v3, %v4053_v4  ;;  %v4085_v49 = vld [vmem:[#allocation8 + $0x4f0] sm:$0xff]  ;;  %v4082_v9 = vld [vmem:[#allocation8 + $0x4d8] sm:$0xff] }
 0x3a3   :  { %7553 = vmatprep.subr.bf16.mxu1 %v8379_v11  ;;  %v8419_v11 = vcombine.high %v4050_v5, %v4054_v36  ;;  %v4086_v52 = vld [vmem:[#allocation8 + $0x4f8] sm:$0xff] }
 0x3a5   :  { %7390 = vmatpush1.bf16.msra.mxu0 %v8376_v24  ;;  %v8416_v24 = vcombine.low %v4049_v3, %v4053_v4  ;;  %v4093_v3 = vld [vmem:[#allocation8 + $0x530] sm:$0xff]  ;;  %v4090_v4 = vld [vmem:[#allocation8 + $0x518] sm:$0xff] }
 0x3a6   :  { %7554 = vmatpush1.bf16.msra.mxu1 %v8378_v33  ;;  %7391 = vmatprep.subr.bf16.mxu0 %v8385_v34  ;;  %v8418_v33 = vcombine.low %v4050_v5, %v4054_v36  ;;  %v8425_v34 = vcombine.high %v4057_v20, %v4061_v21  ;;  %v4094_v5 = vld [vmem:[#allocation8 + $0x538] sm:$0xff]  ;;  %v8450_v36 = vcombine.low %v4082_v9, %v4086_v52 }
 0x3a7   :  { %7555 = vmatprep.subr.bf16.mxu1 %v8387_v15  ;;  %v8427_v15 = vcombine.high %v4058_v22, %v4062_v62  ;;  %v4098_v20 = vld [vmem:[#allocation8 + $0x558] sm:$0xff] }
 0x3a8   :  { %v4102_v21 = vld [vmem:[#allocation8 + $0x578] sm:$0xff] }
 0x3a9   :  { %7392 = vmatpush1.bf16.msra.mxu0 %v8384_v41  ;;  %v4070_v41 = vld [vmem:[#allocation8 + $0x478] sm:$0xff] }
 0x3aa   :  { %7556 = vmatpush1.bf16.msra.mxu1 %v8386_v8  ;;  %7393 = vmatprep.subr.bf16.mxu0 %v8393_v42  ;;  %v8426_v8 = vcombine.low %v4058_v22, %v4062_v62  ;;  %v8433_v42 = vcombine.high %v4065_v35, %v4069_v37  ;;  %v8435_v44 = vcombine.high %v4066_v40, %v4070_v41 }
 0x3ab   :  { %7557 = vmatprep.subr.bf16.mxu1 %v8395_v31  ;;  %v4073_v31 = vld [vmem:[#allocation8 + $0x490] sm:$0xff]  ;;  %v8458_v62 = vcombine.low %v4090_v4, %v4094_v5 }
 0x3ad   :  { %7394 = vmatpush1.bf16.msra.mxu0 %v8392_v48  ;;  %v8432_v48 = vcombine.low %v4065_v35, %v4069_v37  ;;  %v4106_v35 = vld [vmem:[#allocation8 + $0x598] sm:$0xff] }
 0x3ae   :  { %7558 = vmatpush1.bf16.msra.mxu1 %v8394_v53  ;;  %7395 = vmatprep.subr.bf16.mxu0 %v8401_v51  ;;  %v8434_v53 = vcombine.low %v4066_v40, %v4070_v41  ;;  %v8441_v51 = vcombine.high %v4073_v31, %v4077_v43  ;;  %v4110_v37 = vld [vmem:[#allocation8 + $0x5b8] sm:$0xff]  ;;  %v8466_v40 = vcombine.low %v4098_v20, %v4102_v21 }
 0x3af   :  { %7559 = vmatprep.subr.bf16.mxu1 %v8403_v63  ;;  %v8443_v63 = vcombine.high %v4074_v45, %v4078_v46 }
 0x3b1   :  { %7396 = vmatpush1.bf16.msra.mxu0 %v8400_v56  ;;  %v8440_v56 = vcombine.low %v4073_v31, %v4077_v43  ;;  %v4117_v31 = vld [vmem:[#allocation8 + $0x5f0] sm:$0xff]  ;;  %v4114_v43 = vld [vmem:[#allocation8 + $0x5d8] sm:$0xff] }
 0x3b2   :  { %7560 = vmatpush1.bf16.msra.mxu1 %v8402_v57  ;;  %7397 = vmatprep.subr.bf16.mxu0 %v8409_v27  ;;  %v8449_v57 = vcombine.high %v4081_v18, %v4085_v49  ;;  %v8451_v27 = vcombine.high %v4082_v9, %v4086_v52 }
 0x3b3   :  { %7561 = vmatprep.subr.bf16.mxu1 %v8411_v2  ;;  %v4089_v2 = vld [vmem:[#allocation8 + $0x510] sm:$0xff] }
 0x3b4   :  { %v8456_v22 = vcombine.low %v4089_v2, %v4093_v3 }
 0x3b5   :  { %7398 = vmatpush1.bf16.msra.mxu0 %v8408_v6  ;;  %v8457_v6 = vcombine.high %v4089_v2, %v4093_v3  ;;  %v4130_v2 = vld [vmem:[#allocation8 + $0x658] sm:$0xff] }
 0x3b6   :  { %7562 = vmatpush1.bf16.msra.mxu1 %v8410_v13  ;;  %7399 = vmatprep.subr.bf16.mxu0 %v8417_v17  ;;  %v8459_v13 = vcombine.high %v4090_v4, %v4094_v5  ;;  %v4097_v17 = vld [vmem:[#allocation8 + $0x550] sm:$0xff]  ;;  %v4134_v3 = vld [vmem:[#allocation8 + $0x678] sm:$0xff] }
 0x3b7   :  { %7563 = vmatprep.subr.bf16.mxu1 %v8419_v11  ;;  %v4101_v11 = vld [vmem:[#allocation8 + $0x570] sm:$0xff] }
 0x3b9   :  { %7400 = vmatpush1.bf16.msra.mxu0 %v8416_v24  ;;  %v8465_v24 = vcombine.high %v4097_v17, %v4101_v11 }
 0x3ba   :  { %7564 = vmatpush1.bf16.msra.mxu1 %v8418_v33  ;;  %7410 = vmatprep.subr.bf16.mxu0 %v8425_v34  ;;  %v8467_v33 = vcombine.high %v4098_v20, %v4102_v21  ;;  %v4105_v34 = vld [vmem:[#allocation8 + $0x590] sm:$0xff]  ;;  %v8498_v21 = vcombine.low %v4130_v2, %v4134_v3 }
 0x3bb   :  { %7574 = vmatprep.subr.bf16.mxu1 %v8427_v15  ;;  %v4109_v15 = vld [vmem:[#allocation8 + $0x5b0] sm:$0xff] }
 0x3bc   :  { %7402 = vmatmul.mubr.bf16.vlgmr.msra.gmra.mrb[12].mxu0 %v9322_v0  ;;  %v8473_v41 = vcombine.high %v4105_v34, %v4109_v15 }
 0x3bd   :  { %7566 = vmatmul.mubr.bf16.vlgmr.msra.gmra.mrb[12].mxu1 %v9322_v0  ;;  %7411 = vmatpush1.bf16.msra.mxu0 %v8424_v38  ;;  %v8442_v0 = vcombine.low %v4074_v45, %v4078_v46  ;;  %v8464_v38 = vcombine.low %v4097_v17, %v4101_v11  ;;  %v8472_v45 = vcombine.low %v4105_v34, %v4109_v15  ;;  %v4138_v17 = vld [vmem:[#allocation8 + $0x698] sm:$0xff] }
 0x3be   :  { %7442 = vmatprep.mubr.bf16.mxu0 %v9324_v59  ;;  %7575 = vmatpush1.bf16.msra.mxu1 %v8426_v8  ;;  %v8475_v8 = vcombine.high %v4106_v35, %v4110_v37  ;;  %v8474_v46 = vcombine.low %v4106_v35, %v4110_v37  ;;  %v4142_v11 = vld [vmem:[#allocation8 + $0x6b8] sm:$0xff] }
 0x3bf   :  { %7606 = vmatprep.mubr.bf16.mxu1 %v9324_v59  ;;  %7412 = vmatprep.subr.bf16.mxu0 %v8433_v42  ;;  %v8448_v59 = vcombine.low %v4081_v18, %v4085_v49  ;;  %v4113_v42 = vld [vmem:[#allocation8 + $0x5d0] sm:$0xff]  ;;  %v4122_v18 = vld [vmem:[#allocation8 + $0x618] sm:$0xff]  ;;  %v8506_v37 = vcombine.low %v4138_v17, %v4142_v11 }
 0x3c0   :  { %7576 = vmatprep.subr.bf16.mxu1 %v8435_v44  ;;  %v4118_v44 = vld [vmem:[#allocation8 + $0x5f8] sm:$0xff]  ;;  %v8480_v9 = vcombine.low %v4113_v42, %v4117_v31 }
 0x3c1   :  { %7413 = vmatpush1.bf16.msra.mxu0 %v8432_v48  ;;  %v8481_v48 = vcombine.high %v4113_v42, %v4117_v31  ;;  %v4126_v49 = vld [vmem:[#allocation8 + $0x638] sm:$0xff]  ;;  %v8482_v52 = vcombine.low %v4114_v43, %v4118_v44 }
 0x3c2   :  { %7577 = vmatpush1.bf16.msra.mxu1 %v8434_v53  ;;  %7414 = vmatprep.subr.bf16.mxu0 %v8441_v51  ;;  %v8483_v53 = vcombine.high %v4114_v43, %v4118_v44  ;;  %v4121_v51 = vld [vmem:[#allocation8 + $0x610] sm:$0xff]  ;;  %v8490_v5 = vcombine.low %v4122_v18, %v4126_v49  ;;  %v4146_v34 = vld [vmem:[#allocation8 + $0x6d8] sm:$0xff] }
 0x3c3   :  { %7578 = vmatprep.subr.bf16.mxu1 %v8443_v63  ;;  %v4125_v63 = vld [vmem:[#allocation8 + $0x630] sm:$0xff]  ;;  %v4150_v15 = vld [vmem:[#allocation8 + $0x6f8] sm:$0xff] }
 0x3c4   :  { %v8488_v4 = vcombine.low %v4121_v51, %v4125_v63  ;;  %v4154_v42 = vld [vmem:[#allocation8 + $0x718] sm:$0xff]  ;;  %v8514_v44 = vcombine.low %v4146_v34, %v4150_v15 }
 0x3c5   :  { %7415 = vmatpush1.bf16.msra.mxu0 %v8440_v56  ;;  %v8489_v56 = vcombine.high %v4121_v51, %v4125_v63  ;;  %v4158_v31 = vld [vmem:[#allocation8 + $0x738] sm:$0xff] }
 0x3c6   :  { %7579 = vmatpush1.bf16.msra.mxu1 %v8442_v0  ;;  %7416 = vmatprep.subr.bf16.mxu0 %v8449_v57  ;;  %v8491_v0 = vcombine.high %v4122_v18, %v4126_v49  ;;  %v4129_v57 = vld [vmem:[#allocation8 + $0x650] sm:$0xff]  ;;  %v4162_v51 = vld [vmem:[#allocation8 + $0x758] sm:$0xff]  ;;  %v8522_v49 = vcombine.low %v4154_v42, %v4158_v31 }
 0x3c7   :  { %7580 = vmatprep.subr.bf16.mxu1 %v8451_v27  ;;  %v4133_v27 = vld [vmem:[#allocation8 + $0x670] sm:$0xff]  ;;  %v4166_v63 = vld [vmem:[#allocation8 + $0x778] sm:$0xff] }
 0x3c8   :  { %v8496_v20 = vcombine.low %v4129_v57, %v4133_v27 }
 0x3c9   :  { %7417 = vmatpush1.bf16.msra.mxu0 %v8448_v59  ;;  %v8497_v59 = vcombine.high %v4129_v57, %v4133_v27  ;;  %v4170_v57 = vld [vmem:[#allocation8 + $0x798] sm:$0xff] }
 0x3ca   :  { %7581 = vmatpush1.bf16.msra.mxu1 %v8450_v36  ;;  %7418 = vmatprep.subr.bf16.mxu0 %v8457_v6  ;;  %v8499_v36 = vcombine.high %v4130_v2, %v4134_v3  ;;  %v4137_v6 = vld [vmem:[#allocation8 + $0x690] sm:$0xff]  ;;  %v4174_v27 = vld [vmem:[#allocation8 + $0x7b8] sm:$0xff]  ;;  %v8530_v3 = vcombine.low %v4162_v51, %v4166_v63 }
 0x3cb   :  { %7582 = vmatprep.subr.bf16.mxu1 %v8459_v13  ;;  %v4141_v13 = vld [vmem:[#allocation8 + $0x6b0] sm:$0xff] }
 0x3cc   :  { %v8504_v35 = vcombine.low %v4137_v6, %v4141_v13 }
 0x3cd   :  { %7419 = vmatpush1.bf16.msra.mxu0 %v8456_v22  ;;  %v8505_v22 = vcombine.high %v4137_v6, %v4141_v13  ;;  %v4178_v6 = vld [vmem:[#allocation8 + $0x7d8] sm:$0xff] }
 0x3ce   :  { %7583 = vmatpush1.bf16.msra.mxu1 %v8458_v62  ;;  %7420 = vmatprep.subr.bf16.mxu0 %v8465_v24  ;;  %v8507_v62 = vcombine.high %v4138_v17, %v4142_v11  ;;  %v4145_v24 = vld [vmem:[#allocation8 + $0x6d0] sm:$0xff]  ;;  %v4182_v13 = vld [vmem:[#allocation8 + $0x7f8] sm:$0xff]  ;;  %v8538_v11 = vcombine.low %v4170_v57, %v4174_v27 }
 0x3cf   :  { %7584 = vmatprep.subr.bf16.mxu1 %v8467_v33  ;;  %v4149_v33 = vld [vmem:[#allocation8 + $0x6f0] sm:$0xff] }
 0x3d0   :  { %v8512_v43 = vcombine.low %v4145_v24, %v4149_v33 }
 0x3d1   :  { %7421 = vmatpush1.bf16.msra.mxu0 %v8464_v38  ;;  %v8513_v38 = vcombine.high %v4145_v24, %v4149_v33  ;;  %v4186_v24 = vld [vmem:[#allocation8 + $0x818] sm:$0xff] }
 0x3d2   :  { %7585 = vmatpush1.bf16.msra.mxu1 %v8466_v40  ;;  %7422 = vmatprep.subr.bf16.mxu0 %v8473_v41  ;;  %v8515_v40 = vcombine.high %v4146_v34, %v4150_v15  ;;  %v4153_v41 = vld [vmem:[#allocation8 + $0x710] sm:$0xff]  ;;  %v4190_v33 = vld [vmem:[#allocation8 + $0x838] sm:$0xff]  ;;  %v8546_v15 = vcombine.low %v4178_v6, %v4182_v13 }
 0x3d3   :  { %7586 = vmatprep.subr.bf16.mxu1 %v8475_v8  ;;  %v4157_v8 = vld [vmem:[#allocation8 + $0x730] sm:$0xff] }
 0x3d4   :  { %v8520_v18 = vcombine.low %v4153_v41, %v4157_v8 }
 0x3d5   :  { %7423 = vmatpush1.bf16.msra.mxu0 %v8472_v45  ;;  %v8521_v45 = vcombine.high %v4153_v41, %v4157_v8  ;;  %v4194_v8 = vld [vmem:[#allocation8 + $0x858] sm:$0xff] }
 0x3d6   :  { %7587 = vmatpush1.bf16.msra.mxu1 %v8474_v46  ;;  %7424 = vmatprep.subr.bf16.mxu0 %v8481_v48  ;;  %v8523_v46 = vcombine.high %v4154_v42, %v4158_v31  ;;  %v4161_v48 = vld [vmem:[#allocation8 + $0x750] sm:$0xff]  ;;  %v4198_v42 = vld [vmem:[#allocation8 + $0x878] sm:$0xff]  ;;  %v8554_v31 = vcombine.low %v4186_v24, %v4190_v33 }
 0x3d7   :  { %7588 = vmatprep.subr.bf16.mxu1 %v8483_v53  ;;  %v4165_v53 = vld [vmem:[#allocation8 + $0x770] sm:$0xff] }
 0x3d8   :  { %v8528_v2 = vcombine.low %v4161_v48, %v4165_v53 }
 0x3d9   :  { %7425 = vmatpush1.bf16.msra.mxu0 %v8480_v9  ;;  %v8529_v9 = vcombine.high %v4161_v48, %v4165_v53  ;;  %v4202_v48 = vld [vmem:[#allocation8 + $0x898] sm:$0xff] }
 0x3da   :  { %7589 = vmatpush1.bf16.msra.mxu1 %v8482_v52  ;;  %7426 = vmatprep.subr.bf16.mxu0 %v8489_v56  ;;  %v8531_v52 = vcombine.high %v4162_v51, %v4166_v63  ;;  %v4169_v56 = vld [vmem:[#allocation8 + $0x790] sm:$0xff]  ;;  %v4206_v53 = vld [vmem:[#allocation8 + $0x8b8] sm:$0xff]  ;;  %v8562_v63 = vcombine.low %v4194_v8, %v4198_v42 }
 0x3db   :  { %7590 = vmatprep.subr.bf16.mxu1 %v8491_v0  ;;  %v4173_v0 = vld [vmem:[#allocation8 + $0x7b0] sm:$0xff] }
 0x3dc   :  { %v8536_v17 = vcombine.low %v4169_v56, %v4173_v0 }
 0x3dd   :  { %7427 = vmatpush1.bf16.msra.mxu0 %v8488_v4  ;;  %v8537_v4 = vcombine.high %v4169_v56, %v4173_v0  ;;  %v4210_v56 = vld [vmem:[#allocation8 + $0x8d8] sm:$0xff] }
 0x3de   :  { %7591 = vmatpush1.bf16.msra.mxu1 %v8490_v5  ;;  %7428 = vmatprep.subr.bf16.mxu0 %v8497_v59  ;;  %v8539_v5 = vcombine.high %v4170_v57, %v4174_v27  ;;  %v4177_v59 = vld [vmem:[#allocation8 + $0x7d0] sm:$0xff]  ;;  %v4214_v0 = vld [vmem:[#allocation8 + $0x8f8] sm:$0xff] }
 0x3df   :  { %7592 = vmatprep.subr.bf16.mxu1 %v8499_v36  ;;  %v4181_v36 = vld [vmem:[#allocation8 + $0x7f0] sm:$0xff] }
 0x3e0   :  { %v8544_v34 = vcombine.low %v4177_v59, %v4181_v36 }
 0x3e1   :  { %7429 = vmatpush1.bf16.msra.mxu0 %v8496_v20  ;;  %v8545_v20 = vcombine.high %v4177_v59, %v4181_v36  ;;  %v4222_v59 = vld [vmem:[#allocation8 + $0x938] sm:$0xff]  ;;  %v8578_v36 = vcombine.low %v4210_v56, %v4214_v0 }
 0x3e2   :  { %7593 = vmatpush1.bf16.msra.mxu1 %v8498_v21  ;;  %7430 = vmatprep.subr.bf16.mxu0 %v8505_v22  ;;  %v8547_v21 = vcombine.high %v4178_v6, %v4182_v13  ;;  %v4185_v22 = vld [vmem:[#allocation8 + $0x810] sm:$0xff] }
 0x3e3   :  { %7594 = vmatprep.subr.bf16.mxu1 %v8507_v62  ;;  %v4189_v62 = vld [vmem:[#allocation8 + $0x830] sm:$0xff] }
 0x3e4   :  { %v8552_v41 = vcombine.low %v4185_v22, %v4189_v62 }
 0x3e5   :  { %7431 = vmatpush1.bf16.msra.mxu0 %v8504_v35  ;;  %v8553_v35 = vcombine.high %v4185_v22, %v4189_v62 }
 0x3e6   :  { %7595 = vmatpush1.bf16.msra.mxu1 %v8506_v37  ;;  %7432 = vmatprep.subr.bf16.mxu0 %v8513_v38  ;;  %v8555_v37 = vcombine.high %v4186_v24, %v4190_v33  ;;  %v4193_v38 = vld [vmem:[#allocation8 + $0x850] sm:$0xff] }
 0x3e7   :  { %7596 = vmatprep.subr.bf16.mxu1 %v8515_v40  ;;  %v4197_v40 = vld [vmem:[#allocation8 + $0x870] sm:$0xff] }
 0x3e8   :  { %v8560_v51 = vcombine.low %v4193_v38, %v4197_v40 }
 0x3e9   :  { %7433 = vmatpush1.bf16.msra.mxu0 %v8512_v43  ;;  %v8561_v43 = vcombine.high %v4193_v38, %v4197_v40 }
 0x3ea   :  { %7597 = vmatpush1.bf16.msra.mxu1 %v8514_v44  ;;  %7434 = vmatprep.subr.bf16.mxu0 %v8521_v45  ;;  %v4201_v44 = vld [vmem:[#allocation8 + $0x890] sm:$0xff] }
 0x3eb   :  { %7598 = vmatprep.subr.bf16.mxu1 %v8523_v46  ;;  %v4205_v45 = vld [vmem:[#allocation8 + $0x8b0] sm:$0xff]  ;;  %v8563_v46 = vcombine.high %v4194_v8, %v4198_v42 }
 0x3ec   :  { %v8568_v57 = vcombine.low %v4201_v44, %v4205_v45  ;;  %v4241_v42 = vld [vmem:[#allocation8 + $0x9d0] sm:$0xff] }
 0x3ed   :  { %7435 = vmatpush1.bf16.msra.mxu0 %v8520_v18  ;;  %v8569_v18 = vcombine.high %v4201_v44, %v4205_v45  ;;  %v4246_v44 = vld [vmem:[#allocation8 + $0x9f8] sm:$0xff] }
 0x3ee   :  { %7599 = vmatpush1.bf16.msra.mxu1 %v8522_v49  ;;  %7436 = vmatprep.subr.bf16.mxu0 %v8529_v9  ;;  %v8571_v49 = vcombine.high %v4202_v48, %v4206_v53  ;;  %v4209_v9 = vld [vmem:[#allocation8 + $0x8d0] sm:$0xff] }
 0x3ef   :  { %7600 = vmatprep.subr.bf16.mxu1 %v8531_v52  ;;  %v4213_v52 = vld [vmem:[#allocation8 + $0x8f0] sm:$0xff] }
 0x3f0   :  { %v8577_v27 = vcombine.high %v4209_v9, %v4213_v52 }
 0x3f1   :  { %7437 = vmatpush1.bf16.msra.mxu0 %v8528_v2  ;;  %v8579_v2 = vcombine.high %v4210_v56, %v4214_v0 }
 0x3f2   :  { %7601 = vmatpush1.bf16.msra.mxu1 %v8530_v3  ;;  %7438 = vmatprep.subr.bf16.mxu0 %v8537_v4  ;;  %v4217_v3 = vld [vmem:[#allocation8 + $0x910] sm:$0xff] }
 0x3f3   :  { %7602 = vmatprep.subr.bf16.mxu1 %v8539_v5  ;;  %v4221_v4 = vld [vmem:[#allocation8 + $0x930] sm:$0xff]  ;;  %v4218_v5 = vld [vmem:[#allocation8 + $0x918] sm:$0xff] }
 0x3f4   :  { %v8585_v6 = vcombine.high %v4217_v3, %v4221_v4  ;;  %v8587_v13 = vcombine.high %v4218_v5, %v4222_v59  ;;  %v8584_v22 = vcombine.low %v4217_v3, %v4221_v4  ;;  %v8586_v62 = vcombine.low %v4218_v5, %v4222_v59 }
 0x3f5   :  { %7439 = vmatpush1.bf16.msra.mxu0 %v8536_v17  ;;  %v4225_v17 = vld [vmem:[#allocation8 + $0x950] sm:$0xff] }
 0x3f6   :  { %7603 = vmatpush1.bf16.msra.mxu1 %v8538_v11  ;;  %7440 = vmatprep.subr.bf16.mxu0 %v8545_v20  ;;  %v4229_v11 = vld [vmem:[#allocation8 + $0x970] sm:$0xff]  ;;  %v4226_v20 = vld [vmem:[#allocation8 + $0x958] sm:$0xff] }
 0x3f7   :  { %7604 = vmatprep.subr.bf16.mxu1 %v8547_v21  ;;  %v4230_v21 = vld [vmem:[#allocation8 + $0x978] sm:$0xff]  ;;  %v8593_v24 = vcombine.high %v4225_v17, %v4229_v11  ;;  %v8592_v38 = vcombine.low %v4225_v17, %v4229_v11 }
 0x3f8   :  { %v8595_v33 = vcombine.high %v4226_v20, %v4230_v21  ;;  %v8594_v40 = vcombine.low %v4226_v20, %v4230_v21 }
 0x3f9   :  { %7441 = vmatpush1.bf16.msra.mxu0 %v8544_v34  ;;  %v4233_v34 = vld [vmem:[#allocation8 + $0x990] sm:$0xff] }
 0x3fa   :  { %7605 = vmatpush1.bf16.msra.mxu1 %v8546_v15  ;;  %7451 = vmatprep.subr.bf16.mxu0 %v8553_v35  ;;  %v4237_v15 = vld [vmem:[#allocation8 + $0x9b0] sm:$0xff]  ;;  %v4234_v35 = vld [vmem:[#allocation8 + $0x998] sm:$0xff] }
 0x3fb   :  { %7615 = vmatprep.subr.bf16.mxu1 %v8555_v37  ;;  %v4238_v37 = vld [vmem:[#allocation8 + $0x9b8] sm:$0xff]  ;;  %v8600_v45 = vcombine.low %v4233_v34, %v4237_v15 }
 0x3fc   :  { %7443 = vmatmul.mubr.bf16.vlgmr.msra.gmra.mrb[12].mxu0 %v9335_v54  ;;  %v8603_v8 = vcombine.high %v4234_v35, %v4238_v37 }
 0x3fd   :  { %7607 = vmatmul.mubr.bf16.vlgmr.msra.gmra.mrb[12].mxu1 %v9335_v54  ;;  %7452 = vmatpush1.bf16.msra.mxu0 %v8552_v41  ;;  %v8570_v54 = vcombine.low %v4202_v48, %v4206_v53  ;;  %v8601_v41 = vcombine.high %v4233_v34, %v4237_v15 }
 0x3fe   :  { %7483 = vmatprep.mubr.bf16.mxu0 %v9355_v55  ;;  %7616 = vmatpush1.bf16.msra.mxu1 %v8554_v31  ;;  %v4245_v31 = vld [vmem:[#allocation8 + $0x9f0] sm:$0xff] }
 0x3ff   :  { %7647 = vmatprep.mubr.bf16.mxu1 %v9355_v55  ;;  %7453 = vmatprep.subr.bf16.mxu0 %v8561_v43  ;;  %v8576_v55 = vcombine.low %v4209_v9, %v4213_v52  ;;  %v4242_v43 = vld [vmem:[#allocation8 + $0x9d8] sm:$0xff]  ;;  %v8609_v48 = vcombine.high %v4241_v42, %v4245_v31  ;;  %v8608_v9 = vcombine.low %v4241_v42, %v4245_v31 }
 0x400   :  { %7617 = vmatprep.subr.bf16.mxu1 %v8563_v46  ;;  %v8602_v46 = vcombine.low %v4234_v35, %v4238_v37  ;;  %v8611_v53 = vcombine.high %v4242_v43, %v4246_v44  ;;  %v8610_v52 = vcombine.low %v4242_v43, %v4246_v44 }
 0x401   :  { %7454 = vmatpush1.bf16.msra.mxu0 %v8560_v51  ;;  %v4249_v51 = vld [vmem:[#allocation8 + $0xa10] sm:$0xff] }
 0x402   :  { %7618 = vmatpush1.bf16.msra.mxu1 %v8562_v63  ;;  %7455 = vmatprep.subr.bf16.mxu0 %v8569_v18  ;;  %v4253_v63 = vld [vmem:[#allocation8 + $0xa30] sm:$0xff]  ;;  %v4250_v18 = vld [vmem:[#allocation8 + $0xa18] sm:$0xff] }
 0x403   :  { %7619 = vmatprep.subr.bf16.mxu1 %v8571_v49  ;;  %v4254_v49 = vld [vmem:[#allocation8 + $0xa38] sm:$0xff]  ;;  %v8617_v56 = vcombine.high %v4249_v51, %v4253_v63  ;;  %v8616_v3 = vcombine.low %v4249_v51, %v4253_v63 }
 0x404   :  { %v8619_v0 = vcombine.high %v4250_v18, %v4254_v49  ;;  %v8618_v4 = vcombine.low %v4250_v18, %v4254_v49 }
 0x405   :  { %7456 = vmatpush1.bf16.msra.mxu0 %v8568_v57  ;;  %v4257_v57 = vld [vmem:[#allocation8 + $0xa50] sm:$0xff] }
 0x406   :  { %7620 = vmatpush1.bf16.msra.mxu1 %v8570_v54  ;;  %7457 = vmatprep.subr.bf16.mxu0 %v8577_v27  ;;  %v4261_v54 = vld [vmem:[#allocation8 + $0xa70] sm:$0xff]  ;;  %v4258_v27 = vld [vmem:[#allocation8 + $0xa58] sm:$0xff] }
 0x407   :  { %7621 = vmatprep.subr.bf16.mxu1 %v8579_v2  ;;  %v4262_v2 = vld [vmem:[#allocation8 + $0xa78] sm:$0xff]  ;;  %v8625_v5 = vcombine.high %v4257_v57, %v4261_v54  ;;  %v8624_v17 = vcombine.low %v4257_v57, %v4261_v54 }
 0x408   :  { %v8627_v59 = vcombine.high %v4258_v27, %v4262_v2  ;;  %v8626_v11 = vcombine.low %v4258_v27, %v4262_v2 }
 0x409   :  { %7458 = vmatpush1.bf16.msra.mxu0 %v8576_v55  ;;  %v4265_v55 = vld [vmem:[#allocation8 + $0xa90] sm:$0xff] }
 0x40a   :  { %7622 = vmatpush1.bf16.msra.mxu1 %v8578_v36  ;;  %7459 = vmatprep.subr.bf16.mxu0 %v8585_v6  ;;  %v4269_v36 = vld [vmem:[#allocation8 + $0xab0] sm:$0xff]  ;;  %v4266_v6 = vld [vmem:[#allocation8 + $0xa98] sm:$0xff] }
 0x40b   :  { %7623 = vmatprep.subr.bf16.mxu1 %v8587_v13  ;;  %v4270_v13 = vld [vmem:[#allocation8 + $0xab8] sm:$0xff]  ;;  %v8633_v20 = vcombine.high %v4265_v55, %v4269_v36  ;;  %v8632_v34 = vcombine.low %v4265_v55, %v4269_v36 }
 0x40c   :  { %v8635_v21 = vcombine.high %v4266_v6, %v4270_v13  ;;  %v8634_v15 = vcombine.low %v4266_v6, %v4270_v13 }
 0x40d   :  { %7460 = vmatpush1.bf16.msra.mxu0 %v8584_v22  ;;  %v4273_v22 = vld [vmem:[#allocation8 + $0xad0] sm:$0xff] }
 0x40e   :  { %7624 = vmatpush1.bf16.msra.mxu1 %v8586_v62  ;;  %7461 = vmatprep.subr.bf16.mxu0 %v8593_v24  ;;  %v4277_v62 = vld [vmem:[#allocation8 + $0xaf0] sm:$0xff]  ;;  %v4274_v24 = vld [vmem:[#allocation8 + $0xad8] sm:$0xff] }
 0x40f   :  { %7625 = vmatprep.subr.bf16.mxu1 %v8595_v33  ;;  %v4278_v33 = vld [vmem:[#allocation8 + $0xaf8] sm:$0xff]  ;;  %v8641_v35 = vcombine.high %v4273_v22, %v4277_v62  ;;  %v8640_v42 = vcombine.low %v4273_v22, %v4277_v62 }
 0x410   :  { %v8643_v37 = vcombine.high %v4274_v24, %v4278_v33  ;;  %v8642_v31 = vcombine.low %v4274_v24, %v4278_v33 }
 0x411   :  { %7462 = vmatpush1.bf16.msra.mxu0 %v8592_v38  ;;  %v4281_v38 = vld [vmem:[#allocation8 + $0xb10] sm:$0xff] }
 0x412   :  { %7626 = vmatpush1.bf16.msra.mxu1 %v8594_v40  ;;  %7463 = vmatprep.subr.bf16.mxu0 %v8601_v41  ;;  %v4285_v40 = vld [vmem:[#allocation8 + $0xb30] sm:$0xff]  ;;  %v4282_v41 = vld [vmem:[#allocation8 + $0xb18] sm:$0xff] }
 0x413   :  { %7627 = vmatprep.subr.bf16.mxu1 %v8603_v8  ;;  %v4286_v8 = vld [vmem:[#allocation8 + $0xb38] sm:$0xff]  ;;  %v8649_v43 = vcombine.high %v4281_v38, %v4285_v40  ;;  %v8648_v51 = vcombine.low %v4281_v38, %v4285_v40 }
 0x414   :  { %v8651_v44 = vcombine.high %v4282_v41, %v4286_v8  ;;  %v8650_v63 = vcombine.low %v4282_v41, %v4286_v8  ;;  %v4326_v38 = vld [vmem:[#allocation8 + $0xc78] sm:$0xff]  ;;  %v4329_v8 = vld [vmem:[#allocation8 + $0xc90] sm:$0xff] }
 0x415   :  { %7464 = vmatpush1.bf16.msra.mxu0 %v8600_v45  ;;  %v4289_v45 = vld [vmem:[#allocation8 + $0xb50] sm:$0xff] }
 0x416   :  { %7628 = vmatpush1.bf16.msra.mxu1 %v8602_v46  ;;  %7465 = vmatprep.subr.bf16.mxu0 %v8609_v48  ;;  %v4293_v46 = vld [vmem:[#allocation8 + $0xb70] sm:$0xff]  ;;  %v4290_v48 = vld [vmem:[#allocation8 + $0xb58] sm:$0xff] }
 0x417   :  { %7629 = vmatprep.subr.bf16.mxu1 %v8611_v53  ;;  %v4294_v53 = vld [vmem:[#allocation8 + $0xb78] sm:$0xff]  ;;  %v8657_v18 = vcombine.high %v4289_v45, %v4293_v46  ;;  %v8656_v57 = vcombine.low %v4289_v45, %v4293_v46 }
 0x418   :  { %v8659_v49 = vcombine.high %v4290_v48, %v4294_v53  ;;  %v8658_v54 = vcombine.low %v4290_v48, %v4294_v53 }
 0x419   :  { %7466 = vmatpush1.bf16.msra.mxu0 %v8608_v9  ;;  %v4297_v9 = vld [vmem:[#allocation8 + $0xb90] sm:$0xff] }
 0x41a   :  { %7630 = vmatpush1.bf16.msra.mxu1 %v8610_v52  ;;  %7467 = vmatprep.subr.bf16.mxu0 %v8617_v56  ;;  %v4301_v52 = vld [vmem:[#allocation8 + $0xbb0] sm:$0xff]  ;;  %v4298_v56 = vld [vmem:[#allocation8 + $0xb98] sm:$0xff] }
 0x41b   :  { %7631 = vmatprep.subr.bf16.mxu1 %v8619_v0  ;;  %v4302_v0 = vld [vmem:[#allocation8 + $0xbb8] sm:$0xff]  ;;  %v8665_v27 = vcombine.high %v4297_v9, %v4301_v52  ;;  %v8664_v55 = vcombine.low %v4297_v9, %v4301_v52 }
 0x41c   :  { %v8667_v2 = vcombine.high %v4298_v56, %v4302_v0  ;;  %v8666_v36 = vcombine.low %v4298_v56, %v4302_v0  ;;  %v4345_v0 = vld [vmem:[#allocation8 + $0xd10] sm:$0xff] }
 0x41d   :  { %7468 = vmatpush1.bf16.msra.mxu0 %v8616_v3  ;;  %v4305_v3 = vld [vmem:[#allocation8 + $0xbd0] sm:$0xff] }
 0x41e   :  { %7632 = vmatpush1.bf16.msra.mxu1 %v8618_v4  ;;  %7469 = vmatprep.subr.bf16.mxu0 %v8625_v5  ;;  %v4309_v4 = vld [vmem:[#allocation8 + $0xbf0] sm:$0xff]  ;;  %v4306_v5 = vld [vmem:[#allocation8 + $0xbd8] sm:$0xff] }
 0x41f   :  { %7633 = vmatprep.subr.bf16.mxu1 %v8627_v59  ;;  %v4310_v59 = vld [vmem:[#allocation8 + $0xbf8] sm:$0xff]  ;;  %v8673_v6 = vcombine.high %v4305_v3, %v4309_v4  ;;  %v8672_v22 = vcombine.low %v4305_v3, %v4309_v4 }
 0x420   :  { %v8675_v13 = vcombine.high %v4306_v5, %v4310_v59  ;;  %v8674_v62 = vcombine.low %v4306_v5, %v4310_v59  ;;  %v4353_v5 = vld [vmem:[#allocation8 + $0xd50] sm:$0xff] }
 0x421   :  { %7470 = vmatpush1.bf16.msra.mxu0 %v8624_v17  ;;  %v4313_v17 = vld [vmem:[#allocation8 + $0xc10] sm:$0xff] }
 0x422   :  { %7634 = vmatpush1.bf16.msra.mxu1 %v8626_v11  ;;  %7471 = vmatprep.subr.bf16.mxu0 %v8633_v20  ;;  %v4317_v11 = vld [vmem:[#allocation8 + $0xc30] sm:$0xff]  ;;  %v4314_v20 = vld [vmem:[#allocation8 + $0xc18] sm:$0xff] }
 0x423   :  { %7635 = vmatprep.subr.bf16.mxu1 %v8635_v21  ;;  %v4318_v21 = vld [vmem:[#allocation8 + $0xc38] sm:$0xff]  ;;  %v8681_v24 = vcombine.high %v4313_v17, %v4317_v11  ;;  %v4357_v59 = vld [vmem:[#allocation8 + $0xd70] sm:$0xff] }
 0x424   :  { %v8683_v33 = vcombine.high %v4314_v20, %v4318_v21  ;;  %v8682_v40 = vcombine.low %v4314_v20, %v4318_v21  ;;  %v4361_v21 = vld [vmem:[#allocation8 + $0xd90] sm:$0xff] }
 0x425   :  { %7472 = vmatpush1.bf16.msra.mxu0 %v8632_v34  ;;  %v4321_v34 = vld [vmem:[#allocation8 + $0xc50] sm:$0xff] }
 0x426   :  { %7636 = vmatpush1.bf16.msra.mxu1 %v8634_v15  ;;  %7473 = vmatprep.subr.bf16.mxu0 %v8641_v35  ;;  %v4325_v15 = vld [vmem:[#allocation8 + $0xc70] sm:$0xff]  ;;  %v8680_v35 = vcombine.low %v4313_v17, %v4317_v11  ;;  %v8721_v11 = vcombine.high %v4353_v5, %v4357_v59 }
 0x427   :  { %7637 = vmatprep.subr.bf16.mxu1 %v8643_v37  ;;  %v4322_v37 = vld [vmem:[#allocation8 + $0xc58] sm:$0xff]  ;;  %v8689_v41 = vcombine.high %v4321_v34, %v4325_v15  ;;  %v8688_v45 = vcombine.low %v4321_v34, %v4325_v15 }
 0x428   :  { %v8690_v46 = vcombine.low %v4322_v37, %v4326_v38  ;;  %v4366_v34 = vld [vmem:[#allocation8 + $0xdb8] sm:$0xff] }
 0x429   :  { %7474 = vmatpush1.bf16.msra.mxu0 %v8640_v42  ;;  %v4333_v42 = vld [vmem:[#allocation8 + $0xcb0] sm:$0xff] }
 0x42a   :  { %7638 = vmatpush1.bf16.msra.mxu1 %v8642_v31  ;;  %7475 = vmatprep.subr.bf16.mxu0 %v8649_v43  ;;  %v8691_v31 = vcombine.high %v4322_v37, %v4326_v38  ;;  %v4330_v43 = vld [vmem:[#allocation8 + $0xc98] sm:$0xff]  ;;  %v8697_v48 = vcombine.high %v4329_v8, %v4333_v42  ;;  %v8696_v9 = vcombine.low %v4329_v8, %v4333_v42  ;;  %v9404_v38 = vld [vmem:[#allocation8 + $0xdd0] sm:$0xff] }
 0x42b   :  { %7639 = vmatprep.subr.bf16.mxu1 %v8651_v44  ;;  %v4334_v44 = vld [vmem:[#allocation8 + $0xcb8] sm:$0xff]  ;;  %v8720_v37 = vcombine.low %v4353_v5, %v4357_v59 }
 0x42c   :  { %v8699_v53 = vcombine.high %v4330_v43, %v4334_v44  ;;  %v9408_v8 = vld [vmem:[#allocation8 + $0xdf8] sm:$0xff] }
 0x42d   :  { %7476 = vmatpush1.bf16.msra.mxu0 %v8648_v51  ;;  %v4337_v51 = vld [vmem:[#allocation8 + $0xcd0] sm:$0xff]  ;;  %v4378_v59 = vld [vmem:[#allocation8 + $0xe18] sm:$0xff] }
 0x42e   :  { %7640 = vmatpush1.bf16.msra.mxu1 %v8650_v63  ;;  %7477 = vmatprep.subr.bf16.mxu0 %v8657_v18  ;;  %v4341_v63 = vld [vmem:[#allocation8 + $0xcf0] sm:$0xff]  ;;  %v4338_v18 = vld [vmem:[#allocation8 + $0xcd8] sm:$0xff] }
 0x42f   :  { %7641 = vmatprep.subr.bf16.mxu1 %v8659_v49  ;;  %v4342_v49 = vld [vmem:[#allocation8 + $0xcf8] sm:$0xff]  ;;  %v8705_v52 = vcombine.high %v4337_v51, %v4341_v63 }
 0x430   :  { %v8707_v56 = vcombine.high %v4338_v18, %v4342_v49 }
 0x431   :  { %7478 = vmatpush1.bf16.msra.mxu0 %v8656_v57  ;;  %v4349_v57 = vld [vmem:[#allocation8 + $0xd30] sm:$0xff] }
 0x432   :  { %7642 = vmatpush1.bf16.msra.mxu1 %v8658_v54  ;;  %7479 = vmatprep.subr.bf16.mxu0 %v8665_v27  ;;  %v4346_v54 = vld [vmem:[#allocation8 + $0xd18] sm:$0xff]  ;;  %v8713_v3 = vcombine.high %v4345_v0, %v4349_v57 }
 0x433   :  { %7643 = vmatprep.subr.bf16.mxu1 %v8667_v2  ;;  %v4350_v27 = vld [vmem:[#allocation8 + $0xd38] sm:$0xff]  ;;  %v8706_v2 = vcombine.low %v4338_v18, %v4342_v49 }
 0x434   :  { %v8715_v4 = vcombine.high %v4346_v54, %v4350_v27  ;;  %v8714_v17 = vcombine.low %v4346_v54, %v4350_v27 }
 0x435   :  { %7480 = vmatpush1.bf16.msra.mxu0 %v8664_v55  ;;  %v4354_v55 = vld [vmem:[#allocation8 + $0xd58] sm:$0xff] }
 0x436   :  { %7644 = vmatpush1.bf16.msra.mxu1 %v8666_v36  ;;  %7481 = vmatprep.subr.bf16.mxu0 %v8673_v6  ;;  %v4358_v36 = vld [vmem:[#allocation8 + $0xd78] sm:$0xff]  ;;  %v8712_v6 = vcombine.low %v4345_v0, %v4349_v57 }
 0x437   :  { %7645 = vmatprep.subr.bf16.mxu1 %v8675_v13  ;;  %v9390_v13 = vld [vmem:[#allocation10] sm:$0xff]  ;;  %v8723_v20 = vcombine.high %v4354_v55, %v4358_v36 }
 0x438   :  { %v4448_v15 = vrot.slane %v9390_v13, %v645_v23 }
 0x439   :  { %7482 = vmatpush1.bf16.msra.mxu0 %v8672_v22  ;;  %v4365_v22 = vld [vmem:[#allocation8 + $0xdb0] sm:$0xff] }
 0x43a   :  { %7646 = vmatpush1.bf16.msra.mxu1 %v8674_v62  ;;  %7492 = vmatprep.subr.bf16.mxu0 %v8681_v24  ;;  %v4444_v62 = vrot.slane %v9390_v13, %v641_v16  ;;  %v4452_v24 = vrot.slane %v9390_v13, %v649_v50  ;;  %v8722_v16 = vcombine.low %v4354_v55, %v4358_v36  ;;  %v9406_v50 = vld [vmem:[#allocation8 + $0xdd8] sm:$0xff] }
 0x43b   :  { %7656 = vmatprep.subr.bf16.mxu1 %v8683_v33  ;;  %v4362_v33 = vld [vmem:[#allocation8 + $0xd98] sm:$0xff]  ;;  %v8738_v5 = vcombine.low %v9406_v50, %v9408_v8 }
 0x43c   :  { %7484 = vmatmul.mubr.bf16.vlgmr.msra.gmra.mrb[12].mxu0 %v9357_v60  ;;  %v8731_v23 = vcombine.high %v4362_v33, %v4366_v34  ;;  %v4382_v55 = vld [vmem:[#allocation8 + $0xe38] sm:$0xff] }
 0x43d   :  { %7648 = vmatmul.mubr.bf16.vlgmr.msra.gmra.mrb[12].mxu1 %v9357_v60  ;;  %7493 = vmatpush1.bf16.msra.mxu0 %v8680_v35  ;;  %v8698_v60 = vcombine.low %v4330_v43, %v4334_v44  ;;  %v4456_v35 = vrot.slane %v9390_v13, %v653_v1 }
 0x43e   :  { %7524 = vmatprep.mubr.bf16.mxu0 %v9361_v14  ;;  %7657 = vmatpush1.bf16.msra.mxu1 %v8682_v40  ;;  %v8729_v40 = vcombine.high %v4361_v21, %v4365_v22 }
 0x43f   :  { %7688 = vmatprep.mubr.bf16.mxu1 %v9361_v14  ;;  %7494 = vmatprep.subr.bf16.mxu0 %v8689_v41  ;;  %v8704_v14 = vcombine.low %v4337_v51, %v4341_v63  ;;  %v4373_v41 = vld [vmem:[#allocation8 + $0xdf0] sm:$0xff] }
 0x440   :  { %7658 = vmatprep.subr.bf16.mxu1 %v8691_v31  ;;  %v8737_v49 = vcombine.high %v9404_v38, %v4373_v41 }
 0x441   :  { %7495 = vmatpush1.bf16.msra.mxu0 %v8688_v45 }
 0x442   :  { %7659 = vmatpush1.bf16.msra.mxu1 %v8690_v46  ;;  %7496 = vmatprep.subr.bf16.mxu0 %v8697_v48  ;;  %v8728_v46 = vcombine.low %v4361_v21, %v4365_v22  ;;  %v8730_v48 = vcombine.low %v4362_v33, %v4366_v34  ;;  %v4389_v33 = vld [vmem:[#allocation8 + $0xe70] sm:$0xff] }
 0x443   :  { %7660 = vmatprep.subr.bf16.mxu1 %v8699_v53 }
 0x445   :  { %7497 = vmatpush1.bf16.msra.mxu0 %v8696_v9  ;;  %v8739_v9 = vcombine.high %v9406_v50, %v9408_v8  ;;  %v4394_v50 = vld [vmem:[#allocation8 + $0xe98] sm:$0xff] }
 0x446   :  { %7661 = vmatpush1.bf16.msra.mxu1 %v8698_v60  ;;  %7498 = vmatprep.subr.bf16.mxu0 %v8705_v52  ;;  %v4377_v60 = vld [vmem:[#allocation8 + $0xe10] sm:$0xff]  ;;  %v4398_v8 = vld [vmem:[#allocation8 + $0xeb8] sm:$0xff] }
 0x447   :  { %7662 = vmatprep.subr.bf16.mxu1 %v8707_v56  ;;  %v4381_v52 = vld [vmem:[#allocation8 + $0xe30] sm:$0xff] }
 0x448   :  { %v8745_v22 = vcombine.high %v4377_v60, %v4381_v52 }
 0x449   :  { %7499 = vmatpush1.bf16.msra.mxu0 %v8704_v14 }
 0x44a   :  { %7663 = vmatpush1.bf16.msra.mxu1 %v8706_v2  ;;  %7500 = vmatprep.subr.bf16.mxu0 %v8713_v3 }
 0x44b   :  { %7664 = vmatprep.subr.bf16.mxu1 %v8715_v4  ;;  %v8736_v4 = vcombine.low %v9404_v38, %v4373_v41  ;;  %v8744_v38 = vcombine.low %v4377_v60, %v4381_v52  ;;  %v4397_v41 = vld [vmem:[#allocation8 + $0xeb0] sm:$0xff]  ;;  %v4414_v60 = vld [vmem:[#allocation8 + $0xf38] sm:$0xff] }
 0x44d   :  { %7501 = vmatpush1.bf16.msra.mxu0 %v8712_v6 }
 0x44e   :  { %7665 = vmatpush1.bf16.msra.mxu1 %v8714_v17  ;;  %7502 = vmatprep.subr.bf16.mxu0 %v8721_v11 }
 0x44f   :  { %v7198_v42 = vpop.f32.mrb[8].mxu0  ;;  %v7362_v31 = vpop.f32.mrb[8].mxu1  ;;  %7666 = vmatprep.subr.bf16.mxu1 %v8723_v20 }
 0x450   :  { %v8812_v43 = vadd.f32 %v7198_v42, %v4444_v62  ;;  %v8814_v44 = vadd.f32 %v7362_v31, %v4452_v24  ;;  %v7200_v45 = vpop.f32.mrb[9].mxu0  ;;  %v7364_v1 = vpop.f32.mrb[9].mxu1  ;;  %v8747_v62 = vcombine.high %v4378_v59, %v4382_v55  ;;  %v4385_v24 = vld [vmem:[#allocation8 + $0xe50] sm:$0xff] }
 0x451   :  { %v8813_v53 = vadd.f32 %v7200_v45, %v4448_v15  ;;  %v8815_v51 = vadd.f32 %v7364_v1, %v4456_v35  ;;  %v7202_v63 = vpop.f32.mrb[10].mxu0  ;;  %v7366_v18 = vpop.f32.mrb[10].mxu1  ;;  %7503 = vmatpush1.bf16.msra.mxu0 %v8720_v37  ;;  %v4386_v37 = vld [vmem:[#allocation8 + $0xe58] sm:$0xff]  ;;  %v8752_v42 = vcombine.low %v4385_v24, %v4389_v33  ;;  %v4405_v45 = vld [vmem:[#allocation8 + $0xef0] sm:$0xff] }
 0x452   :  { %vm7697_vm8 = vcmp.gt.f32.partialorder %v8812_v43, 0.0  ;;  %v7705_v56 = vmul.f32 0.01, %v8812_v43  ;;  %vm7699_vm9 = vcmp.gt.f32.partialorder %v8814_v44, 0.0  ;;  %v7707_v0 = vmul.f32 0.01, %v8814_v44  ;;  %7667 = vmatpush1.bf16.msra.mxu1 %v8722_v16  ;;  %7504 = vmatprep.subr.bf16.mxu0 %v8729_v40 }
 0x453   :  { %vm7698_vm10 = vcmp.gt.f32.partialorder %v8813_v53, 0.0  ;;  %v7706_v57 = vmul.f32 0.01, %v8813_v53  ;;  %vm7700_vm11 = vcmp.gt.f32.partialorder %v8815_v51, 0.0  ;;  %v7708_v54 = vmul.f32 0.01, %v8815_v51  ;;  %7668 = vmatprep.subr.bf16.mxu1 %v8731_v23 }
 0x454   :  { %v7713_v27 = vsel %vm7697_vm8, %v8812_v43, %v7705_v56  ;;  %v7715_v14 = vsel %vm7699_vm9, %v8814_v44, %v7707_v0  ;;  %v7203_v2 = vpop.f32.mrb[11].mxu0  ;;  %v7367_v3 = vpop.f32.mrb[11].mxu1  ;;  %v4393_v40 = vld [vmem:[#allocation8 + $0xe90] sm:$0xff]  ;;  %v8763_v43 = vcombine.high %v4394_v50, %v4398_v8  ;;  %v4402_v1 = vld [vmem:[#allocation8 + $0xed8] sm:$0xff] }
 0x455   :  { %v7721_v36 = vadd.f32 %v7713_v27, %v9195_v10  ;;  %v7723_v6 = vadd.f32 %v7715_v14, %v9219_v30  ;;  %v7714_v17 = vsel %vm7698_vm10, %v8813_v53, %v7706_v57  ;;  %v7716_v11 = vsel %vm7700_vm11, %v8815_v51, %v7708_v54  ;;  %7505 = vmatpush1.bf16.msra.mxu0 %v8728_v46  ;;  %v4390_v30 = vld [vmem:[#allocation8 + $0xe78] sm:$0xff]  ;;  %v4401_v44 = vld [vmem:[#allocation8 + $0xed0] sm:$0xff] }
 0x456   :  { %v7722_v20 = vadd.f32 %v7714_v17, %v9185_v58  ;;  %v7724_v21 = vadd.f32 %v7716_v11, %v9203_v19  ;;  %7669 = vmatpush1.bf16.msra.mxu1 %v8730_v48  ;;  %7506 = vmatprep.subr.bf16.mxu0 %v8737_v49  ;;  %v8746_v58 = vcombine.low %v4378_v59, %v4382_v55  ;;  %v4406_v46 = vld [vmem:[#allocation8 + $0xef8] sm:$0xff]  ;;  %v4409_v18 = vld [vmem:[#allocation8 + $0xf10] sm:$0xff] }
 0x457   :  { %7670 = vmatprep.subr.bf16.mxu1 %v8739_v9  ;;  %v8753_v19 = vcombine.high %v4385_v24, %v4389_v33  ;;  %v8755_v16 = vcombine.high %v4386_v37, %v4390_v30  ;;  %v8754_v31 = vcombine.low %v4386_v37, %v4390_v30  ;;  %v8761_v23 = vcombine.high %v4393_v40, %v4397_v41  ;;  %v4413_v49 = vld [vmem:[#allocation8 + $0xf30] sm:$0xff]  ;;  %v4410_v9 = vld [vmem:[#allocation8 + $0xf18] sm:$0xff] }
 0x458   :  { %v7737_v34 = vcombine.low %v7721_v36, %v7722_v20  ;;  %v7738_v15 = vcombine.high %v7721_v36, %v7722_v20  ;;  %v7739_v35 = vcombine.low %v7723_v6, %v7724_v21  ;;  %v7740_v10 = vcombine.high %v7723_v6, %v7724_v21  ;;  %v4417_v54 = vld [vmem:[#allocation8 + $0xf50] sm:$0xff]  ;;  %v4418_v14 = vld [vmem:[#allocation8 + $0xf58] sm:$0xff] }
 0x459   :  { %7507 = vmatpush1.bf16.msra.mxu0 %v8736_v4  ;;  %v8760_v48 = vcombine.low %v4393_v40, %v4397_v41  ;;  %v8762_v53 = vcombine.low %v4394_v50, %v4398_v8  ;;  %v8769_v51 = vcombine.high %v4401_v44, %v4405_v45  ;;  %v8771_v63 = vcombine.high %v4402_v1, %v4406_v46  ;;  %v4421_v27 = vld [vmem:[#allocation8 + $0xf70] sm:$0xff]  ;;  %v4422_v2 = vld [vmem:[#allocation8 + $0xf78] sm:$0xff] }
 0x45a   :  { %7753 = vst [vmem:[#allocation11] sm:$0xff] %v7737_v34  ;;  %7757 = vst [vmem:[#allocation11 + $0x20] sm:$0xff] %v7738_v15  ;;  %7671 = vmatpush1.bf16.msra.mxu1 %v8738_v5  ;;  %7508 = vmatprep.subr.bf16.mxu0 %v8745_v22  ;;  %v8768_v52 = vcombine.low %v4401_v44, %v4405_v45  ;;  %v8770_v56 = vcombine.low %v4402_v1, %v4406_v46  ;;  %v4425_v55 = vld [vmem:[#allocation8 + $0xf90] sm:$0xff]  ;;  %v4426_v6 = vld [vmem:[#allocation8 + $0xf98] sm:$0xff] }
 0x45b   :  { %7754 = vst [vmem:[#allocation11 + $0x8] sm:$0xff] %v7739_v35  ;;  %7758 = vst [vmem:[#allocation11 + $0x28] sm:$0xff] %v7740_v10  ;;  %7672 = vmatprep.subr.bf16.mxu1 %v8747_v62  ;;  %v8777_v0 = vcombine.high %v4409_v18, %v4413_v49  ;;  %v8779_v57 = vcombine.high %v4410_v9, %v4414_v60  ;;  %v8776_v3 = vcombine.low %v4409_v18, %v4413_v49  ;;  %v4429_v36 = vld [vmem:[#allocation8 + $0xfb0] sm:$0xff]  ;;  %v4430_v17 = vld [vmem:[#allocation8 + $0xfb8] sm:$0xff] }
 0x45c   :  { %v8778_v4 = vcombine.low %v4410_v9, %v4414_v60  ;;  %v8785_v5 = vcombine.high %v4417_v54, %v4421_v27  ;;  %v8787_v59 = vcombine.high %v4418_v14, %v4422_v2  ;;  %v8784_v11 = vcombine.low %v4417_v54, %v4421_v27  ;;  %v4433_v62 = vld [vmem:[#allocation8 + $0xfd0] sm:$0xff]  ;;  %v4434_v33 = vld [vmem:[#allocation8 + $0xfd8] sm:$0xff] }
 0x45d   :  { %7509 = vmatpush1.bf16.msra.mxu0 %v8744_v38  ;;  %v8786_v20 = vcombine.low %v4418_v14, %v4422_v2  ;;  %v8793_v21 = vcombine.high %v4425_v55, %v4429_v36  ;;  %v8795_v22 = vcombine.high %v4426_v6, %v4430_v17  ;;  %v4437_v24 = vld [vmem:[#allocation8 + $0xff0] sm:$0xff]  ;;  %v4438_v34 = vld [vmem:[#allocation8 + $0xff8] sm:$0xff]  ;;  %v8792_v15 = vcombine.low %v4425_v55, %v4429_v36 }
 0x45e   :  { %7673 = vmatpush1.bf16.msra.mxu1 %v8746_v58  ;;  %7510 = vmatprep.subr.bf16.mxu0 %v8753_v19  ;;  %v8794_v35 = vcombine.low %v4426_v6, %v4430_v17  ;;  %v8801_v10 = vcombine.high %v4433_v62, %v4437_v24  ;;  %v8803_v37 = vcombine.high %v4434_v33, %v4438_v34 }
 0x45f   :  { %7674 = vmatprep.subr.bf16.mxu1 %v8755_v16  ;;  %v8800_v30 = vcombine.low %v4433_v62, %v4437_v24  ;;  %v8802_v38 = vcombine.low %v4434_v33, %v4438_v34  ;;  %v4460_v58 = vrot.slane %v9390_v13, %v657_v26  ;;  %v4468_v19 = vrot.slane %v9390_v13, %v665_v25 }
 0x460   :  { %v4464_v16 = vrot.slane %v9390_v13, %v661_v47  ;;  %v4472_v40 = vrot.slane %v9390_v13, %v669_v28 }
 0x461   :  { %7511 = vmatpush1.bf16.msra.mxu0 %v8752_v42 }
 0x462   :  { %7675 = vmatpush1.bf16.msra.mxu1 %v8754_v31  ;;  %7512 = vmatprep.subr.bf16.mxu0 %v8761_v23 }
 0x463   :  { %7676 = vmatprep.subr.bf16.mxu1 %v8763_v43 }
 0x465   :  { %7513 = vmatpush1.bf16.msra.mxu0 %v8760_v48 }
 0x466   :  { %7677 = vmatpush1.bf16.msra.mxu1 %v8762_v53  ;;  %7514 = vmatprep.subr.bf16.mxu0 %v8769_v51 }
 0x467   :  { %7678 = vmatprep.subr.bf16.mxu1 %v8771_v63 }
 0x469   :  { %7515 = vmatpush1.bf16.msra.mxu0 %v8768_v52 }
 0x46a   :  { %7679 = vmatpush1.bf16.msra.mxu1 %v8770_v56  ;;  %7516 = vmatprep.subr.bf16.mxu0 %v8777_v0 }
 0x46b   :  { %7680 = vmatprep.subr.bf16.mxu1 %v8779_v57 }
 0x46d   :  { %7517 = vmatpush1.bf16.msra.mxu0 %v8776_v3 }
 0x46e   :  { %7681 = vmatpush1.bf16.msra.mxu1 %v8778_v4  ;;  %7518 = vmatprep.subr.bf16.mxu0 %v8785_v5 }
 0x46f   :  { %7682 = vmatprep.subr.bf16.mxu1 %v8787_v59 }
 0x471   :  { %7519 = vmatpush1.bf16.msra.mxu0 %v8784_v11 }
 0x472   :  { %7683 = vmatpush1.bf16.msra.mxu1 %v8786_v20  ;;  %7520 = vmatprep.subr.bf16.mxu0 %v8793_v21 }
 0x473   :  { %7684 = vmatprep.subr.bf16.mxu1 %v8795_v22 }
 0x475   :  { %7521 = vmatpush1.bf16.msra.mxu0 %v8792_v15 }
 0x476   :  { %7685 = vmatpush1.bf16.msra.mxu1 %v8794_v35  ;;  %7522 = vmatprep.subr.bf16.mxu0 %v8801_v10 }
 0x477   :  { %7686 = vmatprep.subr.bf16.mxu1 %v8803_v37 }
 0x479   :  { %7523 = vmatpush1.bf16.msra.mxu0 %v8800_v30 }
 0x47a   :  { %7687 = vmatpush1.bf16.msra.mxu1 %v8802_v38 }
 0x47c   :  { %7525 = vmatmul.mubr.bf16.vlgmr.msra.gmra.mrb[12].mxu0 %v9372_v29 }
 0x47d   :  { %7689 = vmatmul.mubr.bf16.vlgmr.msra.gmra.mrb[12].mxu1 %v9372_v29 }
 0x54f   :  { %v7526_v41 = vpop.f32.mrb[12].mxu0 }
 0x550   :  { %v8816_v50 = vadd.f32 %v7526_v41, %v4460_v58  ;;  %v7690_v8 = vpop.f32.mrb[12].mxu1  ;;  %v7528_v29 = vpop.f32.mrb[13].mxu0 }
 0x551   :  { %v8818_v42 = vadd.f32 %v7690_v8, %v4468_v19  ;;  %v8817_v31 = vadd.f32 %v7528_v29, %v4464_v16  ;;  %v7692_v23 = vpop.f32.mrb[13].mxu1  ;;  %v7530_v26 = vpop.f32.mrb[14].mxu0 }
 0x552   :  { %vm7701_vm12 = vcmp.gt.f32.partialorder %v8816_v50, 0.0  ;;  %v7709_v43 = vmul.f32 0.01, %v8816_v50  ;;  %v8819_v44 = vadd.f32 %v7692_v23, %v4472_v40  ;;  %v7694_v25 = vpop.f32.mrb[14].mxu1  ;;  %v7531_v45 = vpop.f32.mrb[15].mxu0 }
 0x553   :  { %vm7703_vm13 = vcmp.gt.f32.partialorder %v8818_v42, 0.0  ;;  %v7711_v1 = vmul.f32 0.01, %v8818_v42  ;;  %vm7702_vm14 = vcmp.gt.f32.partialorder %v8817_v31, 0.0  ;;  %v7710_v47 = vmul.f32 0.01, %v8817_v31 }
 0x554   :  { %v7717_v32 = vsel %vm7701_vm12, %v8816_v50, %v7709_v43  ;;  %vm7704_vm15 = vcmp.gt.f32.partialorder %v8819_v44, 0.0  ;;  %v7712_v28 = vmul.f32 0.01, %v8819_v44  ;;  %v7695_v13 = vpop.f32.mrb[15].mxu1 }
 0x555   :  { %v7725_v46 = vadd.f32 %v7717_v32, %v9243_v61  ;;  %v7719_v48 = vsel %vm7703_vm13, %v8818_v42, %v7711_v1  ;;  %v7718_v53 = vsel %vm7702_vm14, %v8817_v31, %v7710_v47 }
 0x556   :  { %v7727_v51 = vadd.f32 %v7719_v48, %v9267_v12  ;;  %v7726_v63 = vadd.f32 %v7718_v53, %v9227_v39  ;;  %v7720_v18 = vsel %vm7704_vm15, %v8819_v44, %v7712_v28 }
 0x557   :  { %v7728_v49 = vadd.f32 %v7720_v18, %v9251_v7 }
 0x558   :  { %v7741_v9 = vcombine.low %v7725_v46, %v7726_v63  ;;  %v7742_v60 = vcombine.high %v7725_v46, %v7726_v63 }
 0x559   :  { %v7743_v52 = vcombine.low %v7727_v51, %v7728_v49  ;;  %v7744_v56 = vcombine.high %v7727_v51, %v7728_v49 }
 0x55a   :  { %7755 = vst [vmem:[#allocation11 + $0x10] sm:$0xff] %v7741_v9  ;;  %7759 = vst [vmem:[#allocation11 + $0x30] sm:$0xff] %v7742_v60 }
 0x55b   :  { %7756 = vst [vmem:[#allocation11 + $0x18] sm:$0xff] %v7743_v52  ;;  %7760 = vst [vmem:[#allocation11 + $0x38] sm:$0xff] %v7744_v56 }
 0x55c   :  { %7765 = vsyncadd [#allocation4], 512  ;;  %s9072_s4 = smov [#allocation11]  }
 0x55d   :  { %s7766_s29 = sshll.u32 %s9072_s4, 4  ;;  %s7767_s29 = int_to_ptr.vmem [resolvable:$true] %s7766_s29 }
 0x55e   :  { %s9035_s3 = scalar_lea.vmem %s7767_s29, 512  ;;  %s9039_s21 = scalar_lea.vmem %s7767_s29, 1024 }
 0x55f   :  { %p9036_p12 = scmp.ne.s32.totalorder %s7767_s29, %s9035_s3  ;;  %p9040_p13 = scmp.lt.s32.totalorder %s7767_s29, %s7767_s29 }
 0x560   :  { %p9041_p0 = scmp.lt.s32.totalorder %s9039_s21, %s9035_s3 }
 0x562   :  { %p9042_p1 = por %p9041_p0, %p9040_p13 }
 0x564   :  { %p9043_p2 = pnand %p9042_p1, %p9036_p12 }
 0x566   :  { %9046 = shalt.err (!%p9043_p2)
}
 0x567   :  { %s9047_s9 = scalar_lea.hbm %s9458_s5, 512 }
 0x568   :  { %p9048_p3 = scmp.ne.s32.totalorder %s9458_s5, %s9047_s9  ;;  %p9051_p4 = scmp.lt.u32.totalorder %s9047_s9, %s9458_s5 }
 0x56a   :  { %p9053_p5 = pnand %p9051_p4, %p9048_p3 }
 0x56c   :  { %9056 = shalt.err (!%p9053_p5)
}
 0x56d   :  { %7772 = dma.vmem_to_hbm [thread:$0]  %s7767_s29, 512, %s9458_s5, [#allocation4], %s9067_s30, %s9067_s30, %s9068_s6  }
 0x56e   :  { %9063 = dma.done.wait [#allocation4], 1024  }
 0x56f   :  { %9064 = vsyncadd [#allocation4], 4294966272 }
 0x570   :  { %7776 = vsyncpa [#allocation3], 1 }
 0x571   :  { %7777 = vsyncpa [#allocation6], 1 }
 0x572   :  { %7778 = vsyncpa [#allocation9], 1 }
 0x573   :  { %7779 = vsyncpa [#allocation4], 1 }

// kernel: _res_block_call.1
= control target key start
LH: loop header
LB: loop body
LE: loop exit
PB: predicated region body
PF: predicated region fallthrough
CT: control target
= control target key end

     0   :  { %10 = vsyncpa [#allocation3], 0  ;;  %s9453_s0 = inlined_call_operand.hbm [shape: f32[4,1024], index: 0, kind: input, shape index: {}]   ;;  %s9454_s1 = inlined_call_operand.hbm [shape: bf16[1024,1024], index: 1, kind: input, shape index: {}]   ;;  %s9455_s2 = inlined_call_operand.hbm [shape: f32[1,1024], index: 2, kind: input, shape index: {}]   ;;  %s9456_s3 = inlined_call_operand.hbm [shape: bf16[1024,1024], index: 3, kind: input, shape index: {}]   ;;  %s9457_s4 = inlined_call_operand.hbm [shape: f32[1,1024], index: 4, kind: input, shape index: {}]   ;;  %s9458_s5 = inlined_call_operand.hbm [shape: f32[4,1024], index: 5, kind: output, shape index: {}]  }
   0x1   :  { %11 = vsyncpa [#allocation6], 0 }
   0x2   :  { %12 = vsyncpa [#allocation9], 0 }
   0x3   :  { %13 = vsyncpa [#allocation4], 0 }
   0x4   :  { %18 = vsyncadd [#allocation3], 512  ;;  %s9065_s18 = smov [#allocation5]   ;;  %s9066_s20 = smov [#allocation8]  }
   0x5   :  { %s31_s19 = sshll.u32 %s9065_s18, 4  ;;  %s53_s21 = sshll.u32 %s9066_s20, 4  ;;  %s32_s19 = int_to_ptr.vmem [resolvable:$true] %s31_s19  ;;  %s9103_s21 = int_to_ptr.vmem [resolvable:$true] %s53_s21 }
   0x6   :  { %s8925_s24 = scalar_lea.hbm %s9454_s1, 65536 }
   0x7   :  { %p8926_p0 = scmp.ne.s32.totalorder %s9454_s1, %s8925_s24  ;;  %p8929_p1 = scmp.lt.u32.totalorder %s8925_s24, %s9454_s1 }
   0x9   :  { %p8931_p2 = pnand %p8929_p1, %p8926_p0 }
   0xb   :  { %8934 = shalt.err (!%p8931_p2)
}
   0xc   :  { %s8935_s29 = scalar_lea.vmem %s32_s19, 65536  ;;  %p8940_p4 = scmp.lt.s32.totalorder %s32_s19, %s32_s19 }
   0xd   :  { %p8936_p3 = scmp.ne.s32.totalorder %s32_s19, %s8935_s29  ;;  %p8941_p5 = scmp.lt.s32.totalorder %s8935_s29, %s8935_s29 }
   0xf   :  { %p8942_p6 = por %p8941_p5, %p8940_p4 }
  0x11   :  { %p8943_p7 = pnand %p8942_p6, %p8936_p3 }
  0x13   :  { %8946 = shalt.err (!%p8943_p7)
}
  0x14   :  { %s9067_s30 = smov 512   ;;  %s9068_s6 = smov 32  }
  0x15   :  { %37 = dma.hbm_to_vmem [thread:$0]  %s9454_s1, 65536, %s32_s19, [#allocation6], %s9067_s30, %s9067_s30, %s9068_s6  }
  0x16   :  { %s8947_s11 = scalar_lea.hbm %s9456_s3, 65536 }
  0x17   :  { %p8948_p8 = scmp.ne.s32.totalorder %s9456_s3, %s8947_s11  ;;  %p8951_p9 = scmp.lt.u32.totalorder %s8947_s11, %s9456_s3 }
  0x19   :  { %p8953_p10 = pnand %p8951_p9, %p8948_p8 }
  0x1b   :  { %8956 = shalt.err (!%p8953_p10)
}
  0x1c   :  { %s8957_s16 = scalar_lea.vmem %s9103_s21, 65536  ;;  %p8962_p12 = scmp.lt.s32.totalorder %s9103_s21, %s9103_s21 }
  0x1d   :  { %p8958_p11 = scmp.ne.s32.totalorder %s9103_s21, %s8957_s16  ;;  %p8963_p13 = scmp.lt.s32.totalorder %s8957_s16, %s8957_s16 }
  0x1f   :  { %p8964_p0 = por %p8963_p13, %p8962_p12 }
  0x21   :  { %p8965_p1 = pnand %p8964_p0, %p8958_p11 }
  0x23   :  { %8968 = shalt.err (!%p8965_p1)
}
  0x24   :  { %59 = dma.hbm_to_vmem [thread:$0]  %s9456_s3, 65536, %s9103_s21, [#allocation9], %s9067_s30, %s9067_s30, %s9068_s6  }
  0x25   :  { %s9069_s18 = smov [#allocation2]   ;;  %s9070_s20 = smov [#allocation7]  }
  0x26   :  { %s19_s19 = sshll.u32 %s9069_s18, 4  ;;  %s44_s22 = sshll.u32 %s9070_s20, 4  ;;  %s20_s19 = int_to_ptr.vmem [resolvable:$true] %s19_s19  ;;  %s45_s22 = int_to_ptr.vmem [resolvable:$true] %s44_s22 }
  0x27   :  { %s8969_s25 = scalar_lea.hbm %s9453_s0, 512 }
  0x28   :  { %p8970_p2 = scmp.ne.s32.totalorder %s9453_s0, %s8969_s25  ;;  %p8973_p3 = scmp.lt.u32.totalorder %s8969_s25, %s9453_s0 }
  0x2a   :  { %p8975_p4 = pnand %p8973_p3, %p8970_p2 }
  0x2c   :  { %8978 = shalt.err (!%p8975_p4)
}
  0x2d   :  { %s8979_s3 = scalar_lea.vmem %s20_s19, 512  ;;  %s8983_s21 = scalar_lea.vmem %s20_s19, 1024 }
  0x2e   :  { %p8980_p5 = scmp.ne.s32.totalorder %s20_s19, %s8979_s3  ;;  %p8984_p6 = scmp.lt.s32.totalorder %s20_s19, %s20_s19 }
  0x2f   :  { %p8985_p7 = scmp.lt.s32.totalorder %s8983_s21, %s8979_s3 }
  0x31   :  { %p8986_p8 = por %p8985_p7, %p8984_p6 }
  0x33   :  { %p8987_p9 = pnand %p8986_p8, %p8980_p5 }
  0x35   :  { %8990 = shalt.err (!%p8987_p9)
}
  0x36   :  { %25 = dma.hbm_to_vmem [thread:$0]  %s9453_s0, 512, %s20_s19, [#allocation3], %s9067_s30, %s9067_s30, %s9068_s6  }
  0x37   :  { %s8991_s11 = scalar_lea.hbm %s9455_s2, 128 }
  0x38   :  { %p8992_p10 = scmp.ne.s32.totalorder %s9455_s2, %s8991_s11  ;;  %p8995_p11 = scmp.lt.u32.totalorder %s8991_s11, %s9455_s2 }
  0x3a   :  { %p8997_p12 = pnand %p8995_p11, %p8992_p10 }
  0x3c   :  { %9000 = shalt.err (!%p8997_p12)
}
  0x3d   :  { %s9001_s16 = scalar_lea.vmem %s45_s22, 128  ;;  %p9006_p0 = scmp.lt.s32.totalorder %s45_s22, %s45_s22 }
  0x3e   :  { %p9002_p13 = scmp.ne.s32.totalorder %s45_s22, %s9001_s16  ;;  %p9007_p1 = scmp.lt.s32.totalorder %s9001_s16, %s9001_s16 }
  0x40   :  { %p9008_p2 = por %p9007_p1, %p9006_p0 }
  0x42   :  { %p9009_p3 = pnand %p9008_p2, %p9002_p13 }
  0x44   :  { %9012 = shalt.err (!%p9009_p3)
}
  0x45   :  { %47 = dma.hbm_to_vmem [thread:$0]  %s9455_s2, 128, %s45_s22, [#allocation6]  }
  0x46   :  { %s9071_s17 = smov [#allocation10]   ;;  %s9013_s23 = scalar_lea.hbm %s9457_s4, 128 }
  0x47   :  { %s66_s18 = sshll.u32 %s9071_s17, 4  ;;  %p9014_p4 = scmp.ne.s32.totalorder %s9457_s4, %s9013_s23  ;;  %s67_s18 = int_to_ptr.vmem [resolvable:$true] %s66_s18 }
  0x48   :  { %p9017_p5 = scmp.lt.u32.totalorder %s9013_s23, %s9457_s4 }
  0x4a   :  { %p9019_p6 = pnand %p9017_p5, %p9014_p4 }
  0x4c   :  { %9022 = shalt.err (!%p9019_p6)
}
  0x4d   :  { %s9023_s28 = scalar_lea.vmem %s67_s18, 128  ;;  %p9028_p8 = scmp.lt.s32.totalorder %s67_s18, %s67_s18 }
  0x4e   :  { %p9024_p7 = scmp.ne.s32.totalorder %s67_s18, %s9023_s28  ;;  %p9029_p9 = scmp.lt.s32.totalorder %s9023_s28, %s9023_s28 }
  0x50   :  { %p9030_p10 = por %p9029_p9, %p9028_p8 }
  0x52   :  { %p9031_p11 = pnand %p9030_p10, %p9024_p7 }
  0x54   :  { %9034 = shalt.err (!%p9031_p11)
}
  0x55   :  { %69 = dma.hbm_to_vmem [thread:$0]  %s9457_s4, 128, %s67_s18, [#allocation9]  }
  0x56   :  { %9057 = dma.done.wait [#allocation3], 1024  }
  0x57   :  { %9058 = vsyncadd [#allocation3], 4294966272 }
  0x58   :  { %9059 = dma.done.wait [#allocation6], 65664  }
  0x59   :  { %9060 = vsyncadd [#allocation6], 4294901632 }
  0x5a   :  { %9061 = dma.done.wait [#allocation9], 65664  }
  0x5b   :  { %9062 = vsyncadd [#allocation9], 4294901632  ;;  %v125_v0 = vld [vmem:[#allocation5] sm:$0xff]  ;;  %v126_v2 = vld [vmem:[#allocation5 + $0x8] sm:$0xff] }
  0x5c   :  { %v129_v1 = vld [vmem:[#allocation5 + $0x20] sm:$0xff]  ;;  %v130_v4 = vld [vmem:[#allocation5 + $0x28] sm:$0xff] }
  0x5d   :  { %v7781_v3 = vcombine.high %v125_v0, %v129_v1  ;;  %v7780_v5 = vcombine.low %v125_v0, %v129_v1  ;;  %v133_v6 = vld [vmem:[#allocation5 + $0x40] sm:$0xff]  ;;  %v7783_v8 = vcombine.high %v126_v2, %v130_v4  ;;  %v7782_v9 = vcombine.low %v126_v2, %v130_v4  ;;  %v134_v11 = vld [vmem:[#allocation5 + $0x48] sm:$0xff] }
  0x5e   :  { %v137_v7 = vld [vmem:[#allocation5 + $0x60] sm:$0xff]  ;;  %v138_v12 = vld [vmem:[#allocation5 + $0x68] sm:$0xff] }
  0x5f   :  { %v7789_v10 = vcombine.high %v133_v6, %v137_v7  ;;  %v141_v13 = vld [vmem:[#allocation5 + $0x80] sm:$0xff]  ;;  %3239 = vmatprep.subr.bf16.mxu0 %v7781_v3  ;;  %v7791_v14 = vcombine.high %v134_v11, %v138_v12  ;;  %v142_v16 = vld [vmem:[#allocation5 + $0x88] sm:$0xff]  ;;  %3403 = vmatprep.subr.bf16.mxu1 %v7783_v8  ;;  %v7788_v18 = vcombine.low %v133_v6, %v137_v7 }
  0x60   :  { %v145_v15 = vld [vmem:[#allocation5 + $0xa0] sm:$0xff]  ;;  %v146_v17 = vld [vmem:[#allocation5 + $0xa8] sm:$0xff]  ;;  %3240 = vmatpush1.bf16.msra.mxu0 %v7780_v5  ;;  %3404 = vmatpush1.bf16.msra.mxu1 %v7782_v9  ;;  %v7790_v19 = vcombine.low %v134_v11, %v138_v12 }
  0x61   :  { %3241 = vmatprep.subr.bf16.mxu0 %v7789_v10  ;;  %v7797_v20 = vcombine.high %v141_v13, %v145_v15  ;;  %3405 = vmatprep.subr.bf16.mxu1 %v7791_v14  ;;  %v7799_v21 = vcombine.high %v142_v16, %v146_v17  ;;  %v149_v22 = vld [vmem:[#allocation5 + $0xc0] sm:$0xff]  ;;  %v150_v24 = vld [vmem:[#allocation5 + $0xc8] sm:$0xff]  ;;  %v7796_v26 = vcombine.low %v141_v13, %v145_v15 }
  0x62   :  { %v153_v23 = vld [vmem:[#allocation5 + $0xe0] sm:$0xff]  ;;  %v154_v25 = vld [vmem:[#allocation5 + $0xe8] sm:$0xff]  ;;  %v7798_v27 = vcombine.low %v142_v16, %v146_v17 }
  0x63   :  { %v7805_v28 = vcombine.high %v149_v22, %v153_v23  ;;  %v7807_v29 = vcombine.high %v150_v24, %v154_v25  ;;  %v157_v30 = vld [vmem:[#allocation5 + $0x100] sm:$0xff]  ;;  %v158_v32 = vld [vmem:[#allocation5 + $0x108] sm:$0xff]  ;;  %v7804_v34 = vcombine.low %v149_v22, %v153_v23  ;;  %v7806_v35 = vcombine.low %v150_v24, %v154_v25 }
  0x64   :  { %3242 = vmatpush1.bf16.msra.mxu0 %v7788_v18  ;;  %3406 = vmatpush1.bf16.msra.mxu1 %v7790_v19  ;;  %v161_v31 = vld [vmem:[#allocation5 + $0x120] sm:$0xff]  ;;  %v162_v33 = vld [vmem:[#allocation5 + $0x128] sm:$0xff] }
  0x65   :  { %3243 = vmatprep.subr.bf16.mxu0 %v7797_v20  ;;  %3407 = vmatprep.subr.bf16.mxu1 %v7799_v21  ;;  %v7813_v36 = vcombine.high %v157_v30, %v161_v31  ;;  %v7815_v37 = vcombine.high %v158_v32, %v162_v33  ;;  %v165_v38 = vld [vmem:[#allocation5 + $0x140] sm:$0xff]  ;;  %v166_v40 = vld [vmem:[#allocation5 + $0x148] sm:$0xff]  ;;  %v7812_v42 = vcombine.low %v157_v30, %v161_v31 }
  0x66   :  { %v169_v39 = vld [vmem:[#allocation5 + $0x160] sm:$0xff]  ;;  %v170_v41 = vld [vmem:[#allocation5 + $0x168] sm:$0xff]  ;;  %v7814_v43 = vcombine.low %v158_v32, %v162_v33 }
  0x67   :  { %v7821_v44 = vcombine.high %v165_v38, %v169_v39  ;;  %v7823_v45 = vcombine.high %v166_v40, %v170_v41  ;;  %v173_v46 = vld [vmem:[#allocation5 + $0x180] sm:$0xff]  ;;  %v174_v48 = vld [vmem:[#allocation5 + $0x188] sm:$0xff]  ;;  %v7820_v50 = vcombine.low %v165_v38, %v169_v39  ;;  %v7822_v51 = vcombine.low %v166_v40, %v170_v41 }
  0x68   :  { %3244 = vmatpush1.bf16.msra.mxu0 %v7796_v26  ;;  %3408 = vmatpush1.bf16.msra.mxu1 %v7798_v27  ;;  %v177_v47 = vld [vmem:[#allocation5 + $0x1a0] sm:$0xff]  ;;  %v178_v49 = vld [vmem:[#allocation5 + $0x1a8] sm:$0xff] }
  0x69   :  { %3245 = vmatprep.subr.bf16.mxu0 %v7805_v28  ;;  %3409 = vmatprep.subr.bf16.mxu1 %v7807_v29  ;;  %v7829_v52 = vcombine.high %v173_v46, %v177_v47  ;;  %v9179_v53 = vld [vmem:[#allocation2] sm:$0xff]  ;;  %v7831_v55 = vcombine.high %v174_v48, %v178_v49  ;;  %v182_v59 = vld [vmem:[#allocation5 + $0x1c8] sm:$0xff]  ;;  %v7828_v61 = vcombine.low %v173_v46, %v177_v47 }
  0x6a   :  { %v9181_v54 = vld [vmem:[#allocation2 + $0x20] sm:$0xff]  ;;  %v186_v60 = vld [vmem:[#allocation5 + $0x1e8] sm:$0xff]  ;;  %v7830_v63 = vcombine.low %v174_v48, %v178_v49 }
  0x6b   :  { %v181_v56 = vld [vmem:[#allocation5 + $0x1c0] sm:$0xff]  ;;  %v9185_v58 = vcombine.high %v9179_v53, %v9181_v54  ;;  %v7839_v1 = vcombine.high %v182_v59, %v186_v60  ;;  %v190_v4 = vld [vmem:[#allocation5 + $0x208] sm:$0xff]  ;;  %v7838_v7 = vcombine.low %v182_v59, %v186_v60 }
  0x6c   :  { %3246 = vmatpush1.bf16.msra.mxu0 %v7804_v34  ;;  %3410 = vmatpush1.bf16.msra.mxu1 %v7806_v35  ;;  %v185_v57 = vld [vmem:[#allocation5 + $0x1e0] sm:$0xff]  ;;  %v194_v5 = vld [vmem:[#allocation5 + $0x228] sm:$0xff] }
  0x6d   :  { %3247 = vmatprep.subr.bf16.mxu0 %v7813_v36  ;;  %3411 = vmatprep.subr.bf16.mxu1 %v7815_v37  ;;  %v9189_v62 = vpack.c.bf16 %v9185_v58, %v9185_v58  ;;  %v7837_v0 = vcombine.high %v181_v56, %v185_v57  ;;  %v189_v2 = vld [vmem:[#allocation5 + $0x200] sm:$0xff]  ;;  %v7836_v6 = vcombine.low %v181_v56, %v185_v57  ;;  %v198_v12 = vld [vmem:[#allocation5 + $0x248] sm:$0xff] }
  0x6e   :  { %v193_v3 = vld [vmem:[#allocation5 + $0x220] sm:$0xff]  ;;  %v7847_v9 = vcombine.high %v190_v4, %v194_v5  ;;  %v202_v13 = vld [vmem:[#allocation5 + $0x268] sm:$0xff]  ;;  %v7846_v15 = vcombine.low %v190_v4, %v194_v5 }
  0x6f   :  { %3271 = vmatprep.mubr.bf16.mxu0 %v9189_v62  ;;  %3435 = vmatprep.mubr.bf16.mxu1 %v9189_v62  ;;  %v7845_v8 = vcombine.high %v189_v2, %v193_v3  ;;  %v197_v10 = vld [vmem:[#allocation5 + $0x240] sm:$0xff]  ;;  %v7844_v14 = vcombine.low %v189_v2, %v193_v3  ;;  %v7855_v17 = vcombine.high %v198_v12, %v202_v13  ;;  %v206_v20 = vld [vmem:[#allocation5 + $0x288] sm:$0xff] }
  0x70   :  { %3248 = vmatpush1.bf16.msra.mxu0 %v7812_v42  ;;  %3412 = vmatpush1.bf16.msra.mxu1 %v7814_v43  ;;  %v201_v11 = vld [vmem:[#allocation5 + $0x260] sm:$0xff]  ;;  %v210_v21 = vld [vmem:[#allocation5 + $0x2a8] sm:$0xff]  ;;  %v7854_v23 = vcombine.low %v198_v12, %v202_v13 }
  0x71   :  { %3249 = vmatprep.subr.bf16.mxu0 %v7821_v44  ;;  %3413 = vmatprep.subr.bf16.mxu1 %v7823_v45  ;;  %v7853_v16 = vcombine.high %v197_v10, %v201_v11  ;;  %v205_v18 = vld [vmem:[#allocation5 + $0x280] sm:$0xff]  ;;  %v7852_v22 = vcombine.low %v197_v10, %v201_v11  ;;  %v7863_v25 = vcombine.high %v206_v20, %v210_v21  ;;  %v214_v28 = vld [vmem:[#allocation5 + $0x2c8] sm:$0xff] }
  0x72   :  { %v209_v19 = vld [vmem:[#allocation5 + $0x2a0] sm:$0xff]  ;;  %v218_v29 = vld [vmem:[#allocation5 + $0x2e8] sm:$0xff]  ;;  %v7862_v31 = vcombine.low %v206_v20, %v210_v21  ;;  %v9195_v10 = vcombine.low %v9179_v53, %v9181_v54 }
  0x73   :  { %v7861_v24 = vcombine.high %v205_v18, %v209_v19  ;;  %v213_v26 = vld [vmem:[#allocation5 + $0x2c0] sm:$0xff]  ;;  %v7860_v30 = vcombine.low %v205_v18, %v209_v19  ;;  %v7871_v33 = vcombine.high %v214_v28, %v218_v29  ;;  %v222_v36 = vld [vmem:[#allocation5 + $0x308] sm:$0xff]  ;;  %v7870_v39 = vcombine.low %v214_v28, %v218_v29 }
  0x74   :  { %3250 = vmatpush1.bf16.msra.mxu0 %v7820_v50  ;;  %3414 = vmatpush1.bf16.msra.mxu1 %v7822_v51  ;;  %v217_v27 = vld [vmem:[#allocation5 + $0x2e0] sm:$0xff]  ;;  %v226_v37 = vld [vmem:[#allocation5 + $0x328] sm:$0xff]  ;;  %v9207_v53 = vpack.c.bf16 %v9195_v10, %v9195_v10 }
  0x75   :  { %3251 = vmatprep.subr.bf16.mxu0 %v7829_v52  ;;  %3415 = vmatprep.subr.bf16.mxu1 %v7831_v55  ;;  %v7869_v32 = vcombine.high %v213_v26, %v217_v27  ;;  %v221_v34 = vld [vmem:[#allocation5 + $0x300] sm:$0xff]  ;;  %v7868_v38 = vcombine.low %v213_v26, %v217_v27  ;;  %v7879_v41 = vcombine.high %v222_v36, %v226_v37  ;;  %v230_v44 = vld [vmem:[#allocation5 + $0x348] sm:$0xff] }
  0x76   :  { %v225_v35 = vld [vmem:[#allocation5 + $0x320] sm:$0xff]  ;;  %v234_v45 = vld [vmem:[#allocation5 + $0x368] sm:$0xff]  ;;  %v7878_v47 = vcombine.low %v222_v36, %v226_v37 }
  0x77   :  { %v7877_v40 = vcombine.high %v221_v34, %v225_v35  ;;  %v229_v42 = vld [vmem:[#allocation5 + $0x340] sm:$0xff]  ;;  %v7876_v46 = vcombine.low %v221_v34, %v225_v35  ;;  %v7887_v49 = vcombine.high %v230_v44, %v234_v45  ;;  %v238_v52 = vld [vmem:[#allocation5 + $0x388] sm:$0xff]  ;;  %v7886_v57 = vcombine.low %v230_v44, %v234_v45 }
  0x78   :  { %3252 = vmatpush1.bf16.msra.mxu0 %v7828_v61  ;;  %3416 = vmatpush1.bf16.msra.mxu1 %v7830_v63  ;;  %v233_v43 = vld [vmem:[#allocation5 + $0x360] sm:$0xff]  ;;  %v242_v55 = vld [vmem:[#allocation5 + $0x3a8] sm:$0xff] }
  0x79   :  { %3253 = vmatprep.subr.bf16.mxu0 %v7837_v0  ;;  %3417 = vmatprep.subr.bf16.mxu1 %v7839_v1  ;;  %v7885_v48 = vcombine.high %v229_v42, %v233_v43  ;;  %v237_v50 = vld [vmem:[#allocation5 + $0x380] sm:$0xff]  ;;  %v7884_v56 = vcombine.low %v229_v42, %v233_v43  ;;  %v7895_v60 = vcombine.high %v238_v52, %v242_v55  ;;  %v246_v0 = vld [vmem:[#allocation5 + $0x3c8] sm:$0xff] }
  0x7a   :  { %v241_v51 = vld [vmem:[#allocation5 + $0x3a0] sm:$0xff]  ;;  %v250_v1 = vld [vmem:[#allocation5 + $0x3e8] sm:$0xff]  ;;  %v7894_v3 = vcombine.low %v238_v52, %v242_v55 }
  0x7b   :  { %v7893_v59 = vcombine.high %v237_v50, %v241_v51  ;;  %v245_v61 = vld [vmem:[#allocation5 + $0x3c0] sm:$0xff]  ;;  %v7892_v2 = vcombine.low %v237_v50, %v241_v51  ;;  %v7903_v5 = vcombine.high %v246_v0, %v250_v1  ;;  %v9197_v11 = vld [vmem:[#allocation2 + $0x8] sm:$0xff] }
  0x7c   :  { %3254 = vmatpush1.bf16.msra.mxu0 %v7836_v6  ;;  %3418 = vmatpush1.bf16.msra.mxu1 %v7838_v7  ;;  %v249_v63 = vld [vmem:[#allocation5 + $0x3e0] sm:$0xff]  ;;  %v9199_v12 = vld [vmem:[#allocation2 + $0x28] sm:$0xff] }
  0x7d   :  { %3255 = vmatprep.subr.bf16.mxu0 %v7845_v8  ;;  %3419 = vmatprep.subr.bf16.mxu1 %v7847_v9  ;;  %v7901_v4 = vcombine.high %v245_v61, %v249_v63  ;;  %v253_v6 = vld [vmem:[#allocation5 + $0x400] sm:$0xff]  ;;  %v254_v8 = vld [vmem:[#allocation5 + $0x408] sm:$0xff]  ;;  %v7900_v13 = vcombine.low %v245_v61, %v249_v63  ;;  %v9203_v19 = vcombine.high %v9197_v11, %v9199_v12 }
  0x7e   :  { %v257_v7 = vld [vmem:[#allocation5 + $0x420] sm:$0xff]  ;;  %v258_v9 = vld [vmem:[#allocation5 + $0x428] sm:$0xff] }
  0x7f   :  { %v265_v18 = vld [vmem:[#allocation5 + $0x460] sm:$0xff]  ;;  %v262_v54 = vld [vmem:[#allocation5 + $0x448] sm:$0xff]  ;;  %v7908_v21 = vcombine.low %v253_v6, %v257_v7  ;;  %v9211_v27 = vpack.c.bf16 %v9203_v19, %v9203_v19 }
  0x80   :  { %3256 = vmatpush1.bf16.msra.mxu0 %v7844_v14  ;;  %3420 = vmatpush1.bf16.msra.mxu1 %v7846_v15  ;;  %v7902_v14 = vcombine.low %v246_v0, %v250_v1  ;;  %v7909_v15 = vcombine.high %v253_v6, %v257_v7  ;;  %v266_v20 = vld [vmem:[#allocation5 + $0x468] sm:$0xff]  ;;  %v273_v26 = vld [vmem:[#allocation5 + $0x4a0] sm:$0xff] }
  0x81   :  { %3257 = vmatprep.subr.bf16.mxu0 %v7853_v16  ;;  %3421 = vmatprep.subr.bf16.mxu1 %v7855_v17  ;;  %v7911_v16 = vcombine.high %v254_v8, %v258_v9  ;;  %v261_v17 = vld [vmem:[#allocation5 + $0x440] sm:$0xff]  ;;  %v270_v28 = vld [vmem:[#allocation5 + $0x488] sm:$0xff] }
  0x82   :  { %v274_v29 = vld [vmem:[#allocation5 + $0x4a8] sm:$0xff]  ;;  %v277_v34 = vld [vmem:[#allocation5 + $0x4c0] sm:$0xff] }
  0x83   :  { %v281_v35 = vld [vmem:[#allocation5 + $0x4e0] sm:$0xff]  ;;  %v278_v36 = vld [vmem:[#allocation5 + $0x4c8] sm:$0xff] }
  0x84   :  { %3258 = vmatpush1.bf16.msra.mxu0 %v7852_v22  ;;  %3422 = vmatpush1.bf16.msra.mxu1 %v7854_v23  ;;  %v7910_v22 = vcombine.low %v254_v8, %v258_v9  ;;  %v7917_v23 = vcombine.high %v261_v17, %v265_v18  ;;  %v282_v37 = vld [vmem:[#allocation5 + $0x4e8] sm:$0xff]  ;;  %v285_v42 = vld [vmem:[#allocation5 + $0x500] sm:$0xff] }
  0x85   :  { %3259 = vmatprep.subr.bf16.mxu0 %v7861_v24  ;;  %3423 = vmatprep.subr.bf16.mxu1 %v7863_v25  ;;  %v7919_v24 = vcombine.high %v262_v54, %v266_v20  ;;  %v269_v25 = vld [vmem:[#allocation5 + $0x480] sm:$0xff]  ;;  %v286_v44 = vld [vmem:[#allocation5 + $0x508] sm:$0xff] }
  0x86   :  { %v289_v43 = vld [vmem:[#allocation5 + $0x520] sm:$0xff]  ;;  %v290_v45 = vld [vmem:[#allocation5 + $0x528] sm:$0xff] }
  0x87   :  { %v293_v50 = vld [vmem:[#allocation5 + $0x540] sm:$0xff]  ;;  %v294_v52 = vld [vmem:[#allocation5 + $0x548] sm:$0xff] }
  0x88   :  { %3260 = vmatpush1.bf16.msra.mxu0 %v7860_v30  ;;  %3424 = vmatpush1.bf16.msra.mxu1 %v7862_v31  ;;  %v7916_v30 = vcombine.low %v261_v17, %v265_v18  ;;  %v7918_v31 = vcombine.low %v262_v54, %v266_v20  ;;  %v297_v51 = vld [vmem:[#allocation5 + $0x560] sm:$0xff]  ;;  %v298_v55 = vld [vmem:[#allocation5 + $0x568] sm:$0xff] }
  0x89   :  { %3261 = vmatprep.subr.bf16.mxu0 %v7869_v32  ;;  %3425 = vmatprep.subr.bf16.mxu1 %v7871_v33  ;;  %v7925_v32 = vcombine.high %v269_v25, %v273_v26  ;;  %v7927_v33 = vcombine.high %v270_v28, %v274_v29  ;;  %v301_v61 = vld [vmem:[#allocation5 + $0x580] sm:$0xff]  ;;  %v302_v0 = vld [vmem:[#allocation5 + $0x588] sm:$0xff] }
  0x8a   :  { %v305_v63 = vld [vmem:[#allocation5 + $0x5a0] sm:$0xff]  ;;  %v306_v1 = vld [vmem:[#allocation5 + $0x5a8] sm:$0xff] }
  0x8b   :  { %v309_v6 = vld [vmem:[#allocation5 + $0x5c0] sm:$0xff]  ;;  %v310_v8 = vld [vmem:[#allocation5 + $0x5c8] sm:$0xff] }
  0x8c   :  { %3262 = vmatpush1.bf16.msra.mxu0 %v7868_v38  ;;  %3426 = vmatpush1.bf16.msra.mxu1 %v7870_v39  ;;  %v7924_v38 = vcombine.low %v269_v25, %v273_v26  ;;  %v7926_v39 = vcombine.low %v270_v28, %v274_v29  ;;  %v313_v7 = vld [vmem:[#allocation5 + $0x5e0] sm:$0xff]  ;;  %v314_v9 = vld [vmem:[#allocation5 + $0x5e8] sm:$0xff] }
  0x8d   :  { %3263 = vmatprep.subr.bf16.mxu0 %v7877_v40  ;;  %3427 = vmatprep.subr.bf16.mxu1 %v7879_v41  ;;  %v7933_v40 = vcombine.high %v277_v34, %v281_v35  ;;  %v7935_v41 = vcombine.high %v278_v36, %v282_v37  ;;  %v317_v17 = vld [vmem:[#allocation5 + $0x600] sm:$0xff]  ;;  %v318_v54 = vld [vmem:[#allocation5 + $0x608] sm:$0xff] }
  0x8e   :  { %v321_v18 = vld [vmem:[#allocation5 + $0x620] sm:$0xff]  ;;  %v322_v20 = vld [vmem:[#allocation5 + $0x628] sm:$0xff] }
  0x8f   :  { %v325_v25 = vld [vmem:[#allocation5 + $0x640] sm:$0xff]  ;;  %v326_v28 = vld [vmem:[#allocation5 + $0x648] sm:$0xff] }
  0x90   :  { %3264 = vmatpush1.bf16.msra.mxu0 %v7876_v46  ;;  %3428 = vmatpush1.bf16.msra.mxu1 %v7878_v47  ;;  %v7932_v46 = vcombine.low %v277_v34, %v281_v35  ;;  %v7934_v47 = vcombine.low %v278_v36, %v282_v37  ;;  %v329_v26 = vld [vmem:[#allocation5 + $0x660] sm:$0xff]  ;;  %v330_v29 = vld [vmem:[#allocation5 + $0x668] sm:$0xff] }
  0x91   :  { %3265 = vmatprep.subr.bf16.mxu0 %v7885_v48  ;;  %3429 = vmatprep.subr.bf16.mxu1 %v7887_v49  ;;  %v7941_v48 = vcombine.high %v285_v42, %v289_v43  ;;  %v7943_v49 = vcombine.high %v286_v44, %v290_v45  ;;  %v333_v34 = vld [vmem:[#allocation5 + $0x680] sm:$0xff]  ;;  %v334_v36 = vld [vmem:[#allocation5 + $0x688] sm:$0xff] }
  0x92   :  { %v337_v35 = vld [vmem:[#allocation5 + $0x6a0] sm:$0xff]  ;;  %v338_v37 = vld [vmem:[#allocation5 + $0x6a8] sm:$0xff] }
  0x94   :  { %3266 = vmatpush1.bf16.msra.mxu0 %v7884_v56  ;;  %3430 = vmatpush1.bf16.msra.mxu1 %v7886_v57  ;;  %v7940_v56 = vcombine.low %v285_v42, %v289_v43  ;;  %v7942_v57 = vcombine.low %v286_v44, %v290_v45  ;;  %v341_v42 = vld [vmem:[#allocation5 + $0x6c0] sm:$0xff]  ;;  %v342_v44 = vld [vmem:[#allocation5 + $0x6c8] sm:$0xff] }
  0x95   :  { %3267 = vmatprep.subr.bf16.mxu0 %v7893_v59  ;;  %3431 = vmatprep.subr.bf16.mxu1 %v7895_v60  ;;  %v7949_v59 = vcombine.high %v293_v50, %v297_v51  ;;  %v7951_v60 = vcombine.high %v294_v52, %v298_v55  ;;  %v345_v43 = vld [vmem:[#allocation5 + $0x6e0] sm:$0xff]  ;;  %v346_v45 = vld [vmem:[#allocation5 + $0x6e8] sm:$0xff] }
  0x98   :  { %3268 = vmatpush1.bf16.msra.mxu0 %v7892_v2  ;;  %3432 = vmatpush1.bf16.msra.mxu1 %v7894_v3  ;;  %v7948_v2 = vcombine.low %v293_v50, %v297_v51  ;;  %v7950_v3 = vcombine.low %v294_v52, %v298_v55  ;;  %v349_v50 = vld [vmem:[#allocation5 + $0x700] sm:$0xff]  ;;  %v350_v52 = vld [vmem:[#allocation5 + $0x708] sm:$0xff] }
  0x99   :  { %3269 = vmatprep.subr.bf16.mxu0 %v7901_v4  ;;  %3433 = vmatprep.subr.bf16.mxu1 %v7903_v5  ;;  %v7957_v4 = vcombine.high %v301_v61, %v305_v63  ;;  %v7959_v5 = vcombine.high %v302_v0, %v306_v1  ;;  %v353_v51 = vld [vmem:[#allocation5 + $0x720] sm:$0xff]  ;;  %v354_v55 = vld [vmem:[#allocation5 + $0x728] sm:$0xff] }
  0x9c   :  { %3270 = vmatpush1.bf16.msra.mxu0 %v7900_v13  ;;  %3434 = vmatpush1.bf16.msra.mxu1 %v7902_v14  ;;  %v7956_v13 = vcombine.low %v301_v61, %v305_v63  ;;  %v7958_v14 = vcombine.low %v302_v0, %v306_v1  ;;  %v357_v61 = vld [vmem:[#allocation5 + $0x740] sm:$0xff]  ;;  %v358_v0 = vld [vmem:[#allocation5 + $0x748] sm:$0xff] }
  0x9d   :  { %3280 = vmatprep.subr.bf16.mxu0 %v7909_v15  ;;  %3444 = vmatprep.subr.bf16.mxu1 %v7911_v16  ;;  %v7965_v15 = vcombine.high %v309_v6, %v313_v7  ;;  %v7967_v16 = vcombine.high %v310_v8, %v314_v9  ;;  %v361_v63 = vld [vmem:[#allocation5 + $0x760] sm:$0xff]  ;;  %v362_v1 = vld [vmem:[#allocation5 + $0x768] sm:$0xff] }
  0x9f   :  { %3272 = vmatmul.mubr.bf16.vlgmr.msra.gmra.mrb[0].mxu0 %v9207_v53  ;;  %3436 = vmatmul.mubr.bf16.vlgmr.msra.gmra.mrb[0].mxu1 %v9207_v53 }
  0xa0   :  { %3281 = vmatpush1.bf16.msra.mxu0 %v7908_v21  ;;  %3445 = vmatpush1.bf16.msra.mxu1 %v7910_v22  ;;  %v7964_v21 = vcombine.low %v309_v6, %v313_v7  ;;  %v7966_v22 = vcombine.low %v310_v8, %v314_v9  ;;  %v365_v6 = vld [vmem:[#allocation5 + $0x780] sm:$0xff]  ;;  %v366_v8 = vld [vmem:[#allocation5 + $0x788] sm:$0xff] }
  0xa1   :  { %3282 = vmatprep.subr.bf16.mxu0 %v7917_v23  ;;  %3446 = vmatprep.subr.bf16.mxu1 %v7919_v24  ;;  %v7973_v23 = vcombine.high %v317_v17, %v321_v18  ;;  %v7975_v24 = vcombine.high %v318_v54, %v322_v20  ;;  %v369_v7 = vld [vmem:[#allocation5 + $0x7a0] sm:$0xff]  ;;  %v370_v9 = vld [vmem:[#allocation5 + $0x7a8] sm:$0xff] }
  0xa2   :  { %3312 = vmatprep.mubr.bf16.mxu0 %v9211_v27  ;;  %3476 = vmatprep.mubr.bf16.mxu1 %v9211_v27 }
  0xa4   :  { %3283 = vmatpush1.bf16.msra.mxu0 %v7916_v30  ;;  %3447 = vmatpush1.bf16.msra.mxu1 %v7918_v31  ;;  %v7972_v30 = vcombine.low %v317_v17, %v321_v18  ;;  %v7974_v31 = vcombine.low %v318_v54, %v322_v20  ;;  %v373_v17 = vld [vmem:[#allocation5 + $0x7c0] sm:$0xff]  ;;  %v374_v54 = vld [vmem:[#allocation5 + $0x7c8] sm:$0xff] }
  0xa5   :  { %3284 = vmatprep.subr.bf16.mxu0 %v7925_v32  ;;  %3448 = vmatprep.subr.bf16.mxu1 %v7927_v33  ;;  %v7981_v32 = vcombine.high %v325_v25, %v329_v26  ;;  %v7983_v33 = vcombine.high %v326_v28, %v330_v29  ;;  %v377_v18 = vld [vmem:[#allocation5 + $0x7e0] sm:$0xff]  ;;  %v378_v20 = vld [vmem:[#allocation5 + $0x7e8] sm:$0xff] }
  0xa8   :  { %3285 = vmatpush1.bf16.msra.mxu0 %v7924_v38  ;;  %3449 = vmatpush1.bf16.msra.mxu1 %v7926_v39  ;;  %v7980_v38 = vcombine.low %v325_v25, %v329_v26  ;;  %v7982_v39 = vcombine.low %v326_v28, %v330_v29  ;;  %v381_v25 = vld [vmem:[#allocation5 + $0x800] sm:$0xff]  ;;  %v382_v28 = vld [vmem:[#allocation5 + $0x808] sm:$0xff] }
  0xa9   :  { %3286 = vmatprep.subr.bf16.mxu0 %v7933_v40  ;;  %3450 = vmatprep.subr.bf16.mxu1 %v7935_v41  ;;  %v7989_v40 = vcombine.high %v333_v34, %v337_v35  ;;  %v7991_v41 = vcombine.high %v334_v36, %v338_v37  ;;  %v385_v26 = vld [vmem:[#allocation5 + $0x820] sm:$0xff]  ;;  %v386_v29 = vld [vmem:[#allocation5 + $0x828] sm:$0xff] }
  0xac   :  { %3287 = vmatpush1.bf16.msra.mxu0 %v7932_v46  ;;  %3451 = vmatpush1.bf16.msra.mxu1 %v7934_v47  ;;  %v7988_v46 = vcombine.low %v333_v34, %v337_v35  ;;  %v7990_v47 = vcombine.low %v334_v36, %v338_v37  ;;  %v8030_v34 = vcombine.low %v374_v54, %v378_v20  ;;  %v389_v37 = vld [vmem:[#allocation5 + $0x840] sm:$0xff] }
  0xad   :  { %3288 = vmatprep.subr.bf16.mxu0 %v7941_v48  ;;  %3452 = vmatprep.subr.bf16.mxu1 %v7943_v49  ;;  %v7997_v48 = vcombine.high %v341_v42, %v345_v43  ;;  %v7999_v49 = vcombine.high %v342_v44, %v346_v45  ;;  %v8037_v35 = vcombine.high %v381_v25, %v385_v26 }
  0xae   :  { %v8039_v36 = vcombine.high %v382_v28, %v386_v29 }
  0xb0   :  { %3289 = vmatpush1.bf16.msra.mxu0 %v7940_v56  ;;  %3453 = vmatpush1.bf16.msra.mxu1 %v7942_v57  ;;  %v7996_v56 = vcombine.low %v341_v42, %v345_v43  ;;  %v7998_v57 = vcombine.low %v342_v44, %v346_v45  ;;  %v8038_v42 = vcombine.low %v382_v28, %v386_v29  ;;  %v397_v45 = vld [vmem:[#allocation5 + $0x880] sm:$0xff] }
  0xb1   :  { %3290 = vmatprep.subr.bf16.mxu0 %v7949_v59  ;;  %3454 = vmatprep.subr.bf16.mxu1 %v7951_v60  ;;  %v8005_v59 = vcombine.high %v349_v50, %v353_v51  ;;  %v8007_v60 = vcombine.high %v350_v52, %v354_v55 }
  0xb4   :  { %3291 = vmatpush1.bf16.msra.mxu0 %v7948_v2  ;;  %3455 = vmatpush1.bf16.msra.mxu1 %v7950_v3  ;;  %v8004_v2 = vcombine.low %v349_v50, %v353_v51  ;;  %v8006_v3 = vcombine.low %v350_v52, %v354_v55 }
  0xb5   :  { %3292 = vmatprep.subr.bf16.mxu0 %v7957_v4  ;;  %3456 = vmatprep.subr.bf16.mxu1 %v7959_v5  ;;  %v8013_v4 = vcombine.high %v357_v61, %v361_v63  ;;  %v8015_v5 = vcombine.high %v358_v0, %v362_v1 }
  0xb8   :  { %3293 = vmatpush1.bf16.msra.mxu0 %v7956_v13  ;;  %3457 = vmatpush1.bf16.msra.mxu1 %v7958_v14  ;;  %v8012_v13 = vcombine.low %v357_v61, %v361_v63  ;;  %v8014_v14 = vcombine.low %v358_v0, %v362_v1 }
  0xb9   :  { %3294 = vmatprep.subr.bf16.mxu0 %v7965_v15  ;;  %3458 = vmatprep.subr.bf16.mxu1 %v7967_v16  ;;  %v8021_v15 = vcombine.high %v365_v6, %v369_v7  ;;  %v8023_v16 = vcombine.high %v366_v8, %v370_v9 }
  0xbc   :  { %3295 = vmatpush1.bf16.msra.mxu0 %v7964_v21  ;;  %3459 = vmatpush1.bf16.msra.mxu1 %v7966_v22  ;;  %v8020_v21 = vcombine.low %v365_v6, %v369_v7  ;;  %v8022_v22 = vcombine.low %v366_v8, %v370_v9 }
  0xbd   :  { %3296 = vmatprep.subr.bf16.mxu0 %v7973_v23  ;;  %3460 = vmatprep.subr.bf16.mxu1 %v7975_v24  ;;  %v8029_v23 = vcombine.high %v373_v17, %v377_v18  ;;  %v8031_v24 = vcombine.high %v374_v54, %v378_v20 }
  0xc0   :  { %3297 = vmatpush1.bf16.msra.mxu0 %v7972_v30  ;;  %3461 = vmatpush1.bf16.msra.mxu1 %v7974_v31  ;;  %v9219_v30 = vcombine.low %v9197_v11, %v9199_v12  ;;  %v9221_v31 = vld [vmem:[#allocation2 + $0x10] sm:$0xff]  ;;  %v390_v12 = vld [vmem:[#allocation5 + $0x848] sm:$0xff] }
  0xc1   :  { %3298 = vmatprep.subr.bf16.mxu0 %v7981_v32  ;;  %3462 = vmatprep.subr.bf16.mxu1 %v7983_v33  ;;  %v9223_v32 = vld [vmem:[#allocation2 + $0x30] sm:$0xff]  ;;  %v8028_v33 = vcombine.low %v373_v17, %v377_v18 }
  0xc2   :  { %v9231_v11 = vpack.c.bf16 %v9219_v30, %v9219_v30 }
  0xc4   :  { %3299 = vmatpush1.bf16.msra.mxu0 %v7980_v38  ;;  %3463 = vmatpush1.bf16.msra.mxu1 %v7982_v39  ;;  %v393_v38 = vld [vmem:[#allocation5 + $0x860] sm:$0xff]  ;;  %v9227_v39 = vcombine.high %v9221_v31, %v9223_v32 }
  0xc5   :  { %3300 = vmatprep.subr.bf16.mxu0 %v7989_v40  ;;  %3464 = vmatprep.subr.bf16.mxu1 %v7991_v41  ;;  %v394_v40 = vld [vmem:[#allocation5 + $0x868] sm:$0xff]  ;;  %v8036_v41 = vcombine.low %v381_v25, %v385_v26  ;;  %v8045_v43 = vcombine.high %v389_v37, %v393_v38  ;;  %v8044_v50 = vcombine.low %v389_v37, %v393_v38 }
  0xc6   :  { %v8047_v44 = vcombine.high %v390_v12, %v394_v40  ;;  %v8046_v51 = vcombine.low %v390_v12, %v394_v40 }
  0xc8   :  { %3301 = vmatpush1.bf16.msra.mxu0 %v7988_v46  ;;  %3465 = vmatpush1.bf16.msra.mxu1 %v7990_v47  ;;  %v401_v46 = vld [vmem:[#allocation5 + $0x8a0] sm:$0xff]  ;;  %v9235_v47 = vpack.c.bf16 %v9227_v39, %v9227_v39 }
  0xc9   :  { %3302 = vmatprep.subr.bf16.mxu0 %v7997_v48  ;;  %3466 = vmatprep.subr.bf16.mxu1 %v7999_v49  ;;  %v398_v48 = vld [vmem:[#allocation5 + $0x888] sm:$0xff]  ;;  %v8053_v52 = vcombine.high %v397_v45, %v401_v46  ;;  %v8052_v61 = vcombine.low %v397_v45, %v401_v46 }
  0xca   :  { %v402_v49 = vld [vmem:[#allocation5 + $0x8a8] sm:$0xff] }
  0xcb   :  { %v8055_v55 = vcombine.high %v398_v48, %v402_v49  ;;  %v8054_v63 = vcombine.low %v398_v48, %v402_v49 }
  0xcc   :  { %3303 = vmatpush1.bf16.msra.mxu0 %v7996_v56  ;;  %3467 = vmatpush1.bf16.msra.mxu1 %v7998_v57  ;;  %v405_v56 = vld [vmem:[#allocation5 + $0x8c0] sm:$0xff] }
  0xcd   :  { %3304 = vmatprep.subr.bf16.mxu0 %v8005_v59  ;;  %3468 = vmatprep.subr.bf16.mxu1 %v8007_v60  ;;  %v409_v57 = vld [vmem:[#allocation5 + $0x8e0] sm:$0xff]  ;;  %v406_v59 = vld [vmem:[#allocation5 + $0x8c8] sm:$0xff] }
  0xce   :  { %v410_v60 = vld [vmem:[#allocation5 + $0x8e8] sm:$0xff]  ;;  %v8061_v0 = vcombine.high %v405_v56, %v409_v57  ;;  %v8060_v6 = vcombine.low %v405_v56, %v409_v57 }
  0xcf   :  { %v8063_v1 = vcombine.high %v406_v59, %v410_v60  ;;  %v8062_v7 = vcombine.low %v406_v59, %v410_v60 }
  0xd0   :  { %3305 = vmatpush1.bf16.msra.mxu0 %v8004_v2  ;;  %3469 = vmatpush1.bf16.msra.mxu1 %v8006_v3  ;;  %v413_v2 = vld [vmem:[#allocation5 + $0x900] sm:$0xff] }
  0xd1   :  { %3306 = vmatprep.subr.bf16.mxu0 %v8013_v4  ;;  %3470 = vmatprep.subr.bf16.mxu1 %v8015_v5  ;;  %v417_v3 = vld [vmem:[#allocation5 + $0x920] sm:$0xff]  ;;  %v414_v4 = vld [vmem:[#allocation5 + $0x908] sm:$0xff] }
  0xd2   :  { %v418_v5 = vld [vmem:[#allocation5 + $0x928] sm:$0xff]  ;;  %v8069_v8 = vcombine.high %v413_v2, %v417_v3  ;;  %v8068_v17 = vcombine.low %v413_v2, %v417_v3 }
  0xd3   :  { %v8071_v9 = vcombine.high %v414_v4, %v418_v5  ;;  %v8070_v18 = vcombine.low %v414_v4, %v418_v5 }
  0xd4   :  { %3307 = vmatpush1.bf16.msra.mxu0 %v8012_v13  ;;  %3471 = vmatpush1.bf16.msra.mxu1 %v8014_v14  ;;  %v421_v13 = vld [vmem:[#allocation5 + $0x940] sm:$0xff] }
  0xd5   :  { %3308 = vmatprep.subr.bf16.mxu0 %v8021_v15  ;;  %3472 = vmatprep.subr.bf16.mxu1 %v8023_v16  ;;  %v425_v14 = vld [vmem:[#allocation5 + $0x960] sm:$0xff]  ;;  %v422_v15 = vld [vmem:[#allocation5 + $0x948] sm:$0xff] }
  0xd6   :  { %v426_v16 = vld [vmem:[#allocation5 + $0x968] sm:$0xff]  ;;  %v8077_v54 = vcombine.high %v421_v13, %v425_v14  ;;  %v8076_v25 = vcombine.low %v421_v13, %v425_v14 }
  0xd7   :  { %v8079_v20 = vcombine.high %v422_v15, %v426_v16  ;;  %v8078_v26 = vcombine.low %v422_v15, %v426_v16 }
  0xd8   :  { %3309 = vmatpush1.bf16.msra.mxu0 %v8020_v21  ;;  %3473 = vmatpush1.bf16.msra.mxu1 %v8022_v22  ;;  %v429_v21 = vld [vmem:[#allocation5 + $0x980] sm:$0xff] }
  0xd9   :  { %3310 = vmatprep.subr.bf16.mxu0 %v8029_v23  ;;  %3474 = vmatprep.subr.bf16.mxu1 %v8031_v24  ;;  %v433_v22 = vld [vmem:[#allocation5 + $0x9a0] sm:$0xff]  ;;  %v430_v23 = vld [vmem:[#allocation5 + $0x988] sm:$0xff] }
  0xda   :  { %v434_v24 = vld [vmem:[#allocation5 + $0x9a8] sm:$0xff]  ;;  %v8085_v28 = vcombine.high %v429_v21, %v433_v22  ;;  %v8084_v37 = vcombine.low %v429_v21, %v433_v22 }
  0xdb   :  { %v8087_v29 = vcombine.high %v430_v23, %v434_v24  ;;  %v8086_v38 = vcombine.low %v430_v23, %v434_v24 }
  0xdc   :  { %3311 = vmatpush1.bf16.msra.mxu0 %v8028_v33  ;;  %3475 = vmatpush1.bf16.msra.mxu1 %v8030_v34  ;;  %v437_v33 = vld [vmem:[#allocation5 + $0x9c0] sm:$0xff] }
  0xdd   :  { %3321 = vmatprep.subr.bf16.mxu0 %v8037_v35  ;;  %3485 = vmatprep.subr.bf16.mxu1 %v8039_v36  ;;  %v441_v34 = vld [vmem:[#allocation5 + $0x9e0] sm:$0xff]  ;;  %v438_v35 = vld [vmem:[#allocation5 + $0x9c8] sm:$0xff] }
  0xde   :  { %v442_v36 = vld [vmem:[#allocation5 + $0x9e8] sm:$0xff]  ;;  %v8093_v12 = vcombine.high %v437_v33, %v441_v34  ;;  %v8092_v45 = vcombine.low %v437_v33, %v441_v34 }
  0xdf   :  { %3313 = vmatmul.mubr.bf16.vlgmr.msra.gmra.mrb[0].mxu0 %v9231_v11  ;;  %3477 = vmatmul.mubr.bf16.vlgmr.msra.gmra.mrb[0].mxu1 %v9231_v11  ;;  %v8095_v40 = vcombine.high %v438_v35, %v442_v36  ;;  %v8094_v46 = vcombine.low %v438_v35, %v442_v36 }
  0xe0   :  { %3322 = vmatpush1.bf16.msra.mxu0 %v8036_v41  ;;  %3486 = vmatpush1.bf16.msra.mxu1 %v8038_v42  ;;  %v445_v41 = vld [vmem:[#allocation5 + $0xa00] sm:$0xff] }
  0xe1   :  { %3323 = vmatprep.subr.bf16.mxu0 %v8045_v43  ;;  %3487 = vmatprep.subr.bf16.mxu1 %v8047_v44  ;;  %v449_v42 = vld [vmem:[#allocation5 + $0xa20] sm:$0xff]  ;;  %v446_v43 = vld [vmem:[#allocation5 + $0xa08] sm:$0xff] }
  0xe2   :  { %3353 = vmatprep.mubr.bf16.mxu0 %v9235_v47  ;;  %3517 = vmatprep.mubr.bf16.mxu1 %v9235_v47  ;;  %v450_v44 = vld [vmem:[#allocation5 + $0xa28] sm:$0xff]  ;;  %v8101_v48 = vcombine.high %v445_v41, %v449_v42  ;;  %v8100_v56 = vcombine.low %v445_v41, %v449_v42 }
  0xe3   :  { %v8103_v49 = vcombine.high %v446_v43, %v450_v44  ;;  %v8102_v57 = vcombine.low %v446_v43, %v450_v44 }
  0xe4   :  { %3324 = vmatpush1.bf16.msra.mxu0 %v8044_v50  ;;  %3488 = vmatpush1.bf16.msra.mxu1 %v8046_v51  ;;  %v453_v50 = vld [vmem:[#allocation5 + $0xa40] sm:$0xff] }
  0xe5   :  { %3325 = vmatprep.subr.bf16.mxu0 %v8053_v52  ;;  %3489 = vmatprep.subr.bf16.mxu1 %v8055_v55  ;;  %v457_v51 = vld [vmem:[#allocation5 + $0xa60] sm:$0xff]  ;;  %v454_v52 = vld [vmem:[#allocation5 + $0xa48] sm:$0xff] }
  0xe6   :  { %v458_v55 = vld [vmem:[#allocation5 + $0xa68] sm:$0xff]  ;;  %v8109_v59 = vcombine.high %v453_v50, %v457_v51  ;;  %v8108_v2 = vcombine.low %v453_v50, %v457_v51 }
  0xe7   :  { %v8111_v60 = vcombine.high %v454_v52, %v458_v55  ;;  %v8110_v3 = vcombine.low %v454_v52, %v458_v55 }
  0xe8   :  { %3326 = vmatpush1.bf16.msra.mxu0 %v8052_v61  ;;  %3490 = vmatpush1.bf16.msra.mxu1 %v8054_v63  ;;  %v461_v61 = vld [vmem:[#allocation5 + $0xa80] sm:$0xff] }
  0xe9   :  { %3327 = vmatprep.subr.bf16.mxu0 %v8061_v0  ;;  %3491 = vmatprep.subr.bf16.mxu1 %v8063_v1  ;;  %v465_v63 = vld [vmem:[#allocation5 + $0xaa0] sm:$0xff]  ;;  %v462_v0 = vld [vmem:[#allocation5 + $0xa88] sm:$0xff] }
  0xea   :  { %v466_v1 = vld [vmem:[#allocation5 + $0xaa8] sm:$0xff]  ;;  %v8117_v4 = vcombine.high %v461_v61, %v465_v63  ;;  %v8116_v13 = vcombine.low %v461_v61, %v465_v63  ;;  %v9243_v61 = vcombine.low %v9221_v31, %v9223_v32  ;;  %v9245_v63 = vld [vmem:[#allocation2 + $0x18] sm:$0xff] }
  0xeb   :  { %v8119_v5 = vcombine.high %v462_v0, %v466_v1  ;;  %v8118_v14 = vcombine.low %v462_v0, %v466_v1  ;;  %v9247_v0 = vld [vmem:[#allocation2 + $0x38] sm:$0xff]  ;;  %v518_v32 = vld [vmem:[#allocation5 + $0xc48] sm:$0xff] }
  0xec   :  { %3328 = vmatpush1.bf16.msra.mxu0 %v8060_v6  ;;  %3492 = vmatpush1.bf16.msra.mxu1 %v8062_v7  ;;  %v469_v6 = vld [vmem:[#allocation5 + $0xac0] sm:$0xff]  ;;  %v9255_v31 = vpack.c.bf16 %v9243_v61, %v9243_v61 }
  0xed   :  { %3329 = vmatprep.subr.bf16.mxu0 %v8069_v8  ;;  %3493 = vmatprep.subr.bf16.mxu1 %v8071_v9  ;;  %v473_v7 = vld [vmem:[#allocation5 + $0xae0] sm:$0xff]  ;;  %v470_v8 = vld [vmem:[#allocation5 + $0xac8] sm:$0xff] }
  0xee   :  { %v474_v9 = vld [vmem:[#allocation5 + $0xae8] sm:$0xff]  ;;  %v8125_v15 = vcombine.high %v469_v6, %v473_v7  ;;  %v8124_v21 = vcombine.low %v469_v6, %v473_v7  ;;  %v521_v6 = vld [vmem:[#allocation5 + $0xc60] sm:$0xff]  ;;  %v9251_v7 = vcombine.high %v9245_v63, %v9247_v0 }
  0xef   :  { %v8127_v16 = vcombine.high %v470_v8, %v474_v9  ;;  %v8126_v22 = vcombine.low %v470_v8, %v474_v9  ;;  %v522_v8 = vld [vmem:[#allocation5 + $0xc68] sm:$0xff] }
  0xf0   :  { %3330 = vmatpush1.bf16.msra.mxu0 %v8068_v17  ;;  %3494 = vmatpush1.bf16.msra.mxu1 %v8070_v18  ;;  %v477_v17 = vld [vmem:[#allocation5 + $0xb00] sm:$0xff] }
  0xf1   :  { %3331 = vmatprep.subr.bf16.mxu0 %v8077_v54  ;;  %3495 = vmatprep.subr.bf16.mxu1 %v8079_v20  ;;  %v481_v18 = vld [vmem:[#allocation5 + $0xb20] sm:$0xff]  ;;  %v478_v54 = vld [vmem:[#allocation5 + $0xb08] sm:$0xff] }
  0xf2   :  { %v482_v20 = vld [vmem:[#allocation5 + $0xb28] sm:$0xff]  ;;  %v8133_v23 = vcombine.high %v477_v17, %v481_v18  ;;  %v8132_v33 = vcombine.low %v477_v17, %v481_v18  ;;  %v529_v17 = vld [vmem:[#allocation5 + $0xca0] sm:$0xff]  ;;  %v9259_v18 = vpack.c.bf16 %v9251_v7, %v9251_v7 }
  0xf3   :  { %v8135_v24 = vcombine.high %v478_v54, %v482_v20  ;;  %v8134_v34 = vcombine.low %v478_v54, %v482_v20  ;;  %v526_v54 = vld [vmem:[#allocation5 + $0xc88] sm:$0xff] }
  0xf4   :  { %3332 = vmatpush1.bf16.msra.mxu0 %v8076_v25  ;;  %3496 = vmatpush1.bf16.msra.mxu1 %v8078_v26  ;;  %v485_v25 = vld [vmem:[#allocation5 + $0xb40] sm:$0xff]  ;;  %v530_v20 = vld [vmem:[#allocation5 + $0xca8] sm:$0xff] }
  0xf5   :  { %3333 = vmatprep.subr.bf16.mxu0 %v8085_v28  ;;  %3497 = vmatprep.subr.bf16.mxu1 %v8087_v29  ;;  %v489_v26 = vld [vmem:[#allocation5 + $0xb60] sm:$0xff]  ;;  %v486_v28 = vld [vmem:[#allocation5 + $0xb48] sm:$0xff] }
  0xf6   :  { %v490_v29 = vld [vmem:[#allocation5 + $0xb68] sm:$0xff]  ;;  %v8141_v35 = vcombine.high %v485_v25, %v489_v26  ;;  %v8140_v41 = vcombine.low %v485_v25, %v489_v26  ;;  %v533_v25 = vld [vmem:[#allocation5 + $0xcc0] sm:$0xff] }
  0xf7   :  { %v8143_v36 = vcombine.high %v486_v28, %v490_v29  ;;  %v8142_v42 = vcombine.low %v486_v28, %v490_v29  ;;  %v537_v26 = vld [vmem:[#allocation5 + $0xce0] sm:$0xff]  ;;  %v534_v28 = vld [vmem:[#allocation5 + $0xcc8] sm:$0xff] }
  0xf8   :  { %3334 = vmatpush1.bf16.msra.mxu0 %v8084_v37  ;;  %3498 = vmatpush1.bf16.msra.mxu1 %v8086_v38  ;;  %v493_v37 = vld [vmem:[#allocation5 + $0xb80] sm:$0xff]  ;;  %v538_v29 = vld [vmem:[#allocation5 + $0xce8] sm:$0xff] }
  0xf9   :  { %3335 = vmatprep.subr.bf16.mxu0 %v8093_v12  ;;  %3499 = vmatprep.subr.bf16.mxu1 %v8095_v40  ;;  %v497_v38 = vld [vmem:[#allocation5 + $0xba0] sm:$0xff]  ;;  %v494_v12 = vld [vmem:[#allocation5 + $0xb88] sm:$0xff] }
  0xfa   :  { %v498_v40 = vld [vmem:[#allocation5 + $0xba8] sm:$0xff]  ;;  %v8149_v43 = vcombine.high %v493_v37, %v497_v38  ;;  %v8148_v50 = vcombine.low %v493_v37, %v497_v38  ;;  %v541_v37 = vld [vmem:[#allocation5 + $0xd00] sm:$0xff] }
  0xfb   :  { %v8151_v44 = vcombine.high %v494_v12, %v498_v40  ;;  %v8150_v51 = vcombine.low %v494_v12, %v498_v40  ;;  %v545_v38 = vld [vmem:[#allocation5 + $0xd20] sm:$0xff]  ;;  %v542_v12 = vld [vmem:[#allocation5 + $0xd08] sm:$0xff] }
  0xfc   :  { %3336 = vmatpush1.bf16.msra.mxu0 %v8092_v45  ;;  %3500 = vmatpush1.bf16.msra.mxu1 %v8094_v46  ;;  %v501_v45 = vld [vmem:[#allocation5 + $0xbc0] sm:$0xff]  ;;  %v546_v40 = vld [vmem:[#allocation5 + $0xd28] sm:$0xff] }
  0xfd   :  { %3337 = vmatprep.subr.bf16.mxu0 %v8101_v48  ;;  %3501 = vmatprep.subr.bf16.mxu1 %v8103_v49  ;;  %v505_v46 = vld [vmem:[#allocation5 + $0xbe0] sm:$0xff]  ;;  %v502_v48 = vld [vmem:[#allocation5 + $0xbc8] sm:$0xff] }
  0xfe   :  { %v506_v49 = vld [vmem:[#allocation5 + $0xbe8] sm:$0xff]  ;;  %v8157_v52 = vcombine.high %v501_v45, %v505_v46  ;;  %v8156_v1 = vcombine.low %v501_v45, %v505_v46  ;;  %v549_v45 = vld [vmem:[#allocation5 + $0xd40] sm:$0xff] }
  0xff   :  { %v8159_v55 = vcombine.high %v502_v48, %v506_v49  ;;  %v553_v46 = vld [vmem:[#allocation5 + $0xd60] sm:$0xff] }
 0x100   :  { %3338 = vmatpush1.bf16.msra.mxu0 %v8100_v56  ;;  %3502 = vmatpush1.bf16.msra.mxu1 %v8102_v57  ;;  %v509_v56 = vld [vmem:[#allocation5 + $0xc00] sm:$0xff] }
 0x101   :  { %3339 = vmatprep.subr.bf16.mxu0 %v8109_v59  ;;  %3503 = vmatprep.subr.bf16.mxu1 %v8111_v60  ;;  %v513_v57 = vld [vmem:[#allocation5 + $0xc20] sm:$0xff]  ;;  %v510_v59 = vld [vmem:[#allocation5 + $0xc08] sm:$0xff] }
 0x102   :  { %v514_v60 = vld [vmem:[#allocation5 + $0xc28] sm:$0xff]  ;;  %v8164_v9 = vcombine.low %v509_v56, %v513_v57 }
 0x104   :  { %3340 = vmatpush1.bf16.msra.mxu0 %v8108_v2  ;;  %3504 = vmatpush1.bf16.msra.mxu1 %v8110_v3  ;;  %v8158_v2 = vcombine.low %v502_v48, %v506_v49  ;;  %v8165_v3 = vcombine.high %v509_v56, %v513_v57  ;;  %v550_v48 = vld [vmem:[#allocation5 + $0xd48] sm:$0xff]  ;;  %v557_v56 = vld [vmem:[#allocation5 + $0xd80] sm:$0xff] }
 0x105   :  { %3341 = vmatprep.subr.bf16.mxu0 %v8117_v4  ;;  %3505 = vmatprep.subr.bf16.mxu1 %v8119_v5  ;;  %v8167_v4 = vcombine.high %v510_v59, %v514_v60  ;;  %v517_v5 = vld [vmem:[#allocation5 + $0xc40] sm:$0xff]  ;;  %v554_v49 = vld [vmem:[#allocation5 + $0xd68] sm:$0xff] }
 0x106   :  { %v561_v57 = vld [vmem:[#allocation5 + $0xda0] sm:$0xff] }
 0x108   :  { %3342 = vmatpush1.bf16.msra.mxu0 %v8116_v13  ;;  %3506 = vmatpush1.bf16.msra.mxu1 %v8118_v14  ;;  %v8166_v13 = vcombine.low %v510_v59, %v514_v60  ;;  %v8173_v14 = vcombine.high %v517_v5, %v521_v6  ;;  %v558_v59 = vld [vmem:[#allocation5 + $0xd88] sm:$0xff] }
 0x109   :  { %3343 = vmatprep.subr.bf16.mxu0 %v8125_v15  ;;  %3507 = vmatprep.subr.bf16.mxu1 %v8127_v16  ;;  %v8175_v15 = vcombine.high %v518_v32, %v522_v8  ;;  %v525_v16 = vld [vmem:[#allocation5 + $0xc80] sm:$0xff]  ;;  %v562_v60 = vld [vmem:[#allocation5 + $0xda8] sm:$0xff] }
 0x10c   :  { %3344 = vmatpush1.bf16.msra.mxu0 %v8124_v21  ;;  %3508 = vmatpush1.bf16.msra.mxu1 %v8126_v22  ;;  %v8172_v21 = vcombine.low %v517_v5, %v521_v6  ;;  %v8174_v22 = vcombine.low %v518_v32, %v522_v8  ;;  %v565_v5 = vld [vmem:[#allocation5 + $0xdc0] sm:$0xff]  ;;  %v566_v32 = vld [vmem:[#allocation5 + $0xdc8] sm:$0xff] }
 0x10d   :  { %3345 = vmatprep.subr.bf16.mxu0 %v8133_v23  ;;  %3509 = vmatprep.subr.bf16.mxu1 %v8135_v24  ;;  %v8181_v23 = vcombine.high %v525_v16, %v529_v17  ;;  %v8183_v24 = vcombine.high %v526_v54, %v530_v20  ;;  %v569_v6 = vld [vmem:[#allocation5 + $0xde0] sm:$0xff]  ;;  %v570_v8 = vld [vmem:[#allocation5 + $0xde8] sm:$0xff] }
 0x110   :  { %3346 = vmatpush1.bf16.msra.mxu0 %v8132_v33  ;;  %3510 = vmatpush1.bf16.msra.mxu1 %v8134_v34  ;;  %v8180_v33 = vcombine.low %v525_v16, %v529_v17  ;;  %v8182_v34 = vcombine.low %v526_v54, %v530_v20  ;;  %v573_v16 = vld [vmem:[#allocation5 + $0xe00] sm:$0xff]  ;;  %v574_v54 = vld [vmem:[#allocation5 + $0xe08] sm:$0xff] }
 0x111   :  { %3347 = vmatprep.subr.bf16.mxu0 %v8141_v35  ;;  %3511 = vmatprep.subr.bf16.mxu1 %v8143_v36  ;;  %v8189_v35 = vcombine.high %v533_v25, %v537_v26  ;;  %v8191_v36 = vcombine.high %v534_v28, %v538_v29  ;;  %v577_v17 = vld [vmem:[#allocation5 + $0xe20] sm:$0xff]  ;;  %v578_v20 = vld [vmem:[#allocation5 + $0xe28] sm:$0xff] }
 0x114   :  { %3348 = vmatpush1.bf16.msra.mxu0 %v8140_v41  ;;  %3512 = vmatpush1.bf16.msra.mxu1 %v8142_v42  ;;  %v8188_v41 = vcombine.low %v533_v25, %v537_v26  ;;  %v8190_v42 = vcombine.low %v534_v28, %v538_v29  ;;  %v581_v25 = vld [vmem:[#allocation5 + $0xe40] sm:$0xff]  ;;  %v582_v28 = vld [vmem:[#allocation5 + $0xe48] sm:$0xff] }
 0x115   :  { %3349 = vmatprep.subr.bf16.mxu0 %v8149_v43  ;;  %3513 = vmatprep.subr.bf16.mxu1 %v8151_v44  ;;  %v8197_v43 = vcombine.high %v541_v37, %v545_v38  ;;  %v8199_v44 = vcombine.high %v542_v12, %v546_v40  ;;  %v585_v26 = vld [vmem:[#allocation5 + $0xe60] sm:$0xff]  ;;  %v586_v29 = vld [vmem:[#allocation5 + $0xe68] sm:$0xff] }
 0x118   :  { %3350 = vmatpush1.bf16.msra.mxu0 %v8148_v50  ;;  %3514 = vmatpush1.bf16.msra.mxu1 %v8150_v51  ;;  %v8196_v50 = vcombine.low %v541_v37, %v545_v38  ;;  %v8198_v51 = vcombine.low %v542_v12, %v546_v40  ;;  %v589_v37 = vld [vmem:[#allocation5 + $0xe80] sm:$0xff]  ;;  %v590_v12 = vld [vmem:[#allocation5 + $0xe88] sm:$0xff] }
 0x119   :  { %3351 = vmatprep.subr.bf16.mxu0 %v8157_v52  ;;  %3515 = vmatprep.subr.bf16.mxu1 %v8159_v55  ;;  %v8205_v52 = vcombine.high %v549_v45, %v553_v46  ;;  %v8207_v55 = vcombine.high %v550_v48, %v554_v49  ;;  %v593_v38 = vld [vmem:[#allocation5 + $0xea0] sm:$0xff]  ;;  %v594_v40 = vld [vmem:[#allocation5 + $0xea8] sm:$0xff] }
 0x11c   :  { %3352 = vmatpush1.bf16.msra.mxu0 %v8156_v1  ;;  %3516 = vmatpush1.bf16.msra.mxu1 %v8158_v2  ;;  %v8204_v1 = vcombine.low %v549_v45, %v553_v46  ;;  %v8206_v2 = vcombine.low %v550_v48, %v554_v49  ;;  %v597_v45 = vld [vmem:[#allocation5 + $0xec0] sm:$0xff]  ;;  %v598_v48 = vld [vmem:[#allocation5 + $0xec8] sm:$0xff] }
 0x11d   :  { %3362 = vmatprep.subr.bf16.mxu0 %v8165_v3  ;;  %3526 = vmatprep.subr.bf16.mxu1 %v8167_v4  ;;  %v8213_v3 = vcombine.high %v557_v56, %v561_v57  ;;  %v8215_v4 = vcombine.high %v558_v59, %v562_v60  ;;  %v601_v46 = vld [vmem:[#allocation5 + $0xee0] sm:$0xff]  ;;  %v602_v49 = vld [vmem:[#allocation5 + $0xee8] sm:$0xff] }
 0x11f   :  { %3354 = vmatmul.mubr.bf16.vlgmr.msra.gmra.mrb[0].mxu0 %v9255_v31  ;;  %3518 = vmatmul.mubr.bf16.vlgmr.msra.gmra.mrb[0].mxu1 %v9255_v31 }
 0x120   :  { %3363 = vmatpush1.bf16.msra.mxu0 %v8164_v9  ;;  %3527 = vmatpush1.bf16.msra.mxu1 %v8166_v13  ;;  %v8212_v9 = vcombine.low %v557_v56, %v561_v57  ;;  %v8214_v13 = vcombine.low %v558_v59, %v562_v60  ;;  %v605_v56 = vld [vmem:[#allocation5 + $0xf00] sm:$0xff]  ;;  %v606_v59 = vld [vmem:[#allocation5 + $0xf08] sm:$0xff] }
 0x121   :  { %3364 = vmatprep.subr.bf16.mxu0 %v8173_v14  ;;  %3528 = vmatprep.subr.bf16.mxu1 %v8175_v15  ;;  %v8221_v14 = vcombine.high %v565_v5, %v569_v6  ;;  %v8223_v15 = vcombine.high %v566_v32, %v570_v8  ;;  %v609_v57 = vld [vmem:[#allocation5 + $0xf20] sm:$0xff]  ;;  %v610_v60 = vld [vmem:[#allocation5 + $0xf28] sm:$0xff] }
 0x122   :  { %3394 = vmatprep.mubr.bf16.mxu0 %v9259_v18  ;;  %3558 = vmatprep.mubr.bf16.mxu1 %v9259_v18 }
 0x124   :  { %3365 = vmatpush1.bf16.msra.mxu0 %v8172_v21  ;;  %3529 = vmatpush1.bf16.msra.mxu1 %v8174_v22  ;;  %v8220_v21 = vcombine.low %v565_v5, %v569_v6  ;;  %v8222_v22 = vcombine.low %v566_v32, %v570_v8  ;;  %v613_v5 = vld [vmem:[#allocation5 + $0xf40] sm:$0xff]  ;;  %v614_v32 = vld [vmem:[#allocation5 + $0xf48] sm:$0xff] }
 0x125   :  { %3366 = vmatprep.subr.bf16.mxu0 %v8181_v23  ;;  %3530 = vmatprep.subr.bf16.mxu1 %v8183_v24  ;;  %v8229_v23 = vcombine.high %v573_v16, %v577_v17  ;;  %v8231_v24 = vcombine.high %v574_v54, %v578_v20  ;;  %v617_v6 = vld [vmem:[#allocation5 + $0xf60] sm:$0xff]  ;;  %v618_v8 = vld [vmem:[#allocation5 + $0xf68] sm:$0xff] }
 0x128   :  { %3367 = vmatpush1.bf16.msra.mxu0 %v8180_v33  ;;  %3531 = vmatpush1.bf16.msra.mxu1 %v8182_v34  ;;  %v8228_v33 = vcombine.low %v573_v16, %v577_v17  ;;  %v8230_v34 = vcombine.low %v574_v54, %v578_v20  ;;  %v621_v16 = vld [vmem:[#allocation5 + $0xf80] sm:$0xff]  ;;  %v622_v54 = vld [vmem:[#allocation5 + $0xf88] sm:$0xff] }
 0x129   :  { %3368 = vmatprep.subr.bf16.mxu0 %v8189_v35  ;;  %3532 = vmatprep.subr.bf16.mxu1 %v8191_v36  ;;  %v8237_v35 = vcombine.high %v581_v25, %v585_v26  ;;  %v8239_v36 = vcombine.high %v582_v28, %v586_v29  ;;  %v625_v17 = vld [vmem:[#allocation5 + $0xfa0] sm:$0xff]  ;;  %v626_v20 = vld [vmem:[#allocation5 + $0xfa8] sm:$0xff] }
 0x12c   :  { %3369 = vmatpush1.bf16.msra.mxu0 %v8188_v41  ;;  %3533 = vmatpush1.bf16.msra.mxu1 %v8190_v42  ;;  %v8236_v41 = vcombine.low %v581_v25, %v585_v26  ;;  %v8238_v42 = vcombine.low %v582_v28, %v586_v29  ;;  %v629_v25 = vld [vmem:[#allocation5 + $0xfc0] sm:$0xff]  ;;  %v630_v28 = vld [vmem:[#allocation5 + $0xfc8] sm:$0xff] }
 0x12d   :  { %3370 = vmatprep.subr.bf16.mxu0 %v8197_v43  ;;  %3534 = vmatprep.subr.bf16.mxu1 %v8199_v44  ;;  %v8245_v43 = vcombine.high %v589_v37, %v593_v38  ;;  %v8247_v44 = vcombine.high %v590_v12, %v594_v40  ;;  %v633_v26 = vld [vmem:[#allocation5 + $0xfe0] sm:$0xff]  ;;  %v634_v29 = vld [vmem:[#allocation5 + $0xfe8] sm:$0xff] }
 0x130   :  { %3371 = vmatpush1.bf16.msra.mxu0 %v8196_v50  ;;  %3535 = vmatpush1.bf16.msra.mxu1 %v8198_v51  ;;  %v8244_v50 = vcombine.low %v589_v37, %v593_v38  ;;  %v8246_v51 = vcombine.low %v590_v12, %v594_v40  ;;  %v127_v37 = vld [vmem:[#allocation5 + $0x10] sm:$0xff]  ;;  %v9267_v12 = vcombine.low %v9245_v63, %v9247_v0  ;;  %v128_v40 = vld [vmem:[#allocation5 + $0x18] sm:$0xff] }
 0x131   :  { %3372 = vmatprep.subr.bf16.mxu0 %v8205_v52  ;;  %3536 = vmatprep.subr.bf16.mxu1 %v8207_v55  ;;  %v8253_v52 = vcombine.high %v597_v45, %v601_v46  ;;  %v8255_v55 = vcombine.high %v598_v48, %v602_v49  ;;  %v131_v38 = vld [vmem:[#allocation5 + $0x30] sm:$0xff] }
 0x132   :  { %v7784_v63 = vcombine.low %v127_v37, %v131_v38 }
 0x134   :  { %3373 = vmatpush1.bf16.msra.mxu0 %v8204_v1  ;;  %3537 = vmatpush1.bf16.msra.mxu1 %v8206_v2  ;;  %v8252_v1 = vcombine.low %v597_v45, %v601_v46  ;;  %v8254_v2 = vcombine.low %v598_v48, %v602_v49  ;;  %v135_v46 = vld [vmem:[#allocation5 + $0x50] sm:$0xff]  ;;  %v9271_v49 = vpack.c.bf16 %v9267_v12, %v9267_v12 }
 0x135   :  { %3374 = vmatprep.subr.bf16.mxu0 %v8213_v3  ;;  %3538 = vmatprep.subr.bf16.mxu1 %v8215_v4  ;;  %v8261_v3 = vcombine.high %v605_v56, %v609_v57  ;;  %v8263_v4 = vcombine.high %v606_v59, %v610_v60  ;;  %v139_v48 = vld [vmem:[#allocation5 + $0x70] sm:$0xff] }
 0x138   :  { %3375 = vmatpush1.bf16.msra.mxu0 %v8212_v9  ;;  %3539 = vmatpush1.bf16.msra.mxu1 %v8214_v13  ;;  %v8260_v9 = vcombine.low %v605_v56, %v609_v57  ;;  %v8262_v13 = vcombine.low %v606_v59, %v610_v60  ;;  %v143_v56 = vld [vmem:[#allocation5 + $0x90] sm:$0xff]  ;;  %v144_v59 = vld [vmem:[#allocation5 + $0x98] sm:$0xff] }
 0x139   :  { %3376 = vmatprep.subr.bf16.mxu0 %v8221_v14  ;;  %3540 = vmatprep.subr.bf16.mxu1 %v8223_v15  ;;  %v8269_v14 = vcombine.high %v613_v5, %v617_v6  ;;  %v8271_v15 = vcombine.high %v614_v32, %v618_v8  ;;  %v147_v57 = vld [vmem:[#allocation5 + $0xb0] sm:$0xff]  ;;  %v148_v60 = vld [vmem:[#allocation5 + $0xb8] sm:$0xff] }
 0x13c   :  { %3377 = vmatpush1.bf16.msra.mxu0 %v8220_v21  ;;  %3541 = vmatpush1.bf16.msra.mxu1 %v8222_v22  ;;  %v8268_v21 = vcombine.low %v613_v5, %v617_v6  ;;  %v8270_v22 = vcombine.low %v614_v32, %v618_v8  ;;  %v151_v5 = vld [vmem:[#allocation5 + $0xd0] sm:$0xff]  ;;  %v152_v32 = vld [vmem:[#allocation5 + $0xd8] sm:$0xff] }
 0x13d   :  { %3378 = vmatprep.subr.bf16.mxu0 %v8229_v23  ;;  %3542 = vmatprep.subr.bf16.mxu1 %v8231_v24  ;;  %v8277_v23 = vcombine.high %v621_v16, %v625_v17  ;;  %v8279_v24 = vcombine.high %v622_v54, %v626_v20  ;;  %v155_v6 = vld [vmem:[#allocation5 + $0xf0] sm:$0xff]  ;;  %v156_v8 = vld [vmem:[#allocation5 + $0xf8] sm:$0xff] }
 0x140   :  { %3379 = vmatpush1.bf16.msra.mxu0 %v8228_v33  ;;  %3543 = vmatpush1.bf16.msra.mxu1 %v8230_v34  ;;  %v8276_v33 = vcombine.low %v621_v16, %v625_v17  ;;  %v8278_v34 = vcombine.low %v622_v54, %v626_v20  ;;  %v159_v16 = vld [vmem:[#allocation5 + $0x110] sm:$0xff]  ;;  %v160_v54 = vld [vmem:[#allocation5 + $0x118] sm:$0xff] }
 0x141   :  { %3380 = vmatprep.subr.bf16.mxu0 %v8237_v35  ;;  %3544 = vmatprep.subr.bf16.mxu1 %v8239_v36  ;;  %v8285_v35 = vcombine.high %v629_v25, %v633_v26  ;;  %v8287_v36 = vcombine.high %v630_v28, %v634_v29  ;;  %v163_v17 = vld [vmem:[#allocation5 + $0x130] sm:$0xff]  ;;  %v164_v20 = vld [vmem:[#allocation5 + $0x138] sm:$0xff] }
 0x144   :  { %3381 = vmatpush1.bf16.msra.mxu0 %v8236_v41  ;;  %3545 = vmatpush1.bf16.msra.mxu1 %v8238_v42  ;;  %v132_v41 = vld [vmem:[#allocation5 + $0x38] sm:$0xff]  ;;  %v8284_v42 = vcombine.low %v629_v25, %v633_v26  ;;  %v171_v25 = vld [vmem:[#allocation5 + $0x170] sm:$0xff] }
 0x145   :  { %3382 = vmatprep.subr.bf16.mxu0 %v8245_v43  ;;  %3546 = vmatprep.subr.bf16.mxu1 %v8247_v44  ;;  %v8286_v43 = vcombine.low %v630_v28, %v634_v29  ;;  %v7785_v44 = vcombine.high %v127_v37, %v131_v38  ;;  %v7787_v45 = vcombine.high %v128_v40, %v132_v41  ;;  %v168_v26 = vld [vmem:[#allocation5 + $0x158] sm:$0xff]  ;;  %v179_v37 = vld [vmem:[#allocation5 + $0x1b0] sm:$0xff] }
 0x146   :  { %v7786_v0 = vcombine.low %v128_v40, %v132_v41  ;;  %v172_v28 = vld [vmem:[#allocation5 + $0x178] sm:$0xff]  ;;  %v7816_v29 = vcombine.low %v159_v16, %v163_v17 }
 0x147   :  { %v176_v38 = vld [vmem:[#allocation5 + $0x198] sm:$0xff] }
 0x148   :  { %3383 = vmatpush1.bf16.msra.mxu0 %v8244_v50  ;;  %3547 = vmatpush1.bf16.msra.mxu1 %v8246_v51  ;;  %v136_v50 = vld [vmem:[#allocation5 + $0x58] sm:$0xff] }
 0x149   :  { %3384 = vmatprep.subr.bf16.mxu0 %v8253_v52  ;;  %3548 = vmatprep.subr.bf16.mxu1 %v8255_v55  ;;  %v140_v51 = vld [vmem:[#allocation5 + $0x78] sm:$0xff]  ;;  %v7793_v52 = vcombine.high %v135_v46, %v139_v48 }
 0x14a   :  { %v7795_v55 = vcombine.high %v136_v50, %v140_v51  ;;  %v180_v40 = vld [vmem:[#allocation5 + $0x1b8] sm:$0xff] }
 0x14c   :  { %3385 = vmatpush1.bf16.msra.mxu0 %v8252_v1  ;;  %3549 = vmatpush1.bf16.msra.mxu1 %v8254_v2  ;;  %v7792_v1 = vcombine.low %v135_v46, %v139_v48  ;;  %v7794_v2 = vcombine.low %v136_v50, %v140_v51  ;;  %v187_v46 = vld [vmem:[#allocation5 + $0x1f0] sm:$0xff]  ;;  %v184_v48 = vld [vmem:[#allocation5 + $0x1d8] sm:$0xff] }
 0x14d   :  { %3386 = vmatprep.subr.bf16.mxu0 %v8261_v3  ;;  %3550 = vmatprep.subr.bf16.mxu1 %v8263_v4  ;;  %v7801_v3 = vcombine.high %v143_v56, %v147_v57  ;;  %v7803_v4 = vcombine.high %v144_v59, %v148_v60  ;;  %v188_v50 = vld [vmem:[#allocation5 + $0x1f8] sm:$0xff] }
 0x150   :  { %3387 = vmatpush1.bf16.msra.mxu0 %v8260_v9  ;;  %3551 = vmatpush1.bf16.msra.mxu1 %v8262_v13  ;;  %v7800_v9 = vcombine.low %v143_v56, %v147_v57  ;;  %v7802_v13 = vcombine.low %v144_v59, %v148_v60  ;;  %v195_v56 = vld [vmem:[#allocation5 + $0x230] sm:$0xff]  ;;  %v192_v57 = vld [vmem:[#allocation5 + $0x218] sm:$0xff] }
 0x151   :  { %3388 = vmatprep.subr.bf16.mxu0 %v8269_v14  ;;  %3552 = vmatprep.subr.bf16.mxu1 %v8271_v15  ;;  %v7809_v14 = vcombine.high %v151_v5, %v155_v6  ;;  %v7811_v15 = vcombine.high %v152_v32, %v156_v8  ;;  %v196_v59 = vld [vmem:[#allocation5 + $0x238] sm:$0xff] }
 0x154   :  { %3389 = vmatpush1.bf16.msra.mxu0 %v8268_v21  ;;  %3553 = vmatpush1.bf16.msra.mxu1 %v8270_v22  ;;  %v7808_v21 = vcombine.low %v151_v5, %v155_v6  ;;  %v7810_v22 = vcombine.low %v152_v32, %v156_v8  ;;  %v203_v5 = vld [vmem:[#allocation5 + $0x270] sm:$0xff]  ;;  %v200_v6 = vld [vmem:[#allocation5 + $0x258] sm:$0xff] }
 0x155   :  { %3390 = vmatprep.subr.bf16.mxu0 %v8277_v23  ;;  %3554 = vmatprep.subr.bf16.mxu1 %v8279_v24  ;;  %v7817_v23 = vcombine.high %v159_v16, %v163_v17  ;;  %v167_v24 = vld [vmem:[#allocation5 + $0x150] sm:$0xff]  ;;  %v204_v32 = vld [vmem:[#allocation5 + $0x278] sm:$0xff] }
 0x156   :  { %v7824_v41 = vcombine.low %v167_v24, %v171_v25  ;;  %v211_v16 = vld [vmem:[#allocation5 + $0x2b0] sm:$0xff]  ;;  %v208_v17 = vld [vmem:[#allocation5 + $0x298] sm:$0xff] }
 0x158   :  { %3391 = vmatpush1.bf16.msra.mxu0 %v8276_v33  ;;  %3555 = vmatpush1.bf16.msra.mxu1 %v8278_v34  ;;  %v7818_v33 = vcombine.low %v160_v54, %v164_v20  ;;  %v7825_v34 = vcombine.high %v167_v24, %v171_v25  ;;  %v219_v24 = vld [vmem:[#allocation5 + $0x2f0] sm:$0xff]  ;;  %v216_v25 = vld [vmem:[#allocation5 + $0x2d8] sm:$0xff] }
 0x159   :  { %3392 = vmatprep.subr.bf16.mxu0 %v8285_v35  ;;  %3556 = vmatprep.subr.bf16.mxu1 %v8287_v36  ;;  %v7827_v35 = vcombine.high %v168_v26, %v172_v28  ;;  %v175_v36 = vld [vmem:[#allocation5 + $0x190] sm:$0xff] }
 0x15a   :  { %v7832_v51 = vcombine.low %v175_v36, %v179_v37 }
 0x15c   :  { %3393 = vmatpush1.bf16.msra.mxu0 %v8284_v42  ;;  %3557 = vmatpush1.bf16.msra.mxu1 %v8286_v43  ;;  %v7826_v42 = vcombine.low %v168_v26, %v172_v28  ;;  %v7833_v43 = vcombine.high %v175_v36, %v179_v37  ;;  %v220_v26 = vld [vmem:[#allocation5 + $0x2f8] sm:$0xff]  ;;  %v227_v36 = vld [vmem:[#allocation5 + $0x330] sm:$0xff] }
 0x15d   :  { %3567 = vmatprep.subr.bf16.mxu0 %v7785_v44  ;;  %3731 = vmatprep.subr.bf16.mxu1 %v7787_v45  ;;  %v7835_v44 = vcombine.high %v176_v38, %v180_v40  ;;  %v183_v45 = vld [vmem:[#allocation5 + $0x1d0] sm:$0xff]  ;;  %v224_v37 = vld [vmem:[#allocation5 + $0x318] sm:$0xff] }
 0x15e   :  { %v7840_v60 = vcombine.low %v183_v45, %v187_v46 }
 0x15f   :  { %3395 = vmatmul.mubr.bf16.vlgmr.msra.gmra.mrb[0].mxu0 %v9271_v49  ;;  %3559 = vmatmul.mubr.bf16.vlgmr.msra.gmra.mrb[0].mxu1 %v9271_v49 }
 0x160   :  { %3568 = vmatpush1.bf16.msra.mxu0 %v7784_v63  ;;  %3732 = vmatpush1.bf16.msra.mxu1 %v7786_v0  ;;  %v7834_v63 = vcombine.low %v176_v38, %v180_v40  ;;  %v7841_v0 = vcombine.high %v183_v45, %v187_v46  ;;  %v228_v38 = vld [vmem:[#allocation5 + $0x338] sm:$0xff]  ;;  %v235_v45 = vld [vmem:[#allocation5 + $0x370] sm:$0xff] }
 0x161   :  { %3569 = vmatprep.subr.bf16.mxu0 %v7793_v52  ;;  %3733 = vmatprep.subr.bf16.mxu1 %v7795_v55  ;;  %v7843_v52 = vcombine.high %v184_v48, %v188_v50  ;;  %v191_v55 = vld [vmem:[#allocation5 + $0x210] sm:$0xff]  ;;  %v232_v46 = vld [vmem:[#allocation5 + $0x358] sm:$0xff] }
 0x162   :  { %3599 = vmatprep.mubr.bf16.mxu0 %v9189_v62  ;;  %3763 = vmatprep.mubr.bf16.mxu1 %v9189_v62  ;;  %v7819_v62 = vcombine.high %v160_v54, %v164_v20  ;;  %v7848_v8 = vcombine.low %v191_v55, %v195_v56  ;;  %v212_v54 = vld [vmem:[#allocation5 + $0x2b8] sm:$0xff] }
 0x164   :  { %3570 = vmatpush1.bf16.msra.mxu0 %v7792_v1  ;;  %3734 = vmatpush1.bf16.msra.mxu1 %v7794_v2  ;;  %v7842_v1 = vcombine.low %v184_v48, %v188_v50  ;;  %v7849_v2 = vcombine.high %v191_v55, %v195_v56  ;;  %v236_v48 = vld [vmem:[#allocation5 + $0x378] sm:$0xff]  ;;  %v243_v55 = vld [vmem:[#allocation5 + $0x3b0] sm:$0xff] }
 0x165   :  { %3571 = vmatprep.subr.bf16.mxu0 %v7801_v3  ;;  %3735 = vmatprep.subr.bf16.mxu1 %v7803_v4  ;;  %v7851_v3 = vcombine.high %v192_v57, %v196_v59  ;;  %v199_v4 = vld [vmem:[#allocation5 + $0x250] sm:$0xff]  ;;  %v240_v56 = vld [vmem:[#allocation5 + $0x398] sm:$0xff] }
 0x166   :  { %v7856_v20 = vcombine.low %v199_v4, %v203_v5 }
 0x168   :  { %3572 = vmatpush1.bf16.msra.mxu0 %v7800_v9  ;;  %3736 = vmatpush1.bf16.msra.mxu1 %v7802_v13  ;;  %v7850_v9 = vcombine.low %v192_v57, %v196_v59  ;;  %v7857_v13 = vcombine.high %v199_v4, %v203_v5  ;;  %v244_v57 = vld [vmem:[#allocation5 + $0x3b8] sm:$0xff]  ;;  %v251_v4 = vld [vmem:[#allocation5 + $0x3f0] sm:$0xff] }
 0x169   :  { %3573 = vmatprep.subr.bf16.mxu0 %v7809_v14  ;;  %3737 = vmatprep.subr.bf16.mxu1 %v7811_v15  ;;  %v7859_v14 = vcombine.high %v200_v6, %v204_v32  ;;  %v207_v15 = vld [vmem:[#allocation5 + $0x290] sm:$0xff]  ;;  %v248_v5 = vld [vmem:[#allocation5 + $0x3d8] sm:$0xff] }
 0x16a   :  { %v7864_v28 = vcombine.low %v207_v15, %v211_v16 }
 0x16c   :  { %3574 = vmatpush1.bf16.msra.mxu0 %v7808_v21  ;;  %3738 = vmatpush1.bf16.msra.mxu1 %v7810_v22  ;;  %v7858_v21 = vcombine.low %v200_v6, %v204_v32  ;;  %v7865_v22 = vcombine.high %v207_v15, %v211_v16  ;;  %v252_v6 = vld [vmem:[#allocation5 + $0x3f8] sm:$0xff]  ;;  %v259_v15 = vld [vmem:[#allocation5 + $0x430] sm:$0xff] }
 0x16d   :  { %3575 = vmatprep.subr.bf16.mxu0 %v7817_v23  ;;  %3739 = vmatprep.subr.bf16.mxu1 %v7819_v62  ;;  %v7867_v23 = vcombine.high %v208_v17, %v212_v54  ;;  %v215_v62 = vld [vmem:[#allocation5 + $0x2d0] sm:$0xff]  ;;  %v256_v16 = vld [vmem:[#allocation5 + $0x418] sm:$0xff] }
 0x16e   :  { %v7872_v40 = vcombine.low %v215_v62, %v219_v24 }
 0x170   :  { %3576 = vmatpush1.bf16.msra.mxu0 %v7816_v29  ;;  %3740 = vmatpush1.bf16.msra.mxu1 %v7818_v33  ;;  %v7866_v29 = vcombine.low %v208_v17, %v212_v54  ;;  %v7873_v33 = vcombine.high %v215_v62, %v219_v24  ;;  %v260_v17 = vld [vmem:[#allocation5 + $0x438] sm:$0xff]  ;;  %v267_v62 = vld [vmem:[#allocation5 + $0x470] sm:$0xff] }
 0x171   :  { %3577 = vmatprep.subr.bf16.mxu0 %v7825_v34  ;;  %3741 = vmatprep.subr.bf16.mxu1 %v7827_v35  ;;  %v7875_v34 = vcombine.high %v216_v25, %v220_v26  ;;  %v223_v35 = vld [vmem:[#allocation5 + $0x310] sm:$0xff]  ;;  %v264_v24 = vld [vmem:[#allocation5 + $0x458] sm:$0xff] }
 0x172   :  { %v7880_v50 = vcombine.low %v223_v35, %v227_v36 }
 0x174   :  { %3578 = vmatpush1.bf16.msra.mxu0 %v7824_v41  ;;  %3742 = vmatpush1.bf16.msra.mxu1 %v7826_v42  ;;  %v7874_v41 = vcombine.low %v216_v25, %v220_v26  ;;  %v7881_v42 = vcombine.high %v223_v35, %v227_v36  ;;  %v268_v25 = vld [vmem:[#allocation5 + $0x478] sm:$0xff]  ;;  %v275_v35 = vld [vmem:[#allocation5 + $0x4b0] sm:$0xff] }
 0x175   :  { %3579 = vmatprep.subr.bf16.mxu0 %v7833_v43  ;;  %3743 = vmatprep.subr.bf16.mxu1 %v7835_v44  ;;  %v7883_v43 = vcombine.high %v224_v37, %v228_v38  ;;  %v231_v44 = vld [vmem:[#allocation5 + $0x350] sm:$0xff]  ;;  %v272_v36 = vld [vmem:[#allocation5 + $0x498] sm:$0xff] }
 0x176   :  { %v7888_v59 = vcombine.low %v231_v44, %v235_v45 }
 0x178   :  { %3580 = vmatpush1.bf16.msra.mxu0 %v7832_v51  ;;  %3744 = vmatpush1.bf16.msra.mxu1 %v7834_v63  ;;  %v7882_v51 = vcombine.low %v224_v37, %v228_v38  ;;  %v7889_v63 = vcombine.high %v231_v44, %v235_v45  ;;  %v276_v37 = vld [vmem:[#allocation5 + $0x4b8] sm:$0xff]  ;;  %v283_v44 = vld [vmem:[#allocation5 + $0x4f0] sm:$0xff] }
 0x179   :  { %3581 = vmatprep.subr.bf16.mxu0 %v7841_v0  ;;  %3745 = vmatprep.subr.bf16.mxu1 %v7843_v52  ;;  %v7891_v0 = vcombine.high %v232_v46, %v236_v48  ;;  %v239_v52 = vld [vmem:[#allocation5 + $0x390] sm:$0xff]  ;;  %v280_v45 = vld [vmem:[#allocation5 + $0x4d8] sm:$0xff] }
 0x17a   :  { %v7896_v32 = vcombine.low %v239_v52, %v243_v55 }
 0x17c   :  { %3582 = vmatpush1.bf16.msra.mxu0 %v7840_v60  ;;  %3746 = vmatpush1.bf16.msra.mxu1 %v7842_v1  ;;  %v7890_v60 = vcombine.low %v232_v46, %v236_v48  ;;  %v7897_v1 = vcombine.high %v239_v52, %v243_v55  ;;  %v284_v46 = vld [vmem:[#allocation5 + $0x4f8] sm:$0xff] }
 0x17d   :  { %3583 = vmatprep.subr.bf16.mxu0 %v7849_v2  ;;  %3747 = vmatprep.subr.bf16.mxu1 %v7851_v3  ;;  %v7899_v2 = vcombine.high %v240_v56, %v244_v57  ;;  %v247_v3 = vld [vmem:[#allocation5 + $0x3d0] sm:$0xff]  ;;  %v288_v52 = vld [vmem:[#allocation5 + $0x518] sm:$0xff] }
 0x17e   :  { %v7904_v54 = vcombine.low %v247_v3, %v251_v4  ;;  %v292_v55 = vld [vmem:[#allocation5 + $0x538] sm:$0xff] }
 0x180   :  { %3584 = vmatpush1.bf16.msra.mxu0 %v7848_v8  ;;  %3748 = vmatpush1.bf16.msra.mxu1 %v7850_v9  ;;  %v7898_v8 = vcombine.low %v240_v56, %v244_v57  ;;  %v7905_v9 = vcombine.high %v247_v3, %v251_v4  ;;  %v7938_v57 = vcombine.low %v280_v45, %v284_v46  ;;  %v300_v3 = vld [vmem:[#allocation5 + $0x578] sm:$0xff] }
 0x181   :  { %3585 = vmatprep.subr.bf16.mxu0 %v7857_v13  ;;  %3749 = vmatprep.subr.bf16.mxu1 %v7859_v14  ;;  %v7907_v13 = vcombine.high %v248_v5, %v252_v6  ;;  %v255_v14 = vld [vmem:[#allocation5 + $0x410] sm:$0xff] }
 0x182   :  { %v7912_v26 = vcombine.low %v255_v14, %v259_v15 }
 0x184   :  { %3586 = vmatpush1.bf16.msra.mxu0 %v7856_v20  ;;  %3750 = vmatpush1.bf16.msra.mxu1 %v7858_v21  ;;  %v7906_v20 = vcombine.low %v248_v5, %v252_v6  ;;  %v7913_v21 = vcombine.high %v255_v14, %v259_v15  ;;  %v7946_v5 = vcombine.low %v288_v52, %v292_v55  ;;  %v308_v14 = vld [vmem:[#allocation5 + $0x5b8] sm:$0xff] }
 0x185   :  { %3587 = vmatprep.subr.bf16.mxu0 %v7865_v22  ;;  %3751 = vmatprep.subr.bf16.mxu1 %v7867_v23  ;;  %v7915_v22 = vcombine.high %v256_v16, %v260_v17  ;;  %v263_v23 = vld [vmem:[#allocation5 + $0x450] sm:$0xff] }
 0x186   :  { %v7920_v38 = vcombine.low %v263_v23, %v267_v62 }
 0x188   :  { %3588 = vmatpush1.bf16.msra.mxu0 %v7864_v28  ;;  %3752 = vmatpush1.bf16.msra.mxu1 %v7866_v29  ;;  %v7914_v28 = vcombine.low %v256_v16, %v260_v17  ;;  %v7921_v29 = vcombine.high %v263_v23, %v267_v62  ;;  %v316_v23 = vld [vmem:[#allocation5 + $0x5f8] sm:$0xff] }
 0x189   :  { %3589 = vmatprep.subr.bf16.mxu0 %v7873_v33  ;;  %3753 = vmatprep.subr.bf16.mxu1 %v7875_v34  ;;  %v7923_v33 = vcombine.high %v264_v24, %v268_v25  ;;  %v271_v34 = vld [vmem:[#allocation5 + $0x490] sm:$0xff] }
 0x18a   :  { %v7928_v48 = vcombine.low %v271_v34, %v275_v35 }
 0x18c   :  { %3590 = vmatpush1.bf16.msra.mxu0 %v7872_v40  ;;  %3754 = vmatpush1.bf16.msra.mxu1 %v7874_v41  ;;  %v7922_v40 = vcombine.low %v264_v24, %v268_v25  ;;  %v7929_v41 = vcombine.high %v271_v34, %v275_v35  ;;  %v324_v34 = vld [vmem:[#allocation5 + $0x638] sm:$0xff] }
 0x18d   :  { %3591 = vmatprep.subr.bf16.mxu0 %v7881_v42  ;;  %3755 = vmatprep.subr.bf16.mxu1 %v7883_v43  ;;  %v7931_v42 = vcombine.high %v272_v36, %v276_v37  ;;  %v279_v43 = vld [vmem:[#allocation5 + $0x4d0] sm:$0xff] }
 0x18e   :  { %v7936_v56 = vcombine.low %v279_v43, %v283_v44 }
 0x190   :  { %3592 = vmatpush1.bf16.msra.mxu0 %v7880_v50  ;;  %3756 = vmatpush1.bf16.msra.mxu1 %v7882_v51  ;;  %v7937_v50 = vcombine.high %v279_v43, %v283_v44  ;;  %v7939_v51 = vcombine.high %v280_v45, %v284_v46  ;;  %v332_v43 = vld [vmem:[#allocation5 + $0x678] sm:$0xff] }
 0x191   :  { %3593 = vmatprep.subr.bf16.mxu0 %v7889_v63  ;;  %3757 = vmatprep.subr.bf16.mxu1 %v7891_v0  ;;  %v287_v63 = vld [vmem:[#allocation5 + $0x510] sm:$0xff] }
 0x192   :  { %v291_v0 = vld [vmem:[#allocation5 + $0x530] sm:$0xff] }
 0x193   :  { %v7944_v4 = vcombine.low %v287_v63, %v291_v0 }
 0x194   :  { %3594 = vmatpush1.bf16.msra.mxu0 %v7888_v59  ;;  %3758 = vmatpush1.bf16.msra.mxu1 %v7890_v60  ;;  %v7945_v59 = vcombine.high %v287_v63, %v291_v0  ;;  %v295_v60 = vld [vmem:[#allocation5 + $0x550] sm:$0xff]  ;;  %v340_v63 = vld [vmem:[#allocation5 + $0x6b8] sm:$0xff] }
 0x195   :  { %3595 = vmatprep.subr.bf16.mxu0 %v7897_v1  ;;  %3759 = vmatprep.subr.bf16.mxu1 %v7899_v2  ;;  %v299_v1 = vld [vmem:[#allocation5 + $0x570] sm:$0xff]  ;;  %v296_v2 = vld [vmem:[#allocation5 + $0x558] sm:$0xff] }
 0x196   :  { %v7953_v6 = vcombine.high %v295_v60, %v299_v1  ;;  %v7952_v15 = vcombine.low %v295_v60, %v299_v1  ;;  %v7954_v16 = vcombine.low %v296_v2, %v300_v3  ;;  %v348_v60 = vld [vmem:[#allocation5 + $0x6f8] sm:$0xff] }
 0x198   :  { %3596 = vmatpush1.bf16.msra.mxu0 %v7896_v32  ;;  %3760 = vmatpush1.bf16.msra.mxu1 %v7898_v8  ;;  %v7955_v32 = vcombine.high %v296_v2, %v300_v3  ;;  %v303_v8 = vld [vmem:[#allocation5 + $0x590] sm:$0xff] }
 0x199   :  { %3597 = vmatprep.subr.bf16.mxu0 %v7905_v9  ;;  %3761 = vmatprep.subr.bf16.mxu1 %v7907_v13  ;;  %v307_v9 = vld [vmem:[#allocation5 + $0x5b0] sm:$0xff]  ;;  %v304_v13 = vld [vmem:[#allocation5 + $0x598] sm:$0xff] }
 0x19a   :  { %v7961_v17 = vcombine.high %v303_v8, %v307_v9  ;;  %v7960_v62 = vcombine.low %v303_v8, %v307_v9  ;;  %v7962_v24 = vcombine.low %v304_v13, %v308_v14  ;;  %v356_v8 = vld [vmem:[#allocation5 + $0x738] sm:$0xff] }
 0x19c   :  { %3598 = vmatpush1.bf16.msra.mxu0 %v7904_v54  ;;  %3762 = vmatpush1.bf16.msra.mxu1 %v7906_v20  ;;  %v7963_v54 = vcombine.high %v304_v13, %v308_v14  ;;  %v311_v20 = vld [vmem:[#allocation5 + $0x5d0] sm:$0xff] }
 0x19d   :  { %3608 = vmatprep.subr.bf16.mxu0 %v7913_v21  ;;  %3772 = vmatprep.subr.bf16.mxu1 %v7915_v22  ;;  %v315_v21 = vld [vmem:[#allocation5 + $0x5f0] sm:$0xff]  ;;  %v312_v22 = vld [vmem:[#allocation5 + $0x5d8] sm:$0xff] }
 0x19e   :  { %v7969_v25 = vcombine.high %v311_v20, %v315_v21  ;;  %v7968_v35 = vcombine.low %v311_v20, %v315_v21  ;;  %v364_v20 = vld [vmem:[#allocation5 + $0x778] sm:$0xff] }
 0x19f   :  { %3600 = vmatmul.mubr.bf16.vlgmr.msra.gmra.mrb[4].mxu0 %v9207_v53  ;;  %3764 = vmatmul.mubr.bf16.vlgmr.msra.gmra.mrb[4].mxu1 %v9207_v53  ;;  %v7930_v53 = vcombine.low %v272_v36, %v276_v37  ;;  %v7970_v36 = vcombine.low %v312_v22, %v316_v23 }
 0x1a0   :  { %3609 = vmatpush1.bf16.msra.mxu0 %v7912_v26  ;;  %3773 = vmatpush1.bf16.msra.mxu1 %v7914_v28  ;;  %v7971_v26 = vcombine.high %v312_v22, %v316_v23  ;;  %v319_v28 = vld [vmem:[#allocation5 + $0x610] sm:$0xff] }
 0x1a1   :  { %3610 = vmatprep.subr.bf16.mxu0 %v7921_v29  ;;  %3774 = vmatprep.subr.bf16.mxu1 %v7923_v33  ;;  %v323_v29 = vld [vmem:[#allocation5 + $0x630] sm:$0xff]  ;;  %v320_v33 = vld [vmem:[#allocation5 + $0x618] sm:$0xff] }
 0x1a2   :  { %3640 = vmatprep.mubr.bf16.mxu0 %v9211_v27  ;;  %3804 = vmatprep.mubr.bf16.mxu1 %v9211_v27  ;;  %v7947_v27 = vcombine.high %v288_v52, %v292_v55  ;;  %v7977_v37 = vcombine.high %v319_v28, %v323_v29  ;;  %v7976_v44 = vcombine.low %v319_v28, %v323_v29  ;;  %v372_v28 = vld [vmem:[#allocation5 + $0x7b8] sm:$0xff] }
 0x1a3   :  { %v7978_v45 = vcombine.low %v320_v33, %v324_v34 }
 0x1a4   :  { %3611 = vmatpush1.bf16.msra.mxu0 %v7920_v38  ;;  %3775 = vmatpush1.bf16.msra.mxu1 %v7922_v40  ;;  %v7979_v38 = vcombine.high %v320_v33, %v324_v34  ;;  %v327_v40 = vld [vmem:[#allocation5 + $0x650] sm:$0xff] }
 0x1a5   :  { %3612 = vmatprep.subr.bf16.mxu0 %v7929_v41  ;;  %3776 = vmatprep.subr.bf16.mxu1 %v7931_v42  ;;  %v331_v41 = vld [vmem:[#allocation5 + $0x670] sm:$0xff]  ;;  %v328_v42 = vld [vmem:[#allocation5 + $0x658] sm:$0xff] }
 0x1a6   :  { %v7985_v46 = vcombine.high %v327_v40, %v331_v41  ;;  %v7984_v0 = vcombine.low %v327_v40, %v331_v41  ;;  %v7986_v52 = vcombine.low %v328_v42, %v332_v43  ;;  %v380_v40 = vld [vmem:[#allocation5 + $0x7f8] sm:$0xff] }
 0x1a8   :  { %3613 = vmatpush1.bf16.msra.mxu0 %v7928_v48  ;;  %3777 = vmatpush1.bf16.msra.mxu1 %v7930_v53  ;;  %v7987_v48 = vcombine.high %v328_v42, %v332_v43  ;;  %v335_v53 = vld [vmem:[#allocation5 + $0x690] sm:$0xff] }
 0x1a9   :  { %3614 = vmatprep.subr.bf16.mxu0 %v7937_v50  ;;  %3778 = vmatprep.subr.bf16.mxu1 %v7939_v51  ;;  %v339_v50 = vld [vmem:[#allocation5 + $0x6b0] sm:$0xff]  ;;  %v336_v51 = vld [vmem:[#allocation5 + $0x698] sm:$0xff] }
 0x1aa   :  { %v7993_v55 = vcombine.high %v335_v53, %v339_v50  ;;  %v7992_v1 = vcombine.low %v335_v53, %v339_v50  ;;  %v7994_v2 = vcombine.low %v336_v51, %v340_v63  ;;  %v388_v53 = vld [vmem:[#allocation5 + $0x838] sm:$0xff] }
 0x1ac   :  { %3615 = vmatpush1.bf16.msra.mxu0 %v7936_v56  ;;  %3779 = vmatpush1.bf16.msra.mxu1 %v7938_v57  ;;  %v7995_v56 = vcombine.high %v336_v51, %v340_v63  ;;  %v343_v57 = vld [vmem:[#allocation5 + $0x6d0] sm:$0xff] }
 0x1ad   :  { %3616 = vmatprep.subr.bf16.mxu0 %v7945_v59  ;;  %3780 = vmatprep.subr.bf16.mxu1 %v7947_v27  ;;  %v347_v59 = vld [vmem:[#allocation5 + $0x6f0] sm:$0xff]  ;;  %v344_v27 = vld [vmem:[#allocation5 + $0x6d8] sm:$0xff] }
 0x1ae   :  { %v8001_v3 = vcombine.high %v343_v57, %v347_v59  ;;  %v8000_v9 = vcombine.low %v343_v57, %v347_v59  ;;  %v8002_v13 = vcombine.low %v344_v27, %v348_v60  ;;  %v396_v57 = vld [vmem:[#allocation5 + $0x878] sm:$0xff] }
 0x1b0   :  { %3617 = vmatpush1.bf16.msra.mxu0 %v7944_v4  ;;  %3781 = vmatpush1.bf16.msra.mxu1 %v7946_v5  ;;  %v8003_v4 = vcombine.high %v344_v27, %v348_v60  ;;  %v351_v5 = vld [vmem:[#allocation5 + $0x710] sm:$0xff] }
 0x1b1   :  { %3618 = vmatprep.subr.bf16.mxu0 %v7953_v6  ;;  %3782 = vmatprep.subr.bf16.mxu1 %v7955_v32  ;;  %v355_v6 = vld [vmem:[#allocation5 + $0x730] sm:$0xff]  ;;  %v352_v32 = vld [vmem:[#allocation5 + $0x718] sm:$0xff] }
 0x1b2   :  { %v8009_v14 = vcombine.high %v351_v5, %v355_v6  ;;  %v8008_v21 = vcombine.low %v351_v5, %v355_v6  ;;  %v8010_v22 = vcombine.low %v352_v32, %v356_v8  ;;  %v404_v5 = vld [vmem:[#allocation5 + $0x8b8] sm:$0xff] }
 0x1b4   :  { %3619 = vmatpush1.bf16.msra.mxu0 %v7952_v15  ;;  %3783 = vmatpush1.bf16.msra.mxu1 %v7954_v16  ;;  %v8011_v15 = vcombine.high %v352_v32, %v356_v8  ;;  %v359_v16 = vld [vmem:[#allocation5 + $0x750] sm:$0xff] }
 0x1b5   :  { %3620 = vmatprep.subr.bf16.mxu0 %v7961_v17  ;;  %3784 = vmatprep.subr.bf16.mxu1 %v7963_v54  ;;  %v363_v17 = vld [vmem:[#allocation5 + $0x770] sm:$0xff]  ;;  %v360_v54 = vld [vmem:[#allocation5 + $0x758] sm:$0xff] }
 0x1b6   :  { %v8017_v23 = vcombine.high %v359_v16, %v363_v17  ;;  %v8016_v29 = vcombine.low %v359_v16, %v363_v17  ;;  %v8018_v33 = vcombine.low %v360_v54, %v364_v20  ;;  %v412_v16 = vld [vmem:[#allocation5 + $0x8f8] sm:$0xff] }
 0x1b8   :  { %3621 = vmatpush1.bf16.msra.mxu0 %v7960_v62  ;;  %3785 = vmatpush1.bf16.msra.mxu1 %v7962_v24  ;;  %v8019_v62 = vcombine.high %v360_v54, %v364_v20  ;;  %v367_v24 = vld [vmem:[#allocation5 + $0x790] sm:$0xff] }
 0x1b9   :  { %3622 = vmatprep.subr.bf16.mxu0 %v7969_v25  ;;  %3786 = vmatprep.subr.bf16.mxu1 %v7971_v26  ;;  %v371_v25 = vld [vmem:[#allocation5 + $0x7b0] sm:$0xff]  ;;  %v368_v26 = vld [vmem:[#allocation5 + $0x798] sm:$0xff] }
 0x1ba   :  { %v8025_v34 = vcombine.high %v367_v24, %v371_v25  ;;  %v8024_v41 = vcombine.low %v367_v24, %v371_v25  ;;  %v8026_v42 = vcombine.low %v368_v26, %v372_v28 }
 0x1bc   :  { %3623 = vmatpush1.bf16.msra.mxu0 %v7968_v35  ;;  %3787 = vmatpush1.bf16.msra.mxu1 %v7970_v36  ;;  %v8027_v35 = vcombine.high %v368_v26, %v372_v28  ;;  %v375_v36 = vld [vmem:[#allocation5 + $0x7d0] sm:$0xff] }
 0x1bd   :  { %3624 = vmatprep.subr.bf16.mxu0 %v7977_v37  ;;  %3788 = vmatprep.subr.bf16.mxu1 %v7979_v38  ;;  %v379_v37 = vld [vmem:[#allocation5 + $0x7f0] sm:$0xff]  ;;  %v376_v38 = vld [vmem:[#allocation5 + $0x7d8] sm:$0xff] }
 0x1be   :  { %v8033_v43 = vcombine.high %v375_v36, %v379_v37  ;;  %v8032_v50 = vcombine.low %v375_v36, %v379_v37  ;;  %v8034_v51 = vcombine.low %v376_v38, %v380_v40  ;;  %v423_v28 = vld [vmem:[#allocation5 + $0x950] sm:$0xff] }
 0x1c0   :  { %3625 = vmatpush1.bf16.msra.mxu0 %v7976_v44  ;;  %3789 = vmatpush1.bf16.msra.mxu1 %v7978_v45  ;;  %v8035_v44 = vcombine.high %v376_v38, %v380_v40  ;;  %v383_v45 = vld [vmem:[#allocation5 + $0x810] sm:$0xff] }
 0x1c1   :  { %3626 = vmatprep.subr.bf16.mxu0 %v7985_v46  ;;  %3790 = vmatprep.subr.bf16.mxu1 %v7987_v48  ;;  %v387_v46 = vld [vmem:[#allocation5 + $0x830] sm:$0xff]  ;;  %v384_v48 = vld [vmem:[#allocation5 + $0x818] sm:$0xff] }
 0x1c2   :  { %v8041_v63 = vcombine.high %v383_v45, %v387_v46  ;;  %v8040_v59 = vcombine.low %v383_v45, %v387_v46  ;;  %v8042_v27 = vcombine.low %v384_v48, %v388_v53  ;;  %v431_v40 = vld [vmem:[#allocation5 + $0x990] sm:$0xff] }
 0x1c4   :  { %3627 = vmatpush1.bf16.msra.mxu0 %v7984_v0  ;;  %3791 = vmatpush1.bf16.msra.mxu1 %v7986_v52  ;;  %v8043_v0 = vcombine.high %v384_v48, %v388_v53  ;;  %v391_v52 = vld [vmem:[#allocation5 + $0x850] sm:$0xff] }
 0x1c5   :  { %3628 = vmatprep.subr.bf16.mxu0 %v7993_v55  ;;  %3792 = vmatprep.subr.bf16.mxu1 %v7995_v56  ;;  %v395_v55 = vld [vmem:[#allocation5 + $0x870] sm:$0xff]  ;;  %v392_v56 = vld [vmem:[#allocation5 + $0x858] sm:$0xff] }
 0x1c6   :  { %v8049_v60 = vcombine.high %v391_v52, %v395_v55  ;;  %v8048_v6 = vcombine.low %v391_v52, %v395_v55  ;;  %v8050_v32 = vcombine.low %v392_v56, %v396_v57  ;;  %v439_v53 = vld [vmem:[#allocation5 + $0x9d0] sm:$0xff] }
 0x1c8   :  { %3629 = vmatpush1.bf16.msra.mxu0 %v7992_v1  ;;  %3793 = vmatpush1.bf16.msra.mxu1 %v7994_v2  ;;  %v8051_v1 = vcombine.high %v392_v56, %v396_v57  ;;  %v399_v2 = vld [vmem:[#allocation5 + $0x890] sm:$0xff] }
 0x1c9   :  { %3630 = vmatprep.subr.bf16.mxu0 %v8001_v3  ;;  %3794 = vmatprep.subr.bf16.mxu1 %v8003_v4  ;;  %v403_v3 = vld [vmem:[#allocation5 + $0x8b0] sm:$0xff]  ;;  %v400_v4 = vld [vmem:[#allocation5 + $0x898] sm:$0xff] }
 0x1ca   :  { %v8057_v8 = vcombine.high %v399_v2, %v403_v3  ;;  %v8056_v17 = vcombine.low %v399_v2, %v403_v3  ;;  %v447_v57 = vld [vmem:[#allocation5 + $0xa10] sm:$0xff] }
 0x1cc   :  { %3631 = vmatpush1.bf16.msra.mxu0 %v8000_v9  ;;  %3795 = vmatpush1.bf16.msra.mxu1 %v8002_v13  ;;  %v8059_v9 = vcombine.high %v400_v4, %v404_v5  ;;  %v407_v13 = vld [vmem:[#allocation5 + $0x8d0] sm:$0xff] }
 0x1cd   :  { %3632 = vmatprep.subr.bf16.mxu0 %v8009_v14  ;;  %3796 = vmatprep.subr.bf16.mxu1 %v8011_v15  ;;  %v411_v14 = vld [vmem:[#allocation5 + $0x8f0] sm:$0xff]  ;;  %v408_v15 = vld [vmem:[#allocation5 + $0x8d8] sm:$0xff] }
 0x1ce   :  { %v8065_v54 = vcombine.high %v407_v13, %v411_v14  ;;  %v8067_v20 = vcombine.high %v408_v15, %v412_v16  ;;  %v8064_v24 = vcombine.low %v407_v13, %v411_v14  ;;  %v8066_v25 = vcombine.low %v408_v15, %v412_v16  ;;  %v463_v16 = vld [vmem:[#allocation5 + $0xa90] sm:$0xff] }
 0x1d0   :  { %3633 = vmatpush1.bf16.msra.mxu0 %v8008_v21  ;;  %3797 = vmatpush1.bf16.msra.mxu1 %v8010_v22  ;;  %v415_v21 = vld [vmem:[#allocation5 + $0x910] sm:$0xff] }
 0x1d1   :  { %3634 = vmatprep.subr.bf16.mxu0 %v8017_v23  ;;  %3798 = vmatprep.subr.bf16.mxu1 %v8019_v62  ;;  %v419_v22 = vld [vmem:[#allocation5 + $0x930] sm:$0xff]  ;;  %v416_v23 = vld [vmem:[#allocation5 + $0x918] sm:$0xff] }
 0x1d2   :  { %v420_v62 = vld [vmem:[#allocation5 + $0x938] sm:$0xff]  ;;  %v8073_v26 = vcombine.high %v415_v21, %v419_v22 }
 0x1d3   :  { %v8074_v36 = vcombine.low %v416_v23, %v420_v62 }
 0x1d4   :  { %3635 = vmatpush1.bf16.msra.mxu0 %v8016_v29  ;;  %3799 = vmatpush1.bf16.msra.mxu1 %v8018_v33  ;;  %v427_v29 = vld [vmem:[#allocation5 + $0x970] sm:$0xff]  ;;  %v424_v33 = vld [vmem:[#allocation5 + $0x958] sm:$0xff] }
 0x1d5   :  { %3636 = vmatprep.subr.bf16.mxu0 %v8025_v34  ;;  %3800 = vmatprep.subr.bf16.mxu1 %v8027_v35  ;;  %v428_v34 = vld [vmem:[#allocation5 + $0x978] sm:$0xff]  ;;  %v8072_v35 = vcombine.low %v415_v21, %v419_v22  ;;  %v8081_v37 = vcombine.high %v423_v28, %v427_v29 }
 0x1d6   :  { %v8083_v38 = vcombine.high %v424_v33, %v428_v34  ;;  %v8082_v45 = vcombine.low %v424_v33, %v428_v34  ;;  %v479_v34 = vld [vmem:[#allocation5 + $0xb10] sm:$0xff] }
 0x1d8   :  { %3637 = vmatpush1.bf16.msra.mxu0 %v8024_v41  ;;  %3801 = vmatpush1.bf16.msra.mxu1 %v8026_v42  ;;  %v435_v41 = vld [vmem:[#allocation5 + $0x9b0] sm:$0xff]  ;;  %v432_v42 = vld [vmem:[#allocation5 + $0x998] sm:$0xff] }
 0x1d9   :  { %3638 = vmatprep.subr.bf16.mxu0 %v8033_v43  ;;  %3802 = vmatprep.subr.bf16.mxu1 %v8035_v44  ;;  %v436_v43 = vld [vmem:[#allocation5 + $0x9b8] sm:$0xff]  ;;  %v8080_v44 = vcombine.low %v423_v28, %v427_v29  ;;  %v8089_v46 = vcombine.high %v431_v40, %v435_v41 }
 0x1da   :  { %v8091_v48 = vcombine.high %v432_v42, %v436_v43  ;;  %v8090_v52 = vcombine.low %v432_v42, %v436_v43  ;;  %v487_v43 = vld [vmem:[#allocation5 + $0xb50] sm:$0xff] }
 0x1dc   :  { %3639 = vmatpush1.bf16.msra.mxu0 %v8032_v50  ;;  %3803 = vmatpush1.bf16.msra.mxu1 %v8034_v51  ;;  %v443_v50 = vld [vmem:[#allocation5 + $0x9f0] sm:$0xff]  ;;  %v440_v51 = vld [vmem:[#allocation5 + $0x9d8] sm:$0xff] }
 0x1dd   :  { %3649 = vmatprep.subr.bf16.mxu0 %v8041_v63  ;;  %3813 = vmatprep.subr.bf16.mxu1 %v8043_v0  ;;  %v444_v63 = vld [vmem:[#allocation5 + $0x9f8] sm:$0xff]  ;;  %v8088_v0 = vcombine.low %v431_v40, %v435_v41  ;;  %v8097_v55 = vcombine.high %v439_v53, %v443_v50 }
 0x1de   :  { %v8099_v56 = vcombine.high %v440_v51, %v444_v63  ;;  %v8098_v2 = vcombine.low %v440_v51, %v444_v63  ;;  %v495_v63 = vld [vmem:[#allocation5 + $0xb90] sm:$0xff] }
 0x1df   :  { %3641 = vmatmul.mubr.bf16.vlgmr.msra.gmra.mrb[4].mxu0 %v9231_v11  ;;  %3805 = vmatmul.mubr.bf16.vlgmr.msra.gmra.mrb[4].mxu1 %v9231_v11  ;;  %v8058_v11 = vcombine.low %v400_v4, %v404_v5  ;;  %v455_v5 = vld [vmem:[#allocation5 + $0xa50] sm:$0xff] }
 0x1e0   :  { %3650 = vmatpush1.bf16.msra.mxu0 %v8040_v59  ;;  %3814 = vmatpush1.bf16.msra.mxu1 %v8042_v27  ;;  %v451_v59 = vld [vmem:[#allocation5 + $0xa30] sm:$0xff]  ;;  %v448_v27 = vld [vmem:[#allocation5 + $0xa18] sm:$0xff] }
 0x1e1   :  { %3651 = vmatprep.subr.bf16.mxu0 %v8049_v60  ;;  %3815 = vmatprep.subr.bf16.mxu1 %v8051_v1  ;;  %v452_v60 = vld [vmem:[#allocation5 + $0xa38] sm:$0xff]  ;;  %v8096_v1 = vcombine.low %v439_v53, %v443_v50  ;;  %v8105_v3 = vcombine.high %v447_v57, %v451_v59 }
 0x1e2   :  { %3681 = vmatprep.mubr.bf16.mxu0 %v9235_v47  ;;  %3845 = vmatprep.mubr.bf16.mxu1 %v9235_v47  ;;  %v8075_v47 = vcombine.high %v416_v23, %v420_v62  ;;  %v8107_v4 = vcombine.high %v448_v27, %v452_v60  ;;  %v8106_v13 = vcombine.low %v448_v27, %v452_v60  ;;  %v471_v62 = vld [vmem:[#allocation5 + $0xad0] sm:$0xff] }
 0x1e3   :  { %v503_v60 = vld [vmem:[#allocation5 + $0xbd0] sm:$0xff] }
 0x1e4   :  { %3652 = vmatpush1.bf16.msra.mxu0 %v8048_v6  ;;  %3816 = vmatpush1.bf16.msra.mxu1 %v8050_v32  ;;  %v459_v6 = vld [vmem:[#allocation5 + $0xa70] sm:$0xff]  ;;  %v456_v32 = vld [vmem:[#allocation5 + $0xa58] sm:$0xff] }
 0x1e5   :  { %3653 = vmatprep.subr.bf16.mxu0 %v8057_v8  ;;  %3817 = vmatprep.subr.bf16.mxu1 %v8059_v9  ;;  %v460_v8 = vld [vmem:[#allocation5 + $0xa78] sm:$0xff]  ;;  %v8104_v9 = vcombine.low %v447_v57, %v451_v59  ;;  %v8113_v14 = vcombine.high %v455_v5, %v459_v6 }
 0x1e6   :  { %v8115_v15 = vcombine.high %v456_v32, %v460_v8  ;;  %v8114_v21 = vcombine.low %v456_v32, %v460_v8  ;;  %v511_v8 = vld [vmem:[#allocation5 + $0xc10] sm:$0xff] }
 0x1e8   :  { %3654 = vmatpush1.bf16.msra.mxu0 %v8056_v17  ;;  %3818 = vmatpush1.bf16.msra.mxu1 %v8058_v11  ;;  %v467_v17 = vld [vmem:[#allocation5 + $0xab0] sm:$0xff]  ;;  %v464_v11 = vld [vmem:[#allocation5 + $0xa98] sm:$0xff] }
 0x1e9   :  { %3655 = vmatprep.subr.bf16.mxu0 %v8065_v54  ;;  %3819 = vmatprep.subr.bf16.mxu1 %v8067_v20  ;;  %v468_v54 = vld [vmem:[#allocation5 + $0xab8] sm:$0xff]  ;;  %v8112_v20 = vcombine.low %v455_v5, %v459_v6  ;;  %v8121_v22 = vcombine.high %v463_v16, %v467_v17 }
 0x1ea   :  { %v8123_v23 = vcombine.high %v464_v11, %v468_v54  ;;  %v8122_v28 = vcombine.low %v464_v11, %v468_v54  ;;  %v519_v54 = vld [vmem:[#allocation5 + $0xc50] sm:$0xff] }
 0x1ec   :  { %3656 = vmatpush1.bf16.msra.mxu0 %v8064_v24  ;;  %3820 = vmatpush1.bf16.msra.mxu1 %v8066_v25  ;;  %v475_v24 = vld [vmem:[#allocation5 + $0xaf0] sm:$0xff]  ;;  %v472_v25 = vld [vmem:[#allocation5 + $0xad8] sm:$0xff] }
 0x1ed   :  { %3657 = vmatprep.subr.bf16.mxu0 %v8073_v26  ;;  %3821 = vmatprep.subr.bf16.mxu1 %v8075_v47  ;;  %v476_v26 = vld [vmem:[#allocation5 + $0xaf8] sm:$0xff]  ;;  %v8120_v47 = vcombine.low %v463_v16, %v467_v17  ;;  %v8129_v29 = vcombine.high %v471_v62, %v475_v24 }
 0x1ee   :  { %v8131_v33 = vcombine.high %v472_v25, %v476_v26  ;;  %v8130_v40 = vcombine.low %v472_v25, %v476_v26  ;;  %v527_v26 = vld [vmem:[#allocation5 + $0xc90] sm:$0xff] }
 0x1f0   :  { %3658 = vmatpush1.bf16.msra.mxu0 %v8072_v35  ;;  %3822 = vmatpush1.bf16.msra.mxu1 %v8074_v36  ;;  %v483_v35 = vld [vmem:[#allocation5 + $0xb30] sm:$0xff]  ;;  %v480_v36 = vld [vmem:[#allocation5 + $0xb18] sm:$0xff] }
 0x1f1   :  { %3659 = vmatprep.subr.bf16.mxu0 %v8081_v37  ;;  %3823 = vmatprep.subr.bf16.mxu1 %v8083_v38  ;;  %v484_v37 = vld [vmem:[#allocation5 + $0xb38] sm:$0xff]  ;;  %v8128_v38 = vcombine.low %v471_v62, %v475_v24  ;;  %v8137_v41 = vcombine.high %v479_v34, %v483_v35 }
 0x1f2   :  { %v8139_v42 = vcombine.high %v480_v36, %v484_v37  ;;  %v8138_v53 = vcombine.low %v480_v36, %v484_v37  ;;  %v535_v37 = vld [vmem:[#allocation5 + $0xcd0] sm:$0xff] }
 0x1f4   :  { %3660 = vmatpush1.bf16.msra.mxu0 %v8080_v44  ;;  %3824 = vmatpush1.bf16.msra.mxu1 %v8082_v45  ;;  %v491_v44 = vld [vmem:[#allocation5 + $0xb70] sm:$0xff]  ;;  %v488_v45 = vld [vmem:[#allocation5 + $0xb58] sm:$0xff] }
 0x1f5   :  { %3661 = vmatprep.subr.bf16.mxu0 %v8089_v46  ;;  %3825 = vmatprep.subr.bf16.mxu1 %v8091_v48  ;;  %v492_v46 = vld [vmem:[#allocation5 + $0xb78] sm:$0xff]  ;;  %v8136_v48 = vcombine.low %v479_v34, %v483_v35  ;;  %v8145_v50 = vcombine.high %v487_v43, %v491_v44 }
 0x1f6   :  { %v8147_v51 = vcombine.high %v488_v45, %v492_v46  ;;  %v8146_v57 = vcombine.low %v488_v45, %v492_v46  ;;  %v543_v45 = vld [vmem:[#allocation5 + $0xd10] sm:$0xff] }
 0x1f7   :  { %v547_v46 = vld [vmem:[#allocation5 + $0xd30] sm:$0xff] }
 0x1f8   :  { %3662 = vmatpush1.bf16.msra.mxu0 %v8088_v0  ;;  %3826 = vmatpush1.bf16.msra.mxu1 %v8090_v52  ;;  %v499_v0 = vld [vmem:[#allocation5 + $0xbb0] sm:$0xff]  ;;  %v496_v52 = vld [vmem:[#allocation5 + $0xb98] sm:$0xff] }
 0x1f9   :  { %3663 = vmatprep.subr.bf16.mxu0 %v8097_v55  ;;  %3827 = vmatprep.subr.bf16.mxu1 %v8099_v56  ;;  %v500_v55 = vld [vmem:[#allocation5 + $0xbb8] sm:$0xff]  ;;  %v8144_v56 = vcombine.low %v487_v43, %v491_v44  ;;  %v8153_v59 = vcombine.high %v495_v63, %v499_v0 }
 0x1fa   :  { %v8155_v27 = vcombine.high %v496_v52, %v500_v55  ;;  %v8154_v5 = vcombine.low %v496_v52, %v500_v55  ;;  %v555_v52 = vld [vmem:[#allocation5 + $0xd70] sm:$0xff]  ;;  %v552_v55 = vld [vmem:[#allocation5 + $0xd58] sm:$0xff] }
 0x1fc   :  { %3664 = vmatpush1.bf16.msra.mxu0 %v8096_v1  ;;  %3828 = vmatpush1.bf16.msra.mxu1 %v8098_v2  ;;  %v507_v1 = vld [vmem:[#allocation5 + $0xbf0] sm:$0xff]  ;;  %v504_v2 = vld [vmem:[#allocation5 + $0xbd8] sm:$0xff] }
 0x1fd   :  { %3665 = vmatprep.subr.bf16.mxu0 %v8105_v3  ;;  %3829 = vmatprep.subr.bf16.mxu1 %v8107_v4  ;;  %v508_v3 = vld [vmem:[#allocation5 + $0xbf8] sm:$0xff]  ;;  %v8152_v4 = vcombine.low %v495_v63, %v499_v0  ;;  %v8161_v6 = vcombine.high %v503_v60, %v507_v1  ;;  %v8201_v63 = vcombine.high %v543_v45, %v547_v46  ;;  %v551_v0 = vld [vmem:[#allocation5 + $0xd50] sm:$0xff] }
 0x1fe   :  { %v8163_v32 = vcombine.high %v504_v2, %v508_v3  ;;  %v8162_v16 = vcombine.low %v504_v2, %v508_v3  ;;  %v563_v2 = vld [vmem:[#allocation5 + $0xdb0] sm:$0xff]  ;;  %v560_v3 = vld [vmem:[#allocation5 + $0xd98] sm:$0xff] }
 0x200   :  { %3666 = vmatpush1.bf16.msra.mxu0 %v8104_v9  ;;  %3830 = vmatpush1.bf16.msra.mxu1 %v8106_v13  ;;  %v515_v9 = vld [vmem:[#allocation5 + $0xc30] sm:$0xff]  ;;  %v512_v13 = vld [vmem:[#allocation5 + $0xc18] sm:$0xff] }
 0x201   :  { %3667 = vmatprep.subr.bf16.mxu0 %v8113_v14  ;;  %3831 = vmatprep.subr.bf16.mxu1 %v8115_v15  ;;  %v516_v14 = vld [vmem:[#allocation5 + $0xc38] sm:$0xff]  ;;  %v8160_v15 = vcombine.low %v503_v60, %v507_v1  ;;  %v8169_v17 = vcombine.high %v511_v8, %v515_v9  ;;  %v559_v1 = vld [vmem:[#allocation5 + $0xd90] sm:$0xff] }
 0x202   :  { %v8171_v11 = vcombine.high %v512_v13, %v516_v14  ;;  %v8170_v62 = vcombine.low %v512_v13, %v516_v14  ;;  %v567_v13 = vld [vmem:[#allocation5 + $0xdd0] sm:$0xff] }
 0x203   :  { %v571_v14 = vld [vmem:[#allocation5 + $0xdf0] sm:$0xff] }
 0x204   :  { %3668 = vmatpush1.bf16.msra.mxu0 %v8112_v20  ;;  %3832 = vmatpush1.bf16.msra.mxu1 %v8114_v21  ;;  %v523_v20 = vld [vmem:[#allocation5 + $0xc70] sm:$0xff]  ;;  %v520_v21 = vld [vmem:[#allocation5 + $0xc58] sm:$0xff] }
 0x205   :  { %3669 = vmatprep.subr.bf16.mxu0 %v8121_v22  ;;  %3833 = vmatprep.subr.bf16.mxu1 %v8123_v23  ;;  %v524_v22 = vld [vmem:[#allocation5 + $0xc78] sm:$0xff]  ;;  %v8168_v23 = vcombine.low %v511_v8, %v515_v9  ;;  %v8177_v24 = vcombine.high %v519_v54, %v523_v20 }
 0x206   :  { %v8179_v25 = vcombine.high %v520_v21, %v524_v22  ;;  %v8178_v34 = vcombine.low %v520_v21, %v524_v22  ;;  %v8216_v21 = vcombine.low %v559_v1, %v563_v2 }
 0x208   :  { %3670 = vmatpush1.bf16.msra.mxu0 %v8120_v47  ;;  %3834 = vmatpush1.bf16.msra.mxu1 %v8122_v28  ;;  %v531_v47 = vld [vmem:[#allocation5 + $0xcb0] sm:$0xff]  ;;  %v528_v28 = vld [vmem:[#allocation5 + $0xc98] sm:$0xff] }
 0x209   :  { %3671 = vmatprep.subr.bf16.mxu0 %v8129_v29  ;;  %3835 = vmatprep.subr.bf16.mxu1 %v8131_v33  ;;  %v532_v29 = vld [vmem:[#allocation5 + $0xcb8] sm:$0xff]  ;;  %v8176_v33 = vcombine.low %v519_v54, %v523_v20  ;;  %v8185_v35 = vcombine.high %v527_v26, %v531_v47 }
 0x20a   :  { %v8187_v36 = vcombine.high %v528_v28, %v532_v29 }
 0x20c   :  { %3672 = vmatpush1.bf16.msra.mxu0 %v8128_v38  ;;  %3836 = vmatpush1.bf16.msra.mxu1 %v8130_v40  ;;  %v539_v38 = vld [vmem:[#allocation5 + $0xcf0] sm:$0xff]  ;;  %v536_v40 = vld [vmem:[#allocation5 + $0xcd8] sm:$0xff] }
 0x20d   :  { %3673 = vmatprep.subr.bf16.mxu0 %v8137_v41  ;;  %3837 = vmatprep.subr.bf16.mxu1 %v8139_v42  ;;  %v540_v41 = vld [vmem:[#allocation5 + $0xcf8] sm:$0xff]  ;;  %v8184_v42 = vcombine.low %v527_v26, %v531_v47  ;;  %v8193_v43 = vcombine.high %v535_v37, %v539_v38  ;;  %v575_v26 = vld [vmem:[#allocation5 + $0xe10] sm:$0xff] }
 0x20e   :  { %v8195_v44 = vcombine.high %v536_v40, %v540_v41  ;;  %v579_v47 = vld [vmem:[#allocation5 + $0xe30] sm:$0xff] }
 0x210   :  { %3674 = vmatpush1.bf16.msra.mxu0 %v8136_v48  ;;  %3838 = vmatpush1.bf16.msra.mxu1 %v8138_v53  ;;  %v544_v48 = vld [vmem:[#allocation5 + $0xd18] sm:$0xff] }
 0x211   :  { %3675 = vmatprep.subr.bf16.mxu0 %v8145_v50  ;;  %3839 = vmatprep.subr.bf16.mxu1 %v8147_v51  ;;  %v548_v53 = vld [vmem:[#allocation5 + $0xd38] sm:$0xff]  ;;  %v8192_v50 = vcombine.low %v535_v37, %v539_v38  ;;  %v8194_v51 = vcombine.low %v536_v40, %v540_v41  ;;  %v583_v38 = vld [vmem:[#allocation5 + $0xe50] sm:$0xff] }
 0x212   :  { %v587_v40 = vld [vmem:[#allocation5 + $0xe70] sm:$0xff]  ;;  %v584_v41 = vld [vmem:[#allocation5 + $0xe58] sm:$0xff] }
 0x214   :  { %3676 = vmatpush1.bf16.msra.mxu0 %v8144_v56  ;;  %3840 = vmatpush1.bf16.msra.mxu1 %v8146_v57  ;;  %v556_v56 = vld [vmem:[#allocation5 + $0xd78] sm:$0xff]  ;;  %v8200_v57 = vcombine.low %v543_v45, %v547_v46  ;;  %v591_v46 = vld [vmem:[#allocation5 + $0xe90] sm:$0xff] }
 0x215   :  { %3677 = vmatprep.subr.bf16.mxu0 %v8153_v59  ;;  %3841 = vmatprep.subr.bf16.mxu1 %v8155_v27  ;;  %v8202_v59 = vcombine.low %v544_v48, %v548_v53  ;;  %v8209_v27 = vcombine.high %v551_v0, %v555_v52  ;;  %v8211_v60 = vcombine.high %v552_v55, %v556_v56 }
 0x218   :  { %3678 = vmatpush1.bf16.msra.mxu0 %v8152_v4  ;;  %3842 = vmatpush1.bf16.msra.mxu1 %v8154_v5  ;;  %v564_v4 = vld [vmem:[#allocation5 + $0xdb8] sm:$0xff]  ;;  %v8208_v5 = vcombine.low %v551_v0, %v555_v52  ;;  %v599_v52 = vld [vmem:[#allocation5 + $0xed0] sm:$0xff] }
 0x219   :  { %3679 = vmatprep.subr.bf16.mxu0 %v8161_v6  ;;  %3843 = vmatprep.subr.bf16.mxu1 %v8163_v32  ;;  %v8210_v6 = vcombine.low %v552_v55, %v556_v56  ;;  %v8217_v32 = vcombine.high %v559_v1, %v563_v2  ;;  %v8219_v9 = vcombine.high %v560_v3, %v564_v4  ;;  %v603_v55 = vld [vmem:[#allocation5 + $0xef0] sm:$0xff]  ;;  %v600_v56 = vld [vmem:[#allocation5 + $0xed8] sm:$0xff] }
 0x21a   :  { %v8257_v1 = vcombine.high %v599_v52, %v603_v55 }
 0x21c   :  { %3680 = vmatpush1.bf16.msra.mxu0 %v8160_v15  ;;  %3844 = vmatpush1.bf16.msra.mxu1 %v8162_v16 }
 0x21d   :  { %3690 = vmatprep.subr.bf16.mxu0 %v8169_v17  ;;  %3854 = vmatprep.subr.bf16.mxu1 %v8171_v11  ;;  %v568_v17 = vld [vmem:[#allocation5 + $0xdd8] sm:$0xff] }
 0x21e   :  { %v572_v11 = vld [vmem:[#allocation5 + $0xdf8] sm:$0xff] }
 0x21f   :  { %3682 = vmatmul.mubr.bf16.vlgmr.msra.gmra.mrb[4].mxu0 %v9255_v31  ;;  %3846 = vmatmul.mubr.bf16.vlgmr.msra.gmra.mrb[4].mxu1 %v9255_v31  ;;  %v8186_v31 = vcombine.low %v528_v28, %v532_v29  ;;  %v576_v29 = vld [vmem:[#allocation5 + $0xe18] sm:$0xff] }
 0x220   :  { %3691 = vmatpush1.bf16.msra.mxu0 %v8168_v23  ;;  %3855 = vmatpush1.bf16.msra.mxu1 %v8170_v62  ;;  %v8218_v62 = vcombine.low %v560_v3, %v564_v4  ;;  %v607_v3 = vld [vmem:[#allocation5 + $0xf10] sm:$0xff] }
 0x221   :  { %3692 = vmatprep.subr.bf16.mxu0 %v8177_v24  ;;  %3856 = vmatprep.subr.bf16.mxu1 %v8179_v25  ;;  %v8225_v24 = vcombine.high %v567_v13, %v571_v14  ;;  %v8227_v25 = vcombine.high %v568_v17, %v572_v11  ;;  %v611_v4 = vld [vmem:[#allocation5 + $0xf30] sm:$0xff] }
 0x222   :  { %3722 = vmatprep.mubr.bf16.mxu0 %v9259_v18  ;;  %3886 = vmatprep.mubr.bf16.mxu1 %v9259_v18  ;;  %v8203_v18 = vcombine.high %v544_v48, %v548_v53  ;;  %v595_v48 = vld [vmem:[#allocation5 + $0xeb0] sm:$0xff]  ;;  %v592_v53 = vld [vmem:[#allocation5 + $0xe98] sm:$0xff] }
 0x224   :  { %3693 = vmatpush1.bf16.msra.mxu0 %v8176_v33  ;;  %3857 = vmatpush1.bf16.msra.mxu1 %v8178_v34  ;;  %v580_v33 = vld [vmem:[#allocation5 + $0xe38] sm:$0xff]  ;;  %v8224_v34 = vcombine.low %v567_v13, %v571_v14  ;;  %v8265_v14 = vcombine.high %v607_v3, %v611_v4 }
 0x225   :  { %3694 = vmatprep.subr.bf16.mxu0 %v8185_v35  ;;  %3858 = vmatprep.subr.bf16.mxu1 %v8187_v36  ;;  %v8226_v35 = vcombine.low %v568_v17, %v572_v11  ;;  %v8233_v36 = vcombine.high %v575_v26, %v579_v47  ;;  %v8235_v37 = vcombine.high %v576_v29, %v580_v33  ;;  %v615_v11 = vld [vmem:[#allocation5 + $0xf50] sm:$0xff] }
 0x228   :  { %3695 = vmatpush1.bf16.msra.mxu0 %v8184_v42  ;;  %3859 = vmatpush1.bf16.msra.mxu1 %v8186_v31  ;;  %v588_v42 = vld [vmem:[#allocation5 + $0xe78] sm:$0xff]  ;;  %v8232_v31 = vcombine.low %v575_v26, %v579_v47 }
 0x229   :  { %3696 = vmatprep.subr.bf16.mxu0 %v8193_v43  ;;  %3860 = vmatprep.subr.bf16.mxu1 %v8195_v44  ;;  %v8234_v43 = vcombine.low %v576_v29, %v580_v33  ;;  %v8241_v44 = vcombine.high %v583_v38, %v587_v40  ;;  %v8243_v45 = vcombine.high %v584_v41, %v588_v42  ;;  %v627_v29 = vld [vmem:[#allocation5 + $0xfb0] sm:$0xff]  ;;  %v624_v33 = vld [vmem:[#allocation5 + $0xf98] sm:$0xff] }
 0x22c   :  { %3697 = vmatpush1.bf16.msra.mxu0 %v8192_v50  ;;  %3861 = vmatpush1.bf16.msra.mxu1 %v8194_v51  ;;  %v596_v50 = vld [vmem:[#allocation5 + $0xeb8] sm:$0xff]  ;;  %v8240_v51 = vcombine.low %v583_v38, %v587_v40 }
 0x22d   :  { %3698 = vmatprep.subr.bf16.mxu0 %v8201_v63  ;;  %3862 = vmatprep.subr.bf16.mxu1 %v8203_v18  ;;  %v8242_v63 = vcombine.low %v584_v41, %v588_v42  ;;  %v8249_v18 = vcombine.high %v591_v46, %v595_v48  ;;  %v8251_v0 = vcombine.high %v592_v53, %v596_v50  ;;  %v631_v41 = vld [vmem:[#allocation5 + $0xfd0] sm:$0xff] }
 0x22e   :  { %v635_v42 = vld [vmem:[#allocation5 + $0xff0] sm:$0xff] }
 0x230   :  { %3699 = vmatpush1.bf16.msra.mxu0 %v8200_v57  ;;  %3863 = vmatpush1.bf16.msra.mxu1 %v8202_v59  ;;  %v604_v57 = vld [vmem:[#allocation5 + $0xef8] sm:$0xff]  ;;  %v639_v59 = vlaneseq }
 0x231   :  { %3700 = vmatprep.subr.bf16.mxu0 %v8209_v27  ;;  %3864 = vmatprep.subr.bf16.mxu1 %v8211_v60  ;;  %v8248_v27 = vcombine.low %v591_v46, %v595_v48  ;;  %v8250_v60 = vcombine.low %v592_v53, %v596_v50  ;;  %v8259_v2 = vcombine.high %v600_v56, %v604_v57  ;;  %v3927_v50 = vld [vmem:[#allocation8] sm:$0xff] }
 0x232   :  { %v9289_v8 = vpop.f32.mrb[0].mxu0  ;;  %v9291_v15 = vpop.f32.mrb[0].mxu1  ;;  %v8258_v13 = vcombine.low %v600_v56, %v604_v57  ;;  %v8289_v48 = vcombine.high %v631_v41, %v635_v42  ;;  %v3935_v57 = vld [vmem:[#allocation8 + $0x40] sm:$0xff] }
 0x233   :  { %v9293_v16 = vpop.f32.mrb[1].mxu0  ;;  %v9295_v54 = vpop.f32.mrb[1].mxu1 }
 0x234   :  { %v3400_v20 = vpop.f32.mrb[2].mxu0  ;;  %3701 = vmatpush1.bf16.msra.mxu0 %v8208_v5  ;;  %v3564_v22 = vpop.f32.mrb[2].mxu1  ;;  %3865 = vmatpush1.bf16.msra.mxu1 %v8210_v6  ;;  %v608_v5 = vld [vmem:[#allocation5 + $0xf18] sm:$0xff] }
 0x235   :  { %v3401_v23 = vpop.f32.mrb[3].mxu0  ;;  %3702 = vmatprep.subr.bf16.mxu0 %v8217_v32  ;;  %3866 = vmatprep.subr.bf16.mxu1 %v8219_v9  ;;  %v3565_v28 = vpop.f32.mrb[3].mxu1  ;;  %v612_v6 = vld [vmem:[#allocation5 + $0xf38] sm:$0xff]  ;;  %v9297_v32 = vshrl.u32 %v639_v59, 7  ;;  %v8256_v9 = vcombine.low %v599_v52, %v603_v55  ;;  %v619_v20 = vld [vmem:[#allocation5 + $0xf70] sm:$0xff]  ;;  %v8288_v52 = vcombine.low %v631_v41, %v635_v42  ;;  %v3939_v59 = vld [vmem:[#allocation8 + $0x60] sm:$0xff] }
 0x236   :  { %v8267_v17 = vcombine.high %v608_v5, %v612_v6  ;;  %v620_v22 = vld [vmem:[#allocation5 + $0xf78] sm:$0xff]  ;;  %v8273_v26 = vcombine.high %v615_v11, %v619_v20  ;;  %v623_v28 = vld [vmem:[#allocation5 + $0xf90] sm:$0xff] }
 0x237   :  { %v645_v23 = vsub.s32 1, %v9297_v32  ;;  %v8281_v38 = vcombine.high %v623_v28, %v627_v29 }
 0x238   :  { %3703 = vmatpush1.bf16.msra.mxu0 %v8216_v21  ;;  %3867 = vmatpush1.bf16.msra.mxu1 %v8218_v62  ;;  %v616_v21 = vld [vmem:[#allocation5 + $0xf58] sm:$0xff]  ;;  %v8264_v62 = vcombine.low %v607_v3, %v611_v4  ;;  %v8301_v4 = vcombine.high %v3935_v57, %v3939_v59 }
 0x239   :  { %3704 = vmatprep.subr.bf16.mxu0 %v8225_v24  ;;  %3868 = vmatprep.subr.bf16.mxu1 %v8227_v25  ;;  %v9300_v24 = vld [vmem:[#allocation7] sm:$0xff]  ;;  %v8266_v25 = vcombine.low %v608_v5, %v612_v6  ;;  %v8275_v47 = vcombine.high %v616_v21, %v620_v22  ;;  %v3943_v5 = vld [vmem:[#allocation8 + $0x80] sm:$0xff] }
 0x23a   :  { %v3947_v6 = vld [vmem:[#allocation8 + $0xa0] sm:$0xff] }
 0x23c   :  { %3705 = vmatpush1.bf16.msra.mxu0 %v8224_v34  ;;  %3869 = vmatpush1.bf16.msra.mxu1 %v8226_v35  ;;  %v628_v34 = vld [vmem:[#allocation5 + $0xfb8] sm:$0xff]  ;;  %v646_v35 = vrot.slane %v9300_v24, %v645_v23 }
 0x23d   :  { %3706 = vmatprep.subr.bf16.mxu0 %v8233_v36  ;;  %3870 = vmatprep.subr.bf16.mxu1 %v8235_v37  ;;  %v8272_v36 = vcombine.low %v615_v11, %v619_v20  ;;  %v8274_v37 = vcombine.low %v616_v21, %v620_v22  ;;  %v8283_v40 = vcombine.high %v624_v33, %v628_v34 }
 0x23e   :  { %v8282_v46 = vcombine.low %v624_v33, %v628_v34  ;;  %v8300_v11 = vcombine.low %v3935_v57, %v3939_v59  ;;  %v8309_v21 = vcombine.high %v3943_v5, %v3947_v6  ;;  %v3959_v34 = vld [vmem:[#allocation8 + $0x100] sm:$0xff] }
 0x23f   :  { %v3983_v57 = vld [vmem:[#allocation8 + $0x1c0] sm:$0xff] }
 0x240   :  { %3707 = vmatpush1.bf16.msra.mxu0 %v8232_v31  ;;  %3871 = vmatpush1.bf16.msra.mxu1 %v8234_v43  ;;  %v632_v31 = vld [vmem:[#allocation5 + $0xfd8] sm:$0xff]  ;;  %v3987_v59 = vld [vmem:[#allocation8 + $0x1e0] sm:$0xff] }
 0x241   :  { %3708 = vmatprep.subr.bf16.mxu0 %v8241_v44  ;;  %3872 = vmatprep.subr.bf16.mxu1 %v8243_v45  ;;  %v636_v43 = vld [vmem:[#allocation5 + $0xff8] sm:$0xff]  ;;  %v8805_v44 = vadd.f32 %v9293_v16, %v646_v35  ;;  %v8280_v45 = vcombine.low %v623_v28, %v627_v29  ;;  %v8308_v28 = vcombine.low %v3943_v5, %v3947_v6  ;;  %v3963_v35 = vld [vmem:[#allocation8 + $0x120] sm:$0xff] }
 0x242   :  { %v8291_v53 = vcombine.high %v632_v31, %v636_v43  ;;  %v8290_v55 = vcombine.low %v632_v31, %v636_v43  ;;  %v8325_v41 = vcombine.high %v3959_v34, %v3963_v35  ;;  %v3967_v31 = vld [vmem:[#allocation8 + $0x140] sm:$0xff] }
 0x243   :  { %vm3896_vm0 = vcmp.gt.f32.partialorder %v8805_v44, 0.0  ;;  %v3971_v43 = vld [vmem:[#allocation8 + $0x160] sm:$0xff] }
 0x244   :  { %3709 = vmatpush1.bf16.msra.mxu0 %v8240_v51  ;;  %3873 = vmatpush1.bf16.msra.mxu1 %v8242_v63  ;;  %v3931_v51 = vld [vmem:[#allocation8 + $0x20] sm:$0xff]  ;;  %v3928_v63 = vld [vmem:[#allocation8 + $0x8] sm:$0xff] }
 0x245   :  { %3710 = vmatprep.subr.bf16.mxu0 %v8249_v18  ;;  %3874 = vmatprep.subr.bf16.mxu1 %v8251_v0  ;;  %v3932_v18 = vld [vmem:[#allocation8 + $0x28] sm:$0xff]  ;;  %v3904_v0 = vmul.f32 0.01, %v8805_v44  ;;  %v8293_v16 = vcombine.high %v3927_v50, %v3931_v51  ;;  %v3991_v5 = vld [vmem:[#allocation8 + $0x200] sm:$0xff] }
 0x246   :  { %v8295_v56 = vcombine.high %v3928_v63, %v3932_v18  ;;  %v8294_v3 = vcombine.low %v3928_v63, %v3932_v18  ;;  %v3979_v63 = vld [vmem:[#allocation8 + $0x1a0] sm:$0xff]  ;;  %v3976_v18 = vld [vmem:[#allocation8 + $0x188] sm:$0xff] }
 0x247   :  { %v3995_v6 = vld [vmem:[#allocation8 + $0x220] sm:$0xff] }
 0x248   :  { %3711 = vmatpush1.bf16.msra.mxu0 %v8248_v27  ;;  %3875 = vmatpush1.bf16.msra.mxu1 %v8250_v60  ;;  %v3912_v27 = vsel %vm3896_vm0, %v8805_v44, %v3904_v0  ;;  %v8292_v60 = vcombine.low %v3927_v50, %v3931_v51  ;;  %v3968_v44 = vld [vmem:[#allocation8 + $0x148] sm:$0xff]  ;;  %v3975_v51 = vld [vmem:[#allocation8 + $0x180] sm:$0xff] }
 0x249   :  { %3712 = vmatprep.subr.bf16.mxu0 %v8257_v1  ;;  %3876 = vmatprep.subr.bf16.mxu1 %v8259_v2  ;;  %v3936_v1 = vld [vmem:[#allocation8 + $0x48] sm:$0xff] }
 0x24a   :  { %v3940_v2 = vld [vmem:[#allocation8 + $0x68] sm:$0xff] }
 0x24b   :  { %v8302_v20 = vcombine.low %v3936_v1, %v3940_v2  ;;  %v3980_v0 = vld [vmem:[#allocation8 + $0x1a8] sm:$0xff] }
 0x24c   :  { %3713 = vmatpush1.bf16.msra.mxu0 %v8256_v9  ;;  %3877 = vmatpush1.bf16.msra.mxu1 %v8258_v13  ;;  %v9306_v9 = vpack.c.bf16 %v3912_v27, %v3912_v27  ;;  %v8303_v13 = vcombine.high %v3936_v1, %v3940_v2  ;;  %v3984_v27 = vld [vmem:[#allocation8 + $0x1c8] sm:$0xff]  ;;  %v8340_v1 = vcombine.low %v3975_v51, %v3979_v63 }
 0x24d   :  { %3714 = vmatprep.subr.bf16.mxu0 %v8265_v14  ;;  %3878 = vmatprep.subr.bf16.mxu1 %v8267_v17  ;;  %v3944_v14 = vld [vmem:[#allocation8 + $0x88] sm:$0xff]  ;;  %v8342_v2 = vcombine.low %v3976_v18, %v3980_v0 }
 0x24e   :  { %v3948_v17 = vld [vmem:[#allocation8 + $0xa8] sm:$0xff] }
 0x24f   :  { %v8311_v22 = vcombine.high %v3944_v14, %v3948_v17 }
 0x250   :  { %3715 = vmatpush1.bf16.msra.mxu0 %v8264_v62  ;;  %3879 = vmatpush1.bf16.msra.mxu1 %v8266_v25  ;;  %v3951_v62 = vld [vmem:[#allocation8 + $0xc0] sm:$0xff] }
 0x251   :  { %3716 = vmatprep.subr.bf16.mxu0 %v8273_v26  ;;  %3880 = vmatprep.subr.bf16.mxu1 %v8275_v47  ;;  %v3955_v25 = vld [vmem:[#allocation8 + $0xe0] sm:$0xff]  ;;  %v3952_v26 = vld [vmem:[#allocation8 + $0xc8] sm:$0xff] }
 0x252   :  { %v3956_v47 = vld [vmem:[#allocation8 + $0xe8] sm:$0xff]  ;;  %v8317_v29 = vcombine.high %v3951_v62, %v3955_v25 }
 0x253   :  { %v8319_v33 = vcombine.high %v3952_v26, %v3956_v47 }
 0x254   :  { %3717 = vmatpush1.bf16.msra.mxu0 %v8272_v36  ;;  %3881 = vmatpush1.bf16.msra.mxu1 %v8274_v37  ;;  %v3960_v36 = vld [vmem:[#allocation8 + $0x108] sm:$0xff] }
 0x255   :  { %3718 = vmatprep.subr.bf16.mxu0 %v8281_v38  ;;  %3882 = vmatprep.subr.bf16.mxu1 %v8283_v40  ;;  %v3964_v37 = vld [vmem:[#allocation8 + $0x128] sm:$0xff]  ;;  %v8316_v38 = vcombine.low %v3951_v62, %v3955_v25  ;;  %v8318_v40 = vcombine.low %v3952_v26, %v3956_v47  ;;  %v4003_v62 = vld [vmem:[#allocation8 + $0x260] sm:$0xff]  ;;  %v8356_v47 = vcombine.low %v3991_v5, %v3995_v6 }
 0x256   :  { %v8327_v42 = vcombine.high %v3960_v36, %v3964_v37  ;;  %v4000_v25 = vld [vmem:[#allocation8 + $0x248] sm:$0xff] }
 0x257   :  { %v4004_v26 = vld [vmem:[#allocation8 + $0x268] sm:$0xff] }
 0x258   :  { %3719 = vmatpush1.bf16.msra.mxu0 %v8280_v45  ;;  %3883 = vmatpush1.bf16.msra.mxu1 %v8282_v46  ;;  %v3972_v45 = vld [vmem:[#allocation8 + $0x168] sm:$0xff]  ;;  %v8324_v46 = vcombine.low %v3959_v34, %v3963_v35  ;;  %v4011_v34 = vld [vmem:[#allocation8 + $0x2a0] sm:$0xff] }
 0x259   :  { %3720 = vmatprep.subr.bf16.mxu0 %v8289_v48  ;;  %3884 = vmatprep.subr.bf16.mxu1 %v8291_v53  ;;  %v8326_v48 = vcombine.low %v3960_v36, %v3964_v37  ;;  %v8333_v53 = vcombine.high %v3967_v31, %v3971_v43  ;;  %v8335_v50 = vcombine.high %v3968_v44, %v3972_v45  ;;  %v4008_v35 = vld [vmem:[#allocation8 + $0x288] sm:$0xff] }
 0x25a   :  { %v4012_v36 = vld [vmem:[#allocation8 + $0x2a8] sm:$0xff] }
 0x25c   :  { %3721 = vmatpush1.bf16.msra.mxu0 %v8288_v52  ;;  %3885 = vmatpush1.bf16.msra.mxu1 %v8290_v55  ;;  %v8332_v52 = vcombine.low %v3967_v31, %v3971_v43  ;;  %v8334_v55 = vcombine.low %v3968_v44, %v3972_v45  ;;  %v4019_v31 = vld [vmem:[#allocation8 + $0x2e0] sm:$0xff]  ;;  %v4016_v43 = vld [vmem:[#allocation8 + $0x2c8] sm:$0xff] }
 0x25d   :  { %7041 = vmatprep.subr.bf16.mxu0 %v8293_v16  ;;  %7205 = vmatprep.subr.bf16.mxu1 %v8295_v56  ;;  %v8341_v16 = vcombine.high %v3975_v51, %v3979_v63  ;;  %v8343_v56 = vcombine.high %v3976_v18, %v3980_v0  ;;  %v4020_v44 = vld [vmem:[#allocation8 + $0x2e8] sm:$0xff]  ;;  %v4027_v51 = vld [vmem:[#allocation8 + $0x320] sm:$0xff] }
 0x25e   :  { %v4024_v63 = vld [vmem:[#allocation8 + $0x308] sm:$0xff] }
 0x25f   :  { %3723 = vmatmul.mubr.bf16.vlgmr.msra.gmra.mrb[4].mxu0 %v9271_v49  ;;  %3887 = vmatmul.mubr.bf16.vlgmr.msra.gmra.mrb[4].mxu1 %v9271_v49  ;;  %v8310_v49 = vcombine.low %v3944_v14, %v3948_v17  ;;  %v3996_v14 = vld [vmem:[#allocation8 + $0x228] sm:$0xff]  ;;  %v8348_v17 = vcombine.low %v3983_v57, %v3987_v59 }
 0x260   :  { %7042 = vmatpush1.bf16.msra.mxu0 %v8292_v60  ;;  %7073 = vmatprep.mubr.bf16.mxu0 %v9306_v9  ;;  %v3988_v60 = vld [vmem:[#allocation8 + $0x1e8] sm:$0xff] }
 0x261   :  { %7206 = vmatpush1.bf16.msra.mxu1 %v8294_v3  ;;  %7237 = vmatprep.mubr.bf16.mxu1 %v9306_v9  ;;  %v8349_v3 = vcombine.high %v3983_v57, %v3987_v59  ;;  %v4028_v18 = vld [vmem:[#allocation8 + $0x328] sm:$0xff]  ;;  %v4031_v57 = vld [vmem:[#allocation8 + $0x340] sm:$0xff] }
 0x262   :  { %7043 = vmatprep.subr.bf16.mxu0 %v8301_v4  ;;  %7207 = vmatprep.subr.bf16.mxu1 %v8303_v13  ;;  %v8351_v4 = vcombine.high %v3984_v27, %v3988_v60  ;;  %v3992_v13 = vld [vmem:[#allocation8 + $0x208] sm:$0xff]  ;;  %v4035_v59 = vld [vmem:[#allocation8 + $0x360] sm:$0xff] }
 0x264   :  { %7044 = vmatpush1.bf16.msra.mxu0 %v8300_v11  ;;  %v8350_v11 = vcombine.low %v3984_v27, %v3988_v60  ;;  %v4032_v27 = vld [vmem:[#allocation8 + $0x348] sm:$0xff] }
 0x265   :  { %7208 = vmatpush1.bf16.msra.mxu1 %v8302_v20  ;;  %7045 = vmatprep.subr.bf16.mxu0 %v8309_v21  ;;  %v8357_v20 = vcombine.high %v3991_v5, %v3995_v6  ;;  %v8359_v21 = vcombine.high %v3992_v13, %v3996_v14  ;;  %v4036_v60 = vld [vmem:[#allocation8 + $0x368] sm:$0xff] }
 0x266   :  { %7209 = vmatprep.subr.bf16.mxu1 %v8311_v22  ;;  %v3999_v22 = vld [vmem:[#allocation8 + $0x240] sm:$0xff]  ;;  %v8399_v6 = vcombine.high %v4032_v27, %v4036_v60 }
 0x267   :  { %v8364_v37 = vcombine.low %v3999_v22, %v4003_v62 }
 0x268   :  { %7046 = vmatpush1.bf16.msra.mxu0 %v8308_v28  ;;  %v8358_v28 = vcombine.low %v3992_v13, %v3996_v14  ;;  %v4039_v13 = vld [vmem:[#allocation8 + $0x380] sm:$0xff] }
 0x269   :  { %7210 = vmatpush1.bf16.msra.mxu1 %v8310_v49  ;;  %7047 = vmatprep.subr.bf16.mxu0 %v8317_v29  ;;  %v8365_v49 = vcombine.high %v3999_v22, %v4003_v62  ;;  %v8367_v29 = vcombine.high %v4000_v25, %v4004_v26  ;;  %v4043_v14 = vld [vmem:[#allocation8 + $0x3a0] sm:$0xff]  ;;  %v8398_v22 = vcombine.low %v4032_v27, %v4036_v60  ;;  %v4072_v60 = vld [vmem:[#allocation8 + $0x488] sm:$0xff] }
 0x26a   :  { %7211 = vmatprep.subr.bf16.mxu1 %v8319_v33  ;;  %v4007_v33 = vld [vmem:[#allocation8 + $0x280] sm:$0xff]  ;;  %v8405_v62 = vcombine.high %v4039_v13, %v4043_v14 }
 0x26b   :  { %v8372_v45 = vcombine.low %v4007_v33, %v4011_v34 }
 0x26c   :  { %7048 = vmatpush1.bf16.msra.mxu0 %v8316_v38  ;;  %v8366_v38 = vcombine.low %v4000_v25, %v4004_v26 }
 0x26d   :  { %7212 = vmatpush1.bf16.msra.mxu1 %v8318_v40  ;;  %7049 = vmatprep.subr.bf16.mxu0 %v8325_v41  ;;  %v8373_v40 = vcombine.high %v4007_v33, %v4011_v34  ;;  %v8375_v41 = vcombine.high %v4008_v35, %v4012_v36  ;;  %v8404_v34 = vcombine.low %v4039_v13, %v4043_v14  ;;  %v4079_v13 = vld [vmem:[#allocation8 + $0x4c0] sm:$0xff] }
 0x26e   :  { %7213 = vmatprep.subr.bf16.mxu1 %v8327_v42  ;;  %v4015_v42 = vld [vmem:[#allocation8 + $0x2c0] sm:$0xff] }
 0x26f   :  { %v8380_v0 = vcombine.low %v4015_v42, %v4019_v31  ;;  %v4083_v14 = vld [vmem:[#allocation8 + $0x4e0] sm:$0xff] }
 0x270   :  { %7050 = vmatpush1.bf16.msra.mxu0 %v8324_v46  ;;  %v8374_v46 = vcombine.low %v4008_v35, %v4012_v36 }
 0x271   :  { %7214 = vmatpush1.bf16.msra.mxu1 %v8326_v48  ;;  %7051 = vmatprep.subr.bf16.mxu0 %v8333_v53  ;;  %v8381_v48 = vcombine.high %v4015_v42, %v4019_v31  ;;  %v8383_v53 = vcombine.high %v4016_v43, %v4020_v44  ;;  %v4060_v42 = vld [vmem:[#allocation8 + $0x428] sm:$0xff] }
 0x272   :  { %7215 = vmatprep.subr.bf16.mxu1 %v8335_v50  ;;  %v4023_v50 = vld [vmem:[#allocation8 + $0x300] sm:$0xff] }
 0x274   :  { %7052 = vmatpush1.bf16.msra.mxu0 %v8332_v52  ;;  %v8382_v52 = vcombine.low %v4016_v43, %v4020_v44 }
 0x275   :  { %7216 = vmatpush1.bf16.msra.mxu1 %v8334_v55  ;;  %7053 = vmatprep.subr.bf16.mxu0 %v8341_v16  ;;  %v8389_v55 = vcombine.high %v4023_v50, %v4027_v51  ;;  %v641_v16 = vsub.s32 0, %v9297_v32 }
 0x276   :  { %7217 = vmatprep.subr.bf16.mxu1 %v8343_v56  ;;  %v8391_v56 = vcombine.high %v4024_v63, %v4028_v18 }
 0x277   :  { %v642_v5 = vrot.slane %v9300_v24, %v641_v16 }
 0x278   :  { %7054 = vmatpush1.bf16.msra.mxu0 %v8340_v1  ;;  %v653_v1 = vsub.s32 3, %v9297_v32 }
 0x279   :  { %7218 = vmatpush1.bf16.msra.mxu1 %v8342_v2  ;;  %7055 = vmatprep.subr.bf16.mxu0 %v8349_v3  ;;  %v8388_v2 = vcombine.low %v4023_v50, %v4027_v51  ;;  %v8390_v3 = vcombine.low %v4024_v63, %v4028_v18  ;;  %v8804_v25 = vadd.f32 %v9289_v8, %v642_v5  ;;  %v4056_v8 = vld [vmem:[#allocation8 + $0x408] sm:$0xff] }
 0x27a   :  { %7219 = vmatprep.subr.bf16.mxu1 %v8351_v4  ;;  %v8397_v4 = vcombine.high %v4031_v57, %v4035_v59  ;;  %v4064_v63 = vld [vmem:[#allocation8 + $0x448] sm:$0xff] }
 0x27b   :  { %vm3895_vm1 = vcmp.gt.f32.partialorder %v8804_v25, 0.0  ;;  %v4068_v18 = vld [vmem:[#allocation8 + $0x468] sm:$0xff] }
 0x27c   :  { %7056 = vmatpush1.bf16.msra.mxu0 %v8348_v17  ;;  %v4040_v17 = vld [vmem:[#allocation8 + $0x388] sm:$0xff]  ;;  %v8431_v27 = vcombine.high %v4064_v63, %v4068_v18 }
 0x27d   :  { %7220 = vmatpush1.bf16.msra.mxu1 %v8350_v11  ;;  %7057 = vmatprep.subr.bf16.mxu0 %v8357_v20  ;;  %v4044_v11 = vld [vmem:[#allocation8 + $0x3a8] sm:$0xff]  ;;  %v654_v20 = vrot.slane %v9300_v24, %v653_v1 }
 0x27e   :  { %7221 = vmatprep.subr.bf16.mxu1 %v8359_v21  ;;  %v8396_v21 = vcombine.low %v4031_v57, %v4035_v59  ;;  %v8407_v26 = vcombine.high %v4040_v17, %v4044_v11  ;;  %v8406_v35 = vcombine.low %v4040_v17, %v4044_v11  ;;  %v4075_v57 = vld [vmem:[#allocation8 + $0x4a0] sm:$0xff]  ;;  %v4080_v17 = vld [vmem:[#allocation8 + $0x4c8] sm:$0xff] }
 0x27f   :  { %v8807_v33 = vadd.f32 %v9295_v54, %v654_v20  ;;  %v4084_v11 = vld [vmem:[#allocation8 + $0x4e8] sm:$0xff] }
 0x280   :  { %7058 = vmatpush1.bf16.msra.mxu0 %v8356_v47  ;;  %v4047_v47 = vld [vmem:[#allocation8 + $0x3c0] sm:$0xff] }
 0x281   :  { %7222 = vmatpush1.bf16.msra.mxu1 %v8358_v28  ;;  %7059 = vmatprep.subr.bf16.mxu0 %v8365_v49  ;;  %v4051_v28 = vld [vmem:[#allocation8 + $0x3e0] sm:$0xff]  ;;  %v4048_v49 = vld [vmem:[#allocation8 + $0x3c8] sm:$0xff]  ;;  %v3906_v31 = vmul.f32 0.01, %v8807_v33  ;;  %vm3898_vm2 = vcmp.gt.f32.partialorder %v8807_v33, 0.0 }
 0x282   :  { %7223 = vmatprep.subr.bf16.mxu1 %v8367_v29  ;;  %v4052_v29 = vld [vmem:[#allocation8 + $0x3e8] sm:$0xff]  ;;  %v8413_v36 = vcombine.high %v4047_v47, %v4051_v28  ;;  %v8412_v43 = vcombine.low %v4047_v47, %v4051_v28 }
 0x283   :  { %v8414_v54 = vcombine.low %v4048_v49, %v4052_v29  ;;  %v3914_v50 = vsel %vm3898_vm2, %v8807_v33, %v3906_v31  ;;  %v4088_v47 = vld [vmem:[#allocation8 + $0x508] sm:$0xff]  ;;  %v4103_v31 = vld [vmem:[#allocation8 + $0x580] sm:$0xff] }
 0x284   :  { %7060 = vmatpush1.bf16.msra.mxu0 %v8364_v37  ;;  %v3903_v37 = vmul.f32 0.01, %v8804_v25  ;;  %v9324_v59 = vpack.c.bf16 %v3914_v50, %v3914_v50  ;;  %v4092_v28 = vld [vmem:[#allocation8 + $0x528] sm:$0xff]  ;;  %v4111_v50 = vld [vmem:[#allocation8 + $0x5c0] sm:$0xff] }
 0x285   :  { %7224 = vmatpush1.bf16.msra.mxu1 %v8366_v38  ;;  %7061 = vmatprep.subr.bf16.mxu0 %v8373_v40  ;;  %v8415_v38 = vcombine.high %v4048_v49, %v4052_v29  ;;  %v4055_v40 = vld [vmem:[#allocation8 + $0x400] sm:$0xff]  ;;  %v8444_v49 = vcombine.low %v4079_v13, %v4083_v14  ;;  %v8446_v29 = vcombine.low %v4080_v17, %v4084_v11 }
 0x286   :  { %7225 = vmatprep.subr.bf16.mxu1 %v8375_v41  ;;  %v4059_v41 = vld [vmem:[#allocation8 + $0x420] sm:$0xff] }
 0x287   :  { %v8421_v44 = vcombine.high %v4055_v40, %v4059_v41  ;;  %v8420_v51 = vcombine.low %v4055_v40, %v4059_v41  ;;  %v8454_v41 = vcombine.low %v4088_v47, %v4092_v28 }
 0x288   :  { %7062 = vmatpush1.bf16.msra.mxu0 %v8372_v45  ;;  %v3911_v45 = vsel %vm3895_vm1, %v8804_v25, %v3903_v37  ;;  %v4087_v25 = vld [vmem:[#allocation8 + $0x500] sm:$0xff]  ;;  %v4096_v37 = vld [vmem:[#allocation8 + $0x548] sm:$0xff] }
 0x289   :  { %7226 = vmatpush1.bf16.msra.mxu1 %v8374_v46  ;;  %7063 = vmatprep.subr.bf16.mxu0 %v8381_v48  ;;  %v8423_v46 = vcombine.high %v4056_v8, %v4060_v42  ;;  %v4063_v48 = vld [vmem:[#allocation8 + $0x440] sm:$0xff] }
 0x28a   :  { %7227 = vmatprep.subr.bf16.mxu1 %v8383_v53  ;;  %v4067_v53 = vld [vmem:[#allocation8 + $0x460] sm:$0xff] }
 0x28c   :  { %7064 = vmatpush1.bf16.msra.mxu0 %v8380_v0  ;;  %v9322_v0 = vpack.c.bf16 %v3911_v45, %v3911_v45 }
 0x28d   :  { %7228 = vmatpush1.bf16.msra.mxu1 %v8382_v52  ;;  %7065 = vmatprep.subr.bf16.mxu0 %v8389_v55  ;;  %v8422_v52 = vcombine.low %v4056_v8, %v4060_v42  ;;  %v8429_v55 = vcombine.high %v4063_v48, %v4067_v53 }
 0x28e   :  { %7229 = vmatprep.subr.bf16.mxu1 %v8391_v56  ;;  %v4071_v56 = vld [vmem:[#allocation8 + $0x480] sm:$0xff] }
 0x28f   :  { %v8437_v5 = vcombine.high %v4071_v56, %v4075_v57  ;;  %v8436_v20 = vcombine.low %v4071_v56, %v4075_v57 }
 0x290   :  { %7066 = vmatpush1.bf16.msra.mxu0 %v8388_v2  ;;  %v4076_v2 = vld [vmem:[#allocation8 + $0x4a8] sm:$0xff] }
 0x291   :  { %7230 = vmatpush1.bf16.msra.mxu1 %v8390_v3  ;;  %7067 = vmatprep.subr.bf16.mxu0 %v8397_v4  ;;  %v8428_v3 = vcombine.low %v4063_v48, %v4067_v53  ;;  %v8430_v4 = vcombine.low %v4064_v63, %v4068_v18  ;;  %v4112_v63 = vld [vmem:[#allocation8 + $0x5c8] sm:$0xff] }
 0x292   :  { %7231 = vmatprep.subr.bf16.mxu1 %v8399_v6  ;;  %v8439_v6 = vcombine.high %v4072_v60, %v4076_v2  ;;  %v4116_v18 = vld [vmem:[#allocation8 + $0x5e8] sm:$0xff] }
 0x293   :  { %v8479_v57 = vcombine.high %v4112_v63, %v4116_v18 }
 0x294   :  { %7068 = vmatpush1.bf16.msra.mxu0 %v8396_v21  ;;  %v8438_v21 = vcombine.low %v4072_v60, %v4076_v2  ;;  %v4123_v60 = vld [vmem:[#allocation8 + $0x620] sm:$0xff]  ;;  %v4120_v2 = vld [vmem:[#allocation8 + $0x608] sm:$0xff] }
 0x295   :  { %7232 = vmatpush1.bf16.msra.mxu1 %v8398_v22  ;;  %7069 = vmatprep.subr.bf16.mxu0 %v8405_v62  ;;  %v8445_v22 = vcombine.high %v4079_v13, %v4083_v14  ;;  %v8447_v62 = vcombine.high %v4080_v17, %v4084_v11  ;;  %v4127_v14 = vld [vmem:[#allocation8 + $0x640] sm:$0xff]  ;;  %v4128_v11 = vld [vmem:[#allocation8 + $0x648] sm:$0xff] }
 0x296   :  { %7233 = vmatprep.subr.bf16.mxu1 %v8407_v26  ;;  %v4091_v26 = vld [vmem:[#allocation8 + $0x520] sm:$0xff] }
 0x297   :  { %v8453_v33 = vcombine.high %v4087_v25, %v4091_v26  ;;  %v8452_v40 = vcombine.low %v4087_v25, %v4091_v26  ;;  %v4131_v17 = vld [vmem:[#allocation8 + $0x660] sm:$0xff] }
 0x298   :  { %7070 = vmatpush1.bf16.msra.mxu0 %v8404_v34  ;;  %v8455_v34 = vcombine.high %v4088_v47, %v4092_v28  ;;  %v4135_v26 = vld [vmem:[#allocation8 + $0x680] sm:$0xff]  ;;  %v4136_v28 = vld [vmem:[#allocation8 + $0x688] sm:$0xff] }
 0x299   :  { %7234 = vmatpush1.bf16.msra.mxu1 %v8406_v35  ;;  %7071 = vmatprep.subr.bf16.mxu0 %v8413_v36  ;;  %v4095_v35 = vld [vmem:[#allocation8 + $0x540] sm:$0xff] }
 0x29a   :  { %7235 = vmatprep.subr.bf16.mxu1 %v8415_v38  ;;  %v4099_v36 = vld [vmem:[#allocation8 + $0x560] sm:$0xff]  ;;  %v4100_v38 = vld [vmem:[#allocation8 + $0x568] sm:$0xff] }
 0x29b   :  { %v8461_v8 = vcombine.high %v4095_v35, %v4099_v36  ;;  %v8463_v42 = vcombine.high %v4096_v37, %v4100_v38  ;;  %v8460_v45 = vcombine.low %v4095_v35, %v4099_v36  ;;  %v4139_v47 = vld [vmem:[#allocation8 + $0x6a0] sm:$0xff] }
 0x29c   :  { %7072 = vmatpush1.bf16.msra.mxu0 %v8412_v43  ;;  %v4107_v43 = vld [vmem:[#allocation8 + $0x5a0] sm:$0xff] }
 0x29d   :  { %7236 = vmatpush1.bf16.msra.mxu1 %v8414_v54  ;;  %7082 = vmatprep.subr.bf16.mxu0 %v8421_v44  ;;  %v4104_v54 = vld [vmem:[#allocation8 + $0x588] sm:$0xff]  ;;  %v8469_v48 = vcombine.high %v4103_v31, %v4107_v43  ;;  %v4143_v36 = vld [vmem:[#allocation8 + $0x6c0] sm:$0xff] }
 0x29e   :  { %7246 = vmatprep.subr.bf16.mxu1 %v8423_v46  ;;  %v4108_v44 = vld [vmem:[#allocation8 + $0x5a8] sm:$0xff]  ;;  %v8462_v46 = vcombine.low %v4096_v37, %v4100_v38  ;;  %v4147_v37 = vld [vmem:[#allocation8 + $0x6e0] sm:$0xff] }
 0x29f   :  { %7074 = vmatmul.mubr.bf16.vlgmr.msra.gmra.mrb[8].mxu0 %v9322_v0  ;;  %v8471_v53 = vcombine.high %v4104_v54, %v4108_v44  ;;  %v4144_v38 = vld [vmem:[#allocation8 + $0x6c8] sm:$0xff] }
 0x2a0   :  { %7238 = vmatmul.mubr.bf16.vlgmr.msra.gmra.mrb[8].mxu1 %v9322_v0  ;;  %7083 = vmatpush1.bf16.msra.mxu0 %v8420_v51  ;;  %v4115_v51 = vld [vmem:[#allocation8 + $0x5e0] sm:$0xff] }
 0x2a1   :  { %7114 = vmatprep.mubr.bf16.mxu0 %v9324_v59  ;;  %7247 = vmatpush1.bf16.msra.mxu1 %v8422_v52  ;;  %v8468_v52 = vcombine.low %v4103_v31, %v4107_v43  ;;  %v8477_v56 = vcombine.high %v4111_v50, %v4115_v51  ;;  %v4151_v43 = vld [vmem:[#allocation8 + $0x700] sm:$0xff] }
 0x2a2   :  { %7278 = vmatprep.mubr.bf16.mxu1 %v9324_v59  ;;  %7084 = vmatprep.subr.bf16.mxu0 %v8429_v55  ;;  %v8470_v55 = vcombine.low %v4104_v54, %v4108_v44  ;;  %v4155_v54 = vld [vmem:[#allocation8 + $0x720] sm:$0xff]  ;;  %v4152_v44 = vld [vmem:[#allocation8 + $0x708] sm:$0xff] }
 0x2a3   :  { %7248 = vmatprep.subr.bf16.mxu1 %v8431_v27  ;;  %v4119_v27 = vld [vmem:[#allocation8 + $0x600] sm:$0xff] }
 0x2a4   :  { %7085 = vmatpush1.bf16.msra.mxu0 %v8428_v3  ;;  %v4124_v3 = vld [vmem:[#allocation8 + $0x628] sm:$0xff] }
 0x2a5   :  { %7249 = vmatpush1.bf16.msra.mxu1 %v8430_v4  ;;  %7086 = vmatprep.subr.bf16.mxu0 %v8437_v5  ;;  %v8476_v4 = vcombine.low %v4111_v50, %v4115_v51  ;;  %v8478_v5 = vcombine.low %v4112_v63, %v4116_v18  ;;  %v8487_v13 = vcombine.high %v4120_v2, %v4124_v3  ;;  %v649_v50 = vsub.s32 2, %v9297_v32  ;;  %v4159_v63 = vld [vmem:[#allocation8 + $0x740] sm:$0xff] }
 0x2a6   :  { %7250 = vmatprep.subr.bf16.mxu1 %v8439_v6  ;;  %v8485_v6 = vcombine.high %v4119_v27, %v4123_v60  ;;  %v4163_v18 = vld [vmem:[#allocation8 + $0x760] sm:$0xff] }
 0x2a8   :  { %7087 = vmatpush1.bf16.msra.mxu0 %v8436_v20  ;;  %v4132_v20 = vld [vmem:[#allocation8 + $0x668] sm:$0xff] }
 0x2a9   :  { %7251 = vmatpush1.bf16.msra.mxu1 %v8438_v21  ;;  %7088 = vmatprep.subr.bf16.mxu0 %v8445_v22  ;;  %v8484_v21 = vcombine.low %v4119_v27, %v4123_v60  ;;  %v8486_v22 = vcombine.low %v4120_v2, %v4124_v3  ;;  %v8495_v25 = vcombine.high %v4128_v11, %v4132_v20  ;;  %v4167_v3 = vld [vmem:[#allocation8 + $0x780] sm:$0xff] }
 0x2aa   :  { %7252 = vmatprep.subr.bf16.mxu1 %v8447_v62  ;;  %v8493_v62 = vcombine.high %v4127_v14, %v4131_v17  ;;  %v8525_v27 = vcombine.high %v4159_v63, %v4163_v18  ;;  %v650_v60 = vrot.slane %v9300_v24, %v649_v50  ;;  %v4180_v24 = vld [vmem:[#allocation8 + $0x7e8] sm:$0xff] }
 0x2ac   :  { %7089 = vmatpush1.bf16.msra.mxu0 %v8444_v49  ;;  %v4140_v49 = vld [vmem:[#allocation8 + $0x6a8] sm:$0xff] }
 0x2ad   :  { %7253 = vmatpush1.bf16.msra.mxu1 %v8446_v29  ;;  %7090 = vmatprep.subr.bf16.mxu0 %v8453_v33  ;;  %v8492_v29 = vcombine.low %v4127_v14, %v4131_v17  ;;  %v8494_v33 = vcombine.low %v4128_v11, %v4132_v20  ;;  %v8503_v35 = vcombine.high %v4136_v28, %v4140_v49 }
 0x2ae   :  { %7254 = vmatprep.subr.bf16.mxu1 %v8455_v34  ;;  %v8501_v34 = vcombine.high %v4135_v26, %v4139_v47  ;;  %v8806_v11 = vadd.f32 %v9291_v15, %v650_v60  ;;  %v4188_v15 = vld [vmem:[#allocation8 + $0x828] sm:$0xff] }
 0x2af   :  { %v4208_v60 = vld [vmem:[#allocation8 + $0x8c8] sm:$0xff] }
 0x2b0   :  { %7091 = vmatpush1.bf16.msra.mxu0 %v8452_v40  ;;  %v4148_v40 = vld [vmem:[#allocation8 + $0x6e8] sm:$0xff]  ;;  %vm3897_vm3 = vcmp.gt.f32.partialorder %v8806_v11, 0.0 }
 0x2b1   :  { %7255 = vmatpush1.bf16.msra.mxu1 %v8454_v41  ;;  %7092 = vmatprep.subr.bf16.mxu0 %v8461_v8  ;;  %v8500_v41 = vcombine.low %v4135_v26, %v4139_v47  ;;  %v8502_v8 = vcombine.low %v4136_v28, %v4140_v49  ;;  %v8511_v31 = vcombine.high %v4144_v38, %v4148_v40  ;;  %v3905_v28 = vmul.f32 0.01, %v8806_v11 }
 0x2b2   :  { %7256 = vmatprep.subr.bf16.mxu1 %v8463_v42  ;;  %v8509_v42 = vcombine.high %v4143_v36, %v4147_v37 }
 0x2b4   :  { %7093 = vmatpush1.bf16.msra.mxu0 %v8460_v45  ;;  %v4156_v45 = vld [vmem:[#allocation8 + $0x728] sm:$0xff] }
 0x2b5   :  { %7257 = vmatpush1.bf16.msra.mxu1 %v8462_v46  ;;  %7094 = vmatprep.subr.bf16.mxu0 %v8469_v48  ;;  %v8508_v46 = vcombine.low %v4143_v36, %v4147_v37  ;;  %v8510_v48 = vcombine.low %v4144_v38, %v4148_v40  ;;  %v8519_v51 = vcombine.high %v4152_v44, %v4156_v45 }
 0x2b6   :  { %7258 = vmatprep.subr.bf16.mxu1 %v8471_v53  ;;  %v8517_v53 = vcombine.high %v4151_v43, %v4155_v54  ;;  %v3913_v38 = vsel %vm3897_vm3, %v8806_v11, %v3905_v28  ;;  %v4220_v11 = vld [vmem:[#allocation8 + $0x928] sm:$0xff] }
 0x2b8   :  { %7095 = vmatpush1.bf16.msra.mxu0 %v8468_v52  ;;  %v4160_v52 = vld [vmem:[#allocation8 + $0x748] sm:$0xff] }
 0x2b9   :  { %7259 = vmatpush1.bf16.msra.mxu1 %v8470_v55  ;;  %7096 = vmatprep.subr.bf16.mxu0 %v8477_v56  ;;  %v4164_v55 = vld [vmem:[#allocation8 + $0x768] sm:$0xff]  ;;  %v8516_v56 = vcombine.low %v4151_v43, %v4155_v54  ;;  %v9335_v54 = vpack.c.bf16 %v3913_v38, %v3913_v38 }
 0x2ba   :  { %7260 = vmatprep.subr.bf16.mxu1 %v8479_v57  ;;  %v8518_v57 = vcombine.low %v4152_v44, %v4156_v45  ;;  %v8527_v2 = vcombine.high %v4160_v52, %v4164_v55  ;;  %v8526_v14 = vcombine.low %v4160_v52, %v4164_v55 }
 0x2bc   :  { %7097 = vmatpush1.bf16.msra.mxu0 %v8476_v4  ;;  %v4171_v4 = vld [vmem:[#allocation8 + $0x7a0] sm:$0xff] }
 0x2bd   :  { %7261 = vmatpush1.bf16.msra.mxu1 %v8478_v5  ;;  %7098 = vmatprep.subr.bf16.mxu0 %v8485_v6  ;;  %v4168_v5 = vld [vmem:[#allocation8 + $0x788] sm:$0xff]  ;;  %v8533_v17 = vcombine.high %v4167_v3, %v4171_v4 }
 0x2be   :  { %7262 = vmatprep.subr.bf16.mxu1 %v8487_v13  ;;  %v4172_v6 = vld [vmem:[#allocation8 + $0x7a8] sm:$0xff]  ;;  %v8524_v13 = vcombine.low %v4159_v63, %v4163_v18 }
 0x2bf   :  { %v8535_v20 = vcombine.high %v4168_v5, %v4172_v6  ;;  %v8534_v26 = vcombine.low %v4168_v5, %v4172_v6  ;;  %v4204_v63 = vld [vmem:[#allocation8 + $0x8a8] sm:$0xff] }
 0x2c0   :  { %7099 = vmatpush1.bf16.msra.mxu0 %v8484_v21  ;;  %v4175_v21 = vld [vmem:[#allocation8 + $0x7c0] sm:$0xff] }
 0x2c1   :  { %7263 = vmatpush1.bf16.msra.mxu1 %v8486_v22  ;;  %7100 = vmatprep.subr.bf16.mxu0 %v8493_v62  ;;  %v4179_v22 = vld [vmem:[#allocation8 + $0x7e0] sm:$0xff]  ;;  %v4176_v62 = vld [vmem:[#allocation8 + $0x7c8] sm:$0xff] }
 0x2c2   :  { %7264 = vmatprep.subr.bf16.mxu1 %v8495_v25  ;;  %v8532_v25 = vcombine.low %v4167_v3, %v4171_v4  ;;  %v8541_v47 = vcombine.high %v4175_v21, %v4179_v22  ;;  %v8543_v49 = vcombine.high %v4176_v62, %v4180_v24  ;;  %v8542_v36 = vcombine.low %v4176_v62, %v4180_v24  ;;  %v4223_v24 = vld [vmem:[#allocation8 + $0x940] sm:$0xff] }
 0x2c4   :  { %7101 = vmatpush1.bf16.msra.mxu0 %v8492_v29  ;;  %v4183_v29 = vld [vmem:[#allocation8 + $0x800] sm:$0xff] }
 0x2c5   :  { %7265 = vmatpush1.bf16.msra.mxu1 %v8494_v33  ;;  %7102 = vmatprep.subr.bf16.mxu0 %v8501_v34  ;;  %v4187_v33 = vld [vmem:[#allocation8 + $0x820] sm:$0xff]  ;;  %v4184_v34 = vld [vmem:[#allocation8 + $0x808] sm:$0xff] }
 0x2c6   :  { %7266 = vmatprep.subr.bf16.mxu1 %v8503_v35  ;;  %v8540_v35 = vcombine.low %v4175_v21, %v4179_v22  ;;  %v8549_v37 = vcombine.high %v4183_v29, %v4187_v33  ;;  %v8551_v40 = vcombine.high %v4184_v34, %v4188_v15  ;;  %v8548_v43 = vcombine.low %v4183_v29, %v4187_v33 }
 0x2c7   :  { %v8550_v44 = vcombine.low %v4184_v34, %v4188_v15  ;;  %v4231_v34 = vld [vmem:[#allocation8 + $0x980] sm:$0xff] }
 0x2c8   :  { %7103 = vmatpush1.bf16.msra.mxu0 %v8500_v41  ;;  %v4191_v41 = vld [vmem:[#allocation8 + $0x840] sm:$0xff] }
 0x2c9   :  { %7267 = vmatpush1.bf16.msra.mxu1 %v8502_v8  ;;  %7104 = vmatprep.subr.bf16.mxu0 %v8509_v42  ;;  %v4195_v8 = vld [vmem:[#allocation8 + $0x860] sm:$0xff]  ;;  %v4192_v42 = vld [vmem:[#allocation8 + $0x848] sm:$0xff] }
 0x2ca   :  { %7268 = vmatprep.subr.bf16.mxu1 %v8511_v31  ;;  %v4196_v31 = vld [vmem:[#allocation8 + $0x868] sm:$0xff]  ;;  %v8557_v45 = vcombine.high %v4191_v41, %v4195_v8  ;;  %v8556_v18 = vcombine.low %v4191_v41, %v4195_v8  ;;  %v4235_v15 = vld [vmem:[#allocation8 + $0x9a0] sm:$0xff] }
 0x2cb   :  { %v8558_v52 = vcombine.low %v4192_v42, %v4196_v31  ;;  %v4239_v8 = vld [vmem:[#allocation8 + $0x9c0] sm:$0xff] }
 0x2cc   :  { %7105 = vmatpush1.bf16.msra.mxu0 %v8508_v46  ;;  %v8559_v46 = vcombine.high %v4192_v42, %v4196_v31  ;;  %v4243_v42 = vld [vmem:[#allocation8 + $0x9e0] sm:$0xff]  ;;  %v4240_v31 = vld [vmem:[#allocation8 + $0x9c8] sm:$0xff] }
 0x2cd   :  { %7269 = vmatpush1.bf16.msra.mxu1 %v8510_v48  ;;  %7106 = vmatprep.subr.bf16.mxu0 %v8517_v53  ;;  %v4199_v48 = vld [vmem:[#allocation8 + $0x880] sm:$0xff] }
 0x2ce   :  { %7270 = vmatprep.subr.bf16.mxu1 %v8519_v51  ;;  %v4203_v53 = vld [vmem:[#allocation8 + $0x8a0] sm:$0xff]  ;;  %v4200_v51 = vld [vmem:[#allocation8 + $0x888] sm:$0xff] }
 0x2cf   :  { %v8565_v55 = vcombine.high %v4199_v48, %v4203_v53  ;;  %v8564_v3 = vcombine.low %v4199_v48, %v4203_v53  ;;  %v8566_v4 = vcombine.low %v4200_v51, %v4204_v63  ;;  %v4247_v53 = vld [vmem:[#allocation8 + $0xa00] sm:$0xff] }
 0x2d0   :  { %7107 = vmatpush1.bf16.msra.mxu0 %v8516_v56  ;;  %v8567_v56 = vcombine.high %v4200_v51, %v4204_v63  ;;  %v4251_v51 = vld [vmem:[#allocation8 + $0xa20] sm:$0xff]  ;;  %v4248_v63 = vld [vmem:[#allocation8 + $0xa08] sm:$0xff] }
 0x2d1   :  { %7271 = vmatpush1.bf16.msra.mxu1 %v8518_v57  ;;  %7108 = vmatprep.subr.bf16.mxu0 %v8525_v27  ;;  %v4207_v57 = vld [vmem:[#allocation8 + $0x8c0] sm:$0xff] }
 0x2d2   :  { %7272 = vmatprep.subr.bf16.mxu1 %v8527_v2  ;;  %v4211_v27 = vld [vmem:[#allocation8 + $0x8e0] sm:$0xff]  ;;  %v4212_v2 = vld [vmem:[#allocation8 + $0x8e8] sm:$0xff] }
 0x2d3   :  { %v8573_v5 = vcombine.high %v4207_v57, %v4211_v27  ;;  %v8575_v6 = vcombine.high %v4208_v60, %v4212_v2  ;;  %v8574_v21 = vcombine.low %v4208_v60, %v4212_v2  ;;  %v4259_v60 = vld [vmem:[#allocation8 + $0xa60] sm:$0xff]  ;;  %v4256_v2 = vld [vmem:[#allocation8 + $0xa48] sm:$0xff] }
 0x2d4   :  { %7109 = vmatpush1.bf16.msra.mxu0 %v8524_v13  ;;  %v4215_v13 = vld [vmem:[#allocation8 + $0x900] sm:$0xff] }
 0x2d5   :  { %7273 = vmatpush1.bf16.msra.mxu1 %v8526_v14  ;;  %7110 = vmatprep.subr.bf16.mxu0 %v8533_v17  ;;  %v4219_v14 = vld [vmem:[#allocation8 + $0x920] sm:$0xff]  ;;  %v4216_v17 = vld [vmem:[#allocation8 + $0x908] sm:$0xff] }
 0x2d6   :  { %7274 = vmatprep.subr.bf16.mxu1 %v8535_v20  ;;  %v8572_v20 = vcombine.low %v4207_v57, %v4211_v27  ;;  %v8581_v22 = vcombine.high %v4215_v13, %v4219_v14  ;;  %v8583_v62 = vcombine.high %v4216_v17, %v4220_v11  ;;  %v8580_v28 = vcombine.low %v4215_v13, %v4219_v14  ;;  %v4255_v27 = vld [vmem:[#allocation8 + $0xa40] sm:$0xff] }
 0x2d7   :  { %v4263_v14 = vld [vmem:[#allocation8 + $0xa80] sm:$0xff] }
 0x2d8   :  { %7111 = vmatpush1.bf16.msra.mxu0 %v8532_v25  ;;  %v4227_v25 = vld [vmem:[#allocation8 + $0x960] sm:$0xff] }
 0x2d9   :  { %7275 = vmatpush1.bf16.msra.mxu1 %v8534_v26  ;;  %7112 = vmatprep.subr.bf16.mxu0 %v8541_v47  ;;  %v4224_v26 = vld [vmem:[#allocation8 + $0x948] sm:$0xff]  ;;  %v8589_v29 = vcombine.high %v4223_v24, %v4227_v25 }
 0x2da   :  { %7276 = vmatprep.subr.bf16.mxu1 %v8543_v49  ;;  %v4228_v47 = vld [vmem:[#allocation8 + $0x968] sm:$0xff]  ;;  %v8582_v49 = vcombine.low %v4216_v17, %v4220_v11  ;;  %v4267_v17 = vld [vmem:[#allocation8 + $0xaa0] sm:$0xff] }
 0x2db   :  { %v8591_v33 = vcombine.high %v4224_v26, %v4228_v47  ;;  %v8590_v38 = vcombine.low %v4224_v26, %v4228_v47  ;;  %v4264_v11 = vld [vmem:[#allocation8 + $0xa88] sm:$0xff]  ;;  %v4275_v26 = vld [vmem:[#allocation8 + $0xae0] sm:$0xff] }
 0x2dc   :  { %7113 = vmatpush1.bf16.msra.mxu0 %v8540_v35  ;;  %v4232_v35 = vld [vmem:[#allocation8 + $0x988] sm:$0xff] }
 0x2dd   :  { %7277 = vmatpush1.bf16.msra.mxu1 %v8542_v36  ;;  %7123 = vmatprep.subr.bf16.mxu0 %v8549_v37  ;;  %v4236_v36 = vld [vmem:[#allocation8 + $0x9a8] sm:$0xff]  ;;  %v8588_v37 = vcombine.low %v4223_v24, %v4227_v25  ;;  %v4271_v25 = vld [vmem:[#allocation8 + $0xac0] sm:$0xff] }
 0x2de   :  { %7287 = vmatprep.subr.bf16.mxu1 %v8551_v40  ;;  %v8597_v40 = vcombine.high %v4231_v34, %v4235_v15  ;;  %v8599_v41 = vcombine.high %v4232_v35, %v4236_v36  ;;  %v4272_v47 = vld [vmem:[#allocation8 + $0xac8] sm:$0xff] }
 0x2df   :  { %7115 = vmatmul.mubr.bf16.vlgmr.msra.gmra.mrb[8].mxu0 %v9335_v54 }
 0x2e0   :  { %7279 = vmatmul.mubr.bf16.vlgmr.msra.gmra.mrb[8].mxu1 %v9335_v54  ;;  %7124 = vmatpush1.bf16.msra.mxu0 %v8548_v43  ;;  %v4244_v43 = vld [vmem:[#allocation8 + $0x9e8] sm:$0xff] }
 0x2e1   :  { %7288 = vmatpush1.bf16.msra.mxu1 %v8550_v44  ;;  %7125 = vmatprep.subr.bf16.mxu0 %v8557_v45  ;;  %v8596_v44 = vcombine.low %v4231_v34, %v4235_v15  ;;  %v8598_v45 = vcombine.low %v4232_v35, %v4236_v36  ;;  %v8607_v48 = vcombine.high %v4240_v31, %v4244_v43  ;;  %v4279_v15 = vld [vmem:[#allocation8 + $0xb00] sm:$0xff]  ;;  %v4280_v36 = vld [vmem:[#allocation8 + $0xb08] sm:$0xff] }
 0x2e2   :  { %7289 = vmatprep.subr.bf16.mxu1 %v8559_v46  ;;  %v8605_v46 = vcombine.high %v4239_v8, %v4243_v42  ;;  %v4283_v35 = vld [vmem:[#allocation8 + $0xb20] sm:$0xff] }
 0x2e4   :  { %7126 = vmatpush1.bf16.msra.mxu0 %v8556_v18  ;;  %v4252_v18 = vld [vmem:[#allocation8 + $0xa28] sm:$0xff] }
 0x2e5   :  { %7290 = vmatpush1.bf16.msra.mxu1 %v8558_v52  ;;  %7127 = vmatprep.subr.bf16.mxu0 %v8565_v55  ;;  %v8604_v52 = vcombine.low %v4239_v8, %v4243_v42  ;;  %v8606_v55 = vcombine.low %v4240_v31, %v4244_v43  ;;  %v8615_v57 = vcombine.high %v4248_v63, %v4252_v18  ;;  %v4287_v42 = vld [vmem:[#allocation8 + $0xb40] sm:$0xff]  ;;  %v4288_v43 = vld [vmem:[#allocation8 + $0xb48] sm:$0xff] }
 0x2e6   :  { %7291 = vmatprep.subr.bf16.mxu1 %v8567_v56  ;;  %v8613_v56 = vcombine.high %v4247_v53, %v4251_v51  ;;  %v4291_v31 = vld [vmem:[#allocation8 + $0xb60] sm:$0xff] }
 0x2e8   :  { %7128 = vmatpush1.bf16.msra.mxu0 %v8564_v3  ;;  %v4260_v3 = vld [vmem:[#allocation8 + $0xa68] sm:$0xff] }
 0x2e9   :  { %7292 = vmatpush1.bf16.msra.mxu1 %v8566_v4  ;;  %7129 = vmatprep.subr.bf16.mxu0 %v8573_v5  ;;  %v8612_v4 = vcombine.low %v4247_v53, %v4251_v51  ;;  %v8614_v5 = vcombine.low %v4248_v63, %v4252_v18  ;;  %v8623_v13 = vcombine.high %v4256_v2, %v4260_v3  ;;  %v4295_v51 = vld [vmem:[#allocation8 + $0xb80] sm:$0xff]  ;;  %v4296_v18 = vld [vmem:[#allocation8 + $0xb88] sm:$0xff] }
 0x2ea   :  { %7293 = vmatprep.subr.bf16.mxu1 %v8575_v6  ;;  %v8621_v6 = vcombine.high %v4255_v27, %v4259_v60  ;;  %v4299_v63 = vld [vmem:[#allocation8 + $0xba0] sm:$0xff] }
 0x2ec   :  { %7130 = vmatpush1.bf16.msra.mxu0 %v8572_v20  ;;  %v4268_v20 = vld [vmem:[#allocation8 + $0xaa8] sm:$0xff] }
 0x2ed   :  { %7294 = vmatpush1.bf16.msra.mxu1 %v8574_v21  ;;  %7131 = vmatprep.subr.bf16.mxu0 %v8581_v22  ;;  %v8620_v21 = vcombine.low %v4255_v27, %v4259_v60  ;;  %v8622_v22 = vcombine.low %v4256_v2, %v4260_v3  ;;  %v8631_v24 = vcombine.high %v4264_v11, %v4268_v20  ;;  %v4303_v60 = vld [vmem:[#allocation8 + $0xbc0] sm:$0xff]  ;;  %v4304_v3 = vld [vmem:[#allocation8 + $0xbc8] sm:$0xff] }
 0x2ee   :  { %7295 = vmatprep.subr.bf16.mxu1 %v8583_v62  ;;  %v8629_v62 = vcombine.high %v4263_v14, %v4267_v17  ;;  %v4307_v2 = vld [vmem:[#allocation8 + $0xbe0] sm:$0xff] }
 0x2f0   :  { %7132 = vmatpush1.bf16.msra.mxu0 %v8580_v28  ;;  %v4276_v28 = vld [vmem:[#allocation8 + $0xae8] sm:$0xff] }
 0x2f1   :  { %7296 = vmatpush1.bf16.msra.mxu1 %v8582_v49  ;;  %7133 = vmatprep.subr.bf16.mxu0 %v8589_v29  ;;  %v8628_v49 = vcombine.low %v4263_v14, %v4267_v17  ;;  %v8630_v29 = vcombine.low %v4264_v11, %v4268_v20  ;;  %v8639_v34 = vcombine.high %v4272_v47, %v4276_v28  ;;  %v4311_v17 = vld [vmem:[#allocation8 + $0xc00] sm:$0xff]  ;;  %v4312_v20 = vld [vmem:[#allocation8 + $0xc08] sm:$0xff] }
 0x2f2   :  { %7297 = vmatprep.subr.bf16.mxu1 %v8591_v33  ;;  %v8637_v33 = vcombine.high %v4271_v25, %v4275_v26  ;;  %v4315_v11 = vld [vmem:[#allocation8 + $0xc20] sm:$0xff] }
 0x2f4   :  { %7134 = vmatpush1.bf16.msra.mxu0 %v8588_v37  ;;  %v4284_v37 = vld [vmem:[#allocation8 + $0xb28] sm:$0xff] }
 0x2f5   :  { %7298 = vmatpush1.bf16.msra.mxu1 %v8590_v38  ;;  %7135 = vmatprep.subr.bf16.mxu0 %v8597_v40  ;;  %v8636_v38 = vcombine.low %v4271_v25, %v4275_v26  ;;  %v8638_v40 = vcombine.low %v4272_v47, %v4276_v28  ;;  %v8647_v8 = vcombine.high %v4280_v36, %v4284_v37  ;;  %v657_v26 = vsub.s32 4, %v9297_v32 }
 0x2f6   :  { %7299 = vmatprep.subr.bf16.mxu1 %v8599_v41  ;;  %v8645_v41 = vcombine.high %v4279_v15, %v4283_v35  ;;  %v661_v47 = vsub.s32 5, %v9297_v32  ;;  %v669_v28 = vsub.s32 7, %v9297_v32 }
 0x2f8   :  { %7136 = vmatpush1.bf16.msra.mxu0 %v8596_v44  ;;  %v4292_v44 = vld [vmem:[#allocation8 + $0xb68] sm:$0xff] }
 0x2f9   :  { %7300 = vmatpush1.bf16.msra.mxu1 %v8598_v45  ;;  %7137 = vmatprep.subr.bf16.mxu0 %v8605_v46  ;;  %v8644_v45 = vcombine.low %v4279_v15, %v4283_v35  ;;  %v8646_v46 = vcombine.low %v4280_v36, %v4284_v37  ;;  %v8655_v53 = vcombine.high %v4288_v43, %v4292_v44 }
 0x2fa   :  { %7301 = vmatprep.subr.bf16.mxu1 %v8607_v48  ;;  %v8653_v48 = vcombine.high %v4287_v42, %v4291_v31 }
 0x2fc   :  { %7138 = vmatpush1.bf16.msra.mxu0 %v8604_v52  ;;  %v4300_v52 = vld [vmem:[#allocation8 + $0xba8] sm:$0xff] }
 0x2fd   :  { %7302 = vmatpush1.bf16.msra.mxu1 %v8606_v55  ;;  %7139 = vmatprep.subr.bf16.mxu0 %v8613_v56  ;;  %v8652_v55 = vcombine.low %v4287_v42, %v4291_v31  ;;  %v8654_v56 = vcombine.low %v4288_v43, %v4292_v44  ;;  %v8663_v27 = vcombine.high %v4296_v18, %v4300_v52 }
 0x2fe   :  { %7303 = vmatprep.subr.bf16.mxu1 %v8615_v57  ;;  %v8661_v57 = vcombine.high %v4295_v51, %v4299_v63 }
 0x300   :  { %7140 = vmatpush1.bf16.msra.mxu0 %v8612_v4  ;;  %v4308_v4 = vld [vmem:[#allocation8 + $0xbe8] sm:$0xff] }
 0x301   :  { %7304 = vmatpush1.bf16.msra.mxu1 %v8614_v5  ;;  %7141 = vmatprep.subr.bf16.mxu0 %v8621_v6  ;;  %v8660_v5 = vcombine.low %v4295_v51, %v4299_v63  ;;  %v8662_v6 = vcombine.low %v4296_v18, %v4300_v52  ;;  %v8671_v14 = vcombine.high %v4304_v3, %v4308_v4  ;;  %v4323_v63 = vld [vmem:[#allocation8 + $0xc60] sm:$0xff]  ;;  %v4320_v18 = vld [vmem:[#allocation8 + $0xc48] sm:$0xff] }
 0x302   :  { %7305 = vmatprep.subr.bf16.mxu1 %v8623_v13  ;;  %v8669_v13 = vcombine.high %v4303_v60, %v4307_v2  ;;  %v4324_v52 = vld [vmem:[#allocation8 + $0xc68] sm:$0xff] }
 0x304   :  { %7142 = vmatpush1.bf16.msra.mxu0 %v8620_v21  ;;  %v4316_v21 = vld [vmem:[#allocation8 + $0xc28] sm:$0xff] }
 0x305   :  { %7306 = vmatpush1.bf16.msra.mxu1 %v8622_v22  ;;  %7143 = vmatprep.subr.bf16.mxu0 %v8629_v62  ;;  %v8668_v22 = vcombine.low %v4303_v60, %v4307_v2  ;;  %v8670_v62 = vcombine.low %v4304_v3, %v4308_v4  ;;  %v8679_v25 = vcombine.high %v4312_v20, %v4316_v21  ;;  %v4327_v2 = vld [vmem:[#allocation8 + $0xc80] sm:$0xff] }
 0x306   :  { %7307 = vmatprep.subr.bf16.mxu1 %v8631_v24  ;;  %v8677_v24 = vcombine.high %v4311_v17, %v4315_v11  ;;  %v8687_v4 = vcombine.high %v4320_v18, %v4324_v52 }
 0x308   :  { %7144 = vmatpush1.bf16.msra.mxu0 %v8628_v49  ;;  %v9342_v49 = vld [vmem:[#allocation7] sm:$0xff] }
 0x309   :  { %7308 = vmatpush1.bf16.msra.mxu1 %v8630_v29  ;;  %7145 = vmatprep.subr.bf16.mxu0 %v8637_v33  ;;  %v658_v29 = vrot.slane %v9342_v49, %v657_v26  ;;  %v662_v33 = vrot.slane %v9342_v49, %v661_v47 }
 0x30a   :  { %7309 = vmatprep.subr.bf16.mxu1 %v8639_v34  ;;  %v670_v34 = vrot.slane %v9342_v49, %v669_v28 }
 0x30c   :  { %7146 = vmatpush1.bf16.msra.mxu0 %v8636_v38 }
 0x30d   :  { %7310 = vmatpush1.bf16.msra.mxu1 %v8638_v40  ;;  %7147 = vmatprep.subr.bf16.mxu0 %v8645_v41 }
 0x30e   :  { %7311 = vmatprep.subr.bf16.mxu1 %v8647_v8 }
 0x310   :  { %7148 = vmatpush1.bf16.msra.mxu0 %v8644_v45 }
 0x311   :  { %7312 = vmatpush1.bf16.msra.mxu1 %v8646_v46  ;;  %7149 = vmatprep.subr.bf16.mxu0 %v8653_v48 }
 0x312   :  { %7313 = vmatprep.subr.bf16.mxu1 %v8655_v53  ;;  %v4319_v53 = vld [vmem:[#allocation8 + $0xc40] sm:$0xff] }
 0x313   :  { %v8685_v3 = vcombine.high %v4319_v53, %v4323_v63 }
 0x314   :  { %7150 = vmatpush1.bf16.msra.mxu0 %v8652_v55 }
 0x315   :  { %7314 = vmatpush1.bf16.msra.mxu1 %v8654_v56  ;;  %7151 = vmatprep.subr.bf16.mxu0 %v8661_v57  ;;  %v8676_v57 = vcombine.low %v4311_v17, %v4315_v11  ;;  %v8684_v17 = vcombine.low %v4319_v53, %v4323_v63  ;;  %v8686_v11 = vcombine.low %v4320_v18, %v4324_v52  ;;  %v4359_v18 = vld [vmem:[#allocation8 + $0xd80] sm:$0xff] }
 0x316   :  { %7315 = vmatprep.subr.bf16.mxu1 %v8663_v27  ;;  %v8678_v27 = vcombine.low %v4312_v20, %v4316_v21  ;;  %v4363_v52 = vld [vmem:[#allocation8 + $0xda0] sm:$0xff] }
 0x318   :  { %7152 = vmatpush1.bf16.msra.mxu0 %v8660_v5  ;;  %v4331_v5 = vld [vmem:[#allocation8 + $0xca0] sm:$0xff] }
 0x319   :  { %7316 = vmatpush1.bf16.msra.mxu1 %v8662_v6  ;;  %7153 = vmatprep.subr.bf16.mxu0 %v8669_v13  ;;  %v4328_v6 = vld [vmem:[#allocation8 + $0xc88] sm:$0xff]  ;;  %v8693_v20 = vcombine.high %v4327_v2, %v4331_v5 }
 0x31a   :  { %7317 = vmatprep.subr.bf16.mxu1 %v8671_v14  ;;  %v4332_v13 = vld [vmem:[#allocation8 + $0xca8] sm:$0xff] }
 0x31b   :  { %v8695_v21 = vcombine.high %v4328_v6, %v4332_v13 }
 0x31c   :  { %7154 = vmatpush1.bf16.msra.mxu0 %v8668_v22  ;;  %v4335_v22 = vld [vmem:[#allocation8 + $0xcc0] sm:$0xff] }
 0x31d   :  { %7318 = vmatpush1.bf16.msra.mxu1 %v8670_v62  ;;  %7164 = vmatprep.subr.bf16.mxu0 %v8677_v24  ;;  %v4339_v62 = vld [vmem:[#allocation8 + $0xce0] sm:$0xff]  ;;  %v4336_v24 = vld [vmem:[#allocation8 + $0xcc8] sm:$0xff] }
 0x31e   :  { %7328 = vmatprep.subr.bf16.mxu1 %v8679_v25  ;;  %v4340_v25 = vld [vmem:[#allocation8 + $0xce8] sm:$0xff] }
 0x332   :  { %v3724_v15 = vpop.f32.mrb[4].mxu0  ;;  %v9353_v36 = vpop.f32.mrb[4].mxu1 }
 0x333   :  { %v8808_v35 = vadd.f32 %v3724_v15, %v658_v29  ;;  %v3726_v37 = vpop.f32.mrb[5].mxu0  ;;  %v3890_v40 = vpop.f32.mrb[5].mxu1  ;;  %v8692_v29 = vcombine.low %v4327_v2, %v4331_v5  ;;  %v8703_v15 = vcombine.high %v4336_v24, %v4340_v25  ;;  %v4367_v5 = vld [vmem:[#allocation8 + $0xdc0] sm:$0xff] }
 0x334   :  { %v8809_v38 = vadd.f32 %v3726_v37, %v662_v33  ;;  %v3728_v41 = vpop.f32.mrb[6].mxu0  ;;  %v8811_v42 = vadd.f32 %v3890_v40, %v670_v34  ;;  %v3892_v31 = vpop.f32.mrb[6].mxu1  ;;  %v8694_v33 = vcombine.low %v4328_v6, %v4332_v13  ;;  %v8701_v34 = vcombine.high %v4335_v22, %v4339_v62  ;;  %v4347_v37 = vld [vmem:[#allocation8 + $0xd20] sm:$0xff]  ;;  %v4348_v40 = vld [vmem:[#allocation8 + $0xd28] sm:$0xff] }
 0x335   :  { %vm3899_vm4 = vcmp.gt.f32.partialorder %v8808_v35, 0.0  ;;  %v3907_v8 = vmul.f32 0.01, %v8808_v35  ;;  %v3729_v43 = vpop.f32.mrb[7].mxu0  ;;  %v3893_v48 = vpop.f32.mrb[7].mxu1  ;;  %v8700_v41 = vcombine.low %v4335_v22, %v4339_v62  ;;  %v4371_v6 = vld [vmem:[#allocation8 + $0xde0] sm:$0xff] }
 0x336   :  { %vm3900_vm5 = vcmp.gt.f32.partialorder %v8809_v38, 0.0  ;;  %v3908_v44 = vmul.f32 0.01, %v8809_v38  ;;  %vm3902_vm6 = vcmp.gt.f32.partialorder %v8811_v42, 0.0  ;;  %v3910_v46 = vmul.f32 0.01, %v8811_v42 }
 0x337   :  { %v3915_v45 = vsel %vm3899_vm4, %v8808_v35, %v3907_v8  ;;  %v4343_v35 = vld [vmem:[#allocation8 + $0xd00] sm:$0xff]  ;;  %v8702_v8 = vcombine.low %v4336_v24, %v4340_v25  ;;  %v4368_v13 = vld [vmem:[#allocation8 + $0xdc8] sm:$0xff] }
 0x338   :  { %v3916_v51 = vsel %vm3900_vm5, %v8809_v38, %v3908_v44  ;;  %v3918_v56 = vsel %vm3902_vm6, %v8811_v42, %v3910_v46  ;;  %v9357_v60 = vpack.c.bf16 %v3915_v45, %v3915_v45  ;;  %v4344_v38 = vld [vmem:[#allocation8 + $0xd08] sm:$0xff]  ;;  %v8709_v42 = vcombine.high %v4343_v35, %v4347_v37  ;;  %v4351_v43 = vld [vmem:[#allocation8 + $0xd40] sm:$0xff] }
 0x339   :  { %v9355_v55 = vpack.c.bf16 %v3916_v51, %v3916_v51  ;;  %v9361_v14 = vpack.c.bf16 %v3918_v56, %v3918_v56  ;;  %v8711_v31 = vcombine.high %v4344_v38, %v4348_v40  ;;  %v4355_v44 = vld [vmem:[#allocation8 + $0xd60] sm:$0xff]  ;;  %v4352_v45 = vld [vmem:[#allocation8 + $0xd48] sm:$0xff]  ;;  %v8708_v48 = vcombine.low %v4343_v35, %v4347_v37 }
 0x33a   :  { %v4356_v46 = vld [vmem:[#allocation8 + $0xd68] sm:$0xff]  ;;  %v8710_v53 = vcombine.low %v4344_v38, %v4348_v40  ;;  %v8717_v51 = vcombine.high %v4351_v43, %v4355_v44  ;;  %v4375_v62 = vld [vmem:[#allocation8 + $0xe00] sm:$0xff] }
 0x33b   :  { %7155 = vmatprep.mubr.bf16.mxu0 %v9355_v55  ;;  %7319 = vmatprep.mubr.bf16.mxu1 %v9355_v55  ;;  %v8719_v63 = vcombine.high %v4352_v45, %v4356_v46  ;;  %v4360_v56 = vld [vmem:[#allocation8 + $0xd88] sm:$0xff]  ;;  %v8718_v2 = vcombine.low %v4352_v45, %v4356_v46  ;;  %v4379_v24 = vld [vmem:[#allocation8 + $0xe20] sm:$0xff] }
 0x33c   :  { %7156 = vmatmul.mubr.bf16.vlgmr.msra.gmra.mrb[8].mxu0 %v9357_v60  ;;  %7320 = vmatmul.mubr.bf16.vlgmr.msra.gmra.mrb[8].mxu1 %v9357_v60  ;;  %v4376_v25 = vld [vmem:[#allocation8 + $0xe08] sm:$0xff]  ;;  %v4383_v37 = vld [vmem:[#allocation8 + $0xe40] sm:$0xff] }
 0x33d   :  { %7165 = vmatpush1.bf16.msra.mxu0 %v8676_v57  ;;  %7329 = vmatpush1.bf16.msra.mxu1 %v8678_v27  ;;  %v4364_v57 = vld [vmem:[#allocation8 + $0xda8] sm:$0xff]  ;;  %v8716_v27 = vcombine.low %v4351_v43, %v4355_v44  ;;  %v4387_v38 = vld [vmem:[#allocation8 + $0xe60] sm:$0xff] }
 0x33e   :  { %7196 = vmatprep.mubr.bf16.mxu0 %v9361_v14  ;;  %7360 = vmatprep.mubr.bf16.mxu1 %v9361_v14  ;;  %v4384_v40 = vld [vmem:[#allocation8 + $0xe48] sm:$0xff]  ;;  %v4391_v44 = vld [vmem:[#allocation8 + $0xe80] sm:$0xff] }
 0x33f   :  { %7166 = vmatprep.subr.bf16.mxu0 %v8685_v3  ;;  %7330 = vmatprep.subr.bf16.mxu1 %v8687_v4  ;;  %v8725_v3 = vcombine.high %v4359_v18, %v4363_v52  ;;  %v8727_v4 = vcombine.high %v4360_v56, %v4364_v57  ;;  %v4395_v45 = vld [vmem:[#allocation8 + $0xea0] sm:$0xff]  ;;  %v4392_v46 = vld [vmem:[#allocation8 + $0xe88] sm:$0xff] }
 0x341   :  { %7167 = vmatpush1.bf16.msra.mxu0 %v8684_v17  ;;  %7331 = vmatpush1.bf16.msra.mxu1 %v8686_v11  ;;  %v4372_v17 = vld [vmem:[#allocation8 + $0xde8] sm:$0xff]  ;;  %v8724_v11 = vcombine.low %v4359_v18, %v4363_v52  ;;  %v4399_v52 = vld [vmem:[#allocation8 + $0xec0] sm:$0xff] }
 0x342   :  { %7168 = vmatprep.subr.bf16.mxu0 %v8693_v20  ;;  %7332 = vmatprep.subr.bf16.mxu1 %v8695_v21  ;;  %v8726_v20 = vcombine.low %v4360_v56, %v4364_v57  ;;  %v8733_v21 = vcombine.high %v4367_v5, %v4371_v6  ;;  %v8735_v22 = vcombine.high %v4368_v13, %v4372_v17  ;;  %v4403_v56 = vld [vmem:[#allocation8 + $0xee0] sm:$0xff]  ;;  %v4400_v57 = vld [vmem:[#allocation8 + $0xec8] sm:$0xff] }
 0x345   :  { %7169 = vmatpush1.bf16.msra.mxu0 %v8692_v29  ;;  %7333 = vmatpush1.bf16.msra.mxu1 %v8694_v33  ;;  %v4380_v29 = vld [vmem:[#allocation8 + $0xe28] sm:$0xff]  ;;  %v8732_v33 = vcombine.low %v4367_v5, %v4371_v6  ;;  %v4407_v6 = vld [vmem:[#allocation8 + $0xf00] sm:$0xff] }
 0x346   :  { %7170 = vmatprep.subr.bf16.mxu0 %v8701_v34  ;;  %7334 = vmatprep.subr.bf16.mxu1 %v8703_v15  ;;  %v8734_v34 = vcombine.low %v4368_v13, %v4372_v17  ;;  %v8741_v15 = vcombine.high %v4375_v62, %v4379_v24  ;;  %v8743_v35 = vcombine.high %v4376_v25, %v4380_v29  ;;  %v4411_v13 = vld [vmem:[#allocation8 + $0xf20] sm:$0xff]  ;;  %v4408_v17 = vld [vmem:[#allocation8 + $0xf08] sm:$0xff] }
 0x349   :  { %7171 = vmatpush1.bf16.msra.mxu0 %v8700_v41  ;;  %7335 = vmatpush1.bf16.msra.mxu1 %v8702_v8  ;;  %v4388_v41 = vld [vmem:[#allocation8 + $0xe68] sm:$0xff]  ;;  %v8740_v8 = vcombine.low %v4375_v62, %v4379_v24  ;;  %v4415_v24 = vld [vmem:[#allocation8 + $0xf40] sm:$0xff] }
 0x34a   :  { %7172 = vmatprep.subr.bf16.mxu0 %v8709_v42  ;;  %7336 = vmatprep.subr.bf16.mxu1 %v8711_v31  ;;  %v8742_v42 = vcombine.low %v4376_v25, %v4380_v29  ;;  %v8749_v31 = vcombine.high %v4383_v37, %v4387_v38  ;;  %v8751_v43 = vcombine.high %v4384_v40, %v4388_v41  ;;  %v665_v25 = vsub.s32 6, %v9297_v32  ;;  %v4419_v29 = vld [vmem:[#allocation8 + $0xf60] sm:$0xff] }
 0x34d   :  { %7173 = vmatpush1.bf16.msra.mxu0 %v8708_v48  ;;  %7337 = vmatpush1.bf16.msra.mxu1 %v8710_v53  ;;  %v4396_v48 = vld [vmem:[#allocation8 + $0xea8] sm:$0xff]  ;;  %v8748_v53 = vcombine.low %v4383_v37, %v4387_v38  ;;  %v8781_v37 = vcombine.high %v4415_v24, %v4419_v29 }
 0x34e   :  { %7174 = vmatprep.subr.bf16.mxu0 %v8717_v51  ;;  %7338 = vmatprep.subr.bf16.mxu1 %v8719_v63  ;;  %v8750_v51 = vcombine.low %v4384_v40, %v4388_v41  ;;  %v8757_v63 = vcombine.high %v4391_v44, %v4395_v45  ;;  %v8759_v18 = vcombine.high %v4392_v46, %v4396_v48  ;;  %v4423_v40 = vld [vmem:[#allocation8 + $0xf80] sm:$0xff] }
 0x34f   :  { %v666_v41 = vrot.slane %v9342_v49, %v665_v25 }
 0x351   :  { %7175 = vmatpush1.bf16.msra.mxu0 %v8716_v27  ;;  %7339 = vmatpush1.bf16.msra.mxu1 %v8718_v2  ;;  %v4404_v27 = vld [vmem:[#allocation8 + $0xee8] sm:$0xff]  ;;  %v8756_v2 = vcombine.low %v4391_v44, %v4395_v45 }
 0x352   :  { %7176 = vmatprep.subr.bf16.mxu0 %v8725_v3  ;;  %7340 = vmatprep.subr.bf16.mxu1 %v8727_v4  ;;  %v8758_v3 = vcombine.low %v4392_v46, %v4396_v48  ;;  %v8765_v4 = vcombine.high %v4399_v52, %v4403_v56  ;;  %v8767_v5 = vcombine.high %v4400_v57, %v4404_v27  ;;  %v4431_v48 = vld [vmem:[#allocation8 + $0xfc0] sm:$0xff] }
 0x355   :  { %7177 = vmatpush1.bf16.msra.mxu0 %v8724_v11  ;;  %7341 = vmatpush1.bf16.msra.mxu1 %v8726_v20  ;;  %v4412_v11 = vld [vmem:[#allocation8 + $0xf28] sm:$0xff]  ;;  %v8764_v20 = vcombine.low %v4399_v52, %v4403_v56 }
 0x356   :  { %7178 = vmatprep.subr.bf16.mxu0 %v8733_v21  ;;  %7342 = vmatprep.subr.bf16.mxu1 %v8735_v22  ;;  %v8766_v21 = vcombine.low %v4400_v57, %v4404_v27  ;;  %v8773_v22 = vcombine.high %v4407_v6, %v4411_v13  ;;  %v8775_v62 = vcombine.high %v4408_v17, %v4412_v11  ;;  %v3929_v27 = vld [vmem:[#allocation8 + $0x10] sm:$0xff] }
 0x359   :  { %7179 = vmatpush1.bf16.msra.mxu0 %v8732_v33  ;;  %7343 = vmatpush1.bf16.msra.mxu1 %v8734_v34  ;;  %v4416_v33 = vld [vmem:[#allocation8 + $0xf48] sm:$0xff] }
 0x35a   :  { %7180 = vmatprep.subr.bf16.mxu0 %v8741_v15  ;;  %7344 = vmatprep.subr.bf16.mxu1 %v8743_v35  ;;  %v4420_v34 = vld [vmem:[#allocation8 + $0xf68] sm:$0xff]  ;;  %v8772_v15 = vcombine.low %v4407_v6, %v4411_v13  ;;  %v8774_v35 = vcombine.low %v4408_v17, %v4412_v11 }
 0x35b   :  { %v8783_v38 = vcombine.high %v4416_v33, %v4420_v34  ;;  %v8782_v44 = vcombine.low %v4416_v33, %v4420_v34 }
 0x35d   :  { %7181 = vmatpush1.bf16.msra.mxu0 %v8740_v8  ;;  %7345 = vmatpush1.bf16.msra.mxu1 %v8742_v42  ;;  %v4427_v8 = vld [vmem:[#allocation8 + $0xfa0] sm:$0xff]  ;;  %v4424_v42 = vld [vmem:[#allocation8 + $0xf88] sm:$0xff] }
 0x35e   :  { %7182 = vmatprep.subr.bf16.mxu0 %v8749_v31  ;;  %7346 = vmatprep.subr.bf16.mxu1 %v8751_v43  ;;  %v4428_v31 = vld [vmem:[#allocation8 + $0xfa8] sm:$0xff]  ;;  %v8780_v43 = vcombine.low %v4415_v24, %v4419_v29  ;;  %v8789_v45 = vcombine.high %v4423_v40, %v4427_v8  ;;  %v8788_v49 = vcombine.low %v4423_v40, %v4427_v8  ;;  %v3950_v40 = vld [vmem:[#allocation8 + $0xb8] sm:$0xff] }
 0x35f   :  { %v8791_v46 = vcombine.high %v4424_v42, %v4428_v31  ;;  %v8790_v52 = vcombine.low %v4424_v42, %v4428_v31 }
 0x361   :  { %7183 = vmatpush1.bf16.msra.mxu0 %v8748_v53  ;;  %7347 = vmatpush1.bf16.msra.mxu1 %v8750_v51  ;;  %v8810_v53 = vadd.f32 %v9353_v36, %v666_v41  ;;  %v4435_v51 = vld [vmem:[#allocation8 + $0xfe0] sm:$0xff] }
 0x362   :  { %7184 = vmatprep.subr.bf16.mxu0 %v8757_v63  ;;  %7348 = vmatprep.subr.bf16.mxu1 %v8759_v18  ;;  %v4432_v63 = vld [vmem:[#allocation8 + $0xfc8] sm:$0xff]  ;;  %v8797_v56 = vcombine.high %v4431_v48, %v4435_v51  ;;  %v8796_v36 = vcombine.low %v4431_v48, %v4435_v51 }
 0x363   :  { %v4436_v18 = vld [vmem:[#allocation8 + $0xfe8] sm:$0xff]  ;;  %vm3901_vm7 = vcmp.gt.f32.partialorder %v8810_v53, 0.0 }
 0x364   :  { %v8799_v57 = vcombine.high %v4432_v63, %v4436_v18  ;;  %v8798_v6 = vcombine.low %v4432_v63, %v4436_v18  ;;  %v3961_v18 = vld [vmem:[#allocation8 + $0x110] sm:$0xff] }
 0x365   :  { %7185 = vmatpush1.bf16.msra.mxu0 %v8756_v2  ;;  %7349 = vmatpush1.bf16.msra.mxu1 %v8758_v3  ;;  %v3909_v2 = vmul.f32 0.01, %v8810_v53  ;;  %v3933_v3 = vld [vmem:[#allocation8 + $0x30] sm:$0xff] }
 0x366   :  { %7186 = vmatprep.subr.bf16.mxu0 %v8765_v4  ;;  %7350 = vmatprep.subr.bf16.mxu1 %v8767_v5  ;;  %v3930_v4 = vld [vmem:[#allocation8 + $0x18] sm:$0xff]  ;;  %v8297_v13 = vcombine.high %v3929_v27, %v3933_v3  ;;  %v8296_v24 = vcombine.low %v3929_v27, %v3933_v3  ;;  %v3969_v3 = vld [vmem:[#allocation8 + $0x150] sm:$0xff] }
 0x367   :  { %v3934_v5 = vld [vmem:[#allocation8 + $0x38] sm:$0xff]  ;;  %v3917_v11 = vsel %vm3901_vm7, %v8810_v53, %v3909_v2 }
 0x368   :  { %v8299_v17 = vcombine.high %v3930_v4, %v3934_v5  ;;  %v9372_v29 = vpack.c.bf16 %v3917_v11, %v3917_v11  ;;  %v8298_v33 = vcombine.low %v3930_v4, %v3934_v5  ;;  %v3973_v4 = vld [vmem:[#allocation8 + $0x170] sm:$0xff]  ;;  %v3970_v5 = vld [vmem:[#allocation8 + $0x158] sm:$0xff] }
 0x369   :  { %7187 = vmatpush1.bf16.msra.mxu0 %v8764_v20  ;;  %7351 = vmatpush1.bf16.msra.mxu1 %v8766_v21  ;;  %v3937_v20 = vld [vmem:[#allocation8 + $0x50] sm:$0xff] }
 0x36a   :  { %7188 = vmatprep.subr.bf16.mxu0 %v8773_v22  ;;  %7352 = vmatprep.subr.bf16.mxu1 %v8775_v62  ;;  %v3941_v21 = vld [vmem:[#allocation8 + $0x70] sm:$0xff]  ;;  %v3938_v22 = vld [vmem:[#allocation8 + $0x58] sm:$0xff] }
 0x36b   :  { %v3942_v62 = vld [vmem:[#allocation8 + $0x78] sm:$0xff]  ;;  %v8305_v34 = vcombine.high %v3937_v20, %v3941_v21  ;;  %v8304_v41 = vcombine.low %v3937_v20, %v3941_v21  ;;  %v3977_v20 = vld [vmem:[#allocation8 + $0x190] sm:$0xff] }
 0x36c   :  { %v8306_v8 = vcombine.low %v3938_v22, %v3942_v62  ;;  %v3981_v21 = vld [vmem:[#allocation8 + $0x1b0] sm:$0xff] }
 0x36d   :  { %7189 = vmatpush1.bf16.msra.mxu0 %v8772_v15  ;;  %7353 = vmatpush1.bf16.msra.mxu1 %v8774_v35  ;;  %v8307_v15 = vcombine.high %v3938_v22, %v3942_v62  ;;  %v3945_v35 = vld [vmem:[#allocation8 + $0x90] sm:$0xff]  ;;  %v3978_v22 = vld [vmem:[#allocation8 + $0x198] sm:$0xff] }
 0x36e   :  { %7190 = vmatprep.subr.bf16.mxu0 %v8781_v37  ;;  %7354 = vmatprep.subr.bf16.mxu1 %v8783_v38  ;;  %v3949_v37 = vld [vmem:[#allocation8 + $0xb0] sm:$0xff]  ;;  %v3946_v38 = vld [vmem:[#allocation8 + $0x98] sm:$0xff] }
 0x36f   :  { %v8313_v42 = vcombine.high %v3945_v35, %v3949_v37  ;;  %v8315_v31 = vcombine.high %v3946_v38, %v3950_v40  ;;  %v8312_v48 = vcombine.low %v3945_v35, %v3949_v37  ;;  %v8314_v53 = vcombine.low %v3946_v38, %v3950_v40  ;;  %v3982_v62 = vld [vmem:[#allocation8 + $0x1b8] sm:$0xff]  ;;  %v3985_v35 = vld [vmem:[#allocation8 + $0x1d0] sm:$0xff] }
 0x370   :  { %v3989_v37 = vld [vmem:[#allocation8 + $0x1f0] sm:$0xff]  ;;  %v3986_v38 = vld [vmem:[#allocation8 + $0x1d8] sm:$0xff] }
 0x371   :  { %7191 = vmatpush1.bf16.msra.mxu0 %v8780_v43  ;;  %7355 = vmatpush1.bf16.msra.mxu1 %v8782_v44  ;;  %v3953_v43 = vld [vmem:[#allocation8 + $0xd0] sm:$0xff]  ;;  %v3990_v40 = vld [vmem:[#allocation8 + $0x1f8] sm:$0xff] }
 0x372   :  { %7192 = vmatprep.subr.bf16.mxu0 %v8789_v45  ;;  %7356 = vmatprep.subr.bf16.mxu1 %v8791_v46  ;;  %v3957_v44 = vld [vmem:[#allocation8 + $0xf0] sm:$0xff]  ;;  %v3954_v45 = vld [vmem:[#allocation8 + $0xd8] sm:$0xff] }
 0x373   :  { %v3958_v46 = vld [vmem:[#allocation8 + $0xf8] sm:$0xff]  ;;  %v8321_v51 = vcombine.high %v3953_v43, %v3957_v44 }
 0x374   :  { %v8323_v63 = vcombine.high %v3954_v45, %v3958_v46 }
 0x375   :  { %7193 = vmatpush1.bf16.msra.mxu0 %v8788_v49  ;;  %7357 = vmatpush1.bf16.msra.mxu1 %v8790_v52  ;;  %v3965_v49 = vld [vmem:[#allocation8 + $0x130] sm:$0xff]  ;;  %v3966_v52 = vld [vmem:[#allocation8 + $0x138] sm:$0xff] }
 0x376   :  { %7194 = vmatprep.subr.bf16.mxu0 %v8797_v56  ;;  %7358 = vmatprep.subr.bf16.mxu1 %v8799_v57  ;;  %v8320_v56 = vcombine.low %v3953_v43, %v3957_v44  ;;  %v8322_v57 = vcombine.low %v3954_v45, %v3958_v46  ;;  %v8329_v27 = vcombine.high %v3961_v18, %v3965_v49  ;;  %v3993_v43 = vld [vmem:[#allocation8 + $0x210] sm:$0xff]  ;;  %v3994_v45 = vld [vmem:[#allocation8 + $0x218] sm:$0xff] }
 0x377   :  { %v3997_v44 = vld [vmem:[#allocation8 + $0x230] sm:$0xff]  ;;  %v3998_v46 = vld [vmem:[#allocation8 + $0x238] sm:$0xff] }
 0x379   :  { %7195 = vmatpush1.bf16.msra.mxu0 %v8796_v36  ;;  %7359 = vmatpush1.bf16.msra.mxu1 %v8798_v6  ;;  %v3974_v36 = vld [vmem:[#allocation8 + $0x178] sm:$0xff]  ;;  %v8328_v6 = vcombine.low %v3961_v18, %v3965_v49  ;;  %v4001_v18 = vld [vmem:[#allocation8 + $0x250] sm:$0xff] }
 0x37a   :  { %7369 = vmatprep.subr.bf16.mxu0 %v8297_v13  ;;  %7533 = vmatprep.subr.bf16.mxu1 %v8299_v17  ;;  %v8337_v17 = vcombine.high %v3969_v3, %v3973_v4  ;;  %v8339_v11 = vcombine.high %v3970_v5, %v3974_v36  ;;  %v4005_v49 = vld [vmem:[#allocation8 + $0x270] sm:$0xff] }
 0x37c   :  { %7197 = vmatmul.mubr.bf16.vlgmr.msra.gmra.mrb[8].mxu0 %v9372_v29  ;;  %7361 = vmatmul.mubr.bf16.vlgmr.msra.gmra.mrb[8].mxu1 %v9372_v29 }
 0x37d   :  { %7370 = vmatpush1.bf16.msra.mxu0 %v8296_v24  ;;  %7401 = vmatprep.mubr.bf16.mxu0 %v9306_v9  ;;  %v8336_v24 = vcombine.low %v3969_v3, %v3973_v4  ;;  %v4009_v3 = vld [vmem:[#allocation8 + $0x290] sm:$0xff] }
 0x37e   :  { %7534 = vmatpush1.bf16.msra.mxu1 %v8298_v33  ;;  %7565 = vmatprep.mubr.bf16.mxu1 %v9306_v9  ;;  %v3962_v9 = vld [vmem:[#allocation8 + $0x118] sm:$0xff]  ;;  %v8338_v33 = vcombine.low %v3970_v5, %v3974_v36  ;;  %v4013_v4 = vld [vmem:[#allocation8 + $0x2b0] sm:$0xff] }
 0x37f   :  { %7371 = vmatprep.subr.bf16.mxu0 %v8305_v34  ;;  %7535 = vmatprep.subr.bf16.mxu1 %v8307_v15  ;;  %v8331_v2 = vcombine.high %v3962_v9, %v3966_v52  ;;  %v8330_v13 = vcombine.low %v3962_v9, %v3966_v52  ;;  %v8345_v34 = vcombine.high %v3977_v20, %v3981_v21  ;;  %v4002_v9 = vld [vmem:[#allocation8 + $0x258] sm:$0xff] }
 0x380   :  { %v8347_v15 = vcombine.high %v3978_v22, %v3982_v62  ;;  %v4006_v52 = vld [vmem:[#allocation8 + $0x278] sm:$0xff] }
 0x381   :  { %7372 = vmatpush1.bf16.msra.mxu0 %v8304_v41  ;;  %v8344_v41 = vcombine.low %v3977_v20, %v3981_v21  ;;  %v4010_v5 = vld [vmem:[#allocation8 + $0x298] sm:$0xff]  ;;  %v4017_v20 = vld [vmem:[#allocation8 + $0x2d0] sm:$0xff] }
 0x382   :  { %7536 = vmatpush1.bf16.msra.mxu1 %v8306_v8  ;;  %7373 = vmatprep.subr.bf16.mxu0 %v8313_v42  ;;  %v8346_v8 = vcombine.low %v3978_v22, %v3982_v62  ;;  %v8353_v42 = vcombine.high %v3985_v35, %v3989_v37  ;;  %v4014_v36 = vld [vmem:[#allocation8 + $0x2b8] sm:$0xff]  ;;  %v4021_v21 = vld [vmem:[#allocation8 + $0x2f0] sm:$0xff] }
 0x383   :  { %7537 = vmatprep.subr.bf16.mxu1 %v8315_v31  ;;  %v8355_v31 = vcombine.high %v3986_v38, %v3990_v40  ;;  %v4018_v22 = vld [vmem:[#allocation8 + $0x2d8] sm:$0xff] }
 0x384   :  { %v4022_v62 = vld [vmem:[#allocation8 + $0x2f8] sm:$0xff] }
 0x385   :  { %7374 = vmatpush1.bf16.msra.mxu0 %v8312_v48  ;;  %v8352_v48 = vcombine.low %v3985_v35, %v3989_v37  ;;  %v4025_v35 = vld [vmem:[#allocation8 + $0x310] sm:$0xff] }
 0x386   :  { %7538 = vmatpush1.bf16.msra.mxu1 %v8314_v53  ;;  %7375 = vmatprep.subr.bf16.mxu0 %v8321_v51  ;;  %v8354_v53 = vcombine.low %v3986_v38, %v3990_v40  ;;  %v8361_v51 = vcombine.high %v3993_v43, %v3997_v44  ;;  %v4029_v37 = vld [vmem:[#allocation8 + $0x330] sm:$0xff]  ;;  %v4026_v38 = vld [vmem:[#allocation8 + $0x318] sm:$0xff] }
 0x387   :  { %7539 = vmatprep.subr.bf16.mxu1 %v8323_v63  ;;  %v8363_v63 = vcombine.high %v3994_v45, %v3998_v46  ;;  %v4030_v40 = vld [vmem:[#allocation8 + $0x338] sm:$0xff] }
 0x389   :  { %7376 = vmatpush1.bf16.msra.mxu0 %v8320_v56  ;;  %v8360_v56 = vcombine.low %v3993_v43, %v3997_v44  ;;  %v4033_v43 = vld [vmem:[#allocation8 + $0x350] sm:$0xff] }
 0x38a   :  { %7540 = vmatpush1.bf16.msra.mxu1 %v8322_v57  ;;  %7377 = vmatprep.subr.bf16.mxu0 %v8329_v27  ;;  %v8362_v57 = vcombine.low %v3994_v45, %v3998_v46  ;;  %v8369_v27 = vcombine.high %v4001_v18, %v4005_v49  ;;  %v4037_v44 = vld [vmem:[#allocation8 + $0x370] sm:$0xff]  ;;  %v4034_v45 = vld [vmem:[#allocation8 + $0x358] sm:$0xff] }
 0x38b   :  { %7541 = vmatprep.subr.bf16.mxu1 %v8331_v2  ;;  %v8371_v2 = vcombine.high %v4002_v9, %v4006_v52  ;;  %v4038_v46 = vld [vmem:[#allocation8 + $0x378] sm:$0xff] }
 0x38d   :  { %7378 = vmatpush1.bf16.msra.mxu0 %v8328_v6  ;;  %v8368_v6 = vcombine.low %v4001_v18, %v4005_v49  ;;  %v4041_v18 = vld [vmem:[#allocation8 + $0x390] sm:$0xff] }
 0x38e   :  { %7542 = vmatpush1.bf16.msra.mxu1 %v8330_v13  ;;  %7379 = vmatprep.subr.bf16.mxu0 %v8337_v17  ;;  %v8370_v13 = vcombine.low %v4002_v9, %v4006_v52  ;;  %v8377_v17 = vcombine.high %v4009_v3, %v4013_v4  ;;  %v4045_v49 = vld [vmem:[#allocation8 + $0x3b0] sm:$0xff]  ;;  %v4042_v9 = vld [vmem:[#allocation8 + $0x398] sm:$0xff] }
 0x38f   :  { %7543 = vmatprep.subr.bf16.mxu1 %v8339_v11  ;;  %v8379_v11 = vcombine.high %v4010_v5, %v4014_v36  ;;  %v4046_v52 = vld [vmem:[#allocation8 + $0x3b8] sm:$0xff] }
 0x391   :  { %7380 = vmatpush1.bf16.msra.mxu0 %v8336_v24  ;;  %v8376_v24 = vcombine.low %v4009_v3, %v4013_v4  ;;  %v4049_v3 = vld [vmem:[#allocation8 + $0x3d0] sm:$0xff] }
 0x392   :  { %7544 = vmatpush1.bf16.msra.mxu1 %v8338_v33  ;;  %7381 = vmatprep.subr.bf16.mxu0 %v8345_v34  ;;  %v8378_v33 = vcombine.low %v4010_v5, %v4014_v36  ;;  %v8385_v34 = vcombine.high %v4017_v20, %v4021_v21  ;;  %v4053_v4 = vld [vmem:[#allocation8 + $0x3f0] sm:$0xff]  ;;  %v4050_v5 = vld [vmem:[#allocation8 + $0x3d8] sm:$0xff] }
 0x393   :  { %7545 = vmatprep.subr.bf16.mxu1 %v8347_v15  ;;  %v8387_v15 = vcombine.high %v4018_v22, %v4022_v62  ;;  %v4054_v36 = vld [vmem:[#allocation8 + $0x3f8] sm:$0xff] }
 0x395   :  { %7382 = vmatpush1.bf16.msra.mxu0 %v8344_v41  ;;  %v8384_v41 = vcombine.low %v4017_v20, %v4021_v21  ;;  %v4057_v20 = vld [vmem:[#allocation8 + $0x410] sm:$0xff] }
 0x396   :  { %7546 = vmatpush1.bf16.msra.mxu1 %v8346_v8  ;;  %7383 = vmatprep.subr.bf16.mxu0 %v8353_v42  ;;  %v8386_v8 = vcombine.low %v4018_v22, %v4022_v62  ;;  %v8393_v42 = vcombine.high %v4025_v35, %v4029_v37  ;;  %v4061_v21 = vld [vmem:[#allocation8 + $0x430] sm:$0xff]  ;;  %v4058_v22 = vld [vmem:[#allocation8 + $0x418] sm:$0xff] }
 0x397   :  { %7547 = vmatprep.subr.bf16.mxu1 %v8355_v31  ;;  %v8395_v31 = vcombine.high %v4026_v38, %v4030_v40  ;;  %v4062_v62 = vld [vmem:[#allocation8 + $0x438] sm:$0xff] }
 0x399   :  { %7384 = vmatpush1.bf16.msra.mxu0 %v8352_v48  ;;  %v8392_v48 = vcombine.low %v4025_v35, %v4029_v37  ;;  %v4065_v35 = vld [vmem:[#allocation8 + $0x450] sm:$0xff] }
 0x39a   :  { %7548 = vmatpush1.bf16.msra.mxu1 %v8354_v53  ;;  %7385 = vmatprep.subr.bf16.mxu0 %v8361_v51  ;;  %v8394_v53 = vcombine.low %v4026_v38, %v4030_v40  ;;  %v8401_v51 = vcombine.high %v4033_v43, %v4037_v44  ;;  %v4069_v37 = vld [vmem:[#allocation8 + $0x470] sm:$0xff]  ;;  %v8424_v38 = vcombine.low %v4057_v20, %v4061_v21  ;;  %v4066_v40 = vld [vmem:[#allocation8 + $0x458] sm:$0xff] }
 0x39b   :  { %7549 = vmatprep.subr.bf16.mxu1 %v8363_v63  ;;  %v8403_v63 = vcombine.high %v4034_v45, %v4038_v46 }
 0x39d   :  { %7386 = vmatpush1.bf16.msra.mxu0 %v8360_v56  ;;  %v8400_v56 = vcombine.low %v4033_v43, %v4037_v44  ;;  %v4077_v43 = vld [vmem:[#allocation8 + $0x4b0] sm:$0xff] }
 0x39e   :  { %7550 = vmatpush1.bf16.msra.mxu1 %v8362_v57  ;;  %7387 = vmatprep.subr.bf16.mxu0 %v8369_v27  ;;  %v8402_v57 = vcombine.low %v4034_v45, %v4038_v46  ;;  %v8409_v27 = vcombine.high %v4041_v18, %v4045_v49  ;;  %v4074_v45 = vld [vmem:[#allocation8 + $0x498] sm:$0xff] }
 0x39f   :  { %7551 = vmatprep.subr.bf16.mxu1 %v8371_v2  ;;  %v8411_v2 = vcombine.high %v4042_v9, %v4046_v52  ;;  %v4078_v46 = vld [vmem:[#allocation8 + $0x4b8] sm:$0xff] }
 0x3a1   :  { %7388 = vmatpush1.bf16.msra.mxu0 %v8368_v6  ;;  %v8408_v6 = vcombine.low %v4041_v18, %v4045_v49  ;;  %v4081_v18 = vld [vmem:[#allocation8 + $0x4d0] sm:$0xff] }
 0x3a2   :  { %7552 = vmatpush1.bf16.msra.mxu1 %v8370_v13  ;;  %7389 = vmatprep.subr.bf16.mxu0 %v8377_v17  ;;  %v8410_v13 = vcombine.low %v4042_v9, %v4046_v52  ;;  %v8417_v17 = vcombine.high %v4049_v3, %v4053_v4  ;;  %v4085_v49 = vld [vmem:[#allocation8 + $0x4f0] sm:$0xff]  ;;  %v4082_v9 = vld [vmem:[#allocation8 + $0x4d8] sm:$0xff] }
 0x3a3   :  { %7553 = vmatprep.subr.bf16.mxu1 %v8379_v11  ;;  %v8419_v11 = vcombine.high %v4050_v5, %v4054_v36  ;;  %v4086_v52 = vld [vmem:[#allocation8 + $0x4f8] sm:$0xff] }
 0x3a5   :  { %7390 = vmatpush1.bf16.msra.mxu0 %v8376_v24  ;;  %v8416_v24 = vcombine.low %v4049_v3, %v4053_v4  ;;  %v4093_v3 = vld [vmem:[#allocation8 + $0x530] sm:$0xff]  ;;  %v4090_v4 = vld [vmem:[#allocation8 + $0x518] sm:$0xff] }
 0x3a6   :  { %7554 = vmatpush1.bf16.msra.mxu1 %v8378_v33  ;;  %7391 = vmatprep.subr.bf16.mxu0 %v8385_v34  ;;  %v8418_v33 = vcombine.low %v4050_v5, %v4054_v36  ;;  %v8425_v34 = vcombine.high %v4057_v20, %v4061_v21  ;;  %v4094_v5 = vld [vmem:[#allocation8 + $0x538] sm:$0xff]  ;;  %v8450_v36 = vcombine.low %v4082_v9, %v4086_v52 }
 0x3a7   :  { %7555 = vmatprep.subr.bf16.mxu1 %v8387_v15  ;;  %v8427_v15 = vcombine.high %v4058_v22, %v4062_v62  ;;  %v4098_v20 = vld [vmem:[#allocation8 + $0x558] sm:$0xff] }
 0x3a8   :  { %v4102_v21 = vld [vmem:[#allocation8 + $0x578] sm:$0xff] }
 0x3a9   :  { %7392 = vmatpush1.bf16.msra.mxu0 %v8384_v41  ;;  %v4070_v41 = vld [vmem:[#allocation8 + $0x478] sm:$0xff] }
 0x3aa   :  { %7556 = vmatpush1.bf16.msra.mxu1 %v8386_v8  ;;  %7393 = vmatprep.subr.bf16.mxu0 %v8393_v42  ;;  %v8426_v8 = vcombine.low %v4058_v22, %v4062_v62  ;;  %v8433_v42 = vcombine.high %v4065_v35, %v4069_v37  ;;  %v8435_v44 = vcombine.high %v4066_v40, %v4070_v41 }
 0x3ab   :  { %7557 = vmatprep.subr.bf16.mxu1 %v8395_v31  ;;  %v4073_v31 = vld [vmem:[#allocation8 + $0x490] sm:$0xff]  ;;  %v8458_v62 = vcombine.low %v4090_v4, %v4094_v5 }
 0x3ad   :  { %7394 = vmatpush1.bf16.msra.mxu0 %v8392_v48  ;;  %v8432_v48 = vcombine.low %v4065_v35, %v4069_v37  ;;  %v4106_v35 = vld [vmem:[#allocation8 + $0x598] sm:$0xff] }
 0x3ae   :  { %7558 = vmatpush1.bf16.msra.mxu1 %v8394_v53  ;;  %7395 = vmatprep.subr.bf16.mxu0 %v8401_v51  ;;  %v8434_v53 = vcombine.low %v4066_v40, %v4070_v41  ;;  %v8441_v51 = vcombine.high %v4073_v31, %v4077_v43  ;;  %v4110_v37 = vld [vmem:[#allocation8 + $0x5b8] sm:$0xff]  ;;  %v8466_v40 = vcombine.low %v4098_v20, %v4102_v21 }
 0x3af   :  { %7559 = vmatprep.subr.bf16.mxu1 %v8403_v63  ;;  %v8443_v63 = vcombine.high %v4074_v45, %v4078_v46 }
 0x3b1   :  { %7396 = vmatpush1.bf16.msra.mxu0 %v8400_v56  ;;  %v8440_v56 = vcombine.low %v4073_v31, %v4077_v43  ;;  %v4117_v31 = vld [vmem:[#allocation8 + $0x5f0] sm:$0xff]  ;;  %v4114_v43 = vld [vmem:[#allocation8 + $0x5d8] sm:$0xff] }
 0x3b2   :  { %7560 = vmatpush1.bf16.msra.mxu1 %v8402_v57  ;;  %7397 = vmatprep.subr.bf16.mxu0 %v8409_v27  ;;  %v8449_v57 = vcombine.high %v4081_v18, %v4085_v49  ;;  %v8451_v27 = vcombine.high %v4082_v9, %v4086_v52 }
 0x3b3   :  { %7561 = vmatprep.subr.bf16.mxu1 %v8411_v2  ;;  %v4089_v2 = vld [vmem:[#allocation8 + $0x510] sm:$0xff] }
 0x3b4   :  { %v8456_v22 = vcombine.low %v4089_v2, %v4093_v3 }
 0x3b5   :  { %7398 = vmatpush1.bf16.msra.mxu0 %v8408_v6  ;;  %v8457_v6 = vcombine.high %v4089_v2, %v4093_v3  ;;  %v4130_v2 = vld [vmem:[#allocation8 + $0x658] sm:$0xff] }
 0x3b6   :  { %7562 = vmatpush1.bf16.msra.mxu1 %v8410_v13  ;;  %7399 = vmatprep.subr.bf16.mxu0 %v8417_v17  ;;  %v8459_v13 = vcombine.high %v4090_v4, %v4094_v5  ;;  %v4097_v17 = vld [vmem:[#allocation8 + $0x550] sm:$0xff]  ;;  %v4134_v3 = vld [vmem:[#allocation8 + $0x678] sm:$0xff] }
 0x3b7   :  { %7563 = vmatprep.subr.bf16.mxu1 %v8419_v11  ;;  %v4101_v11 = vld [vmem:[#allocation8 + $0x570] sm:$0xff] }
 0x3b9   :  { %7400 = vmatpush1.bf16.msra.mxu0 %v8416_v24  ;;  %v8465_v24 = vcombine.high %v4097_v17, %v4101_v11 }
 0x3ba   :  { %7564 = vmatpush1.bf16.msra.mxu1 %v8418_v33  ;;  %7410 = vmatprep.subr.bf16.mxu0 %v8425_v34  ;;  %v8467_v33 = vcombine.high %v4098_v20, %v4102_v21  ;;  %v4105_v34 = vld [vmem:[#allocation8 + $0x590] sm:$0xff]  ;;  %v8498_v21 = vcombine.low %v4130_v2, %v4134_v3 }
 0x3bb   :  { %7574 = vmatprep.subr.bf16.mxu1 %v8427_v15  ;;  %v4109_v15 = vld [vmem:[#allocation8 + $0x5b0] sm:$0xff] }
 0x3bc   :  { %7402 = vmatmul.mubr.bf16.vlgmr.msra.gmra.mrb[12].mxu0 %v9322_v0  ;;  %v8473_v41 = vcombine.high %v4105_v34, %v4109_v15 }
 0x3bd   :  { %7566 = vmatmul.mubr.bf16.vlgmr.msra.gmra.mrb[12].mxu1 %v9322_v0  ;;  %7411 = vmatpush1.bf16.msra.mxu0 %v8424_v38  ;;  %v8442_v0 = vcombine.low %v4074_v45, %v4078_v46  ;;  %v8464_v38 = vcombine.low %v4097_v17, %v4101_v11  ;;  %v8472_v45 = vcombine.low %v4105_v34, %v4109_v15  ;;  %v4138_v17 = vld [vmem:[#allocation8 + $0x698] sm:$0xff] }
 0x3be   :  { %7442 = vmatprep.mubr.bf16.mxu0 %v9324_v59  ;;  %7575 = vmatpush1.bf16.msra.mxu1 %v8426_v8  ;;  %v8475_v8 = vcombine.high %v4106_v35, %v4110_v37  ;;  %v8474_v46 = vcombine.low %v4106_v35, %v4110_v37  ;;  %v4142_v11 = vld [vmem:[#allocation8 + $0x6b8] sm:$0xff] }
 0x3bf   :  { %7606 = vmatprep.mubr.bf16.mxu1 %v9324_v59  ;;  %7412 = vmatprep.subr.bf16.mxu0 %v8433_v42  ;;  %v8448_v59 = vcombine.low %v4081_v18, %v4085_v49  ;;  %v4113_v42 = vld [vmem:[#allocation8 + $0x5d0] sm:$0xff]  ;;  %v4122_v18 = vld [vmem:[#allocation8 + $0x618] sm:$0xff]  ;;  %v8506_v37 = vcombine.low %v4138_v17, %v4142_v11 }
 0x3c0   :  { %7576 = vmatprep.subr.bf16.mxu1 %v8435_v44  ;;  %v4118_v44 = vld [vmem:[#allocation8 + $0x5f8] sm:$0xff]  ;;  %v8480_v9 = vcombine.low %v4113_v42, %v4117_v31 }
 0x3c1   :  { %7413 = vmatpush1.bf16.msra.mxu0 %v8432_v48  ;;  %v8481_v48 = vcombine.high %v4113_v42, %v4117_v31  ;;  %v4126_v49 = vld [vmem:[#allocation8 + $0x638] sm:$0xff]  ;;  %v8482_v52 = vcombine.low %v4114_v43, %v4118_v44 }
 0x3c2   :  { %7577 = vmatpush1.bf16.msra.mxu1 %v8434_v53  ;;  %7414 = vmatprep.subr.bf16.mxu0 %v8441_v51  ;;  %v8483_v53 = vcombine.high %v4114_v43, %v4118_v44  ;;  %v4121_v51 = vld [vmem:[#allocation8 + $0x610] sm:$0xff]  ;;  %v8490_v5 = vcombine.low %v4122_v18, %v4126_v49  ;;  %v4146_v34 = vld [vmem:[#allocation8 + $0x6d8] sm:$0xff] }
 0x3c3   :  { %7578 = vmatprep.subr.bf16.mxu1 %v8443_v63  ;;  %v4125_v63 = vld [vmem:[#allocation8 + $0x630] sm:$0xff]  ;;  %v4150_v15 = vld [vmem:[#allocation8 + $0x6f8] sm:$0xff] }
 0x3c4   :  { %v8488_v4 = vcombine.low %v4121_v51, %v4125_v63  ;;  %v4154_v42 = vld [vmem:[#allocation8 + $0x718] sm:$0xff]  ;;  %v8514_v44 = vcombine.low %v4146_v34, %v4150_v15 }
 0x3c5   :  { %7415 = vmatpush1.bf16.msra.mxu0 %v8440_v56  ;;  %v8489_v56 = vcombine.high %v4121_v51, %v4125_v63  ;;  %v4158_v31 = vld [vmem:[#allocation8 + $0x738] sm:$0xff] }
 0x3c6   :  { %7579 = vmatpush1.bf16.msra.mxu1 %v8442_v0  ;;  %7416 = vmatprep.subr.bf16.mxu0 %v8449_v57  ;;  %v8491_v0 = vcombine.high %v4122_v18, %v4126_v49  ;;  %v4129_v57 = vld [vmem:[#allocation8 + $0x650] sm:$0xff]  ;;  %v4162_v51 = vld [vmem:[#allocation8 + $0x758] sm:$0xff]  ;;  %v8522_v49 = vcombine.low %v4154_v42, %v4158_v31 }
 0x3c7   :  { %7580 = vmatprep.subr.bf16.mxu1 %v8451_v27  ;;  %v4133_v27 = vld [vmem:[#allocation8 + $0x670] sm:$0xff]  ;;  %v4166_v63 = vld [vmem:[#allocation8 + $0x778] sm:$0xff] }
 0x3c8   :  { %v8496_v20 = vcombine.low %v4129_v57, %v4133_v27 }
 0x3c9   :  { %7417 = vmatpush1.bf16.msra.mxu0 %v8448_v59  ;;  %v8497_v59 = vcombine.high %v4129_v57, %v4133_v27  ;;  %v4170_v57 = vld [vmem:[#allocation8 + $0x798] sm:$0xff] }
 0x3ca   :  { %7581 = vmatpush1.bf16.msra.mxu1 %v8450_v36  ;;  %7418 = vmatprep.subr.bf16.mxu0 %v8457_v6  ;;  %v8499_v36 = vcombine.high %v4130_v2, %v4134_v3  ;;  %v4137_v6 = vld [vmem:[#allocation8 + $0x690] sm:$0xff]  ;;  %v4174_v27 = vld [vmem:[#allocation8 + $0x7b8] sm:$0xff]  ;;  %v8530_v3 = vcombine.low %v4162_v51, %v4166_v63 }
 0x3cb   :  { %7582 = vmatprep.subr.bf16.mxu1 %v8459_v13  ;;  %v4141_v13 = vld [vmem:[#allocation8 + $0x6b0] sm:$0xff] }
 0x3cc   :  { %v8504_v35 = vcombine.low %v4137_v6, %v4141_v13 }
 0x3cd   :  { %7419 = vmatpush1.bf16.msra.mxu0 %v8456_v22  ;;  %v8505_v22 = vcombine.high %v4137_v6, %v4141_v13  ;;  %v4178_v6 = vld [vmem:[#allocation8 + $0x7d8] sm:$0xff] }
 0x3ce   :  { %7583 = vmatpush1.bf16.msra.mxu1 %v8458_v62  ;;  %7420 = vmatprep.subr.bf16.mxu0 %v8465_v24  ;;  %v8507_v62 = vcombine.high %v4138_v17, %v4142_v11  ;;  %v4145_v24 = vld [vmem:[#allocation8 + $0x6d0] sm:$0xff]  ;;  %v4182_v13 = vld [vmem:[#allocation8 + $0x7f8] sm:$0xff]  ;;  %v8538_v11 = vcombine.low %v4170_v57, %v4174_v27 }
 0x3cf   :  { %7584 = vmatprep.subr.bf16.mxu1 %v8467_v33  ;;  %v4149_v33 = vld [vmem:[#allocation8 + $0x6f0] sm:$0xff] }
 0x3d0   :  { %v8512_v43 = vcombine.low %v4145_v24, %v4149_v33 }
 0x3d1   :  { %7421 = vmatpush1.bf16.msra.mxu0 %v8464_v38  ;;  %v8513_v38 = vcombine.high %v4145_v24, %v4149_v33  ;;  %v4186_v24 = vld [vmem:[#allocation8 + $0x818] sm:$0xff] }
 0x3d2   :  { %7585 = vmatpush1.bf16.msra.mxu1 %v8466_v40  ;;  %7422 = vmatprep.subr.bf16.mxu0 %v8473_v41  ;;  %v8515_v40 = vcombine.high %v4146_v34, %v4150_v15  ;;  %v4153_v41 = vld [vmem:[#allocation8 + $0x710] sm:$0xff]  ;;  %v4190_v33 = vld [vmem:[#allocation8 + $0x838] sm:$0xff]  ;;  %v8546_v15 = vcombine.low %v4178_v6, %v4182_v13 }
 0x3d3   :  { %7586 = vmatprep.subr.bf16.mxu1 %v8475_v8  ;;  %v4157_v8 = vld [vmem:[#allocation8 + $0x730] sm:$0xff] }
 0x3d4   :  { %v8520_v18 = vcombine.low %v4153_v41, %v4157_v8 }
 0x3d5   :  { %7423 = vmatpush1.bf16.msra.mxu0 %v8472_v45  ;;  %v8521_v45 = vcombine.high %v4153_v41, %v4157_v8  ;;  %v4194_v8 = vld [vmem:[#allocation8 + $0x858] sm:$0xff] }
 0x3d6   :  { %7587 = vmatpush1.bf16.msra.mxu1 %v8474_v46  ;;  %7424 = vmatprep.subr.bf16.mxu0 %v8481_v48  ;;  %v8523_v46 = vcombine.high %v4154_v42, %v4158_v31  ;;  %v4161_v48 = vld [vmem:[#allocation8 + $0x750] sm:$0xff]  ;;  %v4198_v42 = vld [vmem:[#allocation8 + $0x878] sm:$0xff]  ;;  %v8554_v31 = vcombine.low %v4186_v24, %v4190_v33 }
 0x3d7   :  { %7588 = vmatprep.subr.bf16.mxu1 %v8483_v53  ;;  %v4165_v53 = vld [vmem:[#allocation8 + $0x770] sm:$0xff] }
 0x3d8   :  { %v8528_v2 = vcombine.low %v4161_v48, %v4165_v53 }
 0x3d9   :  { %7425 = vmatpush1.bf16.msra.mxu0 %v8480_v9  ;;  %v8529_v9 = vcombine.high %v4161_v48, %v4165_v53  ;;  %v4202_v48 = vld [vmem:[#allocation8 + $0x898] sm:$0xff] }
 0x3da   :  { %7589 = vmatpush1.bf16.msra.mxu1 %v8482_v52  ;;  %7426 = vmatprep.subr.bf16.mxu0 %v8489_v56  ;;  %v8531_v52 = vcombine.high %v4162_v51, %v4166_v63  ;;  %v4169_v56 = vld [vmem:[#allocation8 + $0x790] sm:$0xff]  ;;  %v4206_v53 = vld [vmem:[#allocation8 + $0x8b8] sm:$0xff]  ;;  %v8562_v63 = vcombine.low %v4194_v8, %v4198_v42 }
 0x3db   :  { %7590 = vmatprep.subr.bf16.mxu1 %v8491_v0  ;;  %v4173_v0 = vld [vmem:[#allocation8 + $0x7b0] sm:$0xff] }
 0x3dc   :  { %v8536_v17 = vcombine.low %v4169_v56, %v4173_v0 }
 0x3dd   :  { %7427 = vmatpush1.bf16.msra.mxu0 %v8488_v4  ;;  %v8537_v4 = vcombine.high %v4169_v56, %v4173_v0  ;;  %v4210_v56 = vld [vmem:[#allocation8 + $0x8d8] sm:$0xff] }
 0x3de   :  { %7591 = vmatpush1.bf16.msra.mxu1 %v8490_v5  ;;  %7428 = vmatprep.subr.bf16.mxu0 %v8497_v59  ;;  %v8539_v5 = vcombine.high %v4170_v57, %v4174_v27  ;;  %v4177_v59 = vld [vmem:[#allocation8 + $0x7d0] sm:$0xff]  ;;  %v4214_v0 = vld [vmem:[#allocation8 + $0x8f8] sm:$0xff] }
 0x3df   :  { %7592 = vmatprep.subr.bf16.mxu1 %v8499_v36  ;;  %v4181_v36 = vld [vmem:[#allocation8 + $0x7f0] sm:$0xff] }
 0x3e0   :  { %v8544_v34 = vcombine.low %v4177_v59, %v4181_v36 }
 0x3e1   :  { %7429 = vmatpush1.bf16.msra.mxu0 %v8496_v20  ;;  %v8545_v20 = vcombine.high %v4177_v59, %v4181_v36  ;;  %v4222_v59 = vld [vmem:[#allocation8 + $0x938] sm:$0xff]  ;;  %v8578_v36 = vcombine.low %v4210_v56, %v4214_v0 }
 0x3e2   :  { %7593 = vmatpush1.bf16.msra.mxu1 %v8498_v21  ;;  %7430 = vmatprep.subr.bf16.mxu0 %v8505_v22  ;;  %v8547_v21 = vcombine.high %v4178_v6, %v4182_v13  ;;  %v4185_v22 = vld [vmem:[#allocation8 + $0x810] sm:$0xff] }
 0x3e3   :  { %7594 = vmatprep.subr.bf16.mxu1 %v8507_v62  ;;  %v4189_v62 = vld [vmem:[#allocation8 + $0x830] sm:$0xff] }
 0x3e4   :  { %v8552_v41 = vcombine.low %v4185_v22, %v4189_v62 }
 0x3e5   :  { %7431 = vmatpush1.bf16.msra.mxu0 %v8504_v35  ;;  %v8553_v35 = vcombine.high %v4185_v22, %v4189_v62 }
 0x3e6   :  { %7595 = vmatpush1.bf16.msra.mxu1 %v8506_v37  ;;  %7432 = vmatprep.subr.bf16.mxu0 %v8513_v38  ;;  %v8555_v37 = vcombine.high %v4186_v24, %v4190_v33  ;;  %v4193_v38 = vld [vmem:[#allocation8 + $0x850] sm:$0xff] }
 0x3e7   :  { %7596 = vmatprep.subr.bf16.mxu1 %v8515_v40  ;;  %v4197_v40 = vld [vmem:[#allocation8 + $0x870] sm:$0xff] }
 0x3e8   :  { %v8560_v51 = vcombine.low %v4193_v38, %v4197_v40 }
 0x3e9   :  { %7433 = vmatpush1.bf16.msra.mxu0 %v8512_v43  ;;  %v8561_v43 = vcombine.high %v4193_v38, %v4197_v40 }
 0x3ea   :  { %7597 = vmatpush1.bf16.msra.mxu1 %v8514_v44  ;;  %7434 = vmatprep.subr.bf16.mxu0 %v8521_v45  ;;  %v4201_v44 = vld [vmem:[#allocation8 + $0x890] sm:$0xff] }
 0x3eb   :  { %7598 = vmatprep.subr.bf16.mxu1 %v8523_v46  ;;  %v4205_v45 = vld [vmem:[#allocation8 + $0x8b0] sm:$0xff]  ;;  %v8563_v46 = vcombine.high %v4194_v8, %v4198_v42 }
 0x3ec   :  { %v8568_v57 = vcombine.low %v4201_v44, %v4205_v45  ;;  %v4241_v42 = vld [vmem:[#allocation8 + $0x9d0] sm:$0xff] }
 0x3ed   :  { %7435 = vmatpush1.bf16.msra.mxu0 %v8520_v18  ;;  %v8569_v18 = vcombine.high %v4201_v44, %v4205_v45  ;;  %v4246_v44 = vld [vmem:[#allocation8 + $0x9f8] sm:$0xff] }
 0x3ee   :  { %7599 = vmatpush1.bf16.msra.mxu1 %v8522_v49  ;;  %7436 = vmatprep.subr.bf16.mxu0 %v8529_v9  ;;  %v8571_v49 = vcombine.high %v4202_v48, %v4206_v53  ;;  %v4209_v9 = vld [vmem:[#allocation8 + $0x8d0] sm:$0xff] }
 0x3ef   :  { %7600 = vmatprep.subr.bf16.mxu1 %v8531_v52  ;;  %v4213_v52 = vld [vmem:[#allocation8 + $0x8f0] sm:$0xff] }
 0x3f0   :  { %v8577_v27 = vcombine.high %v4209_v9, %v4213_v52 }
 0x3f1   :  { %7437 = vmatpush1.bf16.msra.mxu0 %v8528_v2  ;;  %v8579_v2 = vcombine.high %v4210_v56, %v4214_v0 }
 0x3f2   :  { %7601 = vmatpush1.bf16.msra.mxu1 %v8530_v3  ;;  %7438 = vmatprep.subr.bf16.mxu0 %v8537_v4  ;;  %v4217_v3 = vld [vmem:[#allocation8 + $0x910] sm:$0xff] }
 0x3f3   :  { %7602 = vmatprep.subr.bf16.mxu1 %v8539_v5  ;;  %v4221_v4 = vld [vmem:[#allocation8 + $0x930] sm:$0xff]  ;;  %v4218_v5 = vld [vmem:[#allocation8 + $0x918] sm:$0xff] }
 0x3f4   :  { %v8585_v6 = vcombine.high %v4217_v3, %v4221_v4  ;;  %v8587_v13 = vcombine.high %v4218_v5, %v4222_v59  ;;  %v8584_v22 = vcombine.low %v4217_v3, %v4221_v4  ;;  %v8586_v62 = vcombine.low %v4218_v5, %v4222_v59 }
 0x3f5   :  { %7439 = vmatpush1.bf16.msra.mxu0 %v8536_v17  ;;  %v4225_v17 = vld [vmem:[#allocation8 + $0x950] sm:$0xff] }
 0x3f6   :  { %7603 = vmatpush1.bf16.msra.mxu1 %v8538_v11  ;;  %7440 = vmatprep.subr.bf16.mxu0 %v8545_v20  ;;  %v4229_v11 = vld [vmem:[#allocation8 + $0x970] sm:$0xff]  ;;  %v4226_v20 = vld [vmem:[#allocation8 + $0x958] sm:$0xff] }
 0x3f7   :  { %7604 = vmatprep.subr.bf16.mxu1 %v8547_v21  ;;  %v4230_v21 = vld [vmem:[#allocation8 + $0x978] sm:$0xff]  ;;  %v8593_v24 = vcombine.high %v4225_v17, %v4229_v11  ;;  %v8592_v38 = vcombine.low %v4225_v17, %v4229_v11 }
 0x3f8   :  { %v8595_v33 = vcombine.high %v4226_v20, %v4230_v21  ;;  %v8594_v40 = vcombine.low %v4226_v20, %v4230_v21 }
 0x3f9   :  { %7441 = vmatpush1.bf16.msra.mxu0 %v8544_v34  ;;  %v4233_v34 = vld [vmem:[#allocation8 + $0x990] sm:$0xff] }
 0x3fa   :  { %7605 = vmatpush1.bf16.msra.mxu1 %v8546_v15  ;;  %7451 = vmatprep.subr.bf16.mxu0 %v8553_v35  ;;  %v4237_v15 = vld [vmem:[#allocation8 + $0x9b0] sm:$0xff]  ;;  %v4234_v35 = vld [vmem:[#allocation8 + $0x998] sm:$0xff] }
 0x3fb   :  { %7615 = vmatprep.subr.bf16.mxu1 %v8555_v37  ;;  %v4238_v37 = vld [vmem:[#allocation8 + $0x9b8] sm:$0xff]  ;;  %v8600_v45 = vcombine.low %v4233_v34, %v4237_v15 }
 0x3fc   :  { %7443 = vmatmul.mubr.bf16.vlgmr.msra.gmra.mrb[12].mxu0 %v9335_v54  ;;  %v8603_v8 = vcombine.high %v4234_v35, %v4238_v37 }
 0x3fd   :  { %7607 = vmatmul.mubr.bf16.vlgmr.msra.gmra.mrb[12].mxu1 %v9335_v54  ;;  %7452 = vmatpush1.bf16.msra.mxu0 %v8552_v41  ;;  %v8570_v54 = vcombine.low %v4202_v48, %v4206_v53  ;;  %v8601_v41 = vcombine.high %v4233_v34, %v4237_v15 }
 0x3fe   :  { %7483 = vmatprep.mubr.bf16.mxu0 %v9355_v55  ;;  %7616 = vmatpush1.bf16.msra.mxu1 %v8554_v31  ;;  %v4245_v31 = vld [vmem:[#allocation8 + $0x9f0] sm:$0xff] }
 0x3ff   :  { %7647 = vmatprep.mubr.bf16.mxu1 %v9355_v55  ;;  %7453 = vmatprep.subr.bf16.mxu0 %v8561_v43  ;;  %v8576_v55 = vcombine.low %v4209_v9, %v4213_v52  ;;  %v4242_v43 = vld [vmem:[#allocation8 + $0x9d8] sm:$0xff]  ;;  %v8609_v48 = vcombine.high %v4241_v42, %v4245_v31  ;;  %v8608_v9 = vcombine.low %v4241_v42, %v4245_v31 }
 0x400   :  { %7617 = vmatprep.subr.bf16.mxu1 %v8563_v46  ;;  %v8602_v46 = vcombine.low %v4234_v35, %v4238_v37  ;;  %v8611_v53 = vcombine.high %v4242_v43, %v4246_v44  ;;  %v8610_v52 = vcombine.low %v4242_v43, %v4246_v44 }
 0x401   :  { %7454 = vmatpush1.bf16.msra.mxu0 %v8560_v51  ;;  %v4249_v51 = vld [vmem:[#allocation8 + $0xa10] sm:$0xff] }
 0x402   :  { %7618 = vmatpush1.bf16.msra.mxu1 %v8562_v63  ;;  %7455 = vmatprep.subr.bf16.mxu0 %v8569_v18  ;;  %v4253_v63 = vld [vmem:[#allocation8 + $0xa30] sm:$0xff]  ;;  %v4250_v18 = vld [vmem:[#allocation8 + $0xa18] sm:$0xff] }
 0x403   :  { %7619 = vmatprep.subr.bf16.mxu1 %v8571_v49  ;;  %v4254_v49 = vld [vmem:[#allocation8 + $0xa38] sm:$0xff]  ;;  %v8617_v56 = vcombine.high %v4249_v51, %v4253_v63  ;;  %v8616_v3 = vcombine.low %v4249_v51, %v4253_v63 }
 0x404   :  { %v8619_v0 = vcombine.high %v4250_v18, %v4254_v49  ;;  %v8618_v4 = vcombine.low %v4250_v18, %v4254_v49 }
 0x405   :  { %7456 = vmatpush1.bf16.msra.mxu0 %v8568_v57  ;;  %v4257_v57 = vld [vmem:[#allocation8 + $0xa50] sm:$0xff] }
 0x406   :  { %7620 = vmatpush1.bf16.msra.mxu1 %v8570_v54  ;;  %7457 = vmatprep.subr.bf16.mxu0 %v8577_v27  ;;  %v4261_v54 = vld [vmem:[#allocation8 + $0xa70] sm:$0xff]  ;;  %v4258_v27 = vld [vmem:[#allocation8 + $0xa58] sm:$0xff] }
 0x407   :  { %7621 = vmatprep.subr.bf16.mxu1 %v8579_v2  ;;  %v4262_v2 = vld [vmem:[#allocation8 + $0xa78] sm:$0xff]  ;;  %v8625_v5 = vcombine.high %v4257_v57, %v4261_v54  ;;  %v8624_v17 = vcombine.low %v4257_v57, %v4261_v54 }
 0x408   :  { %v8627_v59 = vcombine.high %v4258_v27, %v4262_v2  ;;  %v8626_v11 = vcombine.low %v4258_v27, %v4262_v2 }
 0x409   :  { %7458 = vmatpush1.bf16.msra.mxu0 %v8576_v55  ;;  %v4265_v55 = vld [vmem:[#allocation8 + $0xa90] sm:$0xff] }
 0x40a   :  { %7622 = vmatpush1.bf16.msra.mxu1 %v8578_v36  ;;  %7459 = vmatprep.subr.bf16.mxu0 %v8585_v6  ;;  %v4269_v36 = vld [vmem:[#allocation8 + $0xab0] sm:$0xff]  ;;  %v4266_v6 = vld [vmem:[#allocation8 + $0xa98] sm:$0xff] }
 0x40b   :  { %7623 = vmatprep.subr.bf16.mxu1 %v8587_v13  ;;  %v4270_v13 = vld [vmem:[#allocation8 + $0xab8] sm:$0xff]  ;;  %v8633_v20 = vcombine.high %v4265_v55, %v4269_v36  ;;  %v8632_v34 = vcombine.low %v4265_v55, %v4269_v36 }
 0x40c   :  { %v8635_v21 = vcombine.high %v4266_v6, %v4270_v13  ;;  %v8634_v15 = vcombine.low %v4266_v6, %v4270_v13 }
 0x40d   :  { %7460 = vmatpush1.bf16.msra.mxu0 %v8584_v22  ;;  %v4273_v22 = vld [vmem:[#allocation8 + $0xad0] sm:$0xff] }
 0x40e   :  { %7624 = vmatpush1.bf16.msra.mxu1 %v8586_v62  ;;  %7461 = vmatprep.subr.bf16.mxu0 %v8593_v24  ;;  %v4277_v62 = vld [vmem:[#allocation8 + $0xaf0] sm:$0xff]  ;;  %v4274_v24 = vld [vmem:[#allocation8 + $0xad8] sm:$0xff] }
 0x40f   :  { %7625 = vmatprep.subr.bf16.mxu1 %v8595_v33  ;;  %v4278_v33 = vld [vmem:[#allocation8 + $0xaf8] sm:$0xff]  ;;  %v8641_v35 = vcombine.high %v4273_v22, %v4277_v62  ;;  %v8640_v42 = vcombine.low %v4273_v22, %v4277_v62 }
 0x410   :  { %v8643_v37 = vcombine.high %v4274_v24, %v4278_v33  ;;  %v8642_v31 = vcombine.low %v4274_v24, %v4278_v33 }
 0x411   :  { %7462 = vmatpush1.bf16.msra.mxu0 %v8592_v38  ;;  %v4281_v38 = vld [vmem:[#allocation8 + $0xb10] sm:$0xff] }
 0x412   :  { %7626 = vmatpush1.bf16.msra.mxu1 %v8594_v40  ;;  %7463 = vmatprep.subr.bf16.mxu0 %v8601_v41  ;;  %v4285_v40 = vld [vmem:[#allocation8 + $0xb30] sm:$0xff]  ;;  %v4282_v41 = vld [vmem:[#allocation8 + $0xb18] sm:$0xff] }
 0x413   :  { %7627 = vmatprep.subr.bf16.mxu1 %v8603_v8  ;;  %v4286_v8 = vld [vmem:[#allocation8 + $0xb38] sm:$0xff]  ;;  %v8649_v43 = vcombine.high %v4281_v38, %v4285_v40  ;;  %v8648_v51 = vcombine.low %v4281_v38, %v4285_v40 }
 0x414   :  { %v8651_v44 = vcombine.high %v4282_v41, %v4286_v8  ;;  %v8650_v63 = vcombine.low %v4282_v41, %v4286_v8  ;;  %v4326_v38 = vld [vmem:[#allocation8 + $0xc78] sm:$0xff]  ;;  %v4329_v8 = vld [vmem:[#allocation8 + $0xc90] sm:$0xff] }
 0x415   :  { %7464 = vmatpush1.bf16.msra.mxu0 %v8600_v45  ;;  %v4289_v45 = vld [vmem:[#allocation8 + $0xb50] sm:$0xff] }
 0x416   :  { %7628 = vmatpush1.bf16.msra.mxu1 %v8602_v46  ;;  %7465 = vmatprep.subr.bf16.mxu0 %v8609_v48  ;;  %v4293_v46 = vld [vmem:[#allocation8 + $0xb70] sm:$0xff]  ;;  %v4290_v48 = vld [vmem:[#allocation8 + $0xb58] sm:$0xff] }
 0x417   :  { %7629 = vmatprep.subr.bf16.mxu1 %v8611_v53  ;;  %v4294_v53 = vld [vmem:[#allocation8 + $0xb78] sm:$0xff]  ;;  %v8657_v18 = vcombine.high %v4289_v45, %v4293_v46  ;;  %v8656_v57 = vcombine.low %v4289_v45, %v4293_v46 }
 0x418   :  { %v8659_v49 = vcombine.high %v4290_v48, %v4294_v53  ;;  %v8658_v54 = vcombine.low %v4290_v48, %v4294_v53 }
 0x419   :  { %7466 = vmatpush1.bf16.msra.mxu0 %v8608_v9  ;;  %v4297_v9 = vld [vmem:[#allocation8 + $0xb90] sm:$0xff] }
 0x41a   :  { %7630 = vmatpush1.bf16.msra.mxu1 %v8610_v52  ;;  %7467 = vmatprep.subr.bf16.mxu0 %v8617_v56  ;;  %v4301_v52 = vld [vmem:[#allocation8 + $0xbb0] sm:$0xff]  ;;  %v4298_v56 = vld [vmem:[#allocation8 + $0xb98] sm:$0xff] }
 0x41b   :  { %7631 = vmatprep.subr.bf16.mxu1 %v8619_v0  ;;  %v4302_v0 = vld [vmem:[#allocation8 + $0xbb8] sm:$0xff]  ;;  %v8665_v27 = vcombine.high %v4297_v9, %v4301_v52  ;;  %v8664_v55 = vcombine.low %v4297_v9, %v4301_v52 }
 0x41c   :  { %v8667_v2 = vcombine.high %v4298_v56, %v4302_v0  ;;  %v8666_v36 = vcombine.low %v4298_v56, %v4302_v0  ;;  %v4345_v0 = vld [vmem:[#allocation8 + $0xd10] sm:$0xff] }
 0x41d   :  { %7468 = vmatpush1.bf16.msra.mxu0 %v8616_v3  ;;  %v4305_v3 = vld [vmem:[#allocation8 + $0xbd0] sm:$0xff] }
 0x41e   :  { %7632 = vmatpush1.bf16.msra.mxu1 %v8618_v4  ;;  %7469 = vmatprep.subr.bf16.mxu0 %v8625_v5  ;;  %v4309_v4 = vld [vmem:[#allocation8 + $0xbf0] sm:$0xff]  ;;  %v4306_v5 = vld [vmem:[#allocation8 + $0xbd8] sm:$0xff] }
 0x41f   :  { %7633 = vmatprep.subr.bf16.mxu1 %v8627_v59  ;;  %v4310_v59 = vld [vmem:[#allocation8 + $0xbf8] sm:$0xff]  ;;  %v8673_v6 = vcombine.high %v4305_v3, %v4309_v4  ;;  %v8672_v22 = vcombine.low %v4305_v3, %v4309_v4 }
 0x420   :  { %v8675_v13 = vcombine.high %v4306_v5, %v4310_v59  ;;  %v8674_v62 = vcombine.low %v4306_v5, %v4310_v59  ;;  %v4353_v5 = vld [vmem:[#allocation8 + $0xd50] sm:$0xff] }
 0x421   :  { %7470 = vmatpush1.bf16.msra.mxu0 %v8624_v17  ;;  %v4313_v17 = vld [vmem:[#allocation8 + $0xc10] sm:$0xff] }
 0x422   :  { %7634 = vmatpush1.bf16.msra.mxu1 %v8626_v11  ;;  %7471 = vmatprep.subr.bf16.mxu0 %v8633_v20  ;;  %v4317_v11 = vld [vmem:[#allocation8 + $0xc30] sm:$0xff]  ;;  %v4314_v20 = vld [vmem:[#allocation8 + $0xc18] sm:$0xff] }
 0x423   :  { %7635 = vmatprep.subr.bf16.mxu1 %v8635_v21  ;;  %v4318_v21 = vld [vmem:[#allocation8 + $0xc38] sm:$0xff]  ;;  %v8681_v24 = vcombine.high %v4313_v17, %v4317_v11  ;;  %v4357_v59 = vld [vmem:[#allocation8 + $0xd70] sm:$0xff] }
 0x424   :  { %v8683_v33 = vcombine.high %v4314_v20, %v4318_v21  ;;  %v8682_v40 = vcombine.low %v4314_v20, %v4318_v21  ;;  %v4361_v21 = vld [vmem:[#allocation8 + $0xd90] sm:$0xff] }
 0x425   :  { %7472 = vmatpush1.bf16.msra.mxu0 %v8632_v34  ;;  %v4321_v34 = vld [vmem:[#allocation8 + $0xc50] sm:$0xff] }
 0x426   :  { %7636 = vmatpush1.bf16.msra.mxu1 %v8634_v15  ;;  %7473 = vmatprep.subr.bf16.mxu0 %v8641_v35  ;;  %v4325_v15 = vld [vmem:[#allocation8 + $0xc70] sm:$0xff]  ;;  %v8680_v35 = vcombine.low %v4313_v17, %v4317_v11  ;;  %v8721_v11 = vcombine.high %v4353_v5, %v4357_v59 }
 0x427   :  { %7637 = vmatprep.subr.bf16.mxu1 %v8643_v37  ;;  %v4322_v37 = vld [vmem:[#allocation8 + $0xc58] sm:$0xff]  ;;  %v8689_v41 = vcombine.high %v4321_v34, %v4325_v15  ;;  %v8688_v45 = vcombine.low %v4321_v34, %v4325_v15 }
 0x428   :  { %v8690_v46 = vcombine.low %v4322_v37, %v4326_v38  ;;  %v4366_v34 = vld [vmem:[#allocation8 + $0xdb8] sm:$0xff] }
 0x429   :  { %7474 = vmatpush1.bf16.msra.mxu0 %v8640_v42  ;;  %v4333_v42 = vld [vmem:[#allocation8 + $0xcb0] sm:$0xff] }
 0x42a   :  { %7638 = vmatpush1.bf16.msra.mxu1 %v8642_v31  ;;  %7475 = vmatprep.subr.bf16.mxu0 %v8649_v43  ;;  %v8691_v31 = vcombine.high %v4322_v37, %v4326_v38  ;;  %v4330_v43 = vld [vmem:[#allocation8 + $0xc98] sm:$0xff]  ;;  %v8697_v48 = vcombine.high %v4329_v8, %v4333_v42  ;;  %v8696_v9 = vcombine.low %v4329_v8, %v4333_v42  ;;  %v9404_v38 = vld [vmem:[#allocation8 + $0xdd0] sm:$0xff] }
 0x42b   :  { %7639 = vmatprep.subr.bf16.mxu1 %v8651_v44  ;;  %v4334_v44 = vld [vmem:[#allocation8 + $0xcb8] sm:$0xff]  ;;  %v8720_v37 = vcombine.low %v4353_v5, %v4357_v59 }
 0x42c   :  { %v8699_v53 = vcombine.high %v4330_v43, %v4334_v44  ;;  %v9408_v8 = vld [vmem:[#allocation8 + $0xdf8] sm:$0xff] }
 0x42d   :  { %7476 = vmatpush1.bf16.msra.mxu0 %v8648_v51  ;;  %v4337_v51 = vld [vmem:[#allocation8 + $0xcd0] sm:$0xff]  ;;  %v4378_v59 = vld [vmem:[#allocation8 + $0xe18] sm:$0xff] }
 0x42e   :  { %7640 = vmatpush1.bf16.msra.mxu1 %v8650_v63  ;;  %7477 = vmatprep.subr.bf16.mxu0 %v8657_v18  ;;  %v4341_v63 = vld [vmem:[#allocation8 + $0xcf0] sm:$0xff]  ;;  %v4338_v18 = vld [vmem:[#allocation8 + $0xcd8] sm:$0xff] }
 0x42f   :  { %7641 = vmatprep.subr.bf16.mxu1 %v8659_v49  ;;  %v4342_v49 = vld [vmem:[#allocation8 + $0xcf8] sm:$0xff]  ;;  %v8705_v52 = vcombine.high %v4337_v51, %v4341_v63 }
 0x430   :  { %v8707_v56 = vcombine.high %v4338_v18, %v4342_v49 }
 0x431   :  { %7478 = vmatpush1.bf16.msra.mxu0 %v8656_v57  ;;  %v4349_v57 = vld [vmem:[#allocation8 + $0xd30] sm:$0xff] }
 0x432   :  { %7642 = vmatpush1.bf16.msra.mxu1 %v8658_v54  ;;  %7479 = vmatprep.subr.bf16.mxu0 %v8665_v27  ;;  %v4346_v54 = vld [vmem:[#allocation8 + $0xd18] sm:$0xff]  ;;  %v8713_v3 = vcombine.high %v4345_v0, %v4349_v57 }
 0x433   :  { %7643 = vmatprep.subr.bf16.mxu1 %v8667_v2  ;;  %v4350_v27 = vld [vmem:[#allocation8 + $0xd38] sm:$0xff]  ;;  %v8706_v2 = vcombine.low %v4338_v18, %v4342_v49 }
 0x434   :  { %v8715_v4 = vcombine.high %v4346_v54, %v4350_v27  ;;  %v8714_v17 = vcombine.low %v4346_v54, %v4350_v27 }
 0x435   :  { %7480 = vmatpush1.bf16.msra.mxu0 %v8664_v55  ;;  %v4354_v55 = vld [vmem:[#allocation8 + $0xd58] sm:$0xff] }
 0x436   :  { %7644 = vmatpush1.bf16.msra.mxu1 %v8666_v36  ;;  %7481 = vmatprep.subr.bf16.mxu0 %v8673_v6  ;;  %v4358_v36 = vld [vmem:[#allocation8 + $0xd78] sm:$0xff]  ;;  %v8712_v6 = vcombine.low %v4345_v0, %v4349_v57 }
 0x437   :  { %7645 = vmatprep.subr.bf16.mxu1 %v8675_v13  ;;  %v9390_v13 = vld [vmem:[#allocation10] sm:$0xff]  ;;  %v8723_v20 = vcombine.high %v4354_v55, %v4358_v36 }
 0x438   :  { %v4448_v15 = vrot.slane %v9390_v13, %v645_v23 }
 0x439   :  { %7482 = vmatpush1.bf16.msra.mxu0 %v8672_v22  ;;  %v4365_v22 = vld [vmem:[#allocation8 + $0xdb0] sm:$0xff] }
 0x43a   :  { %7646 = vmatpush1.bf16.msra.mxu1 %v8674_v62  ;;  %7492 = vmatprep.subr.bf16.mxu0 %v8681_v24  ;;  %v4444_v62 = vrot.slane %v9390_v13, %v641_v16  ;;  %v4452_v24 = vrot.slane %v9390_v13, %v649_v50  ;;  %v8722_v16 = vcombine.low %v4354_v55, %v4358_v36  ;;  %v9406_v50 = vld [vmem:[#allocation8 + $0xdd8] sm:$0xff] }
 0x43b   :  { %7656 = vmatprep.subr.bf16.mxu1 %v8683_v33  ;;  %v4362_v33 = vld [vmem:[#allocation8 + $0xd98] sm:$0xff]  ;;  %v8738_v5 = vcombine.low %v9406_v50, %v9408_v8 }
 0x43c   :  { %7484 = vmatmul.mubr.bf16.vlgmr.msra.gmra.mrb[12].mxu0 %v9357_v60  ;;  %v8731_v23 = vcombine.high %v4362_v33, %v4366_v34  ;;  %v4382_v55 = vld [vmem:[#allocation8 + $0xe38] sm:$0xff] }
 0x43d   :  { %7648 = vmatmul.mubr.bf16.vlgmr.msra.gmra.mrb[12].mxu1 %v9357_v60  ;;  %7493 = vmatpush1.bf16.msra.mxu0 %v8680_v35  ;;  %v8698_v60 = vcombine.low %v4330_v43, %v4334_v44  ;;  %v4456_v35 = vrot.slane %v9390_v13, %v653_v1 }
 0x43e   :  { %7524 = vmatprep.mubr.bf16.mxu0 %v9361_v14  ;;  %7657 = vmatpush1.bf16.msra.mxu1 %v8682_v40  ;;  %v8729_v40 = vcombine.high %v4361_v21, %v4365_v22 }
 0x43f   :  { %7688 = vmatprep.mubr.bf16.mxu1 %v9361_v14  ;;  %7494 = vmatprep.subr.bf16.mxu0 %v8689_v41  ;;  %v8704_v14 = vcombine.low %v4337_v51, %v4341_v63  ;;  %v4373_v41 = vld [vmem:[#allocation8 + $0xdf0] sm:$0xff] }
 0x440   :  { %7658 = vmatprep.subr.bf16.mxu1 %v8691_v31  ;;  %v8737_v49 = vcombine.high %v9404_v38, %v4373_v41 }
 0x441   :  { %7495 = vmatpush1.bf16.msra.mxu0 %v8688_v45 }
 0x442   :  { %7659 = vmatpush1.bf16.msra.mxu1 %v8690_v46  ;;  %7496 = vmatprep.subr.bf16.mxu0 %v8697_v48  ;;  %v8728_v46 = vcombine.low %v4361_v21, %v4365_v22  ;;  %v8730_v48 = vcombine.low %v4362_v33, %v4366_v34  ;;  %v4389_v33 = vld [vmem:[#allocation8 + $0xe70] sm:$0xff] }
 0x443   :  { %7660 = vmatprep.subr.bf16.mxu1 %v8699_v53 }
 0x445   :  { %7497 = vmatpush1.bf16.msra.mxu0 %v8696_v9  ;;  %v8739_v9 = vcombine.high %v9406_v50, %v9408_v8  ;;  %v4394_v50 = vld [vmem:[#allocation8 + $0xe98] sm:$0xff] }
 0x446   :  { %7661 = vmatpush1.bf16.msra.mxu1 %v8698_v60  ;;  %7498 = vmatprep.subr.bf16.mxu0 %v8705_v52  ;;  %v4377_v60 = vld [vmem:[#allocation8 + $0xe10] sm:$0xff]  ;;  %v4398_v8 = vld [vmem:[#allocation8 + $0xeb8] sm:$0xff] }
 0x447   :  { %7662 = vmatprep.subr.bf16.mxu1 %v8707_v56  ;;  %v4381_v52 = vld [vmem:[#allocation8 + $0xe30] sm:$0xff] }
 0x448   :  { %v8745_v22 = vcombine.high %v4377_v60, %v4381_v52 }
 0x449   :  { %7499 = vmatpush1.bf16.msra.mxu0 %v8704_v14 }
 0x44a   :  { %7663 = vmatpush1.bf16.msra.mxu1 %v8706_v2  ;;  %7500 = vmatprep.subr.bf16.mxu0 %v8713_v3 }
 0x44b   :  { %7664 = vmatprep.subr.bf16.mxu1 %v8715_v4  ;;  %v8736_v4 = vcombine.low %v9404_v38, %v4373_v41  ;;  %v8744_v38 = vcombine.low %v4377_v60, %v4381_v52  ;;  %v4397_v41 = vld [vmem:[#allocation8 + $0xeb0] sm:$0xff]  ;;  %v4414_v60 = vld [vmem:[#allocation8 + $0xf38] sm:$0xff] }
 0x44d   :  { %7501 = vmatpush1.bf16.msra.mxu0 %v8712_v6 }
 0x44e   :  { %7665 = vmatpush1.bf16.msra.mxu1 %v8714_v17  ;;  %7502 = vmatprep.subr.bf16.mxu0 %v8721_v11 }
 0x44f   :  { %v7198_v42 = vpop.f32.mrb[8].mxu0  ;;  %v7362_v31 = vpop.f32.mrb[8].mxu1  ;;  %7666 = vmatprep.subr.bf16.mxu1 %v8723_v20 }
 0x450   :  { %v8812_v43 = vadd.f32 %v7198_v42, %v4444_v62  ;;  %v8814_v44 = vadd.f32 %v7362_v31, %v4452_v24  ;;  %v7200_v45 = vpop.f32.mrb[9].mxu0  ;;  %v7364_v1 = vpop.f32.mrb[9].mxu1  ;;  %v8747_v62 = vcombine.high %v4378_v59, %v4382_v55  ;;  %v4385_v24 = vld [vmem:[#allocation8 + $0xe50] sm:$0xff] }
 0x451   :  { %v8813_v53 = vadd.f32 %v7200_v45, %v4448_v15  ;;  %v8815_v51 = vadd.f32 %v7364_v1, %v4456_v35  ;;  %v7202_v63 = vpop.f32.mrb[10].mxu0  ;;  %v7366_v18 = vpop.f32.mrb[10].mxu1  ;;  %7503 = vmatpush1.bf16.msra.mxu0 %v8720_v37  ;;  %v4386_v37 = vld [vmem:[#allocation8 + $0xe58] sm:$0xff]  ;;  %v8752_v42 = vcombine.low %v4385_v24, %v4389_v33  ;;  %v4405_v45 = vld [vmem:[#allocation8 + $0xef0] sm:$0xff] }
 0x452   :  { %vm7697_vm8 = vcmp.gt.f32.partialorder %v8812_v43, 0.0  ;;  %v7705_v56 = vmul.f32 0.01, %v8812_v43  ;;  %vm7699_vm9 = vcmp.gt.f32.partialorder %v8814_v44, 0.0  ;;  %v7707_v0 = vmul.f32 0.01, %v8814_v44  ;;  %7667 = vmatpush1.bf16.msra.mxu1 %v8722_v16  ;;  %7504 = vmatprep.subr.bf16.mxu0 %v8729_v40 }
 0x453   :  { %vm7698_vm10 = vcmp.gt.f32.partialorder %v8813_v53, 0.0  ;;  %v7706_v57 = vmul.f32 0.01, %v8813_v53  ;;  %vm7700_vm11 = vcmp.gt.f32.partialorder %v8815_v51, 0.0  ;;  %v7708_v54 = vmul.f32 0.01, %v8815_v51  ;;  %7668 = vmatprep.subr.bf16.mxu1 %v8731_v23 }
 0x454   :  { %v7713_v27 = vsel %vm7697_vm8, %v8812_v43, %v7705_v56  ;;  %v7715_v14 = vsel %vm7699_vm9, %v8814_v44, %v7707_v0  ;;  %v7203_v2 = vpop.f32.mrb[11].mxu0  ;;  %v7367_v3 = vpop.f32.mrb[11].mxu1  ;;  %v4393_v40 = vld [vmem:[#allocation8 + $0xe90] sm:$0xff]  ;;  %v8763_v43 = vcombine.high %v4394_v50, %v4398_v8  ;;  %v4402_v1 = vld [vmem:[#allocation8 + $0xed8] sm:$0xff] }
 0x455   :  { %v7721_v36 = vadd.f32 %v7713_v27, %v9195_v10  ;;  %v7723_v6 = vadd.f32 %v7715_v14, %v9219_v30  ;;  %v7714_v17 = vsel %vm7698_vm10, %v8813_v53, %v7706_v57  ;;  %v7716_v11 = vsel %vm7700_vm11, %v8815_v51, %v7708_v54  ;;  %7505 = vmatpush1.bf16.msra.mxu0 %v8728_v46  ;;  %v4390_v30 = vld [vmem:[#allocation8 + $0xe78] sm:$0xff]  ;;  %v4401_v44 = vld [vmem:[#allocation8 + $0xed0] sm:$0xff] }
 0x456   :  { %v7722_v20 = vadd.f32 %v7714_v17, %v9185_v58  ;;  %v7724_v21 = vadd.f32 %v7716_v11, %v9203_v19  ;;  %7669 = vmatpush1.bf16.msra.mxu1 %v8730_v48  ;;  %7506 = vmatprep.subr.bf16.mxu0 %v8737_v49  ;;  %v8746_v58 = vcombine.low %v4378_v59, %v4382_v55  ;;  %v4406_v46 = vld [vmem:[#allocation8 + $0xef8] sm:$0xff]  ;;  %v4409_v18 = vld [vmem:[#allocation8 + $0xf10] sm:$0xff] }
 0x457   :  { %7670 = vmatprep.subr.bf16.mxu1 %v8739_v9  ;;  %v8753_v19 = vcombine.high %v4385_v24, %v4389_v33  ;;  %v8755_v16 = vcombine.high %v4386_v37, %v4390_v30  ;;  %v8754_v31 = vcombine.low %v4386_v37, %v4390_v30  ;;  %v8761_v23 = vcombine.high %v4393_v40, %v4397_v41  ;;  %v4413_v49 = vld [vmem:[#allocation8 + $0xf30] sm:$0xff]  ;;  %v4410_v9 = vld [vmem:[#allocation8 + $0xf18] sm:$0xff] }
 0x458   :  { %v7737_v34 = vcombine.low %v7721_v36, %v7722_v20  ;;  %v7738_v15 = vcombine.high %v7721_v36, %v7722_v20  ;;  %v7739_v35 = vcombine.low %v7723_v6, %v7724_v21  ;;  %v7740_v10 = vcombine.high %v7723_v6, %v7724_v21  ;;  %v4417_v54 = vld [vmem:[#allocation8 + $0xf50] sm:$0xff]  ;;  %v4418_v14 = vld [vmem:[#allocation8 + $0xf58] sm:$0xff] }
 0x459   :  { %7507 = vmatpush1.bf16.msra.mxu0 %v8736_v4  ;;  %v8760_v48 = vcombine.low %v4393_v40, %v4397_v41  ;;  %v8762_v53 = vcombine.low %v4394_v50, %v4398_v8  ;;  %v8769_v51 = vcombine.high %v4401_v44, %v4405_v45  ;;  %v8771_v63 = vcombine.high %v4402_v1, %v4406_v46  ;;  %v4421_v27 = vld [vmem:[#allocation8 + $0xf70] sm:$0xff]  ;;  %v4422_v2 = vld [vmem:[#allocation8 + $0xf78] sm:$0xff] }
 0x45a   :  { %7753 = vst [vmem:[#allocation11] sm:$0xff] %v7737_v34  ;;  %7757 = vst [vmem:[#allocation11 + $0x20] sm:$0xff] %v7738_v15  ;;  %7671 = vmatpush1.bf16.msra.mxu1 %v8738_v5  ;;  %7508 = vmatprep.subr.bf16.mxu0 %v8745_v22  ;;  %v8768_v52 = vcombine.low %v4401_v44, %v4405_v45  ;;  %v8770_v56 = vcombine.low %v4402_v1, %v4406_v46  ;;  %v4425_v55 = vld [vmem:[#allocation8 + $0xf90] sm:$0xff]  ;;  %v4426_v6 = vld [vmem:[#allocation8 + $0xf98] sm:$0xff] }
 0x45b   :  { %7754 = vst [vmem:[#allocation11 + $0x8] sm:$0xff] %v7739_v35  ;;  %7758 = vst [vmem:[#allocation11 + $0x28] sm:$0xff] %v7740_v10  ;;  %7672 = vmatprep.subr.bf16.mxu1 %v8747_v62  ;;  %v8777_v0 = vcombine.high %v4409_v18, %v4413_v49  ;;  %v8779_v57 = vcombine.high %v4410_v9, %v4414_v60  ;;  %v8776_v3 = vcombine.low %v4409_v18, %v4413_v49  ;;  %v4429_v36 = vld [vmem:[#allocation8 + $0xfb0] sm:$0xff]  ;;  %v4430_v17 = vld [vmem:[#allocation8 + $0xfb8] sm:$0xff] }
 0x45c   :  { %v8778_v4 = vcombine.low %v4410_v9, %v4414_v60  ;;  %v8785_v5 = vcombine.high %v4417_v54, %v4421_v27  ;;  %v8787_v59 = vcombine.high %v4418_v14, %v4422_v2  ;;  %v8784_v11 = vcombine.low %v4417_v54, %v4421_v27  ;;  %v4433_v62 = vld [vmem:[#allocation8 + $0xfd0] sm:$0xff]  ;;  %v4434_v33 = vld [vmem:[#allocation8 + $0xfd8] sm:$0xff] }
 0x45d   :  { %7509 = vmatpush1.bf16.msra.mxu0 %v8744_v38  ;;  %v8786_v20 = vcombine.low %v4418_v14, %v4422_v2  ;;  %v8793_v21 = vcombine.high %v4425_v55, %v4429_v36  ;;  %v8795_v22 = vcombine.high %v4426_v6, %v4430_v17  ;;  %v4437_v24 = vld [vmem:[#allocation8 + $0xff0] sm:$0xff]  ;;  %v4438_v34 = vld [vmem:[#allocation8 + $0xff8] sm:$0xff]  ;;  %v8792_v15 = vcombine.low %v4425_v55, %v4429_v36 }
 0x45e   :  { %7673 = vmatpush1.bf16.msra.mxu1 %v8746_v58  ;;  %7510 = vmatprep.subr.bf16.mxu0 %v8753_v19  ;;  %v8794_v35 = vcombine.low %v4426_v6, %v4430_v17  ;;  %v8801_v10 = vcombine.high %v4433_v62, %v4437_v24  ;;  %v8803_v37 = vcombine.high %v4434_v33, %v4438_v34 }
 0x45f   :  { %7674 = vmatprep.subr.bf16.mxu1 %v8755_v16  ;;  %v8800_v30 = vcombine.low %v4433_v62, %v4437_v24  ;;  %v8802_v38 = vcombine.low %v4434_v33, %v4438_v34  ;;  %v4460_v58 = vrot.slane %v9390_v13, %v657_v26  ;;  %v4468_v19 = vrot.slane %v9390_v13, %v665_v25 }
 0x460   :  { %v4464_v16 = vrot.slane %v9390_v13, %v661_v47  ;;  %v4472_v40 = vrot.slane %v9390_v13, %v669_v28 }
 0x461   :  { %7511 = vmatpush1.bf16.msra.mxu0 %v8752_v42 }
 0x462   :  { %7675 = vmatpush1.bf16.msra.mxu1 %v8754_v31  ;;  %7512 = vmatprep.subr.bf16.mxu0 %v8761_v23 }
 0x463   :  { %7676 = vmatprep.subr.bf16.mxu1 %v8763_v43 }
 0x465   :  { %7513 = vmatpush1.bf16.msra.mxu0 %v8760_v48 }
 0x466   :  { %7677 = vmatpush1.bf16.msra.mxu1 %v8762_v53  ;;  %7514 = vmatprep.subr.bf16.mxu0 %v8769_v51 }
 0x467   :  { %7678 = vmatprep.subr.bf16.mxu1 %v8771_v63 }
 0x469   :  { %7515 = vmatpush1.bf16.msra.mxu0 %v8768_v52 }
 0x46a   :  { %7679 = vmatpush1.bf16.msra.mxu1 %v8770_v56  ;;  %7516 = vmatprep.subr.bf16.mxu0 %v8777_v0 }
 0x46b   :  { %7680 = vmatprep.subr.bf16.mxu1 %v8779_v57 }
 0x46d   :  { %7517 = vmatpush1.bf16.msra.mxu0 %v8776_v3 }
 0x46e   :  { %7681 = vmatpush1.bf16.msra.mxu1 %v8778_v4  ;;  %7518 = vmatprep.subr.bf16.mxu0 %v8785_v5 }
 0x46f   :  { %7682 = vmatprep.subr.bf16.mxu1 %v8787_v59 }
 0x471   :  { %7519 = vmatpush1.bf16.msra.mxu0 %v8784_v11 }
 0x472   :  { %7683 = vmatpush1.bf16.msra.mxu1 %v8786_v20  ;;  %7520 = vmatprep.subr.bf16.mxu0 %v8793_v21 }
 0x473   :  { %7684 = vmatprep.subr.bf16.mxu1 %v8795_v22 }
 0x475   :  { %7521 = vmatpush1.bf16.msra.mxu0 %v8792_v15 }
 0x476   :  { %7685 = vmatpush1.bf16.msra.mxu1 %v8794_v35  ;;  %7522 = vmatprep.subr.bf16.mxu0 %v8801_v10 }
 0x477   :  { %7686 = vmatprep.subr.bf16.mxu1 %v8803_v37 }
 0x479   :  { %7523 = vmatpush1.bf16.msra.mxu0 %v8800_v30 }
 0x47a   :  { %7687 = vmatpush1.bf16.msra.mxu1 %v8802_v38 }
 0x47c   :  { %7525 = vmatmul.mubr.bf16.vlgmr.msra.gmra.mrb[12].mxu0 %v9372_v29 }
 0x47d   :  { %7689 = vmatmul.mubr.bf16.vlgmr.msra.gmra.mrb[12].mxu1 %v9372_v29 }
 0x54f   :  { %v7526_v41 = vpop.f32.mrb[12].mxu0 }
 0x550   :  { %v8816_v50 = vadd.f32 %v7526_v41, %v4460_v58  ;;  %v7690_v8 = vpop.f32.mrb[12].mxu1  ;;  %v7528_v29 = vpop.f32.mrb[13].mxu0 }
 0x551   :  { %v8818_v42 = vadd.f32 %v7690_v8, %v4468_v19  ;;  %v8817_v31 = vadd.f32 %v7528_v29, %v4464_v16  ;;  %v7692_v23 = vpop.f32.mrb[13].mxu1  ;;  %v7530_v26 = vpop.f32.mrb[14].mxu0 }
 0x552   :  { %vm7701_vm12 = vcmp.gt.f32.partialorder %v8816_v50, 0.0  ;;  %v7709_v43 = vmul.f32 0.01, %v8816_v50  ;;  %v8819_v44 = vadd.f32 %v7692_v23, %v4472_v40  ;;  %v7694_v25 = vpop.f32.mrb[14].mxu1  ;;  %v7531_v45 = vpop.f32.mrb[15].mxu0 }
 0x553   :  { %vm7703_vm13 = vcmp.gt.f32.partialorder %v8818_v42, 0.0  ;;  %v7711_v1 = vmul.f32 0.01, %v8818_v42  ;;  %vm7702_vm14 = vcmp.gt.f32.partialorder %v8817_v31, 0.0  ;;  %v7710_v47 = vmul.f32 0.01, %v8817_v31 }
 0x554   :  { %v7717_v32 = vsel %vm7701_vm12, %v8816_v50, %v7709_v43  ;;  %vm7704_vm15 = vcmp.gt.f32.partialorder %v8819_v44, 0.0  ;;  %v7712_v28 = vmul.f32 0.01, %v8819_v44  ;;  %v7695_v13 = vpop.f32.mrb[15].mxu1 }
 0x555   :  { %v7725_v46 = vadd.f32 %v7717_v32, %v9243_v61  ;;  %v7719_v48 = vsel %vm7703_vm13, %v8818_v42, %v7711_v1  ;;  %v7718_v53 = vsel %vm7702_vm14, %v8817_v31, %v7710_v47 }
 0x556   :  { %v7727_v51 = vadd.f32 %v7719_v48, %v9267_v12  ;;  %v7726_v63 = vadd.f32 %v7718_v53, %v9227_v39  ;;  %v7720_v18 = vsel %vm7704_vm15, %v8819_v44, %v7712_v28 }
 0x557   :  { %v7728_v49 = vadd.f32 %v7720_v18, %v9251_v7 }
 0x558   :  { %v7741_v9 = vcombine.low %v7725_v46, %v7726_v63  ;;  %v7742_v60 = vcombine.high %v7725_v46, %v7726_v63 }
 0x559   :  { %v7743_v52 = vcombine.low %v7727_v51, %v7728_v49  ;;  %v7744_v56 = vcombine.high %v7727_v51, %v7728_v49 }
 0x55a   :  { %7755 = vst [vmem:[#allocation11 + $0x10] sm:$0xff] %v7741_v9  ;;  %7759 = vst [vmem:[#allocation11 + $0x30] sm:$0xff] %v7742_v60 }
 0x55b   :  { %7756 = vst [vmem:[#allocation11 + $0x18] sm:$0xff] %v7743_v52  ;;  %7760 = vst [vmem:[#allocation11 + $0x38] sm:$0xff] %v7744_v56 }
 0x55c   :  { %7765 = vsyncadd [#allocation4], 512  ;;  %s9072_s4 = smov [#allocation11]  }
 0x55d   :  { %s7766_s29 = sshll.u32 %s9072_s4, 4  ;;  %s7767_s29 = int_to_ptr.vmem [resolvable:$true] %s7766_s29 }
 0x55e   :  { %s9035_s3 = scalar_lea.vmem %s7767_s29, 512  ;;  %s9039_s21 = scalar_lea.vmem %s7767_s29, 1024 }
 0x55f   :  { %p9036_p12 = scmp.ne.s32.totalorder %s7767_s29, %s9035_s3  ;;  %p9040_p13 = scmp.lt.s32.totalorder %s7767_s29, %s7767_s29 }
 0x560   :  { %p9041_p0 = scmp.lt.s32.totalorder %s9039_s21, %s9035_s3 }
 0x562   :  { %p9042_p1 = por %p9041_p0, %p9040_p13 }
 0x564   :  { %p9043_p2 = pnand %p9042_p1, %p9036_p12 }
 0x566   :  { %9046 = shalt.err (!%p9043_p2)
}
 0x567   :  { %s9047_s9 = scalar_lea.hbm %s9458_s5, 512 }
 0x568   :  { %p9048_p3 = scmp.ne.s32.totalorder %s9458_s5, %s9047_s9  ;;  %p9051_p4 = scmp.lt.u32.totalorder %s9047_s9, %s9458_s5 }
 0x56a   :  { %p9053_p5 = pnand %p9051_p4, %p9048_p3 }
 0x56c   :  { %9056 = shalt.err (!%p9053_p5)
}
 0x56d   :  { %7772 = dma.vmem_to_hbm [thread:$0]  %s7767_s29, 512, %s9458_s5, [#allocation4], %s9067_s30, %s9067_s30, %s9068_s6  }
 0x56e   :  { %9063 = dma.done.wait [#allocation4], 1024  }
 0x56f   :  { %9064 = vsyncadd [#allocation4], 4294966272 }
 0x570   :  { %7776 = vsyncpa [#allocation3], 1 }
 0x571   :  { %7777 = vsyncpa [#allocation6], 1 }
 0x572   :  { %7778 = vsyncpa [#allocation9], 1 }
 0x573   :  { %7779 = vsyncpa [#allocation4], 1 }

</bundles_post_ra>
